<compile_context>
chip_gen: v7x
topology: tpu7x:2x2x1
jax: 0.10.0
libtpu: 0.0.40
codegen_flags: <defaults>
</compile_context>

<pallas_src>
import functools

import jax
import jax.numpy as jnp
from jax.experimental import pallas as pl
from jax.experimental.pallas import tpu as pltpu


# --------------------------------- the kernel --------------------------------

def darnn_kernel(x2_ref, y2_ref, wA_ref, dhw_ref, out_ref, *, off, B, N, T, H, E, D):
    f32 = jnp.float32
    Tm1 = T - 1
    NT = N * T        # flattened (driving-series n, attention column t') lane width
    TE = Tm1 * E      # flattened (encoder step j, feature e) lane width for the decoder

    def w(name):
        r0, nr, nc = off[name]                    # static python ints
        return wA_ref[r0:r0 + nr, 0:nc]           # static ref slice -> plain load

    def dot(a, b):
        return jnp.dot(a, b, preferred_element_type=f32)

    def sigmoid(v):
        return 0.5 * (jnp.tanh(0.5 * v) + 1.0)    # EUP path, numerically stable

    def softmax_lanes(s):
        m = jnp.max(s, axis=-1, keepdims=True)
        e = jnp.exp(s - m)
        return e / jnp.sum(e, axis=-1, keepdims=True)

    def lstm_update(gates, c, hs):
        i = sigmoid(gates[:, 0 * hs:1 * hs])
        f = sigmoid(gates[:, 1 * hs:2 * hs])
        g = jnp.tanh(gates[:, 2 * hs:3 * hs])
        o = sigmoid(gates[:, 3 * hs:4 * hs])
        c_new = f * c + i * g
        h_new = o * jnp.tanh(c_new)
        return h_new, c_new

    # scalar constants packed in one row
    cst = w("consts")                              # (1, 8)
    fs_ab, ss_ab, d_a2b = cst[:, 0:1], cst[:, 1:2], cst[:, 2:3]
    w_fc_y, fc_b, ff_b = cst[:, 3:4], cst[:, 4:5], cst[:, 5:6]

    x2 = x2_ref[...]                               # (B, (T-1)*N), [b, t*N + n]
    y2 = y2_ref[...]                               # (B, T-1)

    # =========================== FirstStage encoder ===========================
    # loop-invariant linear_input (+ biases) over all (n, t') lanes: one contraction
    lin0 = dot(x2, w("fs_lin")) + w("fs_pre_b")    # (B, N*T)

    fs_hw = w("fs_hw")                             # (H, N*T + 4H)   fused h weights
    fs_cw = w("fs_cw")                             # (H, N*T)        tiled c weights
    fs_wih = w("fs_wih")                           # (N, 4H)
    fs_A = w("fs_A")                               # (N*T, N)        attn weights + seg-sum
    fs_bg = w("fs_bg")                             # (1, 4H)

    h = jnp.zeros((B, H), f32)
    c = jnp.zeros((B, H), f32)
    wi_list = []
    for t in range(Tm1):
        if t == 0:
            pre = lin0                             # h = c = 0 -> their terms vanish
            gates = fs_bg
        else:
            hm = dot(h, fs_hw)                     # one wide MXU matmul for h
            pre = lin0 + hm[:, :NT] + dot(c, fs_cw)
            gates = hm[:, NT:] + fs_bg
        z = jnp.tanh(pre)                          # (B, N*T) -- single vreg pass
        aw = softmax_lanes(dot(z, fs_A) + fs_ab)   # (B, N)
        x_t = x2[:, t * N:(t + 1) * N]             # (B, N) = input_data[:, t, :]
        wi = aw * x_t
        wi_list.append(wi)
        for n in range(N):                         # K = N = 4: keep on the VPU
            gates = gates + wi[:, n:n + 1] * fs_wih[n:n + 1, :]
        h, c = lstm_update(gates, c, H)

    # =========================== SecondStage encoder ==========================
    WI = jnp.concatenate(wi_list, axis=1)          # (B, (T-1)*N), [b, t*N + n]
    lfs0 = dot(WI, w("ss_M")) + w("ss_pre_b")      # loop-invariant linear_FS (+ biases)
    wfsy = w("ss_wfsy")                            # (1, N*T)  y-history column, tiled

    ss_hw = w("ss_hw")                             # (E, N*T + 4E + E)
    ss_cw = w("ss_cw")                             # (E, N*T)
    ss_wih = w("ss_wih")                           # (N, 4E)
    ss_A = w("ss_A")                               # (N*T, N)
    ss_bg = w("ss_bg")                             # (1, 4E)
    GE = NT + 4 * E

    h = jnp.zeros((B, E), f32)
    c = jnp.zeros((B, E), f32)
    enc_list = []
    v_list = []
    for t in range(Tm1):
        y_t = y2[:, t:t + 1]                       # (B, 1) current y_history step
        if t == 0:
            pre = lfs0 + y_t * wfsy
            gates = ss_bg
        else:
            hm = dot(h, ss_hw)                     # lh-part | gates-part | dec-attn proj
            pre = lfs0 + y_t * wfsy + hm[:, :NT] + dot(c, ss_cw)
            gates = hm[:, NT:GE] + ss_bg
            v_list.append(hm[:, GE:GE + E])        # = enc_{t-1} @ W_attn1_enc (fused)
        z = jnp.tanh(pre)
        aw = softmax_lanes(dot(z, ss_A) + ss_ab)
        wi2 = aw * wi_list[t]                      # attn_weights * FS_output[:, t, :]
        for n in range(N):
            gates = gates + wi2[:, n:n + 1] * ss_wih[n:n + 1, :]
        h, c = lstm_update(gates, c, E)
        enc_list.append(h)
    v_list.append(dot(h, w("d_We")))               # projection of the last encoded state

    # ================================ Decoder =================================
    Vb = jnp.concatenate(v_list, axis=1) + w("dec_vb")   # (B, (T-1)*E) + tiled attn bias
    dhw = dhw_ref[...]                             # (D, (T-1)*E + 4D)
    dec_cw = w("dec_cw")                           # (D, (T-1)*E)
    dec_A = w("dec_A")                             # ((T-1)*E, T-1)
    d_wih = w("dec_wih")                           # (1, 4D)
    d_bg = w("dec_bg")                             # (1, 4D)
    wfc_ctx = w("w_fc_ctx")                        # (1, E)
    wff_h = w("w_ff_h")                            # (1, D)
    wff_ctx = w("w_ff_ctx")                        # (1, E)

    hd = jnp.zeros((B, D), f32)
    cd = jnp.zeros((B, D), f32)
    context = jnp.zeros((B, E), f32)
    for t in range(Tm1):
        if t == 0:
            pre = Vb
            gates = d_bg
        else:
            hm = dot(hd, dhw)
            pre = Vb + hm[:, :TE] + dot(cd, dec_cw)
            gates = hm[:, TE:] + d_bg
        z = jnp.tanh(pre)                          # (B, (T-1)*E) -- single vreg pass
        aw = softmax_lanes(dot(z, dec_A) + d_a2b)  # (B, T-1)
        context = aw[:, 0:1] * enc_list[0]
        for j in range(1, Tm1):
            context = context + aw[:, j:j + 1] * enc_list[j]
        y_t = y2[:, t:t + 1]
        y_tild = (jnp.sum(context * wfc_ctx, axis=-1, keepdims=True)
                  + y_t * w_fc_y + fc_b)           # (B, 1)
        gates = gates + y_tild * d_wih             # LSTM input size 1: VPU FMA
        hd, cd = lstm_update(gates, cd, D)

    out_ref[...] = (jnp.sum(hd * wff_h, axis=-1, keepdims=True)
                    + jnp.sum(context * wff_ctx, axis=-1, keepdims=True)
                    + ff_b)


# ------------------------------ host-side packing -----------------------------

def _pack_slab(entries, width=128):
    """Stack 2-D f32 arrays (cols <= width) into one (rows, width) slab.

    Each entry starts at a sublane offset that is a multiple of 8; returns the slab and a
    dict name -> (row_offset, rows, cols) of static python ints.
    """
    offs = {}
    blocks = []
    r = 0
    for name, a in entries:
        a = jnp.asarray(a, jnp.float32)
        nr, nc = a.shape
        assert nc <= width, (name, a.shape)
        offs[name] = (r, nr, nc)
        nr_pad = ((nr + 7) // 8) * 8
        blocks.append(jnp.pad(a, ((0, nr_pad - nr), (0, width - nc))))
        r += nr_pad
    return jnp.concatenate(blocks, axis=0), offs


def pack_params(params, N, T, H, E, D):
    """Host-side fusing / tiling / packing of all module parameters (done once)."""
    f32 = jnp.float32
    Tm1 = T - 1
    NT = N * T
    TE = Tm1 * E

    def tile_cols(a, n):
        return jnp.tile(jnp.asarray(a, f32), (1, n))

    # ----- FirstStage -----
    fs_lh_Wh = params["fs_lh_Wt"][:H, :]                       # (H, T)
    fs_lh_Wc = params["fs_lh_Wt"][H:, :]                       # (H, T)
    fs_hw = jnp.concatenate([tile_cols(fs_lh_Wh, N), params["fs_Whh_t"]], axis=1)
    fs_cw = tile_cols(fs_lh_Wc, N)
    fs_lin = jnp.zeros((Tm1 * N, NT), f32)                     # block-diag linear_input
    fs_A = jnp.zeros((NT, N), f32)                             # attn weight + seg-reduce
    for n in range(N):
        fs_lin = fs_lin.at[n:Tm1 * N:N, n * T:(n + 1) * T].set(params["fs_li_Wt"])
        fs_A = fs_A.at[n * T:(n + 1) * T, n].set(params["fs_aw"][0])
    fs_pre_b = tile_cols(params["fs_li_b"] + params["fs_lh_b"], N)

    # ----- SecondStage -----
    ss_lh_Wh = params["ss_lh_Wt"][:E, :]
    ss_lh_Wc = params["ss_lh_Wt"][E:, :]
    ss_hw = jnp.concatenate([tile_cols(ss_lh_Wh, N), params["ss_Whh_t"],
                             params["d_a1e_Wt"]], axis=1)      # + fused dec-attn proj
    ss_cw = tile_cols(ss_lh_Wc, N)
    ss_M = jnp.zeros((Tm1 * N, NT), f32)                       # block-diag linear_FS
    ss_A = jnp.zeros((NT, N), f32)
    for n in range(N):
        ss_M = ss_M.at[n:Tm1 * N:N, n * T:(n + 1) * T].set(params["ss_fs_Wt"][:Tm1, :])
        ss_A = ss_A.at[n * T:(n + 1) * T, n].set(params["ss_aw"][0])
    ss_pre_b = tile_cols(params["ss_fs_b"] + params["ss_lh_b"], N)
    ss_wfsy = tile_cols(params["ss_fs_Wt"][Tm1:Tm1 + 1, :], N)

    # ----- Decoder -----
    d_a1_Wh = params["d_a1hc_Wt"][:D, :]                       # (D, E)
    d_a1_Wc = params["d_a1hc_Wt"][D:, :]
    dec_hw = jnp.concatenate([tile_cols(d_a1_Wh, Tm1), params["d_Whh_t"]], axis=1)  # (D, TE+4D)
    dec_cw = tile_cols(d_a1_Wc, Tm1)
    dec_A = jnp.zeros((TE, Tm1), f32)
    for j in range(Tm1):
        dec_A = dec_A.at[j * E:(j + 1) * E, j].set(params["d_a2w"][0])
    dec_vb = tile_cols(params["d_a1_b"], Tm1)

    consts = jnp.concatenate(
        [params["fs_ab"], params["ss_ab"], params["d_a2b"],
         params["d_fc_w"][:, E:E + 1], params["d_fc_b"], params["d_ff_b"],
         jnp.zeros((1, 2), f32)], axis=1)                      # (1, 8)

    entries = [
        ("fs_hw", fs_hw), ("fs_cw", fs_cw), ("fs_wih", params["fs_Wih_t"]),
        ("fs_lin", fs_lin), ("fs_A", fs_A),
        ("fs_pre_b", fs_pre_b), ("fs_bg", params["fs_b"]),
        ("ss_hw", ss_hw), ("ss_cw", ss_cw), ("ss_wih", params["ss_Wih_t"]),
        ("ss_M", ss_M), ("ss_A", ss_A),
        ("ss_pre_b", ss_pre_b), ("ss_wfsy", ss_wfsy), ("ss_bg", params["ss_b"]),
        ("dec_cw", dec_cw), ("dec_A", dec_A), ("dec_vb", dec_vb),
        ("d_We", params["d_a1e_Wt"]), ("dec_wih", params["d_Wih"]), ("dec_bg", params["d_b"]),
        ("w_fc_ctx", params["d_fc_w"][:, :E]),
        ("w_ff_h", params["d_ff_w"][:, :D]),
        ("w_ff_ctx", params["d_ff_w"][:, D:D + E]),
        ("consts", consts),
    ]
    slab, off = _pack_slab(entries)
    return slab, jnp.asarray(dec_hw, f32), off


def init_params(key, N, T, H, E, D):
    """Deterministic synthetic parameters with the shapes implied by the module.

    Weights are stored already transposed to (in_features, out_features); LSTM biases are
    b_ih + b_hh folded into a single (1, 4*hidden) row (for a real torch export, sum them).
    """
    Tm1 = T - 1
    keys = iter(jax.random.split(key, 64))

    def nrm(shape, scale=0.1):
        return (scale * jax.random.normal(next(keys), shape)).astype(jnp.float32)

    p = {}
    # FirstStage: linear_input (T-1->T), linear_hidden (2H->T), attn (T->1), LSTM(N->H)
    p["fs_li_Wt"] = nrm((Tm1, T));       p["fs_li_b"] = nrm((1, T))
    p["fs_lh_Wt"] = nrm((2 * H, T));     p["fs_lh_b"] = nrm((1, T))
    p["fs_aw"] = nrm((1, T));            p["fs_ab"] = nrm((1, 1))
    p["fs_Wih_t"] = nrm((N, 4 * H));     p["fs_Whh_t"] = nrm((H, 4 * H))
    p["fs_b"] = nrm((1, 4 * H))
    # SecondStage: linear_hidden (2H->T), linear_FS (T->T), attn (T->1), LSTM(N->E)
    p["ss_lh_Wt"] = nrm((2 * H, T));     p["ss_lh_b"] = nrm((1, T))
    p["ss_fs_Wt"] = nrm((T, T));         p["ss_fs_b"] = nrm((1, T))
    p["ss_aw"] = nrm((1, T));            p["ss_ab"] = nrm((1, 1))
    p["ss_Wih_t"] = nrm((N, 4 * E));     p["ss_Whh_t"] = nrm((E, 4 * E))
    p["ss_b"] = nrm((1, 4 * E))
    # Decoder: attn = Linear(2D+E -> E) -> Tanh -> Linear(E -> 1); LSTM(1 -> D);
    #          fc (E+1 -> 1) with normal_() weights; fc_final (D+E -> 1)
    p["d_a1hc_Wt"] = nrm((2 * D, E));    p["d_a1e_Wt"] = nrm((E, E))
    p["d_a1_b"] = nrm((1, E))
    p["d_a2w"] = nrm((1, E));            p["d_a2b"] = nrm((1, 1))
    p["d_Wih"] = nrm((1, 4 * D));        p["d_Whh_t"] = nrm((D, 4 * D))
    p["d_b"] = nrm((1, 4 * D))
    p["d_fc_w"] = nrm((1, E + 1), scale=1.0)   # mirrors fc.weight.data.normal_()
    p["d_fc_b"] = nrm((1, 1))
    p["d_ff_w"] = nrm((1, D + E));       p["d_ff_b"] = nrm((1, 1))
    return p


def model_forward(x, y_history, params):
    B, Tm1, N = x.shape
    T = Tm1 + 1
    H = params["fs_Whh_t"].shape[0]
    E = params["ss_Whh_t"].shape[0]
    D = params["d_Whh_t"].shape[0]
    assert H == E, "module requires FS_hidden_size == SS_hidden_size"

    BT = 8                                      # one f32 sublane tile of batch per grid step
    B_pad = ((B + BT - 1) // BT) * BT
    pad = B_pad - B

    # lane-flat data layout: x2[b, t*N + n] = x[b, t, n]
    x2 = jnp.reshape(x, (B, Tm1 * N)).astype(jnp.float32)
    y2 = y_history.astype(jnp.float32)
    if pad:
        x2 = jnp.pad(x2, ((0, pad), (0, 0)))
        y2 = jnp.pad(y2, ((0, pad), (0, 0)))

    slab, dec_hw, off = pack_params(params, N, T, H, E, D)

    kern = functools.partial(darnn_kernel, off=off, B=BT, N=N, T=T, H=H, E=E, D=D)
    out = pl.pallas_call(
        kern,
        out_shape=jax.ShapeDtypeStruct((B_pad, 1), jnp.float32),
        grid=(B_pad // BT,),
        in_specs=[
            pl.BlockSpec((BT, Tm1 * N), lambda b: (b, 0)),
            pl.BlockSpec((BT, Tm1), lambda b: (b, 0)),
            pl.BlockSpec(slab.shape, lambda b: (0, 0)),
            pl.BlockSpec(dec_hw.shape, lambda b: (0, 0)),
        ],
        out_specs=pl.BlockSpec((BT, 1), lambda b: (b, 0)),
        compiler_params=pltpu.CompilerParams(
            dimension_semantics=("parallel",)),
    )(x2, y2, slab, dec_hw)
    return out[:B]


if __name__ == "__main__":
    # Small config consistent with the module:
    #   input_size=4, T=8, FS_hidden_size=SS_hidden_size=16, decoder_hidden_size=16
    B, N, T = 2, 4, 8
    H = E = D = 16

    key = jax.random.PRNGKey(0)
    kx, ky, kp = jax.random.split(key, 3)
    x = jax.random.normal(kx, (B, T - 1, N), dtype=jnp.float32)
    y_history = jax.random.normal(ky, (B, T - 1), dtype=jnp.float32)
    params = init_params(kp, N, T, H, E, D)

    out = model_forward(x, y_history, params)
    out = jax.block_until_ready(out)
    assert out.shape == (B, 1) and out.dtype == jnp.float32
    print("KERNEL_OK")
</pallas_src>

<mosaic_0001>
module attributes {stable_mosaic.version = 11 : i64} {
  func.func @darnn_kernel(%arg0: i32, %arg1: memref<8x28xf32, #tpu.memory_space<vmem>>, %arg2: memref<8x7xf32, #tpu.memory_space<vmem>>, %arg3: memref<448x128xf32, #tpu.memory_space<vmem>>, %arg4: memref<16x176xf32, #tpu.memory_space<vmem>>, %arg5: memref<8x1xf32, #tpu.memory_space<vmem>>) attributes {dimension_semantics = [#tpu.dimension_semantics<parallel>], iteration_bounds = array<i64: 1>, scalar_prefetch = 0 : i64, scratch_operands = 0 : i64, tpu.core_type = #tpu.core_type<tc>, window_params = [{transform_indices = @transform_0, window_bounds = array<i64: 8, 28>}, {transform_indices = @transform_1, window_bounds = array<i64: 8, 7>}, {pipeline_mode = #tpu.pipeline_mode<synchronous>, transform_indices = @transform_2, window_bounds = array<i64: 448, 128>}, {pipeline_mode = #tpu.pipeline_mode<synchronous>, transform_indices = @transform_3, window_bounds = array<i64: 16, 176>}, {transform_indices = @transform_4, window_bounds = array<i64: 8, 1>}]} {
    %c440 = arith.constant 440 : index
    %c0 = arith.constant 0 : index
    %0 = vector.load %arg3[%c440, %c0] : memref<448x128xf32, #tpu.memory_space<vmem>>, vector<1x8xf32>
    %1 = vector.extract_strided_slice %0 {offsets = [0, 0], sizes = [1, 1], strides = [1, 1]} : vector<1x8xf32> to vector<1x1xf32>
    %2 = vector.extract_strided_slice %0 {offsets = [0, 1], sizes = [1, 1], strides = [1, 1]} : vector<1x8xf32> to vector<1x1xf32>
    %3 = vector.extract_strided_slice %0 {offsets = [0, 2], sizes = [1, 1], strides = [1, 1]} : vector<1x8xf32> to vector<1x1xf32>
    %4 = vector.extract_strided_slice %0 {offsets = [0, 3], sizes = [1, 1], strides = [1, 1]} : vector<1x8xf32> to vector<1x1xf32>
    %5 = vector.extract_strided_slice %0 {offsets = [0, 4], sizes = [1, 1], strides = [1, 1]} : vector<1x8xf32> to vector<1x1xf32>
    %6 = vector.extract_strided_slice %0 {offsets = [0, 5], sizes = [1, 1], strides = [1, 1]} : vector<1x8xf32> to vector<1x1xf32>
    %c0_0 = arith.constant 0 : index
    %c0_1 = arith.constant 0 : index
    %7 = vector.load %arg1[%c0_0, %c0_1] : memref<8x28xf32, #tpu.memory_space<vmem>>, vector<8x28xf32>
    %c0_2 = arith.constant 0 : index
    %c0_3 = arith.constant 0 : index
    %8 = vector.load %arg2[%c0_2, %c0_3] : memref<8x7xf32, #tpu.memory_space<vmem>>, vector<8x7xf32>
    %c40 = arith.constant 40 : index
    %c0_4 = arith.constant 0 : index
    %9 = vector.load %arg3[%c40, %c0_4] : memref<448x128xf32, #tpu.memory_space<vmem>>, vector<28x32xf32>
    %cst = arith.constant dense<0.000000e+00> : vector<8x32xf32>
    %10 = tpu.matmul %7, %9, %cst {dimension_numbers = #tpu.dot_dimension_numbers<[1], [0], [0], [1], [0, 0, 1, 1], [], []>} : vector<8x28xf32>, vector<28x32xf32>, vector<8x32xf32> -> vector<8x32xf32>
    %c104 = arith.constant 104 : index
    %c0_5 = arith.constant 0 : index
    %11 = vector.load %arg3[%c104, %c0_5] : memref<448x128xf32, #tpu.memory_space<vmem>>, vector<1x32xf32>
    %12 = vector.broadcast %11 : vector<1x32xf32> to vector<8x32xf32>
    %13 = arith.addf %10, %12 : vector<8x32xf32>
    %c0_6 = arith.constant 0 : index
    %c0_7 = arith.constant 0 : index
    %14 = vector.load %arg3[%c0_6, %c0_7] : memref<448x128xf32, #tpu.memory_space<vmem>>, vector<16x96xf32>
    %c16 = arith.constant 16 : index
    %c0_8 = arith.constant 0 : index
    %15 = vector.load %arg3[%c16, %c0_8] : memref<448x128xf32, #tpu.memory_space<vmem>>, vector<16x32xf32>
    %c32 = arith.constant 32 : index
    %c0_9 = arith.constant 0 : index
    %16 = vector.load %arg3[%c32, %c0_9] : memref<448x128xf32, #tpu.memory_space<vmem>>, vector<4x64xf32>
    %c72 = arith.constant 72 : index
    %c0_10 = arith.constant 0 : index
    %17 = vector.load %arg3[%c72, %c0_10] : memref<448x128xf32, #tpu.memory_space<vmem>>, vector<32x4xf32>
    %c112 = arith.constant 112 : index
    %c0_11 = arith.constant 0 : index
    %18 = vector.load %arg3[%c112, %c0_11] : memref<448x128xf32, #tpu.memory_space<vmem>>, vector<1x64xf32>
    %cst_12 = arith.constant 0.000000e+00 : f32
    %19 = vector.broadcast %cst_12 : f32 to vector<8x16xf32>
    %20 = math.tanh %13 : vector<8x32xf32>
    %cst_13 = arith.constant dense<0.000000e+00> : vector<8x4xf32>
    %21 = tpu.matmul %20, %17, %cst_13 {dimension_numbers = #tpu.dot_dimension_numbers<[1], [0], [0], [1], [0, 0, 1, 1], [], []>} : vector<8x32xf32>, vector<32x4xf32>, vector<8x4xf32> -> vector<8x4xf32>
    %22 = vector.broadcast %1 : vector<1x1xf32> to vector<8x4xf32>
    %23 = arith.addf %21, %22 : vector<8x4xf32>
    %cst_14 = arith.constant dense<0xFF800000> : vector<8xf32>
    %24 = vector.multi_reduction <maximumf>, %23, %cst_14 [1] : vector<8x4xf32> to vector<8xf32>
    %25 = vector.shape_cast %24 : vector<8xf32> to vector<8x1xf32>
    %26 = vector.broadcast %25 : vector<8x1xf32> to vector<8x4xf32>
    %27 = arith.subf %23, %26 : vector<8x4xf32>
    %28 = math.exp %27 : vector<8x4xf32>
    %cst_15 = arith.constant dense<0.000000e+00> : vector<8xf32>
    %29 = vector.multi_reduction <add>, %28, %cst_15 [1] : vector<8x4xf32> to vector<8xf32>
    %30 = vector.shape_cast %29 : vector<8xf32> to vector<8x1xf32>
    %31 = vector.broadcast %30 : vector<8x1xf32> to vector<8x4xf32>
    %32 = arith.divf %28, %31 : vector<8x4xf32>
    %33 = vector.extract_strided_slice %7 {offsets = [0, 0], sizes = [8, 4], strides = [1, 1]} : vector<8x28xf32> to vector<8x4xf32>
    %34 = arith.mulf %32, %33 : vector<8x4xf32>
    %35 = vector.extract_strided_slice %34 {offsets = [0, 0], sizes = [8, 1], strides = [1, 1]} : vector<8x4xf32> to vector<8x1xf32>
    %36 = vector.extract_strided_slice %16 {offsets = [0, 0], sizes = [1, 64], strides = [1, 1]} : vector<4x64xf32> to vector<1x64xf32>
    %37 = vector.broadcast %35 : vector<8x1xf32> to vector<8x64xf32>
    %38 = vector.broadcast %36 : vector<1x64xf32> to vector<8x64xf32>
    %39 = arith.mulf %37, %38 : vector<8x64xf32>
    %40 = vector.broadcast %18 : vector<1x64xf32> to vector<8x64xf32>
    %41 = arith.addf %40, %39 : vector<8x64xf32>
    %42 = vector.extract_strided_slice %34 {offsets = [0, 1], sizes = [8, 1], strides = [1, 1]} : vector<8x4xf32> to vector<8x1xf32>
    %43 = vector.extract_strided_slice %16 {offsets = [1, 0], sizes = [1, 64], strides = [1, 1]} : vector<4x64xf32> to vector<1x64xf32>
    %44 = vector.broadcast %42 : vector<8x1xf32> to vector<8x64xf32>
    %45 = vector.broadcast %43 : vector<1x64xf32> to vector<8x64xf32>
    %46 = arith.mulf %44, %45 : vector<8x64xf32>
    %47 = arith.addf %41, %46 : vector<8x64xf32>
    %48 = vector.extract_strided_slice %34 {offsets = [0, 2], sizes = [8, 1], strides = [1, 1]} : vector<8x4xf32> to vector<8x1xf32>
    %49 = vector.extract_strided_slice %16 {offsets = [2, 0], sizes = [1, 64], strides = [1, 1]} : vector<4x64xf32> to vector<1x64xf32>
    %50 = vector.broadcast %48 : vector<8x1xf32> to vector<8x64xf32>
    %51 = vector.broadcast %49 : vector<1x64xf32> to vector<8x64xf32>
    %52 = arith.mulf %50, %51 : vector<8x64xf32>
    %53 = arith.addf %47, %52 : vector<8x64xf32>
    %54 = vector.extract_strided_slice %34 {offsets = [0, 3], sizes = [8, 1], strides = [1, 1]} : vector<8x4xf32> to vector<8x1xf32>
    %55 = vector.extract_strided_slice %16 {offsets = [3, 0], sizes = [1, 64], strides = [1, 1]} : vector<4x64xf32> to vector<1x64xf32>
    %56 = vector.broadcast %54 : vector<8x1xf32> to vector<8x64xf32>
    %57 = vector.broadcast %55 : vector<1x64xf32> to vector<8x64xf32>
    %58 = arith.mulf %56, %57 : vector<8x64xf32>
    %59 = arith.addf %53, %58 : vector<8x64xf32>
    %60 = vector.extract_strided_slice %59 {offsets = [0, 0], sizes = [8, 16], strides = [1, 1]} : vector<8x64xf32> to vector<8x16xf32>
    %cst_16 = arith.constant 5.000000e-01 : f32
    %61 = vector.broadcast %cst_16 : f32 to vector<8x16xf32>
    %62 = arith.mulf %61, %60 : vector<8x16xf32>
    %63 = math.tanh %62 : vector<8x16xf32>
    %cst_17 = arith.constant 1.000000e+00 : f32
    %64 = vector.broadcast %cst_17 : f32 to vector<8x16xf32>
    %65 = arith.addf %63, %64 : vector<8x16xf32>
    %cst_18 = arith.constant 5.000000e-01 : f32
    %66 = vector.broadcast %cst_18 : f32 to vector<8x16xf32>
    %67 = arith.mulf %66, %65 : vector<8x16xf32>
    %68 = vector.extract_strided_slice %59 {offsets = [0, 16], sizes = [8, 16], strides = [1, 1]} : vector<8x64xf32> to vector<8x16xf32>
    %cst_19 = arith.constant 5.000000e-01 : f32
    %69 = vector.broadcast %cst_19 : f32 to vector<8x16xf32>
    %70 = arith.mulf %69, %68 : vector<8x16xf32>
    %71 = math.tanh %70 : vector<8x16xf32>
    %cst_20 = arith.constant 1.000000e+00 : f32
    %72 = vector.broadcast %cst_20 : f32 to vector<8x16xf32>
    %73 = arith.addf %71, %72 : vector<8x16xf32>
    %cst_21 = arith.constant 5.000000e-01 : f32
    %74 = vector.broadcast %cst_21 : f32 to vector<8x16xf32>
    %75 = arith.mulf %74, %73 : vector<8x16xf32>
    %76 = vector.extract_strided_slice %59 {offsets = [0, 32], sizes = [8, 16], strides = [1, 1]} : vector<8x64xf32> to vector<8x16xf32>
    %77 = math.tanh %76 : vector<8x16xf32>
    %78 = vector.extract_strided_slice %59 {offsets = [0, 48], sizes = [8, 16], strides = [1, 1]} : vector<8x64xf32> to vector<8x16xf32>
    %cst_22 = arith.constant 5.000000e-01 : f32
    %79 = vector.broadcast %cst_22 : f32 to vector<8x16xf32>
    %80 = arith.mulf %79, %78 : vector<8x16xf32>
    %81 = math.tanh %80 : vector<8x16xf32>
    %cst_23 = arith.constant 1.000000e+00 : f32
    %82 = vector.broadcast %cst_23 : f32 to vector<8x16xf32>
    %83 = arith.addf %81, %82 : vector<8x16xf32>
    %cst_24 = arith.constant 5.000000e-01 : f32
    %84 = vector.broadcast %cst_24 : f32 to vector<8x16xf32>
    %85 = arith.mulf %84, %83 : vector<8x16xf32>
    %86 = arith.mulf %75, %19 : vector<8x16xf32>
    %87 = arith.mulf %67, %77 : vector<8x16xf32>
    %88 = arith.addf %86, %87 : vector<8x16xf32>
    %89 = math.tanh %88 : vector<8x16xf32>
    %90 = arith.mulf %85, %89 : vector<8x16xf32>
    %cst_25 = arith.constant dense<0.000000e+00> : vector<8x96xf32>
    %91 = tpu.matmul %90, %14, %cst_25 {dimension_numbers = #tpu.dot_dimension_numbers<[1], [0], [0], [1], [0, 0, 1, 1], [], []>} : vector<8x16xf32>, vector<16x96xf32>, vector<8x96xf32> -> vector<8x96xf32>
    %92 = vector.extract_strided_slice %91 {offsets = [0, 0], sizes = [8, 32], strides = [1, 1]} : vector<8x96xf32> to vector<8x32xf32>
    %93 = arith.addf %13, %92 : vector<8x32xf32>
    %cst_26 = arith.constant dense<0.000000e+00> : vector<8x32xf32>
    %94 = tpu.matmul %88, %15, %cst_26 {dimension_numbers = #tpu.dot_dimension_numbers<[1], [0], [0], [1], [0, 0, 1, 1], [], []>} : vector<8x16xf32>, vector<16x32xf32>, vector<8x32xf32> -> vector<8x32xf32>
    %95 = arith.addf %93, %94 : vector<8x32xf32>
    %96 = vector.extract_strided_slice %91 {offsets = [0, 32], sizes = [8, 64], strides = [1, 1]} : vector<8x96xf32> to vector<8x64xf32>
    %97 = vector.broadcast %18 : vector<1x64xf32> to vector<8x64xf32>
    %98 = arith.addf %96, %97 : vector<8x64xf32>
    %99 = math.tanh %95 : vector<8x32xf32>
    %cst_27 = arith.constant dense<0.000000e+00> : vector<8x4xf32>
    %100 = tpu.matmul %99, %17, %cst_27 {dimension_numbers = #tpu.dot_dimension_numbers<[1], [0], [0], [1], [0, 0, 1, 1], [], []>} : vector<8x32xf32>, vector<32x4xf32>, vector<8x4xf32> -> vector<8x4xf32>
    %101 = vector.broadcast %1 : vector<1x1xf32> to vector<8x4xf32>
    %102 = arith.addf %100, %101 : vector<8x4xf32>
    %cst_28 = arith.constant dense<0xFF800000> : vector<8xf32>
    %103 = vector.multi_reduction <maximumf>, %102, %cst_28 [1] : vector<8x4xf32> to vector<8xf32>
    %104 = vector.shape_cast %103 : vector<8xf32> to vector<8x1xf32>
    %105 = vector.broadcast %104 : vector<8x1xf32> to vector<8x4xf32>
    %106 = arith.subf %102, %105 : vector<8x4xf32>
    %107 = math.exp %106 : vector<8x4xf32>
    %cst_29 = arith.constant dense<0.000000e+00> : vector<8xf32>
    %108 = vector.multi_reduction <add>, %107, %cst_29 [1] : vector<8x4xf32> to vector<8xf32>
    %109 = vector.shape_cast %108 : vector<8xf32> to vector<8x1xf32>
    %110 = vector.broadcast %109 : vector<8x1xf32> to vector<8x4xf32>
    %111 = arith.divf %107, %110 : vector<8x4xf32>
    %112 = vector.extract_strided_slice %7 {offsets = [0, 4], sizes = [8, 4], strides = [1, 1]} : vector<8x28xf32> to vector<8x4xf32>
    %113 = arith.mulf %111, %112 : vector<8x4xf32>
    %114 = vector.extract_strided_slice %113 {offsets = [0, 0], sizes = [8, 1], strides = [1, 1]} : vector<8x4xf32> to vector<8x1xf32>
    %115 = vector.extract_strided_slice %16 {offsets = [0, 0], sizes = [1, 64], strides = [1, 1]} : vector<4x64xf32> to vector<1x64xf32>
    %116 = vector.broadcast %114 : vector<8x1xf32> to vector<8x64xf32>
    %117 = vector.broadcast %115 : vector<1x64xf32> to vector<8x64xf32>
    %118 = arith.mulf %116, %117 : vector<8x64xf32>
    %119 = arith.addf %98, %118 : vector<8x64xf32>
    %120 = vector.extract_strided_slice %113 {offsets = [0, 1], sizes = [8, 1], strides = [1, 1]} : vector<8x4xf32> to vector<8x1xf32>
    %121 = vector.extract_strided_slice %16 {offsets = [1, 0], sizes = [1, 64], strides = [1, 1]} : vector<4x64xf32> to vector<1x64xf32>
    %122 = vector.broadcast %120 : vector<8x1xf32> to vector<8x64xf32>
    %123 = vector.broadcast %121 : vector<1x64xf32> to vector<8x64xf32>
    %124 = arith.mulf %122, %123 : vector<8x64xf32>
    %125 = arith.addf %119, %124 : vector<8x64xf32>
    %126 = vector.extract_strided_slice %113 {offsets = [0, 2], sizes = [8, 1], strides = [1, 1]} : vector<8x4xf32> to vector<8x1xf32>
    %127 = vector.extract_strided_slice %16 {offsets = [2, 0], sizes = [1, 64], strides = [1, 1]} : vector<4x64xf32> to vector<1x64xf32>
    %128 = vector.broadcast %126 : vector<8x1xf32> to vector<8x64xf32>
    %129 = vector.broadcast %127 : vector<1x64xf32> to vector<8x64xf32>
    %130 = arith.mulf %128, %129 : vector<8x64xf32>
    %131 = arith.addf %125, %130 : vector<8x64xf32>
    %132 = vector.extract_strided_slice %113 {offsets = [0, 3], sizes = [8, 1], strides = [1, 1]} : vector<8x4xf32> to vector<8x1xf32>
    %133 = vector.extract_strided_slice %16 {offsets = [3, 0], sizes = [1, 64], strides = [1, 1]} : vector<4x64xf32> to vector<1x64xf32>
    %134 = vector.broadcast %132 : vector<8x1xf32> to vector<8x64xf32>
    %135 = vector.broadcast %133 : vector<1x64xf32> to vector<8x64xf32>
    %136 = arith.mulf %134, %135 : vector<8x64xf32>
    %137 = arith.addf %131, %136 : vector<8x64xf32>
    %138 = vector.extract_strided_slice %137 {offsets = [0, 0], sizes = [8, 16], strides = [1, 1]} : vector<8x64xf32> to vector<8x16xf32>
    %cst_30 = arith.constant 5.000000e-01 : f32
    %139 = vector.broadcast %cst_30 : f32 to vector<8x16xf32>
    %140 = arith.mulf %139, %138 : vector<8x16xf32>
    %141 = math.tanh %140 : vector<8x16xf32>
    %cst_31 = arith.constant 1.000000e+00 : f32
    %142 = vector.broadcast %cst_31 : f32 to vector<8x16xf32>
    %143 = arith.addf %141, %142 : vector<8x16xf32>
    %cst_32 = arith.constant 5.000000e-01 : f32
    %144 = vector.broadcast %cst_32 : f32 to vector<8x16xf32>
    %145 = arith.mulf %144, %143 : vector<8x16xf32>
    %146 = vector.extract_strided_slice %137 {offsets = [0, 16], sizes = [8, 16], strides = [1, 1]} : vector<8x64xf32> to vector<8x16xf32>
    %cst_33 = arith.constant 5.000000e-01 : f32
    %147 = vector.broadcast %cst_33 : f32 to vector<8x16xf32>
    %148 = arith.mulf %147, %146 : vector<8x16xf32>
    %149 = math.tanh %148 : vector<8x16xf32>
    %cst_34 = arith.constant 1.000000e+00 : f32
    %150 = vector.broadcast %cst_34 : f32 to vector<8x16xf32>
    %151 = arith.addf %149, %150 : vector<8x16xf32>
    %cst_35 = arith.constant 5.000000e-01 : f32
    %152 = vector.broadcast %cst_35 : f32 to vector<8x16xf32>
    %153 = arith.mulf %152, %151 : vector<8x16xf32>
    %154 = vector.extract_strided_slice %137 {offsets = [0, 32], sizes = [8, 16], strides = [1, 1]} : vector<8x64xf32> to vector<8x16xf32>
    %155 = math.tanh %154 : vector<8x16xf32>
    %156 = vector.extract_strided_slice %137 {offsets = [0, 48], sizes = [8, 16], strides = [1, 1]} : vector<8x64xf32> to vector<8x16xf32>
    %cst_36 = arith.constant 5.000000e-01 : f32
    %157 = vector.broadcast %cst_36 : f32 to vector<8x16xf32>
    %158 = arith.mulf %157, %156 : vector<8x16xf32>
    %159 = math.tanh %158 : vector<8x16xf32>
    %cst_37 = arith.constant 1.000000e+00 : f32
    %160 = vector.broadcast %cst_37 : f32 to vector<8x16xf32>
    %161 = arith.addf %159, %160 : vector<8x16xf32>
    %cst_38 = arith.constant 5.000000e-01 : f32
    %162 = vector.broadcast %cst_38 : f32 to vector<8x16xf32>
    %163 = arith.mulf %162, %161 : vector<8x16xf32>
    %164 = arith.mulf %153, %88 : vector<8x16xf32>
    %165 = arith.mulf %145, %155 : vector<8x16xf32>
    %166 = arith.addf %164, %165 : vector<8x16xf32>
    %167 = math.tanh %166 : vector<8x16xf32>
    %168 = arith.mulf %163, %167 : vector<8x16xf32>
    %cst_39 = arith.constant dense<0.000000e+00> : vector<8x96xf32>
    %169 = tpu.matmul %168, %14, %cst_39 {dimension_numbers = #tpu.dot_dimension_numbers<[1], [0], [0], [1], [0, 0, 1, 1], [], []>} : vector<8x16xf32>, vector<16x96xf32>, vector<8x96xf32> -> vector<8x96xf32>
    %170 = vector.extract_strided_slice %169 {offsets = [0, 0], sizes = [8, 32], strides = [1, 1]} : vector<8x96xf32> to vector<8x32xf32>
    %171 = arith.addf %13, %170 : vector<8x32xf32>
    %cst_40 = arith.constant dense<0.000000e+00> : vector<8x32xf32>
    %172 = tpu.matmul %166, %15, %cst_40 {dimension_numbers = #tpu.dot_dimension_numbers<[1], [0], [0], [1], [0, 0, 1, 1], [], []>} : vector<8x16xf32>, vector<16x32xf32>, vector<8x32xf32> -> vector<8x32xf32>
    %173 = arith.addf %171, %172 : vector<8x32xf32>
    %174 = vector.extract_strided_slice %169 {offsets = [0, 32], sizes = [8, 64], strides = [1, 1]} : vector<8x96xf32> to vector<8x64xf32>
    %175 = vector.broadcast %18 : vector<1x64xf32> to vector<8x64xf32>
    %176 = arith.addf %174, %175 : vector<8x64xf32>
    %177 = math.tanh %173 : vector<8x32xf32>
    %cst_41 = arith.constant dense<0.000000e+00> : vector<8x4xf32>
    %178 = tpu.matmul %177, %17, %cst_41 {dimension_numbers = #tpu.dot_dimension_numbers<[1], [0], [0], [1], [0, 0, 1, 1], [], []>} : vector<8x32xf32>, vector<32x4xf32>, vector<8x4xf32> -> vector<8x4xf32>
    %179 = vector.broadcast %1 : vector<1x1xf32> to vector<8x4xf32>
    %180 = arith.addf %178, %179 : vector<8x4xf32>
    %cst_42 = arith.constant dense<0xFF800000> : vector<8xf32>
    %181 = vector.multi_reduction <maximumf>, %180, %cst_42 [1] : vector<8x4xf32> to vector<8xf32>
    %182 = vector.shape_cast %181 : vector<8xf32> to vector<8x1xf32>
    %183 = vector.broadcast %182 : vector<8x1xf32> to vector<8x4xf32>
    %184 = arith.subf %180, %183 : vector<8x4xf32>
    %185 = math.exp %184 : vector<8x4xf32>
    %cst_43 = arith.constant dense<0.000000e+00> : vector<8xf32>
    %186 = vector.multi_reduction <add>, %185, %cst_43 [1] : vector<8x4xf32> to vector<8xf32>
    %187 = vector.shape_cast %186 : vector<8xf32> to vector<8x1xf32>
    %188 = vector.broadcast %187 : vector<8x1xf32> to vector<8x4xf32>
    %189 = arith.divf %185, %188 : vector<8x4xf32>
    %190 = vector.extract_strided_slice %7 {offsets = [0, 8], sizes = [8, 4], strides = [1, 1]} : vector<8x28xf32> to vector<8x4xf32>
    %191 = arith.mulf %189, %190 : vector<8x4xf32>
    %192 = vector.extract_strided_slice %191 {offsets = [0, 0], sizes = [8, 1], strides = [1, 1]} : vector<8x4xf32> to vector<8x1xf32>
    %193 = vector.extract_strided_slice %16 {offsets = [0, 0], sizes = [1, 64], strides = [1, 1]} : vector<4x64xf32> to vector<1x64xf32>
    %194 = vector.broadcast %192 : vector<8x1xf32> to vector<8x64xf32>
    %195 = vector.broadcast %193 : vector<1x64xf32> to vector<8x64xf32>
    %196 = arith.mulf %194, %195 : vector<8x64xf32>
    %197 = arith.addf %176, %196 : vector<8x64xf32>
    %198 = vector.extract_strided_slice %191 {offsets = [0, 1], sizes = [8, 1], strides = [1, 1]} : vector<8x4xf32> to vector<8x1xf32>
    %199 = vector.extract_strided_slice %16 {offsets = [1, 0], sizes = [1, 64], strides = [1, 1]} : vector<4x64xf32> to vector<1x64xf32>
    %200 = vector.broadcast %198 : vector<8x1xf32> to vector<8x64xf32>
    %201 = vector.broadcast %199 : vector<1x64xf32> to vector<8x64xf32>
    %202 = arith.mulf %200, %201 : vector<8x64xf32>
    %203 = arith.addf %197, %202 : vector<8x64xf32>
    %204 = vector.extract_strided_slice %191 {offsets = [0, 2], sizes = [8, 1], strides = [1, 1]} : vector<8x4xf32> to vector<8x1xf32>
    %205 = vector.extract_strided_slice %16 {offsets = [2, 0], sizes = [1, 64], strides = [1, 1]} : vector<4x64xf32> to vector<1x64xf32>
    %206 = vector.broadcast %204 : vector<8x1xf32> to vector<8x64xf32>
    %207 = vector.broadcast %205 : vector<1x64xf32> to vector<8x64xf32>
    %208 = arith.mulf %206, %207 : vector<8x64xf32>
    %209 = arith.addf %203, %208 : vector<8x64xf32>
    %210 = vector.extract_strided_slice %191 {offsets = [0, 3], sizes = [8, 1], strides = [1, 1]} : vector<8x4xf32> to vector<8x1xf32>
    %211 = vector.extract_strided_slice %16 {offsets = [3, 0], sizes = [1, 64], strides = [1, 1]} : vector<4x64xf32> to vector<1x64xf32>
    %212 = vector.broadcast %210 : vector<8x1xf32> to vector<8x64xf32>
    %213 = vector.broadcast %211 : vector<1x64xf32> to vector<8x64xf32>
    %214 = arith.mulf %212, %213 : vector<8x64xf32>
    %215 = arith.addf %209, %214 : vector<8x64xf32>
    %216 = vector.extract_strided_slice %215 {offsets = [0, 0], sizes = [8, 16], strides = [1, 1]} : vector<8x64xf32> to vector<8x16xf32>
    %cst_44 = arith.constant 5.000000e-01 : f32
    %217 = vector.broadcast %cst_44 : f32 to vector<8x16xf32>
    %218 = arith.mulf %217, %216 : vector<8x16xf32>
    %219 = math.tanh %218 : vector<8x16xf32>
    %cst_45 = arith.constant 1.000000e+00 : f32
    %220 = vector.broadcast %cst_45 : f32 to vector<8x16xf32>
    %221 = arith.addf %219, %220 : vector<8x16xf32>
    %cst_46 = arith.constant 5.000000e-01 : f32
    %222 = vector.broadcast %cst_46 : f32 to vector<8x16xf32>
    %223 = arith.mulf %222, %221 : vector<8x16xf32>
    %224 = vector.extract_strided_slice %215 {offsets = [0, 16], sizes = [8, 16], strides = [1, 1]} : vector<8x64xf32> to vector<8x16xf32>
    %cst_47 = arith.constant 5.000000e-01 : f32
    %225 = vector.broadcast %cst_47 : f32 to vector<8x16xf32>
    %226 = arith.mulf %225, %224 : vector<8x16xf32>
    %227 = math.tanh %226 : vector<8x16xf32>
    %cst_48 = arith.constant 1.000000e+00 : f32
    %228 = vector.broadcast %cst_48 : f32 to vector<8x16xf32>
    %229 = arith.addf %227, %228 : vector<8x16xf32>
    %cst_49 = arith.constant 5.000000e-01 : f32
    %230 = vector.broadcast %cst_49 : f32 to vector<8x16xf32>
    %231 = arith.mulf %230, %229 : vector<8x16xf32>
    %232 = vector.extract_strided_slice %215 {offsets = [0, 32], sizes = [8, 16], strides = [1, 1]} : vector<8x64xf32> to vector<8x16xf32>
    %233 = math.tanh %232 : vector<8x16xf32>
    %234 = vector.extract_strided_slice %215 {offsets = [0, 48], sizes = [8, 16], strides = [1, 1]} : vector<8x64xf32> to vector<8x16xf32>
    %cst_50 = arith.constant 5.000000e-01 : f32
    %235 = vector.broadcast %cst_50 : f32 to vector<8x16xf32>
    %236 = arith.mulf %235, %234 : vector<8x16xf32>
    %237 = math.tanh %236 : vector<8x16xf32>
    %cst_51 = arith.constant 1.000000e+00 : f32
    %238 = vector.broadcast %cst_51 : f32 to vector<8x16xf32>
    %239 = arith.addf %237, %238 : vector<8x16xf32>
    %cst_52 = arith.constant 5.000000e-01 : f32
    %240 = vector.broadcast %cst_52 : f32 to vector<8x16xf32>
    %241 = arith.mulf %240, %239 : vector<8x16xf32>
    %242 = arith.mulf %231, %166 : vector<8x16xf32>
    %243 = arith.mulf %223, %233 : vector<8x16xf32>
    %244 = arith.addf %242, %243 : vector<8x16xf32>
    %245 = math.tanh %244 : vector<8x16xf32>
    %246 = arith.mulf %241, %245 : vector<8x16xf32>
    %cst_53 = arith.constant dense<0.000000e+00> : vector<8x96xf32>
    %247 = tpu.matmul %246, %14, %cst_53 {dimension_numbers = #tpu.dot_dimension_numbers<[1], [0], [0], [1], [0, 0, 1, 1], [], []>} : vector<8x16xf32>, vector<16x96xf32>, vector<8x96xf32> -> vector<8x96xf32>
    %248 = vector.extract_strided_slice %247 {offsets = [0, 0], sizes = [8, 32], strides = [1, 1]} : vector<8x96xf32> to vector<8x32xf32>
    %249 = arith.addf %13, %248 : vector<8x32xf32>
    %cst_54 = arith.constant dense<0.000000e+00> : vector<8x32xf32>
    %250 = tpu.matmul %244, %15, %cst_54 {dimension_numbers = #tpu.dot_dimension_numbers<[1], [0], [0], [1], [0, 0, 1, 1], [], []>} : vector<8x16xf32>, vector<16x32xf32>, vector<8x32xf32> -> vector<8x32xf32>
    %251 = arith.addf %249, %250 : vector<8x32xf32>
    %252 = vector.extract_strided_slice %247 {offsets = [0, 32], sizes = [8, 64], strides = [1, 1]} : vector<8x96xf32> to vector<8x64xf32>
    %253 = vector.broadcast %18 : vector<1x64xf32> to vector<8x64xf32>
    %254 = arith.addf %252, %253 : vector<8x64xf32>
    %255 = math.tanh %251 : vector<8x32xf32>
    %cst_55 = arith.constant dense<0.000000e+00> : vector<8x4xf32>
    %256 = tpu.matmul %255, %17, %cst_55 {dimension_numbers = #tpu.dot_dimension_numbers<[1], [0], [0], [1], [0, 0, 1, 1], [], []>} : vector<8x32xf32>, vector<32x4xf32>, vector<8x4xf32> -> vector<8x4xf32>
    %257 = vector.broadcast %1 : vector<1x1xf32> to vector<8x4xf32>
    %258 = arith.addf %256, %257 : vector<8x4xf32>
    %cst_56 = arith.constant dense<0xFF800000> : vector<8xf32>
    %259 = vector.multi_reduction <maximumf>, %258, %cst_56 [1] : vector<8x4xf32> to vector<8xf32>
    %260 = vector.shape_cast %259 : vector<8xf32> to vector<8x1xf32>
    %261 = vector.broadcast %260 : vector<8x1xf32> to vector<8x4xf32>
    %262 = arith.subf %258, %261 : vector<8x4xf32>
    %263 = math.exp %262 : vector<8x4xf32>
    %cst_57 = arith.constant dense<0.000000e+00> : vector<8xf32>
    %264 = vector.multi_reduction <add>, %263, %cst_57 [1] : vector<8x4xf32> to vector<8xf32>
    %265 = vector.shape_cast %264 : vector<8xf32> to vector<8x1xf32>
    %266 = vector.broadcast %265 : vector<8x1xf32> to vector<8x4xf32>
    %267 = arith.divf %263, %266 : vector<8x4xf32>
    %268 = vector.extract_strided_slice %7 {offsets = [0, 12], sizes = [8, 4], strides = [1, 1]} : vector<8x28xf32> to vector<8x4xf32>
    %269 = arith.mulf %267, %268 : vector<8x4xf32>
    %270 = vector.extract_strided_slice %269 {offsets = [0, 0], sizes = [8, 1], strides = [1, 1]} : vector<8x4xf32> to vector<8x1xf32>
    %271 = vector.extract_strided_slice %16 {offsets = [0, 0], sizes = [1, 64], strides = [1, 1]} : vector<4x64xf32> to vector<1x64xf32>
    %272 = vector.broadcast %270 : vector<8x1xf32> to vector<8x64xf32>
    %273 = vector.broadcast %271 : vector<1x64xf32> to vector<8x64xf32>
    %274 = arith.mulf %272, %273 : vector<8x64xf32>
    %275 = arith.addf %254, %274 : vector<8x64xf32>
    %276 = vector.extract_strided_slice %269 {offsets = [0, 1], sizes = [8, 1], strides = [1, 1]} : vector<8x4xf32> to vector<8x1xf32>
    %277 = vector.extract_strided_slice %16 {offsets = [1, 0], sizes = [1, 64], strides = [1, 1]} : vector<4x64xf32> to vector<1x64xf32>
    %278 = vector.broadcast %276 : vector<8x1xf32> to vector<8x64xf32>
    %279 = vector.broadcast %277 : vector<1x64xf32> to vector<8x64xf32>
    %280 = arith.mulf %278, %279 : vector<8x64xf32>
    %281 = arith.addf %275, %280 : vector<8x64xf32>
    %282 = vector.extract_strided_slice %269 {offsets = [0, 2], sizes = [8, 1], strides = [1, 1]} : vector<8x4xf32> to vector<8x1xf32>
    %283 = vector.extract_strided_slice %16 {offsets = [2, 0], sizes = [1, 64], strides = [1, 1]} : vector<4x64xf32> to vector<1x64xf32>
    %284 = vector.broadcast %282 : vector<8x1xf32> to vector<8x64xf32>
    %285 = vector.broadcast %283 : vector<1x64xf32> to vector<8x64xf32>
    %286 = arith.mulf %284, %285 : vector<8x64xf32>
    %287 = arith.addf %281, %286 : vector<8x64xf32>
    %288 = vector.extract_strided_slice %269 {offsets = [0, 3], sizes = [8, 1], strides = [1, 1]} : vector<8x4xf32> to vector<8x1xf32>
    %289 = vector.extract_strided_slice %16 {offsets = [3, 0], sizes = [1, 64], strides = [1, 1]} : vector<4x64xf32> to vector<1x64xf32>
    %290 = vector.broadcast %288 : vector<8x1xf32> to vector<8x64xf32>
    %291 = vector.broadcast %289 : vector<1x64xf32> to vector<8x64xf32>
    %292 = arith.mulf %290, %291 : vector<8x64xf32>
    %293 = arith.addf %287, %292 : vector<8x64xf32>
    %294 = vector.extract_strided_slice %293 {offsets = [0, 0], sizes = [8, 16], strides = [1, 1]} : vector<8x64xf32> to vector<8x16xf32>
    %cst_58 = arith.constant 5.000000e-01 : f32
    %295 = vector.broadcast %cst_58 : f32 to vector<8x16xf32>
    %296 = arith.mulf %295, %294 : vector<8x16xf32>
    %297 = math.tanh %296 : vector<8x16xf32>
    %cst_59 = arith.constant 1.000000e+00 : f32
    %298 = vector.broadcast %cst_59 : f32 to vector<8x16xf32>
    %299 = arith.addf %297, %298 : vector<8x16xf32>
    %cst_60 = arith.constant 5.000000e-01 : f32
    %300 = vector.broadcast %cst_60 : f32 to vector<8x16xf32>
    %301 = arith.mulf %300, %299 : vector<8x16xf32>
    %302 = vector.extract_strided_slice %293 {offsets = [0, 16], sizes = [8, 16], strides = [1, 1]} : vector<8x64xf32> to vector<8x16xf32>
    %cst_61 = arith.constant 5.000000e-01 : f32
    %303 = vector.broadcast %cst_61 : f32 to vector<8x16xf32>
    %304 = arith.mulf %303, %302 : vector<8x16xf32>
    %305 = math.tanh %304 : vector<8x16xf32>
    %cst_62 = arith.constant 1.000000e+00 : f32
    %306 = vector.broadcast %cst_62 : f32 to vector<8x16xf32>
    %307 = arith.addf %305, %306 : vector<8x16xf32>
    %cst_63 = arith.constant 5.000000e-01 : f32
    %308 = vector.broadcast %cst_63 : f32 to vector<8x16xf32>
    %309 = arith.mulf %308, %307 : vector<8x16xf32>
    %310 = vector.extract_strided_slice %293 {offsets = [0, 32], sizes = [8, 16], strides = [1, 1]} : vector<8x64xf32> to vector<8x16xf32>
    %311 = math.tanh %310 : vector<8x16xf32>
    %312 = vector.extract_strided_slice %293 {offsets = [0, 48], sizes = [8, 16], strides = [1, 1]} : vector<8x64xf32> to vector<8x16xf32>
    %cst_64 = arith.constant 5.000000e-01 : f32
    %313 = vector.broadcast %cst_64 : f32 to vector<8x16xf32>
    %314 = arith.mulf %313, %312 : vector<8x16xf32>
    %315 = math.tanh %314 : vector<8x16xf32>
    %cst_65 = arith.constant 1.000000e+00 : f32
    %316 = vector.broadcast %cst_65 : f32 to vector<8x16xf32>
    %317 = arith.addf %315, %316 : vector<8x16xf32>
    %cst_66 = arith.constant 5.000000e-01 : f32
    %318 = vector.broadcast %cst_66 : f32 to vector<8x16xf32>
    %319 = arith.mulf %318, %317 : vector<8x16xf32>
    %320 = arith.mulf %309, %244 : vector<8x16xf32>
    %321 = arith.mulf %301, %311 : vector<8x16xf32>
    %322 = arith.addf %320, %321 : vector<8x16xf32>
    %323 = math.tanh %322 : vector<8x16xf32>
    %324 = arith.mulf %319, %323 : vector<8x16xf32>
    %cst_67 = arith.constant dense<0.000000e+00> : vector<8x96xf32>
    %325 = tpu.matmul %324, %14, %cst_67 {dimension_numbers = #tpu.dot_dimension_numbers<[1], [0], [0], [1], [0, 0, 1, 1], [], []>} : vector<8x16xf32>, vector<16x96xf32>, vector<8x96xf32> -> vector<8x96xf32>
    %326 = vector.extract_strided_slice %325 {offsets = [0, 0], sizes = [8, 32], strides = [1, 1]} : vector<8x96xf32> to vector<8x32xf32>
    %327 = arith.addf %13, %326 : vector<8x32xf32>
    %cst_68 = arith.constant dense<0.000000e+00> : vector<8x32xf32>
    %328 = tpu.matmul %322, %15, %cst_68 {dimension_numbers = #tpu.dot_dimension_numbers<[1], [0], [0], [1], [0, 0, 1, 1], [], []>} : vector<8x16xf32>, vector<16x32xf32>, vector<8x32xf32> -> vector<8x32xf32>
    %329 = arith.addf %327, %328 : vector<8x32xf32>
    %330 = vector.extract_strided_slice %325 {offsets = [0, 32], sizes = [8, 64], strides = [1, 1]} : vector<8x96xf32> to vector<8x64xf32>
    %331 = vector.broadcast %18 : vector<1x64xf32> to vector<8x64xf32>
    %332 = arith.addf %330, %331 : vector<8x64xf32>
    %333 = math.tanh %329 : vector<8x32xf32>
    %cst_69 = arith.constant dense<0.000000e+00> : vector<8x4xf32>
    %334 = tpu.matmul %333, %17, %cst_69 {dimension_numbers = #tpu.dot_dimension_numbers<[1], [0], [0], [1], [0, 0, 1, 1], [], []>} : vector<8x32xf32>, vector<32x4xf32>, vector<8x4xf32> -> vector<8x4xf32>
    %335 = vector.broadcast %1 : vector<1x1xf32> to vector<8x4xf32>
    %336 = arith.addf %334, %335 : vector<8x4xf32>
    %cst_70 = arith.constant dense<0xFF800000> : vector<8xf32>
    %337 = vector.multi_reduction <maximumf>, %336, %cst_70 [1] : vector<8x4xf32> to vector<8xf32>
    %338 = vector.shape_cast %337 : vector<8xf32> to vector<8x1xf32>
    %339 = vector.broadcast %338 : vector<8x1xf32> to vector<8x4xf32>
    %340 = arith.subf %336, %339 : vector<8x4xf32>
    %341 = math.exp %340 : vector<8x4xf32>
    %cst_71 = arith.constant dense<0.000000e+00> : vector<8xf32>
    %342 = vector.multi_reduction <add>, %341, %cst_71 [1] : vector<8x4xf32> to vector<8xf32>
    %343 = vector.shape_cast %342 : vector<8xf32> to vector<8x1xf32>
    %344 = vector.broadcast %343 : vector<8x1xf32> to vector<8x4xf32>
    %345 = arith.divf %341, %344 : vector<8x4xf32>
    %346 = vector.extract_strided_slice %7 {offsets = [0, 16], sizes = [8, 4], strides = [1, 1]} : vector<8x28xf32> to vector<8x4xf32>
    %347 = arith.mulf %345, %346 : vector<8x4xf32>
    %348 = vector.extract_strided_slice %347 {offsets = [0, 0], sizes = [8, 1], strides = [1, 1]} : vector<8x4xf32> to vector<8x1xf32>
    %349 = vector.extract_strided_slice %16 {offsets = [0, 0], sizes = [1, 64], strides = [1, 1]} : vector<4x64xf32> to vector<1x64xf32>
    %350 = vector.broadcast %348 : vector<8x1xf32> to vector<8x64xf32>
    %351 = vector.broadcast %349 : vector<1x64xf32> to vector<8x64xf32>
    %352 = arith.mulf %350, %351 : vector<8x64xf32>
    %353 = arith.addf %332, %352 : vector<8x64xf32>
    %354 = vector.extract_strided_slice %347 {offsets = [0, 1], sizes = [8, 1], strides = [1, 1]} : vector<8x4xf32> to vector<8x1xf32>
    %355 = vector.extract_strided_slice %16 {offsets = [1, 0], sizes = [1, 64], strides = [1, 1]} : vector<4x64xf32> to vector<1x64xf32>
    %356 = vector.broadcast %354 : vector<8x1xf32> to vector<8x64xf32>
    %357 = vector.broadcast %355 : vector<1x64xf32> to vector<8x64xf32>
    %358 = arith.mulf %356, %357 : vector<8x64xf32>
    %359 = arith.addf %353, %358 : vector<8x64xf32>
    %360 = vector.extract_strided_slice %347 {offsets = [0, 2], sizes = [8, 1], strides = [1, 1]} : vector<8x4xf32> to vector<8x1xf32>
    %361 = vector.extract_strided_slice %16 {offsets = [2, 0], sizes = [1, 64], strides = [1, 1]} : vector<4x64xf32> to vector<1x64xf32>
    %362 = vector.broadcast %360 : vector<8x1xf32> to vector<8x64xf32>
    %363 = vector.broadcast %361 : vector<1x64xf32> to vector<8x64xf32>
    %364 = arith.mulf %362, %363 : vector<8x64xf32>
    %365 = arith.addf %359, %364 : vector<8x64xf32>
    %366 = vector.extract_strided_slice %347 {offsets = [0, 3], sizes = [8, 1], strides = [1, 1]} : vector<8x4xf32> to vector<8x1xf32>
    %367 = vector.extract_strided_slice %16 {offsets = [3, 0], sizes = [1, 64], strides = [1, 1]} : vector<4x64xf32> to vector<1x64xf32>
    %368 = vector.broadcast %366 : vector<8x1xf32> to vector<8x64xf32>
    %369 = vector.broadcast %367 : vector<1x64xf32> to vector<8x64xf32>
    %370 = arith.mulf %368, %369 : vector<8x64xf32>
    %371 = arith.addf %365, %370 : vector<8x64xf32>
    %372 = vector.extract_strided_slice %371 {offsets = [0, 0], sizes = [8, 16], strides = [1, 1]} : vector<8x64xf32> to vector<8x16xf32>
    %cst_72 = arith.constant 5.000000e-01 : f32
    %373 = vector.broadcast %cst_72 : f32 to vector<8x16xf32>
    %374 = arith.mulf %373, %372 : vector<8x16xf32>
    %375 = math.tanh %374 : vector<8x16xf32>
    %cst_73 = arith.constant 1.000000e+00 : f32
    %376 = vector.broadcast %cst_73 : f32 to vector<8x16xf32>
    %377 = arith.addf %375, %376 : vector<8x16xf32>
    %cst_74 = arith.constant 5.000000e-01 : f32
    %378 = vector.broadcast %cst_74 : f32 to vector<8x16xf32>
    %379 = arith.mulf %378, %377 : vector<8x16xf32>
    %380 = vector.extract_strided_slice %371 {offsets = [0, 16], sizes = [8, 16], strides = [1, 1]} : vector<8x64xf32> to vector<8x16xf32>
    %cst_75 = arith.constant 5.000000e-01 : f32
    %381 = vector.broadcast %cst_75 : f32 to vector<8x16xf32>
    %382 = arith.mulf %381, %380 : vector<8x16xf32>
    %383 = math.tanh %382 : vector<8x16xf32>
    %cst_76 = arith.constant 1.000000e+00 : f32
    %384 = vector.broadcast %cst_76 : f32 to vector<8x16xf32>
    %385 = arith.addf %383, %384 : vector<8x16xf32>
    %cst_77 = arith.constant 5.000000e-01 : f32
    %386 = vector.broadcast %cst_77 : f32 to vector<8x16xf32>
    %387 = arith.mulf %386, %385 : vector<8x16xf32>
    %388 = vector.extract_strided_slice %371 {offsets = [0, 32], sizes = [8, 16], strides = [1, 1]} : vector<8x64xf32> to vector<8x16xf32>
    %389 = math.tanh %388 : vector<8x16xf32>
    %390 = vector.extract_strided_slice %371 {offsets = [0, 48], sizes = [8, 16], strides = [1, 1]} : vector<8x64xf32> to vector<8x16xf32>
    %cst_78 = arith.constant 5.000000e-01 : f32
    %391 = vector.broadcast %cst_78 : f32 to vector<8x16xf32>
    %392 = arith.mulf %391, %390 : vector<8x16xf32>
    %393 = math.tanh %392 : vector<8x16xf32>
    %cst_79 = arith.constant 1.000000e+00 : f32
    %394 = vector.broadcast %cst_79 : f32 to vector<8x16xf32>
    %395 = arith.addf %393, %394 : vector<8x16xf32>
    %cst_80 = arith.constant 5.000000e-01 : f32
    %396 = vector.broadcast %cst_80 : f32 to vector<8x16xf32>
    %397 = arith.mulf %396, %395 : vector<8x16xf32>
    %398 = arith.mulf %387, %322 : vector<8x16xf32>
    %399 = arith.mulf %379, %389 : vector<8x16xf32>
    %400 = arith.addf %398, %399 : vector<8x16xf32>
    %401 = math.tanh %400 : vector<8x16xf32>
    %402 = arith.mulf %397, %401 : vector<8x16xf32>
    %cst_81 = arith.constant dense<0.000000e+00> : vector<8x96xf32>
    %403 = tpu.matmul %402, %14, %cst_81 {dimension_numbers = #tpu.dot_dimension_numbers<[1], [0], [0], [1], [0, 0, 1, 1], [], []>} : vector<8x16xf32>, vector<16x96xf32>, vector<8x96xf32> -> vector<8x96xf32>
    %404 = vector.extract_strided_slice %403 {offsets = [0, 0], sizes = [8, 32], strides = [1, 1]} : vector<8x96xf32> to vector<8x32xf32>
    %405 = arith.addf %13, %404 : vector<8x32xf32>
    %cst_82 = arith.constant dense<0.000000e+00> : vector<8x32xf32>
    %406 = tpu.matmul %400, %15, %cst_82 {dimension_numbers = #tpu.dot_dimension_numbers<[1], [0], [0], [1], [0, 0, 1, 1], [], []>} : vector<8x16xf32>, vector<16x32xf32>, vector<8x32xf32> -> vector<8x32xf32>
    %407 = arith.addf %405, %406 : vector<8x32xf32>
    %408 = vector.extract_strided_slice %403 {offsets = [0, 32], sizes = [8, 64], strides = [1, 1]} : vector<8x96xf32> to vector<8x64xf32>
    %409 = vector.broadcast %18 : vector<1x64xf32> to vector<8x64xf32>
    %410 = arith.addf %408, %409 : vector<8x64xf32>
    %411 = math.tanh %407 : vector<8x32xf32>
    %cst_83 = arith.constant dense<0.000000e+00> : vector<8x4xf32>
    %412 = tpu.matmul %411, %17, %cst_83 {dimension_numbers = #tpu.dot_dimension_numbers<[1], [0], [0], [1], [0, 0, 1, 1], [], []>} : vector<8x32xf32>, vector<32x4xf32>, vector<8x4xf32> -> vector<8x4xf32>
    %413 = vector.broadcast %1 : vector<1x1xf32> to vector<8x4xf32>
    %414 = arith.addf %412, %413 : vector<8x4xf32>
    %cst_84 = arith.constant dense<0xFF800000> : vector<8xf32>
    %415 = vector.multi_reduction <maximumf>, %414, %cst_84 [1] : vector<8x4xf32> to vector<8xf32>
    %416 = vector.shape_cast %415 : vector<8xf32> to vector<8x1xf32>
    %417 = vector.broadcast %416 : vector<8x1xf32> to vector<8x4xf32>
    %418 = arith.subf %414, %417 : vector<8x4xf32>
    %419 = math.exp %418 : vector<8x4xf32>
    %cst_85 = arith.constant dense<0.000000e+00> : vector<8xf32>
    %420 = vector.multi_reduction <add>, %419, %cst_85 [1] : vector<8x4xf32> to vector<8xf32>
    %421 = vector.shape_cast %420 : vector<8xf32> to vector<8x1xf32>
    %422 = vector.broadcast %421 : vector<8x1xf32> to vector<8x4xf32>
    %423 = arith.divf %419, %422 : vector<8x4xf32>
    %424 = vector.extract_strided_slice %7 {offsets = [0, 20], sizes = [8, 4], strides = [1, 1]} : vector<8x28xf32> to vector<8x4xf32>
    %425 = arith.mulf %423, %424 : vector<8x4xf32>
    %426 = vector.extract_strided_slice %425 {offsets = [0, 0], sizes = [8, 1], strides = [1, 1]} : vector<8x4xf32> to vector<8x1xf32>
    %427 = vector.extract_strided_slice %16 {offsets = [0, 0], sizes = [1, 64], strides = [1, 1]} : vector<4x64xf32> to vector<1x64xf32>
    %428 = vector.broadcast %426 : vector<8x1xf32> to vector<8x64xf32>
    %429 = vector.broadcast %427 : vector<1x64xf32> to vector<8x64xf32>
    %430 = arith.mulf %428, %429 : vector<8x64xf32>
    %431 = arith.addf %410, %430 : vector<8x64xf32>
    %432 = vector.extract_strided_slice %425 {offsets = [0, 1], sizes = [8, 1], strides = [1, 1]} : vector<8x4xf32> to vector<8x1xf32>
    %433 = vector.extract_strided_slice %16 {offsets = [1, 0], sizes = [1, 64], strides = [1, 1]} : vector<4x64xf32> to vector<1x64xf32>
    %434 = vector.broadcast %432 : vector<8x1xf32> to vector<8x64xf32>
    %435 = vector.broadcast %433 : vector<1x64xf32> to vector<8x64xf32>
    %436 = arith.mulf %434, %435 : vector<8x64xf32>
    %437 = arith.addf %431, %436 : vector<8x64xf32>
    %438 = vector.extract_strided_slice %425 {offsets = [0, 2], sizes = [8, 1], strides = [1, 1]} : vector<8x4xf32> to vector<8x1xf32>
    %439 = vector.extract_strided_slice %16 {offsets = [2, 0], sizes = [1, 64], strides = [1, 1]} : vector<4x64xf32> to vector<1x64xf32>
    %440 = vector.broadcast %438 : vector<8x1xf32> to vector<8x64xf32>
    %441 = vector.broadcast %439 : vector<1x64xf32> to vector<8x64xf32>
    %442 = arith.mulf %440, %441 : vector<8x64xf32>
    %443 = arith.addf %437, %442 : vector<8x64xf32>
    %444 = vector.extract_strided_slice %425 {offsets = [0, 3], sizes = [8, 1], strides = [1, 1]} : vector<8x4xf32> to vector<8x1xf32>
    %445 = vector.extract_strided_slice %16 {offsets = [3, 0], sizes = [1, 64], strides = [1, 1]} : vector<4x64xf32> to vector<1x64xf32>
    %446 = vector.broadcast %444 : vector<8x1xf32> to vector<8x64xf32>
    %447 = vector.broadcast %445 : vector<1x64xf32> to vector<8x64xf32>
    %448 = arith.mulf %446, %447 : vector<8x64xf32>
    %449 = arith.addf %443, %448 : vector<8x64xf32>
    %450 = vector.extract_strided_slice %449 {offsets = [0, 0], sizes = [8, 16], strides = [1, 1]} : vector<8x64xf32> to vector<8x16xf32>
    %cst_86 = arith.constant 5.000000e-01 : f32
    %451 = vector.broadcast %cst_86 : f32 to vector<8x16xf32>
    %452 = arith.mulf %451, %450 : vector<8x16xf32>
    %453 = math.tanh %452 : vector<8x16xf32>
    %cst_87 = arith.constant 1.000000e+00 : f32
    %454 = vector.broadcast %cst_87 : f32 to vector<8x16xf32>
    %455 = arith.addf %453, %454 : vector<8x16xf32>
    %cst_88 = arith.constant 5.000000e-01 : f32
    %456 = vector.broadcast %cst_88 : f32 to vector<8x16xf32>
    %457 = arith.mulf %456, %455 : vector<8x16xf32>
    %458 = vector.extract_strided_slice %449 {offsets = [0, 16], sizes = [8, 16], strides = [1, 1]} : vector<8x64xf32> to vector<8x16xf32>
    %cst_89 = arith.constant 5.000000e-01 : f32
    %459 = vector.broadcast %cst_89 : f32 to vector<8x16xf32>
    %460 = arith.mulf %459, %458 : vector<8x16xf32>
    %461 = math.tanh %460 : vector<8x16xf32>
    %cst_90 = arith.constant 1.000000e+00 : f32
    %462 = vector.broadcast %cst_90 : f32 to vector<8x16xf32>
    %463 = arith.addf %461, %462 : vector<8x16xf32>
    %cst_91 = arith.constant 5.000000e-01 : f32
    %464 = vector.broadcast %cst_91 : f32 to vector<8x16xf32>
    %465 = arith.mulf %464, %463 : vector<8x16xf32>
    %466 = vector.extract_strided_slice %449 {offsets = [0, 32], sizes = [8, 16], strides = [1, 1]} : vector<8x64xf32> to vector<8x16xf32>
    %467 = math.tanh %466 : vector<8x16xf32>
    %468 = vector.extract_strided_slice %449 {offsets = [0, 48], sizes = [8, 16], strides = [1, 1]} : vector<8x64xf32> to vector<8x16xf32>
    %cst_92 = arith.constant 5.000000e-01 : f32
    %469 = vector.broadcast %cst_92 : f32 to vector<8x16xf32>
    %470 = arith.mulf %469, %468 : vector<8x16xf32>
    %471 = math.tanh %470 : vector<8x16xf32>
    %cst_93 = arith.constant 1.000000e+00 : f32
    %472 = vector.broadcast %cst_93 : f32 to vector<8x16xf32>
    %473 = arith.addf %471, %472 : vector<8x16xf32>
    %cst_94 = arith.constant 5.000000e-01 : f32
    %474 = vector.broadcast %cst_94 : f32 to vector<8x16xf32>
    %475 = arith.mulf %474, %473 : vector<8x16xf32>
    %476 = arith.mulf %465, %400 : vector<8x16xf32>
    %477 = arith.mulf %457, %467 : vector<8x16xf32>
    %478 = arith.addf %476, %477 : vector<8x16xf32>
    %479 = math.tanh %478 : vector<8x16xf32>
    %480 = arith.mulf %475, %479 : vector<8x16xf32>
    %cst_95 = arith.constant dense<0.000000e+00> : vector<8x96xf32>
    %481 = tpu.matmul %480, %14, %cst_95 {dimension_numbers = #tpu.dot_dimension_numbers<[1], [0], [0], [1], [0, 0, 1, 1], [], []>} : vector<8x16xf32>, vector<16x96xf32>, vector<8x96xf32> -> vector<8x96xf32>
    %482 = vector.extract_strided_slice %481 {offsets = [0, 0], sizes = [8, 32], strides = [1, 1]} : vector<8x96xf32> to vector<8x32xf32>
    %483 = arith.addf %13, %482 : vector<8x32xf32>
    %cst_96 = arith.constant dense<0.000000e+00> : vector<8x32xf32>
    %484 = tpu.matmul %478, %15, %cst_96 {dimension_numbers = #tpu.dot_dimension_numbers<[1], [0], [0], [1], [0, 0, 1, 1], [], []>} : vector<8x16xf32>, vector<16x32xf32>, vector<8x32xf32> -> vector<8x32xf32>
    %485 = arith.addf %483, %484 : vector<8x32xf32>
    %486 = math.tanh %485 : vector<8x32xf32>
    %cst_97 = arith.constant dense<0.000000e+00> : vector<8x4xf32>
    %487 = tpu.matmul %486, %17, %cst_97 {dimension_numbers = #tpu.dot_dimension_numbers<[1], [0], [0], [1], [0, 0, 1, 1], [], []>} : vector<8x32xf32>, vector<32x4xf32>, vector<8x4xf32> -> vector<8x4xf32>
    %488 = vector.broadcast %1 : vector<1x1xf32> to vector<8x4xf32>
    %489 = arith.addf %487, %488 : vector<8x4xf32>
    %cst_98 = arith.constant dense<0xFF800000> : vector<8xf32>
    %490 = vector.multi_reduction <maximumf>, %489, %cst_98 [1] : vector<8x4xf32> to vector<8xf32>
    %491 = vector.shape_cast %490 : vector<8xf32> to vector<8x1xf32>
    %492 = vector.broadcast %491 : vector<8x1xf32> to vector<8x4xf32>
    %493 = arith.subf %489, %492 : vector<8x4xf32>
    %494 = math.exp %493 : vector<8x4xf32>
    %cst_99 = arith.constant dense<0.000000e+00> : vector<8xf32>
    %495 = vector.multi_reduction <add>, %494, %cst_99 [1] : vector<8x4xf32> to vector<8xf32>
    %496 = vector.shape_cast %495 : vector<8xf32> to vector<8x1xf32>
    %497 = vector.broadcast %496 : vector<8x1xf32> to vector<8x4xf32>
    %498 = arith.divf %494, %497 : vector<8x4xf32>
    %499 = vector.extract_strided_slice %7 {offsets = [0, 24], sizes = [8, 4], strides = [1, 1]} : vector<8x28xf32> to vector<8x4xf32>
    %500 = arith.mulf %498, %499 : vector<8x4xf32>
    %501 = tpu.concatenate %34, %113, %191, %269, %347, %425, %500 in 1 : vector<8x4xf32>, vector<8x4xf32>, vector<8x4xf32>, vector<8x4xf32>, vector<8x4xf32>, vector<8x4xf32>, vector<8x4xf32> -> vector<8x28xf32>
    %c160 = arith.constant 160 : index
    %c0_100 = arith.constant 0 : index
    %502 = vector.load %arg3[%c160, %c0_100] : memref<448x128xf32, #tpu.memory_space<vmem>>, vector<28x32xf32>
    %cst_101 = arith.constant dense<0.000000e+00> : vector<8x32xf32>
    %503 = tpu.matmul %501, %502, %cst_101 {dimension_numbers = #tpu.dot_dimension_numbers<[1], [0], [0], [1], [0, 0, 1, 1], [], []>} : vector<8x28xf32>, vector<28x32xf32>, vector<8x32xf32> -> vector<8x32xf32>
    %c224 = arith.constant 224 : index
    %c0_102 = arith.constant 0 : index
    %504 = vector.load %arg3[%c224, %c0_102] : memref<448x128xf32, #tpu.memory_space<vmem>>, vector<1x32xf32>
    %505 = vector.broadcast %504 : vector<1x32xf32> to vector<8x32xf32>
    %506 = arith.addf %503, %505 : vector<8x32xf32>
    %c232 = arith.constant 232 : index
    %c0_103 = arith.constant 0 : index
    %507 = vector.load %arg3[%c232, %c0_103] : memref<448x128xf32, #tpu.memory_space<vmem>>, vector<1x32xf32>
    %c120 = arith.constant 120 : index
    %c0_104 = arith.constant 0 : index
    %508 = vector.load %arg3[%c120, %c0_104] : memref<448x128xf32, #tpu.memory_space<vmem>>, vector<16x112xf32>
    %c136 = arith.constant 136 : index
    %c0_105 = arith.constant 0 : index
    %509 = vector.load %arg3[%c136, %c0_105] : memref<448x128xf32, #tpu.memory_space<vmem>>, vector<16x32xf32>
    %c152 = arith.constant 152 : index
    %c0_106 = arith.constant 0 : index
    %510 = vector.load %arg3[%c152, %c0_106] : memref<448x128xf32, #tpu.memory_space<vmem>>, vector<4x64xf32>
    %c192 = arith.constant 192 : index
    %c0_107 = arith.constant 0 : index
    %511 = vector.load %arg3[%c192, %c0_107] : memref<448x128xf32, #tpu.memory_space<vmem>>, vector<32x4xf32>
    %c240 = arith.constant 240 : index
    %c0_108 = arith.constant 0 : index
    %512 = vector.load %arg3[%c240, %c0_108] : memref<448x128xf32, #tpu.memory_space<vmem>>, vector<1x64xf32>
    %cst_109 = arith.constant 0.000000e+00 : f32
    %513 = vector.broadcast %cst_109 : f32 to vector<8x16xf32>
    %514 = vector.extract_strided_slice %8 {offsets = [0, 0], sizes = [8, 1], strides = [1, 1]} : vector<8x7xf32> to vector<8x1xf32>
    %515 = vector.broadcast %514 : vector<8x1xf32> to vector<8x32xf32>
    %516 = vector.broadcast %507 : vector<1x32xf32> to vector<8x32xf32>
    %517 = arith.mulf %515, %516 : vector<8x32xf32>
    %518 = arith.addf %506, %517 : vector<8x32xf32>
    %519 = math.tanh %518 : vector<8x32xf32>
    %cst_110 = arith.constant dense<0.000000e+00> : vector<8x4xf32>
    %520 = tpu.matmul %519, %511, %cst_110 {dimension_numbers = #tpu.dot_dimension_numbers<[1], [0], [0], [1], [0, 0, 1, 1], [], []>} : vector<8x32xf32>, vector<32x4xf32>, vector<8x4xf32> -> vector<8x4xf32>
    %521 = vector.broadcast %2 : vector<1x1xf32> to vector<8x4xf32>
    %522 = arith.addf %520, %521 : vector<8x4xf32>
    %cst_111 = arith.constant dense<0xFF800000> : vector<8xf32>
    %523 = vector.multi_reduction <maximumf>, %522, %cst_111 [1] : vector<8x4xf32> to vector<8xf32>
    %524 = vector.shape_cast %523 : vector<8xf32> to vector<8x1xf32>
    %525 = vector.broadcast %524 : vector<8x1xf32> to vector<8x4xf32>
    %526 = arith.subf %522, %525 : vector<8x4xf32>
    %527 = math.exp %526 : vector<8x4xf32>
    %cst_112 = arith.constant dense<0.000000e+00> : vector<8xf32>
    %528 = vector.multi_reduction <add>, %527, %cst_112 [1] : vector<8x4xf32> to vector<8xf32>
    %529 = vector.shape_cast %528 : vector<8xf32> to vector<8x1xf32>
    %530 = vector.broadcast %529 : vector<8x1xf32> to vector<8x4xf32>
    %531 = arith.divf %527, %530 : vector<8x4xf32>
    %532 = arith.mulf %531, %34 : vector<8x4xf32>
    %533 = vector.extract_strided_slice %532 {offsets = [0, 0], sizes = [8, 1], strides = [1, 1]} : vector<8x4xf32> to vector<8x1xf32>
    %534 = vector.extract_strided_slice %510 {offsets = [0, 0], sizes = [1, 64], strides = [1, 1]} : vector<4x64xf32> to vector<1x64xf32>
    %535 = vector.broadcast %533 : vector<8x1xf32> to vector<8x64xf32>
    %536 = vector.broadcast %534 : vector<1x64xf32> to vector<8x64xf32>
    %537 = arith.mulf %535, %536 : vector<8x64xf32>
    %538 = vector.broadcast %512 : vector<1x64xf32> to vector<8x64xf32>
    %539 = arith.addf %538, %537 : vector<8x64xf32>
    %540 = vector.extract_strided_slice %532 {offsets = [0, 1], sizes = [8, 1], strides = [1, 1]} : vector<8x4xf32> to vector<8x1xf32>
    %541 = vector.extract_strided_slice %510 {offsets = [1, 0], sizes = [1, 64], strides = [1, 1]} : vector<4x64xf32> to vector<1x64xf32>
    %542 = vector.broadcast %540 : vector<8x1xf32> to vector<8x64xf32>
    %543 = vector.broadcast %541 : vector<1x64xf32> to vector<8x64xf32>
    %544 = arith.mulf %542, %543 : vector<8x64xf32>
    %545 = arith.addf %539, %544 : vector<8x64xf32>
    %546 = vector.extract_strided_slice %532 {offsets = [0, 2], sizes = [8, 1], strides = [1, 1]} : vector<8x4xf32> to vector<8x1xf32>
    %547 = vector.extract_strided_slice %510 {offsets = [2, 0], sizes = [1, 64], strides = [1, 1]} : vector<4x64xf32> to vector<1x64xf32>
    %548 = vector.broadcast %546 : vector<8x1xf32> to vector<8x64xf32>
    %549 = vector.broadcast %547 : vector<1x64xf32> to vector<8x64xf32>
    %550 = arith.mulf %548, %549 : vector<8x64xf32>
    %551 = arith.addf %545, %550 : vector<8x64xf32>
    %552 = vector.extract_strided_slice %532 {offsets = [0, 3], sizes = [8, 1], strides = [1, 1]} : vector<8x4xf32> to vector<8x1xf32>
    %553 = vector.extract_strided_slice %510 {offsets = [3, 0], sizes = [1, 64], strides = [1, 1]} : vector<4x64xf32> to vector<1x64xf32>
    %554 = vector.broadcast %552 : vector<8x1xf32> to vector<8x64xf32>
    %555 = vector.broadcast %553 : vector<1x64xf32> to vector<8x64xf32>
    %556 = arith.mulf %554, %555 : vector<8x64xf32>
    %557 = arith.addf %551, %556 : vector<8x64xf32>
    %558 = vector.extract_strided_slice %557 {offsets = [0, 0], sizes = [8, 16], strides = [1, 1]} : vector<8x64xf32> to vector<8x16xf32>
    %cst_113 = arith.constant 5.000000e-01 : f32
    %559 = vector.broadcast %cst_113 : f32 to vector<8x16xf32>
    %560 = arith.mulf %559, %558 : vector<8x16xf32>
    %561 = math.tanh %560 : vector<8x16xf32>
    %cst_114 = arith.constant 1.000000e+00 : f32
    %562 = vector.broadcast %cst_114 : f32 to vector<8x16xf32>
    %563 = arith.addf %561, %562 : vector<8x16xf32>
    %cst_115 = arith.constant 5.000000e-01 : f32
    %564 = vector.broadcast %cst_115 : f32 to vector<8x16xf32>
    %565 = arith.mulf %564, %563 : vector<8x16xf32>
    %566 = vector.extract_strided_slice %557 {offsets = [0, 16], sizes = [8, 16], strides = [1, 1]} : vector<8x64xf32> to vector<8x16xf32>
    %cst_116 = arith.constant 5.000000e-01 : f32
    %567 = vector.broadcast %cst_116 : f32 to vector<8x16xf32>
    %568 = arith.mulf %567, %566 : vector<8x16xf32>
    %569 = math.tanh %568 : vector<8x16xf32>
    %cst_117 = arith.constant 1.000000e+00 : f32
    %570 = vector.broadcast %cst_117 : f32 to vector<8x16xf32>
    %571 = arith.addf %569, %570 : vector<8x16xf32>
    %cst_118 = arith.constant 5.000000e-01 : f32
    %572 = vector.broadcast %cst_118 : f32 to vector<8x16xf32>
    %573 = arith.mulf %572, %571 : vector<8x16xf32>
    %574 = vector.extract_strided_slice %557 {offsets = [0, 32], sizes = [8, 16], strides = [1, 1]} : vector<8x64xf32> to vector<8x16xf32>
    %575 = math.tanh %574 : vector<8x16xf32>
    %576 = vector.extract_strided_slice %557 {offsets = [0, 48], sizes = [8, 16], strides = [1, 1]} : vector<8x64xf32> to vector<8x16xf32>
    %cst_119 = arith.constant 5.000000e-01 : f32
    %577 = vector.broadcast %cst_119 : f32 to vector<8x16xf32>
    %578 = arith.mulf %577, %576 : vector<8x16xf32>
    %579 = math.tanh %578 : vector<8x16xf32>
    %cst_120 = arith.constant 1.000000e+00 : f32
    %580 = vector.broadcast %cst_120 : f32 to vector<8x16xf32>
    %581 = arith.addf %579, %580 : vector<8x16xf32>
    %cst_121 = arith.constant 5.000000e-01 : f32
    %582 = vector.broadcast %cst_121 : f32 to vector<8x16xf32>
    %583 = arith.mulf %582, %581 : vector<8x16xf32>
    %584 = arith.mulf %573, %513 : vector<8x16xf32>
    %585 = arith.mulf %565, %575 : vector<8x16xf32>
    %586 = arith.addf %584, %585 : vector<8x16xf32>
    %587 = math.tanh %586 : vector<8x16xf32>
    %588 = arith.mulf %583, %587 : vector<8x16xf32>
    %589 = vector.extract_strided_slice %8 {offsets = [0, 1], sizes = [8, 1], strides = [1, 1]} : vector<8x7xf32> to vector<8x1xf32>
    %cst_122 = arith.constant dense<0.000000e+00> : vector<8x112xf32>
    %590 = tpu.matmul %588, %508, %cst_122 {dimension_numbers = #tpu.dot_dimension_numbers<[1], [0], [0], [1], [0, 0, 1, 1], [], []>} : vector<8x16xf32>, vector<16x112xf32>, vector<8x112xf32> -> vector<8x112xf32>
    %591 = vector.broadcast %589 : vector<8x1xf32> to vector<8x32xf32>
    %592 = vector.broadcast %507 : vector<1x32xf32> to vector<8x32xf32>
    %593 = arith.mulf %591, %592 : vector<8x32xf32>
    %594 = arith.addf %506, %593 : vector<8x32xf32>
    %595 = vector.extract_strided_slice %590 {offsets = [0, 0], sizes = [8, 32], strides = [1, 1]} : vector<8x112xf32> to vector<8x32xf32>
    %596 = arith.addf %594, %595 : vector<8x32xf32>
    %cst_123 = arith.constant dense<0.000000e+00> : vector<8x32xf32>
    %597 = tpu.matmul %586, %509, %cst_123 {dimension_numbers = #tpu.dot_dimension_numbers<[1], [0], [0], [1], [0, 0, 1, 1], [], []>} : vector<8x16xf32>, vector<16x32xf32>, vector<8x32xf32> -> vector<8x32xf32>
    %598 = arith.addf %596, %597 : vector<8x32xf32>
    %599 = vector.extract_strided_slice %590 {offsets = [0, 32], sizes = [8, 64], strides = [1, 1]} : vector<8x112xf32> to vector<8x64xf32>
    %600 = vector.broadcast %512 : vector<1x64xf32> to vector<8x64xf32>
    %601 = arith.addf %599, %600 : vector<8x64xf32>
    %602 = vector.extract_strided_slice %590 {offsets = [0, 96], sizes = [8, 16], strides = [1, 1]} : vector<8x112xf32> to vector<8x16xf32>
    %603 = math.tanh %598 : vector<8x32xf32>
    %cst_124 = arith.constant dense<0.000000e+00> : vector<8x4xf32>
    %604 = tpu.matmul %603, %511, %cst_124 {dimension_numbers = #tpu.dot_dimension_numbers<[1], [0], [0], [1], [0, 0, 1, 1], [], []>} : vector<8x32xf32>, vector<32x4xf32>, vector<8x4xf32> -> vector<8x4xf32>
    %605 = vector.broadcast %2 : vector<1x1xf32> to vector<8x4xf32>
    %606 = arith.addf %604, %605 : vector<8x4xf32>
    %cst_125 = arith.constant dense<0xFF800000> : vector<8xf32>
    %607 = vector.multi_reduction <maximumf>, %606, %cst_125 [1] : vector<8x4xf32> to vector<8xf32>
    %608 = vector.shape_cast %607 : vector<8xf32> to vector<8x1xf32>
    %609 = vector.broadcast %608 : vector<8x1xf32> to vector<8x4xf32>
    %610 = arith.subf %606, %609 : vector<8x4xf32>
    %611 = math.exp %610 : vector<8x4xf32>
    %cst_126 = arith.constant dense<0.000000e+00> : vector<8xf32>
    %612 = vector.multi_reduction <add>, %611, %cst_126 [1] : vector<8x4xf32> to vector<8xf32>
    %613 = vector.shape_cast %612 : vector<8xf32> to vector<8x1xf32>
    %614 = vector.broadcast %613 : vector<8x1xf32> to vector<8x4xf32>
    %615 = arith.divf %611, %614 : vector<8x4xf32>
    %616 = arith.mulf %615, %113 : vector<8x4xf32>
    %617 = vector.extract_strided_slice %616 {offsets = [0, 0], sizes = [8, 1], strides = [1, 1]} : vector<8x4xf32> to vector<8x1xf32>
    %618 = vector.extract_strided_slice %510 {offsets = [0, 0], sizes = [1, 64], strides = [1, 1]} : vector<4x64xf32> to vector<1x64xf32>
    %619 = vector.broadcast %617 : vector<8x1xf32> to vector<8x64xf32>
    %620 = vector.broadcast %618 : vector<1x64xf32> to vector<8x64xf32>
    %621 = arith.mulf %619, %620 : vector<8x64xf32>
    %622 = arith.addf %601, %621 : vector<8x64xf32>
    %623 = vector.extract_strided_slice %616 {offsets = [0, 1], sizes = [8, 1], strides = [1, 1]} : vector<8x4xf32> to vector<8x1xf32>
    %624 = vector.extract_strided_slice %510 {offsets = [1, 0], sizes = [1, 64], strides = [1, 1]} : vector<4x64xf32> to vector<1x64xf32>
    %625 = vector.broadcast %623 : vector<8x1xf32> to vector<8x64xf32>
    %626 = vector.broadcast %624 : vector<1x64xf32> to vector<8x64xf32>
    %627 = arith.mulf %625, %626 : vector<8x64xf32>
    %628 = arith.addf %622, %627 : vector<8x64xf32>
    %629 = vector.extract_strided_slice %616 {offsets = [0, 2], sizes = [8, 1], strides = [1, 1]} : vector<8x4xf32> to vector<8x1xf32>
    %630 = vector.extract_strided_slice %510 {offsets = [2, 0], sizes = [1, 64], strides = [1, 1]} : vector<4x64xf32> to vector<1x64xf32>
    %631 = vector.broadcast %629 : vector<8x1xf32> to vector<8x64xf32>
    %632 = vector.broadcast %630 : vector<1x64xf32> to vector<8x64xf32>
    %633 = arith.mulf %631, %632 : vector<8x64xf32>
    %634 = arith.addf %628, %633 : vector<8x64xf32>
    %635 = vector.extract_strided_slice %616 {offsets = [0, 3], sizes = [8, 1], strides = [1, 1]} : vector<8x4xf32> to vector<8x1xf32>
    %636 = vector.extract_strided_slice %510 {offsets = [3, 0], sizes = [1, 64], strides = [1, 1]} : vector<4x64xf32> to vector<1x64xf32>
    %637 = vector.broadcast %635 : vector<8x1xf32> to vector<8x64xf32>
    %638 = vector.broadcast %636 : vector<1x64xf32> to vector<8x64xf32>
    %639 = arith.mulf %637, %638 : vector<8x64xf32>
    %640 = arith.addf %634, %639 : vector<8x64xf32>
    %641 = vector.extract_strided_slice %640 {offsets = [0, 0], sizes = [8, 16], strides = [1, 1]} : vector<8x64xf32> to vector<8x16xf32>
    %cst_127 = arith.constant 5.000000e-01 : f32
    %642 = vector.broadcast %cst_127 : f32 to vector<8x16xf32>
    %643 = arith.mulf %642, %641 : vector<8x16xf32>
    %644 = math.tanh %643 : vector<8x16xf32>
    %cst_128 = arith.constant 1.000000e+00 : f32
    %645 = vector.broadcast %cst_128 : f32 to vector<8x16xf32>
    %646 = arith.addf %644, %645 : vector<8x16xf32>
    %cst_129 = arith.constant 5.000000e-01 : f32
    %647 = vector.broadcast %cst_129 : f32 to vector<8x16xf32>
    %648 = arith.mulf %647, %646 : vector<8x16xf32>
    %649 = vector.extract_strided_slice %640 {offsets = [0, 16], sizes = [8, 16], strides = [1, 1]} : vector<8x64xf32> to vector<8x16xf32>
    %cst_130 = arith.constant 5.000000e-01 : f32
    %650 = vector.broadcast %cst_130 : f32 to vector<8x16xf32>
    %651 = arith.mulf %650, %649 : vector<8x16xf32>
    %652 = math.tanh %651 : vector<8x16xf32>
    %cst_131 = arith.constant 1.000000e+00 : f32
    %653 = vector.broadcast %cst_131 : f32 to vector<8x16xf32>
    %654 = arith.addf %652, %653 : vector<8x16xf32>
    %cst_132 = arith.constant 5.000000e-01 : f32
    %655 = vector.broadcast %cst_132 : f32 to vector<8x16xf32>
    %656 = arith.mulf %655, %654 : vector<8x16xf32>
    %657 = vector.extract_strided_slice %640 {offsets = [0, 32], sizes = [8, 16], strides = [1, 1]} : vector<8x64xf32> to vector<8x16xf32>
    %658 = math.tanh %657 : vector<8x16xf32>
    %659 = vector.extract_strided_slice %640 {offsets = [0, 48], sizes = [8, 16], strides = [1, 1]} : vector<8x64xf32> to vector<8x16xf32>
    %cst_133 = arith.constant 5.000000e-01 : f32
    %660 = vector.broadcast %cst_133 : f32 to vector<8x16xf32>
    %661 = arith.mulf %660, %659 : vector<8x16xf32>
    %662 = math.tanh %661 : vector<8x16xf32>
    %cst_134 = arith.constant 1.000000e+00 : f32
    %663 = vector.broadcast %cst_134 : f32 to vector<8x16xf32>
    %664 = arith.addf %662, %663 : vector<8x16xf32>
    %cst_135 = arith.constant 5.000000e-01 : f32
    %665 = vector.broadcast %cst_135 : f32 to vector<8x16xf32>
    %666 = arith.mulf %665, %664 : vector<8x16xf32>
    %667 = arith.mulf %656, %586 : vector<8x16xf32>
    %668 = arith.mulf %648, %658 : vector<8x16xf32>
    %669 = arith.addf %667, %668 : vector<8x16xf32>
    %670 = math.tanh %669 : vector<8x16xf32>
    %671 = arith.mulf %666, %670 : vector<8x16xf32>
    %672 = vector.extract_strided_slice %8 {offsets = [0, 2], sizes = [8, 1], strides = [1, 1]} : vector<8x7xf32> to vector<8x1xf32>
    %cst_136 = arith.constant dense<0.000000e+00> : vector<8x112xf32>
    %673 = tpu.matmul %671, %508, %cst_136 {dimension_numbers = #tpu.dot_dimension_numbers<[1], [0], [0], [1], [0, 0, 1, 1], [], []>} : vector<8x16xf32>, vector<16x112xf32>, vector<8x112xf32> -> vector<8x112xf32>
    %674 = vector.broadcast %672 : vector<8x1xf32> to vector<8x32xf32>
    %675 = vector.broadcast %507 : vector<1x32xf32> to vector<8x32xf32>
    %676 = arith.mulf %674, %675 : vector<8x32xf32>
    %677 = arith.addf %506, %676 : vector<8x32xf32>
    %678 = vector.extract_strided_slice %673 {offsets = [0, 0], sizes = [8, 32], strides = [1, 1]} : vector<8x112xf32> to vector<8x32xf32>
    %679 = arith.addf %677, %678 : vector<8x32xf32>
    %cst_137 = arith.constant dense<0.000000e+00> : vector<8x32xf32>
    %680 = tpu.matmul %669, %509, %cst_137 {dimension_numbers = #tpu.dot_dimension_numbers<[1], [0], [0], [1], [0, 0, 1, 1], [], []>} : vector<8x16xf32>, vector<16x32xf32>, vector<8x32xf32> -> vector<8x32xf32>
    %681 = arith.addf %679, %680 : vector<8x32xf32>
    %682 = vector.extract_strided_slice %673 {offsets = [0, 32], sizes = [8, 64], strides = [1, 1]} : vector<8x112xf32> to vector<8x64xf32>
    %683 = vector.broadcast %512 : vector<1x64xf32> to vector<8x64xf32>
    %684 = arith.addf %682, %683 : vector<8x64xf32>
    %685 = vector.extract_strided_slice %673 {offsets = [0, 96], sizes = [8, 16], strides = [1, 1]} : vector<8x112xf32> to vector<8x16xf32>
    %686 = math.tanh %681 : vector<8x32xf32>
    %cst_138 = arith.constant dense<0.000000e+00> : vector<8x4xf32>
    %687 = tpu.matmul %686, %511, %cst_138 {dimension_numbers = #tpu.dot_dimension_numbers<[1], [0], [0], [1], [0, 0, 1, 1], [], []>} : vector<8x32xf32>, vector<32x4xf32>, vector<8x4xf32> -> vector<8x4xf32>
    %688 = vector.broadcast %2 : vector<1x1xf32> to vector<8x4xf32>
    %689 = arith.addf %687, %688 : vector<8x4xf32>
    %cst_139 = arith.constant dense<0xFF800000> : vector<8xf32>
    %690 = vector.multi_reduction <maximumf>, %689, %cst_139 [1] : vector<8x4xf32> to vector<8xf32>
    %691 = vector.shape_cast %690 : vector<8xf32> to vector<8x1xf32>
    %692 = vector.broadcast %691 : vector<8x1xf32> to vector<8x4xf32>
    %693 = arith.subf %689, %692 : vector<8x4xf32>
    %694 = math.exp %693 : vector<8x4xf32>
    %cst_140 = arith.constant dense<0.000000e+00> : vector<8xf32>
    %695 = vector.multi_reduction <add>, %694, %cst_140 [1] : vector<8x4xf32> to vector<8xf32>
    %696 = vector.shape_cast %695 : vector<8xf32> to vector<8x1xf32>
    %697 = vector.broadcast %696 : vector<8x1xf32> to vector<8x4xf32>
    %698 = arith.divf %694, %697 : vector<8x4xf32>
    %699 = arith.mulf %698, %191 : vector<8x4xf32>
    %700 = vector.extract_strided_slice %699 {offsets = [0, 0], sizes = [8, 1], strides = [1, 1]} : vector<8x4xf32> to vector<8x1xf32>
    %701 = vector.extract_strided_slice %510 {offsets = [0, 0], sizes = [1, 64], strides = [1, 1]} : vector<4x64xf32> to vector<1x64xf32>
    %702 = vector.broadcast %700 : vector<8x1xf32> to vector<8x64xf32>
    %703 = vector.broadcast %701 : vector<1x64xf32> to vector<8x64xf32>
    %704 = arith.mulf %702, %703 : vector<8x64xf32>
    %705 = arith.addf %684, %704 : vector<8x64xf32>
    %706 = vector.extract_strided_slice %699 {offsets = [0, 1], sizes = [8, 1], strides = [1, 1]} : vector<8x4xf32> to vector<8x1xf32>
    %707 = vector.extract_strided_slice %510 {offsets = [1, 0], sizes = [1, 64], strides = [1, 1]} : vector<4x64xf32> to vector<1x64xf32>
    %708 = vector.broadcast %706 : vector<8x1xf32> to vector<8x64xf32>
    %709 = vector.broadcast %707 : vector<1x64xf32> to vector<8x64xf32>
    %710 = arith.mulf %708, %709 : vector<8x64xf32>
    %711 = arith.addf %705, %710 : vector<8x64xf32>
    %712 = vector.extract_strided_slice %699 {offsets = [0, 2], sizes = [8, 1], strides = [1, 1]} : vector<8x4xf32> to vector<8x1xf32>
    %713 = vector.extract_strided_slice %510 {offsets = [2, 0], sizes = [1, 64], strides = [1, 1]} : vector<4x64xf32> to vector<1x64xf32>
    %714 = vector.broadcast %712 : vector<8x1xf32> to vector<8x64xf32>
    %715 = vector.broadcast %713 : vector<1x64xf32> to vector<8x64xf32>
    %716 = arith.mulf %714, %715 : vector<8x64xf32>
    %717 = arith.addf %711, %716 : vector<8x64xf32>
    %718 = vector.extract_strided_slice %699 {offsets = [0, 3], sizes = [8, 1], strides = [1, 1]} : vector<8x4xf32> to vector<8x1xf32>
    %719 = vector.extract_strided_slice %510 {offsets = [3, 0], sizes = [1, 64], strides = [1, 1]} : vector<4x64xf32> to vector<1x64xf32>
    %720 = vector.broadcast %718 : vector<8x1xf32> to vector<8x64xf32>
    %721 = vector.broadcast %719 : vector<1x64xf32> to vector<8x64xf32>
    %722 = arith.mulf %720, %721 : vector<8x64xf32>
    %723 = arith.addf %717, %722 : vector<8x64xf32>
    %724 = vector.extract_strided_slice %723 {offsets = [0, 0], sizes = [8, 16], strides = [1, 1]} : vector<8x64xf32> to vector<8x16xf32>
    %cst_141 = arith.constant 5.000000e-01 : f32
    %725 = vector.broadcast %cst_141 : f32 to vector<8x16xf32>
    %726 = arith.mulf %725, %724 : vector<8x16xf32>
    %727 = math.tanh %726 : vector<8x16xf32>
    %cst_142 = arith.constant 1.000000e+00 : f32
    %728 = vector.broadcast %cst_142 : f32 to vector<8x16xf32>
    %729 = arith.addf %727, %728 : vector<8x16xf32>
    %cst_143 = arith.constant 5.000000e-01 : f32
    %730 = vector.broadcast %cst_143 : f32 to vector<8x16xf32>
    %731 = arith.mulf %730, %729 : vector<8x16xf32>
    %732 = vector.extract_strided_slice %723 {offsets = [0, 16], sizes = [8, 16], strides = [1, 1]} : vector<8x64xf32> to vector<8x16xf32>
    %cst_144 = arith.constant 5.000000e-01 : f32
    %733 = vector.broadcast %cst_144 : f32 to vector<8x16xf32>
    %734 = arith.mulf %733, %732 : vector<8x16xf32>
    %735 = math.tanh %734 : vector<8x16xf32>
    %cst_145 = arith.constant 1.000000e+00 : f32
    %736 = vector.broadcast %cst_145 : f32 to vector<8x16xf32>
    %737 = arith.addf %735, %736 : vector<8x16xf32>
    %cst_146 = arith.constant 5.000000e-01 : f32
    %738 = vector.broadcast %cst_146 : f32 to vector<8x16xf32>
    %739 = arith.mulf %738, %737 : vector<8x16xf32>
    %740 = vector.extract_strided_slice %723 {offsets = [0, 32], sizes = [8, 16], strides = [1, 1]} : vector<8x64xf32> to vector<8x16xf32>
    %741 = math.tanh %740 : vector<8x16xf32>
    %742 = vector.extract_strided_slice %723 {offsets = [0, 48], sizes = [8, 16], strides = [1, 1]} : vector<8x64xf32> to vector<8x16xf32>
    %cst_147 = arith.constant 5.000000e-01 : f32
    %743 = vector.broadcast %cst_147 : f32 to vector<8x16xf32>
    %744 = arith.mulf %743, %742 : vector<8x16xf32>
    %745 = math.tanh %744 : vector<8x16xf32>
    %cst_148 = arith.constant 1.000000e+00 : f32
    %746 = vector.broadcast %cst_148 : f32 to vector<8x16xf32>
    %747 = arith.addf %745, %746 : vector<8x16xf32>
    %cst_149 = arith.constant 5.000000e-01 : f32
    %748 = vector.broadcast %cst_149 : f32 to vector<8x16xf32>
    %749 = arith.mulf %748, %747 : vector<8x16xf32>
    %750 = arith.mulf %739, %669 : vector<8x16xf32>
    %751 = arith.mulf %731, %741 : vector<8x16xf32>
    %752 = arith.addf %750, %751 : vector<8x16xf32>
    %753 = math.tanh %752 : vector<8x16xf32>
    %754 = arith.mulf %749, %753 : vector<8x16xf32>
    %755 = vector.extract_strided_slice %8 {offsets = [0, 3], sizes = [8, 1], strides = [1, 1]} : vector<8x7xf32> to vector<8x1xf32>
    %cst_150 = arith.constant dense<0.000000e+00> : vector<8x112xf32>
    %756 = tpu.matmul %754, %508, %cst_150 {dimension_numbers = #tpu.dot_dimension_numbers<[1], [0], [0], [1], [0, 0, 1, 1], [], []>} : vector<8x16xf32>, vector<16x112xf32>, vector<8x112xf32> -> vector<8x112xf32>
    %757 = vector.broadcast %755 : vector<8x1xf32> to vector<8x32xf32>
    %758 = vector.broadcast %507 : vector<1x32xf32> to vector<8x32xf32>
    %759 = arith.mulf %757, %758 : vector<8x32xf32>
    %760 = arith.addf %506, %759 : vector<8x32xf32>
    %761 = vector.extract_strided_slice %756 {offsets = [0, 0], sizes = [8, 32], strides = [1, 1]} : vector<8x112xf32> to vector<8x32xf32>
    %762 = arith.addf %760, %761 : vector<8x32xf32>
    %cst_151 = arith.constant dense<0.000000e+00> : vector<8x32xf32>
    %763 = tpu.matmul %752, %509, %cst_151 {dimension_numbers = #tpu.dot_dimension_numbers<[1], [0], [0], [1], [0, 0, 1, 1], [], []>} : vector<8x16xf32>, vector<16x32xf32>, vector<8x32xf32> -> vector<8x32xf32>
    %764 = arith.addf %762, %763 : vector<8x32xf32>
    %765 = vector.extract_strided_slice %756 {offsets = [0, 32], sizes = [8, 64], strides = [1, 1]} : vector<8x112xf32> to vector<8x64xf32>
    %766 = vector.broadcast %512 : vector<1x64xf32> to vector<8x64xf32>
    %767 = arith.addf %765, %766 : vector<8x64xf32>
    %768 = vector.extract_strided_slice %756 {offsets = [0, 96], sizes = [8, 16], strides = [1, 1]} : vector<8x112xf32> to vector<8x16xf32>
    %769 = math.tanh %764 : vector<8x32xf32>
    %cst_152 = arith.constant dense<0.000000e+00> : vector<8x4xf32>
    %770 = tpu.matmul %769, %511, %cst_152 {dimension_numbers = #tpu.dot_dimension_numbers<[1], [0], [0], [1], [0, 0, 1, 1], [], []>} : vector<8x32xf32>, vector<32x4xf32>, vector<8x4xf32> -> vector<8x4xf32>
    %771 = vector.broadcast %2 : vector<1x1xf32> to vector<8x4xf32>
    %772 = arith.addf %770, %771 : vector<8x4xf32>
    %cst_153 = arith.constant dense<0xFF800000> : vector<8xf32>
    %773 = vector.multi_reduction <maximumf>, %772, %cst_153 [1] : vector<8x4xf32> to vector<8xf32>
    %774 = vector.shape_cast %773 : vector<8xf32> to vector<8x1xf32>
    %775 = vector.broadcast %774 : vector<8x1xf32> to vector<8x4xf32>
    %776 = arith.subf %772, %775 : vector<8x4xf32>
    %777 = math.exp %776 : vector<8x4xf32>
    %cst_154 = arith.constant dense<0.000000e+00> : vector<8xf32>
    %778 = vector.multi_reduction <add>, %777, %cst_154 [1] : vector<8x4xf32> to vector<8xf32>
    %779 = vector.shape_cast %778 : vector<8xf32> to vector<8x1xf32>
    %780 = vector.broadcast %779 : vector<8x1xf32> to vector<8x4xf32>
    %781 = arith.divf %777, %780 : vector<8x4xf32>
    %782 = arith.mulf %781, %269 : vector<8x4xf32>
    %783 = vector.extract_strided_slice %782 {offsets = [0, 0], sizes = [8, 1], strides = [1, 1]} : vector<8x4xf32> to vector<8x1xf32>
    %784 = vector.extract_strided_slice %510 {offsets = [0, 0], sizes = [1, 64], strides = [1, 1]} : vector<4x64xf32> to vector<1x64xf32>
    %785 = vector.broadcast %783 : vector<8x1xf32> to vector<8x64xf32>
    %786 = vector.broadcast %784 : vector<1x64xf32> to vector<8x64xf32>
    %787 = arith.mulf %785, %786 : vector<8x64xf32>
    %788 = arith.addf %767, %787 : vector<8x64xf32>
    %789 = vector.extract_strided_slice %782 {offsets = [0, 1], sizes = [8, 1], strides = [1, 1]} : vector<8x4xf32> to vector<8x1xf32>
    %790 = vector.extract_strided_slice %510 {offsets = [1, 0], sizes = [1, 64], strides = [1, 1]} : vector<4x64xf32> to vector<1x64xf32>
    %791 = vector.broadcast %789 : vector<8x1xf32> to vector<8x64xf32>
    %792 = vector.broadcast %790 : vector<1x64xf32> to vector<8x64xf32>
    %793 = arith.mulf %791, %792 : vector<8x64xf32>
    %794 = arith.addf %788, %793 : vector<8x64xf32>
    %795 = vector.extract_strided_slice %782 {offsets = [0, 2], sizes = [8, 1], strides = [1, 1]} : vector<8x4xf32> to vector<8x1xf32>
    %796 = vector.extract_strided_slice %510 {offsets = [2, 0], sizes = [1, 64], strides = [1, 1]} : vector<4x64xf32> to vector<1x64xf32>
    %797 = vector.broadcast %795 : vector<8x1xf32> to vector<8x64xf32>
    %798 = vector.broadcast %796 : vector<1x64xf32> to vector<8x64xf32>
    %799 = arith.mulf %797, %798 : vector<8x64xf32>
    %800 = arith.addf %794, %799 : vector<8x64xf32>
    %801 = vector.extract_strided_slice %782 {offsets = [0, 3], sizes = [8, 1], strides = [1, 1]} : vector<8x4xf32> to vector<8x1xf32>
    %802 = vector.extract_strided_slice %510 {offsets = [3, 0], sizes = [1, 64], strides = [1, 1]} : vector<4x64xf32> to vector<1x64xf32>
    %803 = vector.broadcast %801 : vector<8x1xf32> to vector<8x64xf32>
    %804 = vector.broadcast %802 : vector<1x64xf32> to vector<8x64xf32>
    %805 = arith.mulf %803, %804 : vector<8x64xf32>
    %806 = arith.addf %800, %805 : vector<8x64xf32>
    %807 = vector.extract_strided_slice %806 {offsets = [0, 0], sizes = [8, 16], strides = [1, 1]} : vector<8x64xf32> to vector<8x16xf32>
    %cst_155 = arith.constant 5.000000e-01 : f32
    %808 = vector.broadcast %cst_155 : f32 to vector<8x16xf32>
    %809 = arith.mulf %808, %807 : vector<8x16xf32>
    %810 = math.tanh %809 : vector<8x16xf32>
    %cst_156 = arith.constant 1.000000e+00 : f32
    %811 = vector.broadcast %cst_156 : f32 to vector<8x16xf32>
    %812 = arith.addf %810, %811 : vector<8x16xf32>
    %cst_157 = arith.constant 5.000000e-01 : f32
    %813 = vector.broadcast %cst_157 : f32 to vector<8x16xf32>
    %814 = arith.mulf %813, %812 : vector<8x16xf32>
    %815 = vector.extract_strided_slice %806 {offsets = [0, 16], sizes = [8, 16], strides = [1, 1]} : vector<8x64xf32> to vector<8x16xf32>
    %cst_158 = arith.constant 5.000000e-01 : f32
    %816 = vector.broadcast %cst_158 : f32 to vector<8x16xf32>
    %817 = arith.mulf %816, %815 : vector<8x16xf32>
    %818 = math.tanh %817 : vector<8x16xf32>
    %cst_159 = arith.constant 1.000000e+00 : f32
    %819 = vector.broadcast %cst_159 : f32 to vector<8x16xf32>
    %820 = arith.addf %818, %819 : vector<8x16xf32>
    %cst_160 = arith.constant 5.000000e-01 : f32
    %821 = vector.broadcast %cst_160 : f32 to vector<8x16xf32>
    %822 = arith.mulf %821, %820 : vector<8x16xf32>
    %823 = vector.extract_strided_slice %806 {offsets = [0, 32], sizes = [8, 16], strides = [1, 1]} : vector<8x64xf32> to vector<8x16xf32>
    %824 = math.tanh %823 : vector<8x16xf32>
    %825 = vector.extract_strided_slice %806 {offsets = [0, 48], sizes = [8, 16], strides = [1, 1]} : vector<8x64xf32> to vector<8x16xf32>
    %cst_161 = arith.constant 5.000000e-01 : f32
    %826 = vector.broadcast %cst_161 : f32 to vector<8x16xf32>
    %827 = arith.mulf %826, %825 : vector<8x16xf32>
    %828 = math.tanh %827 : vector<8x16xf32>
    %cst_162 = arith.constant 1.000000e+00 : f32
    %829 = vector.broadcast %cst_162 : f32 to vector<8x16xf32>
    %830 = arith.addf %828, %829 : vector<8x16xf32>
    %cst_163 = arith.constant 5.000000e-01 : f32
    %831 = vector.broadcast %cst_163 : f32 to vector<8x16xf32>
    %832 = arith.mulf %831, %830 : vector<8x16xf32>
    %833 = arith.mulf %822, %752 : vector<8x16xf32>
    %834 = arith.mulf %814, %824 : vector<8x16xf32>
    %835 = arith.addf %833, %834 : vector<8x16xf32>
    %836 = math.tanh %835 : vector<8x16xf32>
    %837 = arith.mulf %832, %836 : vector<8x16xf32>
    %838 = vector.extract_strided_slice %8 {offsets = [0, 4], sizes = [8, 1], strides = [1, 1]} : vector<8x7xf32> to vector<8x1xf32>
    %cst_164 = arith.constant dense<0.000000e+00> : vector<8x112xf32>
    %839 = tpu.matmul %837, %508, %cst_164 {dimension_numbers = #tpu.dot_dimension_numbers<[1], [0], [0], [1], [0, 0, 1, 1], [], []>} : vector<8x16xf32>, vector<16x112xf32>, vector<8x112xf32> -> vector<8x112xf32>
    %840 = vector.broadcast %838 : vector<8x1xf32> to vector<8x32xf32>
    %841 = vector.broadcast %507 : vector<1x32xf32> to vector<8x32xf32>
    %842 = arith.mulf %840, %841 : vector<8x32xf32>
    %843 = arith.addf %506, %842 : vector<8x32xf32>
    %844 = vector.extract_strided_slice %839 {offsets = [0, 0], sizes = [8, 32], strides = [1, 1]} : vector<8x112xf32> to vector<8x32xf32>
    %845 = arith.addf %843, %844 : vector<8x32xf32>
    %cst_165 = arith.constant dense<0.000000e+00> : vector<8x32xf32>
    %846 = tpu.matmul %835, %509, %cst_165 {dimension_numbers = #tpu.dot_dimension_numbers<[1], [0], [0], [1], [0, 0, 1, 1], [], []>} : vector<8x16xf32>, vector<16x32xf32>, vector<8x32xf32> -> vector<8x32xf32>
    %847 = arith.addf %845, %846 : vector<8x32xf32>
    %848 = vector.extract_strided_slice %839 {offsets = [0, 32], sizes = [8, 64], strides = [1, 1]} : vector<8x112xf32> to vector<8x64xf32>
    %849 = vector.broadcast %512 : vector<1x64xf32> to vector<8x64xf32>
    %850 = arith.addf %848, %849 : vector<8x64xf32>
    %851 = vector.extract_strided_slice %839 {offsets = [0, 96], sizes = [8, 16], strides = [1, 1]} : vector<8x112xf32> to vector<8x16xf32>
    %852 = math.tanh %847 : vector<8x32xf32>
    %cst_166 = arith.constant dense<0.000000e+00> : vector<8x4xf32>
    %853 = tpu.matmul %852, %511, %cst_166 {dimension_numbers = #tpu.dot_dimension_numbers<[1], [0], [0], [1], [0, 0, 1, 1], [], []>} : vector<8x32xf32>, vector<32x4xf32>, vector<8x4xf32> -> vector<8x4xf32>
    %854 = vector.broadcast %2 : vector<1x1xf32> to vector<8x4xf32>
    %855 = arith.addf %853, %854 : vector<8x4xf32>
    %cst_167 = arith.constant dense<0xFF800000> : vector<8xf32>
    %856 = vector.multi_reduction <maximumf>, %855, %cst_167 [1] : vector<8x4xf32> to vector<8xf32>
    %857 = vector.shape_cast %856 : vector<8xf32> to vector<8x1xf32>
    %858 = vector.broadcast %857 : vector<8x1xf32> to vector<8x4xf32>
    %859 = arith.subf %855, %858 : vector<8x4xf32>
    %860 = math.exp %859 : vector<8x4xf32>
    %cst_168 = arith.constant dense<0.000000e+00> : vector<8xf32>
    %861 = vector.multi_reduction <add>, %860, %cst_168 [1] : vector<8x4xf32> to vector<8xf32>
    %862 = vector.shape_cast %861 : vector<8xf32> to vector<8x1xf32>
    %863 = vector.broadcast %862 : vector<8x1xf32> to vector<8x4xf32>
    %864 = arith.divf %860, %863 : vector<8x4xf32>
    %865 = arith.mulf %864, %347 : vector<8x4xf32>
    %866 = vector.extract_strided_slice %865 {offsets = [0, 0], sizes = [8, 1], strides = [1, 1]} : vector<8x4xf32> to vector<8x1xf32>
    %867 = vector.extract_strided_slice %510 {offsets = [0, 0], sizes = [1, 64], strides = [1, 1]} : vector<4x64xf32> to vector<1x64xf32>
    %868 = vector.broadcast %866 : vector<8x1xf32> to vector<8x64xf32>
    %869 = vector.broadcast %867 : vector<1x64xf32> to vector<8x64xf32>
    %870 = arith.mulf %868, %869 : vector<8x64xf32>
    %871 = arith.addf %850, %870 : vector<8x64xf32>
    %872 = vector.extract_strided_slice %865 {offsets = [0, 1], sizes = [8, 1], strides = [1, 1]} : vector<8x4xf32> to vector<8x1xf32>
    %873 = vector.extract_strided_slice %510 {offsets = [1, 0], sizes = [1, 64], strides = [1, 1]} : vector<4x64xf32> to vector<1x64xf32>
    %874 = vector.broadcast %872 : vector<8x1xf32> to vector<8x64xf32>
    %875 = vector.broadcast %873 : vector<1x64xf32> to vector<8x64xf32>
    %876 = arith.mulf %874, %875 : vector<8x64xf32>
    %877 = arith.addf %871, %876 : vector<8x64xf32>
    %878 = vector.extract_strided_slice %865 {offsets = [0, 2], sizes = [8, 1], strides = [1, 1]} : vector<8x4xf32> to vector<8x1xf32>
    %879 = vector.extract_strided_slice %510 {offsets = [2, 0], sizes = [1, 64], strides = [1, 1]} : vector<4x64xf32> to vector<1x64xf32>
    %880 = vector.broadcast %878 : vector<8x1xf32> to vector<8x64xf32>
    %881 = vector.broadcast %879 : vector<1x64xf32> to vector<8x64xf32>
    %882 = arith.mulf %880, %881 : vector<8x64xf32>
    %883 = arith.addf %877, %882 : vector<8x64xf32>
    %884 = vector.extract_strided_slice %865 {offsets = [0, 3], sizes = [8, 1], strides = [1, 1]} : vector<8x4xf32> to vector<8x1xf32>
    %885 = vector.extract_strided_slice %510 {offsets = [3, 0], sizes = [1, 64], strides = [1, 1]} : vector<4x64xf32> to vector<1x64xf32>
    %886 = vector.broadcast %884 : vector<8x1xf32> to vector<8x64xf32>
    %887 = vector.broadcast %885 : vector<1x64xf32> to vector<8x64xf32>
    %888 = arith.mulf %886, %887 : vector<8x64xf32>
    %889 = arith.addf %883, %888 : vector<8x64xf32>
    %890 = vector.extract_strided_slice %889 {offsets = [0, 0], sizes = [8, 16], strides = [1, 1]} : vector<8x64xf32> to vector<8x16xf32>
    %cst_169 = arith.constant 5.000000e-01 : f32
    %891 = vector.broadcast %cst_169 : f32 to vector<8x16xf32>
    %892 = arith.mulf %891, %890 : vector<8x16xf32>
    %893 = math.tanh %892 : vector<8x16xf32>
    %cst_170 = arith.constant 1.000000e+00 : f32
    %894 = vector.broadcast %cst_170 : f32 to vector<8x16xf32>
    %895 = arith.addf %893, %894 : vector<8x16xf32>
    %cst_171 = arith.constant 5.000000e-01 : f32
    %896 = vector.broadcast %cst_171 : f32 to vector<8x16xf32>
    %897 = arith.mulf %896, %895 : vector<8x16xf32>
    %898 = vector.extract_strided_slice %889 {offsets = [0, 16], sizes = [8, 16], strides = [1, 1]} : vector<8x64xf32> to vector<8x16xf32>
    %cst_172 = arith.constant 5.000000e-01 : f32
    %899 = vector.broadcast %cst_172 : f32 to vector<8x16xf32>
    %900 = arith.mulf %899, %898 : vector<8x16xf32>
    %901 = math.tanh %900 : vector<8x16xf32>
    %cst_173 = arith.constant 1.000000e+00 : f32
    %902 = vector.broadcast %cst_173 : f32 to vector<8x16xf32>
    %903 = arith.addf %901, %902 : vector<8x16xf32>
    %cst_174 = arith.constant 5.000000e-01 : f32
    %904 = vector.broadcast %cst_174 : f32 to vector<8x16xf32>
    %905 = arith.mulf %904, %903 : vector<8x16xf32>
    %906 = vector.extract_strided_slice %889 {offsets = [0, 32], sizes = [8, 16], strides = [1, 1]} : vector<8x64xf32> to vector<8x16xf32>
    %907 = math.tanh %906 : vector<8x16xf32>
    %908 = vector.extract_strided_slice %889 {offsets = [0, 48], sizes = [8, 16], strides = [1, 1]} : vector<8x64xf32> to vector<8x16xf32>
    %cst_175 = arith.constant 5.000000e-01 : f32
    %909 = vector.broadcast %cst_175 : f32 to vector<8x16xf32>
    %910 = arith.mulf %909, %908 : vector<8x16xf32>
    %911 = math.tanh %910 : vector<8x16xf32>
    %cst_176 = arith.constant 1.000000e+00 : f32
    %912 = vector.broadcast %cst_176 : f32 to vector<8x16xf32>
    %913 = arith.addf %911, %912 : vector<8x16xf32>
    %cst_177 = arith.constant 5.000000e-01 : f32
    %914 = vector.broadcast %cst_177 : f32 to vector<8x16xf32>
    %915 = arith.mulf %914, %913 : vector<8x16xf32>
    %916 = arith.mulf %905, %835 : vector<8x16xf32>
    %917 = arith.mulf %897, %907 : vector<8x16xf32>
    %918 = arith.addf %916, %917 : vector<8x16xf32>
    %919 = math.tanh %918 : vector<8x16xf32>
    %920 = arith.mulf %915, %919 : vector<8x16xf32>
    %921 = vector.extract_strided_slice %8 {offsets = [0, 5], sizes = [8, 1], strides = [1, 1]} : vector<8x7xf32> to vector<8x1xf32>
    %cst_178 = arith.constant dense<0.000000e+00> : vector<8x112xf32>
    %922 = tpu.matmul %920, %508, %cst_178 {dimension_numbers = #tpu.dot_dimension_numbers<[1], [0], [0], [1], [0, 0, 1, 1], [], []>} : vector<8x16xf32>, vector<16x112xf32>, vector<8x112xf32> -> vector<8x112xf32>
    %923 = vector.broadcast %921 : vector<8x1xf32> to vector<8x32xf32>
    %924 = vector.broadcast %507 : vector<1x32xf32> to vector<8x32xf32>
    %925 = arith.mulf %923, %924 : vector<8x32xf32>
    %926 = arith.addf %506, %925 : vector<8x32xf32>
    %927 = vector.extract_strided_slice %922 {offsets = [0, 0], sizes = [8, 32], strides = [1, 1]} : vector<8x112xf32> to vector<8x32xf32>
    %928 = arith.addf %926, %927 : vector<8x32xf32>
    %cst_179 = arith.constant dense<0.000000e+00> : vector<8x32xf32>
    %929 = tpu.matmul %918, %509, %cst_179 {dimension_numbers = #tpu.dot_dimension_numbers<[1], [0], [0], [1], [0, 0, 1, 1], [], []>} : vector<8x16xf32>, vector<16x32xf32>, vector<8x32xf32> -> vector<8x32xf32>
    %930 = arith.addf %928, %929 : vector<8x32xf32>
    %931 = vector.extract_strided_slice %922 {offsets = [0, 32], sizes = [8, 64], strides = [1, 1]} : vector<8x112xf32> to vector<8x64xf32>
    %932 = vector.broadcast %512 : vector<1x64xf32> to vector<8x64xf32>
    %933 = arith.addf %931, %932 : vector<8x64xf32>
    %934 = vector.extract_strided_slice %922 {offsets = [0, 96], sizes = [8, 16], strides = [1, 1]} : vector<8x112xf32> to vector<8x16xf32>
    %935 = math.tanh %930 : vector<8x32xf32>
    %cst_180 = arith.constant dense<0.000000e+00> : vector<8x4xf32>
    %936 = tpu.matmul %935, %511, %cst_180 {dimension_numbers = #tpu.dot_dimension_numbers<[1], [0], [0], [1], [0, 0, 1, 1], [], []>} : vector<8x32xf32>, vector<32x4xf32>, vector<8x4xf32> -> vector<8x4xf32>
    %937 = vector.broadcast %2 : vector<1x1xf32> to vector<8x4xf32>
    %938 = arith.addf %936, %937 : vector<8x4xf32>
    %cst_181 = arith.constant dense<0xFF800000> : vector<8xf32>
    %939 = vector.multi_reduction <maximumf>, %938, %cst_181 [1] : vector<8x4xf32> to vector<8xf32>
    %940 = vector.shape_cast %939 : vector<8xf32> to vector<8x1xf32>
    %941 = vector.broadcast %940 : vector<8x1xf32> to vector<8x4xf32>
    %942 = arith.subf %938, %941 : vector<8x4xf32>
    %943 = math.exp %942 : vector<8x4xf32>
    %cst_182 = arith.constant dense<0.000000e+00> : vector<8xf32>
    %944 = vector.multi_reduction <add>, %943, %cst_182 [1] : vector<8x4xf32> to vector<8xf32>
    %945 = vector.shape_cast %944 : vector<8xf32> to vector<8x1xf32>
    %946 = vector.broadcast %945 : vector<8x1xf32> to vector<8x4xf32>
    %947 = arith.divf %943, %946 : vector<8x4xf32>
    %948 = arith.mulf %947, %425 : vector<8x4xf32>
    %949 = vector.extract_strided_slice %948 {offsets = [0, 0], sizes = [8, 1], strides = [1, 1]} : vector<8x4xf32> to vector<8x1xf32>
    %950 = vector.extract_strided_slice %510 {offsets = [0, 0], sizes = [1, 64], strides = [1, 1]} : vector<4x64xf32> to vector<1x64xf32>
    %951 = vector.broadcast %949 : vector<8x1xf32> to vector<8x64xf32>
    %952 = vector.broadcast %950 : vector<1x64xf32> to vector<8x64xf32>
    %953 = arith.mulf %951, %952 : vector<8x64xf32>
    %954 = arith.addf %933, %953 : vector<8x64xf32>
    %955 = vector.extract_strided_slice %948 {offsets = [0, 1], sizes = [8, 1], strides = [1, 1]} : vector<8x4xf32> to vector<8x1xf32>
    %956 = vector.extract_strided_slice %510 {offsets = [1, 0], sizes = [1, 64], strides = [1, 1]} : vector<4x64xf32> to vector<1x64xf32>
    %957 = vector.broadcast %955 : vector<8x1xf32> to vector<8x64xf32>
    %958 = vector.broadcast %956 : vector<1x64xf32> to vector<8x64xf32>
    %959 = arith.mulf %957, %958 : vector<8x64xf32>
    %960 = arith.addf %954, %959 : vector<8x64xf32>
    %961 = vector.extract_strided_slice %948 {offsets = [0, 2], sizes = [8, 1], strides = [1, 1]} : vector<8x4xf32> to vector<8x1xf32>
    %962 = vector.extract_strided_slice %510 {offsets = [2, 0], sizes = [1, 64], strides = [1, 1]} : vector<4x64xf32> to vector<1x64xf32>
    %963 = vector.broadcast %961 : vector<8x1xf32> to vector<8x64xf32>
    %964 = vector.broadcast %962 : vector<1x64xf32> to vector<8x64xf32>
    %965 = arith.mulf %963, %964 : vector<8x64xf32>
    %966 = arith.addf %960, %965 : vector<8x64xf32>
    %967 = vector.extract_strided_slice %948 {offsets = [0, 3], sizes = [8, 1], strides = [1, 1]} : vector<8x4xf32> to vector<8x1xf32>
    %968 = vector.extract_strided_slice %510 {offsets = [3, 0], sizes = [1, 64], strides = [1, 1]} : vector<4x64xf32> to vector<1x64xf32>
    %969 = vector.broadcast %967 : vector<8x1xf32> to vector<8x64xf32>
    %970 = vector.broadcast %968 : vector<1x64xf32> to vector<8x64xf32>
    %971 = arith.mulf %969, %970 : vector<8x64xf32>
    %972 = arith.addf %966, %971 : vector<8x64xf32>
    %973 = vector.extract_strided_slice %972 {offsets = [0, 0], sizes = [8, 16], strides = [1, 1]} : vector<8x64xf32> to vector<8x16xf32>
    %cst_183 = arith.constant 5.000000e-01 : f32
    %974 = vector.broadcast %cst_183 : f32 to vector<8x16xf32>
    %975 = arith.mulf %974, %973 : vector<8x16xf32>
    %976 = math.tanh %975 : vector<8x16xf32>
    %cst_184 = arith.constant 1.000000e+00 : f32
    %977 = vector.broadcast %cst_184 : f32 to vector<8x16xf32>
    %978 = arith.addf %976, %977 : vector<8x16xf32>
    %cst_185 = arith.constant 5.000000e-01 : f32
    %979 = vector.broadcast %cst_185 : f32 to vector<8x16xf32>
    %980 = arith.mulf %979, %978 : vector<8x16xf32>
    %981 = vector.extract_strided_slice %972 {offsets = [0, 16], sizes = [8, 16], strides = [1, 1]} : vector<8x64xf32> to vector<8x16xf32>
    %cst_186 = arith.constant 5.000000e-01 : f32
    %982 = vector.broadcast %cst_186 : f32 to vector<8x16xf32>
    %983 = arith.mulf %982, %981 : vector<8x16xf32>
    %984 = math.tanh %983 : vector<8x16xf32>
    %cst_187 = arith.constant 1.000000e+00 : f32
    %985 = vector.broadcast %cst_187 : f32 to vector<8x16xf32>
    %986 = arith.addf %984, %985 : vector<8x16xf32>
    %cst_188 = arith.constant 5.000000e-01 : f32
    %987 = vector.broadcast %cst_188 : f32 to vector<8x16xf32>
    %988 = arith.mulf %987, %986 : vector<8x16xf32>
    %989 = vector.extract_strided_slice %972 {offsets = [0, 32], sizes = [8, 16], strides = [1, 1]} : vector<8x64xf32> to vector<8x16xf32>
    %990 = math.tanh %989 : vector<8x16xf32>
    %991 = vector.extract_strided_slice %972 {offsets = [0, 48], sizes = [8, 16], strides = [1, 1]} : vector<8x64xf32> to vector<8x16xf32>
    %cst_189 = arith.constant 5.000000e-01 : f32
    %992 = vector.broadcast %cst_189 : f32 to vector<8x16xf32>
    %993 = arith.mulf %992, %991 : vector<8x16xf32>
    %994 = math.tanh %993 : vector<8x16xf32>
    %cst_190 = arith.constant 1.000000e+00 : f32
    %995 = vector.broadcast %cst_190 : f32 to vector<8x16xf32>
    %996 = arith.addf %994, %995 : vector<8x16xf32>
    %cst_191 = arith.constant 5.000000e-01 : f32
    %997 = vector.broadcast %cst_191 : f32 to vector<8x16xf32>
    %998 = arith.mulf %997, %996 : vector<8x16xf32>
    %999 = arith.mulf %988, %918 : vector<8x16xf32>
    %1000 = arith.mulf %980, %990 : vector<8x16xf32>
    %1001 = arith.addf %999, %1000 : vector<8x16xf32>
    %1002 = math.tanh %1001 : vector<8x16xf32>
    %1003 = arith.mulf %998, %1002 : vector<8x16xf32>
    %1004 = vector.extract_strided_slice %8 {offsets = [0, 6], sizes = [8, 1], strides = [1, 1]} : vector<8x7xf32> to vector<8x1xf32>
    %cst_192 = arith.constant dense<0.000000e+00> : vector<8x112xf32>
    %1005 = tpu.matmul %1003, %508, %cst_192 {dimension_numbers = #tpu.dot_dimension_numbers<[1], [0], [0], [1], [0, 0, 1, 1], [], []>} : vector<8x16xf32>, vector<16x112xf32>, vector<8x112xf32> -> vector<8x112xf32>
    %1006 = vector.broadcast %1004 : vector<8x1xf32> to vector<8x32xf32>
    %1007 = vector.broadcast %507 : vector<1x32xf32> to vector<8x32xf32>
    %1008 = arith.mulf %1006, %1007 : vector<8x32xf32>
    %1009 = arith.addf %506, %1008 : vector<8x32xf32>
    %1010 = vector.extract_strided_slice %1005 {offsets = [0, 0], sizes = [8, 32], strides = [1, 1]} : vector<8x112xf32> to vector<8x32xf32>
    %1011 = arith.addf %1009, %1010 : vector<8x32xf32>
    %cst_193 = arith.constant dense<0.000000e+00> : vector<8x32xf32>
    %1012 = tpu.matmul %1001, %509, %cst_193 {dimension_numbers = #tpu.dot_dimension_numbers<[1], [0], [0], [1], [0, 0, 1, 1], [], []>} : vector<8x16xf32>, vector<16x32xf32>, vector<8x32xf32> -> vector<8x32xf32>
    %1013 = arith.addf %1011, %1012 : vector<8x32xf32>
    %1014 = vector.extract_strided_slice %1005 {offsets = [0, 32], sizes = [8, 64], strides = [1, 1]} : vector<8x112xf32> to vector<8x64xf32>
    %1015 = vector.broadcast %512 : vector<1x64xf32> to vector<8x64xf32>
    %1016 = arith.addf %1014, %1015 : vector<8x64xf32>
    %1017 = vector.extract_strided_slice %1005 {offsets = [0, 96], sizes = [8, 16], strides = [1, 1]} : vector<8x112xf32> to vector<8x16xf32>
    %1018 = math.tanh %1013 : vector<8x32xf32>
    %cst_194 = arith.constant dense<0.000000e+00> : vector<8x4xf32>
    %1019 = tpu.matmul %1018, %511, %cst_194 {dimension_numbers = #tpu.dot_dimension_numbers<[1], [0], [0], [1], [0, 0, 1, 1], [], []>} : vector<8x32xf32>, vector<32x4xf32>, vector<8x4xf32> -> vector<8x4xf32>
    %1020 = vector.broadcast %2 : vector<1x1xf32> to vector<8x4xf32>
    %1021 = arith.addf %1019, %1020 : vector<8x4xf32>
    %cst_195 = arith.constant dense<0xFF800000> : vector<8xf32>
    %1022 = vector.multi_reduction <maximumf>, %1021, %cst_195 [1] : vector<8x4xf32> to vector<8xf32>
    %1023 = vector.shape_cast %1022 : vector<8xf32> to vector<8x1xf32>
    %1024 = vector.broadcast %1023 : vector<8x1xf32> to vector<8x4xf32>
    %1025 = arith.subf %1021, %1024 : vector<8x4xf32>
    %1026 = math.exp %1025 : vector<8x4xf32>
    %cst_196 = arith.constant dense<0.000000e+00> : vector<8xf32>
    %1027 = vector.multi_reduction <add>, %1026, %cst_196 [1] : vector<8x4xf32> to vector<8xf32>
    %1028 = vector.shape_cast %1027 : vector<8xf32> to vector<8x1xf32>
    %1029 = vector.broadcast %1028 : vector<8x1xf32> to vector<8x4xf32>
    %1030 = arith.divf %1026, %1029 : vector<8x4xf32>
    %1031 = arith.mulf %1030, %500 : vector<8x4xf32>
    %1032 = vector.extract_strided_slice %1031 {offsets = [0, 0], sizes = [8, 1], strides = [1, 1]} : vector<8x4xf32> to vector<8x1xf32>
    %1033 = vector.extract_strided_slice %510 {offsets = [0, 0], sizes = [1, 64], strides = [1, 1]} : vector<4x64xf32> to vector<1x64xf32>
    %1034 = vector.broadcast %1032 : vector<8x1xf32> to vector<8x64xf32>
    %1035 = vector.broadcast %1033 : vector<1x64xf32> to vector<8x64xf32>
    %1036 = arith.mulf %1034, %1035 : vector<8x64xf32>
    %1037 = arith.addf %1016, %1036 : vector<8x64xf32>
    %1038 = vector.extract_strided_slice %1031 {offsets = [0, 1], sizes = [8, 1], strides = [1, 1]} : vector<8x4xf32> to vector<8x1xf32>
    %1039 = vector.extract_strided_slice %510 {offsets = [1, 0], sizes = [1, 64], strides = [1, 1]} : vector<4x64xf32> to vector<1x64xf32>
    %1040 = vector.broadcast %1038 : vector<8x1xf32> to vector<8x64xf32>
    %1041 = vector.broadcast %1039 : vector<1x64xf32> to vector<8x64xf32>
    %1042 = arith.mulf %1040, %1041 : vector<8x64xf32>
    %1043 = arith.addf %1037, %1042 : vector<8x64xf32>
    %1044 = vector.extract_strided_slice %1031 {offsets = [0, 2], sizes = [8, 1], strides = [1, 1]} : vector<8x4xf32> to vector<8x1xf32>
    %1045 = vector.extract_strided_slice %510 {offsets = [2, 0], sizes = [1, 64], strides = [1, 1]} : vector<4x64xf32> to vector<1x64xf32>
    %1046 = vector.broadcast %1044 : vector<8x1xf32> to vector<8x64xf32>
    %1047 = vector.broadcast %1045 : vector<1x64xf32> to vector<8x64xf32>
    %1048 = arith.mulf %1046, %1047 : vector<8x64xf32>
    %1049 = arith.addf %1043, %1048 : vector<8x64xf32>
    %1050 = vector.extract_strided_slice %1031 {offsets = [0, 3], sizes = [8, 1], strides = [1, 1]} : vector<8x4xf32> to vector<8x1xf32>
    %1051 = vector.extract_strided_slice %510 {offsets = [3, 0], sizes = [1, 64], strides = [1, 1]} : vector<4x64xf32> to vector<1x64xf32>
    %1052 = vector.broadcast %1050 : vector<8x1xf32> to vector<8x64xf32>
    %1053 = vector.broadcast %1051 : vector<1x64xf32> to vector<8x64xf32>
    %1054 = arith.mulf %1052, %1053 : vector<8x64xf32>
    %1055 = arith.addf %1049, %1054 : vector<8x64xf32>
    %1056 = vector.extract_strided_slice %1055 {offsets = [0, 0], sizes = [8, 16], strides = [1, 1]} : vector<8x64xf32> to vector<8x16xf32>
    %cst_197 = arith.constant 5.000000e-01 : f32
    %1057 = vector.broadcast %cst_197 : f32 to vector<8x16xf32>
    %1058 = arith.mulf %1057, %1056 : vector<8x16xf32>
    %1059 = math.tanh %1058 : vector<8x16xf32>
    %cst_198 = arith.constant 1.000000e+00 : f32
    %1060 = vector.broadcast %cst_198 : f32 to vector<8x16xf32>
    %1061 = arith.addf %1059, %1060 : vector<8x16xf32>
    %cst_199 = arith.constant 5.000000e-01 : f32
    %1062 = vector.broadcast %cst_199 : f32 to vector<8x16xf32>
    %1063 = arith.mulf %1062, %1061 : vector<8x16xf32>
    %1064 = vector.extract_strided_slice %1055 {offsets = [0, 16], sizes = [8, 16], strides = [1, 1]} : vector<8x64xf32> to vector<8x16xf32>
    %cst_200 = arith.constant 5.000000e-01 : f32
    %1065 = vector.broadcast %cst_200 : f32 to vector<8x16xf32>
    %1066 = arith.mulf %1065, %1064 : vector<8x16xf32>
    %1067 = math.tanh %1066 : vector<8x16xf32>
    %cst_201 = arith.constant 1.000000e+00 : f32
    %1068 = vector.broadcast %cst_201 : f32 to vector<8x16xf32>
    %1069 = arith.addf %1067, %1068 : vector<8x16xf32>
    %cst_202 = arith.constant 5.000000e-01 : f32
    %1070 = vector.broadcast %cst_202 : f32 to vector<8x16xf32>
    %1071 = arith.mulf %1070, %1069 : vector<8x16xf32>
    %1072 = vector.extract_strided_slice %1055 {offsets = [0, 32], sizes = [8, 16], strides = [1, 1]} : vector<8x64xf32> to vector<8x16xf32>
    %1073 = math.tanh %1072 : vector<8x16xf32>
    %1074 = vector.extract_strided_slice %1055 {offsets = [0, 48], sizes = [8, 16], strides = [1, 1]} : vector<8x64xf32> to vector<8x16xf32>
    %cst_203 = arith.constant 5.000000e-01 : f32
    %1075 = vector.broadcast %cst_203 : f32 to vector<8x16xf32>
    %1076 = arith.mulf %1075, %1074 : vector<8x16xf32>
    %1077 = math.tanh %1076 : vector<8x16xf32>
    %cst_204 = arith.constant 1.000000e+00 : f32
    %1078 = vector.broadcast %cst_204 : f32 to vector<8x16xf32>
    %1079 = arith.addf %1077, %1078 : vector<8x16xf32>
    %cst_205 = arith.constant 5.000000e-01 : f32
    %1080 = vector.broadcast %cst_205 : f32 to vector<8x16xf32>
    %1081 = arith.mulf %1080, %1079 : vector<8x16xf32>
    %1082 = arith.mulf %1071, %1001 : vector<8x16xf32>
    %1083 = arith.mulf %1063, %1073 : vector<8x16xf32>
    %1084 = arith.addf %1082, %1083 : vector<8x16xf32>
    %1085 = math.tanh %1084 : vector<8x16xf32>
    %1086 = arith.mulf %1081, %1085 : vector<8x16xf32>
    %c384 = arith.constant 384 : index
    %c0_206 = arith.constant 0 : index
    %1087 = vector.load %arg3[%c384, %c0_206] : memref<448x128xf32, #tpu.memory_space<vmem>>, vector<16x16xf32>
    %cst_207 = arith.constant dense<0.000000e+00> : vector<8x16xf32>
    %1088 = tpu.matmul %1086, %1087, %cst_207 {dimension_numbers = #tpu.dot_dimension_numbers<[1], [0], [0], [1], [0, 0, 1, 1], [], []>} : vector<8x16xf32>, vector<16x16xf32>, vector<8x16xf32> -> vector<8x16xf32>
    %1089 = tpu.concatenate %602, %685, %768, %851, %934, %1017, %1088 in 1 : vector<8x16xf32>, vector<8x16xf32>, vector<8x16xf32>, vector<8x16xf32>, vector<8x16xf32>, vector<8x16xf32>, vector<8x16xf32> -> vector<8x112xf32>
    %c376 = arith.constant 376 : index
    %c0_208 = arith.constant 0 : index
    %1090 = vector.load %arg3[%c376, %c0_208] : memref<448x128xf32, #tpu.memory_space<vmem>>, vector<1x112xf32>
    %1091 = vector.broadcast %1090 : vector<1x112xf32> to vector<8x112xf32>
    %1092 = arith.addf %1089, %1091 : vector<8x112xf32>
    %c0_209 = arith.constant 0 : index
    %c0_210 = arith.constant 0 : index
    %1093 = vector.load %arg4[%c0_209, %c0_210] : memref<16x176xf32, #tpu.memory_space<vmem>>, vector<16x176xf32>
    %c248 = arith.constant 248 : index
    %c0_211 = arith.constant 0 : index
    %1094 = vector.load %arg3[%c248, %c0_211] : memref<448x128xf32, #tpu.memory_space<vmem>>, vector<16x112xf32>
    %c264 = arith.constant 264 : index
    %c0_212 = arith.constant 0 : index
    %1095 = vector.load %arg3[%c264, %c0_212] : memref<448x128xf32, #tpu.memory_space<vmem>>, vector<112x7xf32>
    %c400 = arith.constant 400 : index
    %c0_213 = arith.constant 0 : index
    %1096 = vector.load %arg3[%c400, %c0_213] : memref<448x128xf32, #tpu.memory_space<vmem>>, vector<1x64xf32>
    %c408 = arith.constant 408 : index
    %c0_214 = arith.constant 0 : index
    %1097 = vector.load %arg3[%c408, %c0_214] : memref<448x128xf32, #tpu.memory_space<vmem>>, vector<1x64xf32>
    %c416 = arith.constant 416 : index
    %c0_215 = arith.constant 0 : index
    %1098 = vector.load %arg3[%c416, %c0_215] : memref<448x128xf32, #tpu.memory_space<vmem>>, vector<1x16xf32>
    %c424 = arith.constant 424 : index
    %c0_216 = arith.constant 0 : index
    %1099 = vector.load %arg3[%c424, %c0_216] : memref<448x128xf32, #tpu.memory_space<vmem>>, vector<1x16xf32>
    %c432 = arith.constant 432 : index
    %c0_217 = arith.constant 0 : index
    %1100 = vector.load %arg3[%c432, %c0_217] : memref<448x128xf32, #tpu.memory_space<vmem>>, vector<1x16xf32>
    %cst_218 = arith.constant 0.000000e+00 : f32
    %1101 = vector.broadcast %cst_218 : f32 to vector<8x16xf32>
    %1102 = math.tanh %1092 : vector<8x112xf32>
    %cst_219 = arith.constant dense<0.000000e+00> : vector<8x7xf32>
    %1103 = tpu.matmul %1102, %1095, %cst_219 {dimension_numbers = #tpu.dot_dimension_numbers<[1], [0], [0], [1], [0, 0, 1, 1], [], []>} : vector<8x112xf32>, vector<112x7xf32>, vector<8x7xf32> -> vector<8x7xf32>
    %1104 = vector.broadcast %3 : vector<1x1xf32> to vector<8x7xf32>
    %1105 = arith.addf %1103, %1104 : vector<8x7xf32>
    %cst_220 = arith.constant dense<0xFF800000> : vector<8xf32>
    %1106 = vector.multi_reduction <maximumf>, %1105, %cst_220 [1] : vector<8x7xf32> to vector<8xf32>
    %1107 = vector.shape_cast %1106 : vector<8xf32> to vector<8x1xf32>
    %1108 = vector.broadcast %1107 : vector<8x1xf32> to vector<8x7xf32>
    %1109 = arith.subf %1105, %1108 : vector<8x7xf32>
    %1110 = math.exp %1109 : vector<8x7xf32>
    %cst_221 = arith.constant dense<0.000000e+00> : vector<8xf32>
    %1111 = vector.multi_reduction <add>, %1110, %cst_221 [1] : vector<8x7xf32> to vector<8xf32>
    %1112 = vector.shape_cast %1111 : vector<8xf32> to vector<8x1xf32>
    %1113 = vector.broadcast %1112 : vector<8x1xf32> to vector<8x7xf32>
    %1114 = arith.divf %1110, %1113 : vector<8x7xf32>
    %1115 = vector.extract_strided_slice %1114 {offsets = [0, 0], sizes = [8, 1], strides = [1, 1]} : vector<8x7xf32> to vector<8x1xf32>
    %1116 = vector.broadcast %1115 : vector<8x1xf32> to vector<8x16xf32>
    %1117 = arith.mulf %1116, %588 : vector<8x16xf32>
    %1118 = vector.extract_strided_slice %1114 {offsets = [0, 1], sizes = [8, 1], strides = [1, 1]} : vector<8x7xf32> to vector<8x1xf32>
    %1119 = vector.broadcast %1118 : vector<8x1xf32> to vector<8x16xf32>
    %1120 = arith.mulf %1119, %671 : vector<8x16xf32>
    %1121 = arith.addf %1117, %1120 : vector<8x16xf32>
    %1122 = vector.extract_strided_slice %1114 {offsets = [0, 2], sizes = [8, 1], strides = [1, 1]} : vector<8x7xf32> to vector<8x1xf32>
    %1123 = vector.broadcast %1122 : vector<8x1xf32> to vector<8x16xf32>
    %1124 = arith.mulf %1123, %754 : vector<8x16xf32>
    %1125 = arith.addf %1121, %1124 : vector<8x16xf32>
    %1126 = vector.extract_strided_slice %1114 {offsets = [0, 3], sizes = [8, 1], strides = [1, 1]} : vector<8x7xf32> to vector<8x1xf32>
    %1127 = vector.broadcast %1126 : vector<8x1xf32> to vector<8x16xf32>
    %1128 = arith.mulf %1127, %837 : vector<8x16xf32>
    %1129 = arith.addf %1125, %1128 : vector<8x16xf32>
    %1130 = vector.extract_strided_slice %1114 {offsets = [0, 4], sizes = [8, 1], strides = [1, 1]} : vector<8x7xf32> to vector<8x1xf32>
    %1131 = vector.broadcast %1130 : vector<8x1xf32> to vector<8x16xf32>
    %1132 = arith.mulf %1131, %920 : vector<8x16xf32>
    %1133 = arith.addf %1129, %1132 : vector<8x16xf32>
    %1134 = vector.extract_strided_slice %1114 {offsets = [0, 5], sizes = [8, 1], strides = [1, 1]} : vector<8x7xf32> to vector<8x1xf32>
    %1135 = vector.broadcast %1134 : vector<8x1xf32> to vector<8x16xf32>
    %1136 = arith.mulf %1135, %1003 : vector<8x16xf32>
    %1137 = arith.addf %1133, %1136 : vector<8x16xf32>
    %1138 = vector.extract_strided_slice %1114 {offsets = [0, 6], sizes = [8, 1], strides = [1, 1]} : vector<8x7xf32> to vector<8x1xf32>
    %1139 = vector.broadcast %1138 : vector<8x1xf32> to vector<8x16xf32>
    %1140 = arith.mulf %1139, %1086 : vector<8x16xf32>
    %1141 = arith.addf %1137, %1140 : vector<8x16xf32>
    %1142 = vector.extract_strided_slice %8 {offsets = [0, 0], sizes = [8, 1], strides = [1, 1]} : vector<8x7xf32> to vector<8x1xf32>
    %1143 = vector.broadcast %1098 : vector<1x16xf32> to vector<8x16xf32>
    %1144 = arith.mulf %1141, %1143 : vector<8x16xf32>
    %cst_222 = arith.constant dense<0.000000e+00> : vector<8xf32>
    %1145 = vector.multi_reduction <add>, %1144, %cst_222 [1] : vector<8x16xf32> to vector<8xf32>
    %1146 = vector.shape_cast %1145 : vector<8xf32> to vector<8x1xf32>
    %1147 = vector.broadcast %4 : vector<1x1xf32> to vector<8x1xf32>
    %1148 = arith.mulf %1142, %1147 : vector<8x1xf32>
    %1149 = arith.addf %1146, %1148 : vector<8x1xf32>
    %1150 = vector.broadcast %5 : vector<1x1xf32> to vector<8x1xf32>
    %1151 = arith.addf %1149, %1150 : vector<8x1xf32>
    %1152 = vector.broadcast %1151 : vector<8x1xf32> to vector<8x64xf32>
    %1153 = vector.broadcast %1096 : vector<1x64xf32> to vector<8x64xf32>
    %1154 = arith.mulf %1152, %1153 : vector<8x64xf32>
    %1155 = vector.broadcast %1097 : vector<1x64xf32> to vector<8x64xf32>
    %1156 = arith.addf %1155, %1154 : vector<8x64xf32>
    %1157 = vector.extract_strided_slice %1156 {offsets = [0, 0], sizes = [8, 16], strides = [1, 1]} : vector<8x64xf32> to vector<8x16xf32>
    %cst_223 = arith.constant 5.000000e-01 : f32
    %1158 = vector.broadcast %cst_223 : f32 to vector<8x16xf32>
    %1159 = arith.mulf %1158, %1157 : vector<8x16xf32>
    %1160 = math.tanh %1159 : vector<8x16xf32>
    %cst_224 = arith.constant 1.000000e+00 : f32
    %1161 = vector.broadcast %cst_224 : f32 to vector<8x16xf32>
    %1162 = arith.addf %1160, %1161 : vector<8x16xf32>
    %cst_225 = arith.constant 5.000000e-01 : f32
    %1163 = vector.broadcast %cst_225 : f32 to vector<8x16xf32>
    %1164 = arith.mulf %1163, %1162 : vector<8x16xf32>
    %1165 = vector.extract_strided_slice %1156 {offsets = [0, 16], sizes = [8, 16], strides = [1, 1]} : vector<8x64xf32> to vector<8x16xf32>
    %cst_226 = arith.constant 5.000000e-01 : f32
    %1166 = vector.broadcast %cst_226 : f32 to vector<8x16xf32>
    %1167 = arith.mulf %1166, %1165 : vector<8x16xf32>
    %1168 = math.tanh %1167 : vector<8x16xf32>
    %cst_227 = arith.constant 1.000000e+00 : f32
    %1169 = vector.broadcast %cst_227 : f32 to vector<8x16xf32>
    %1170 = arith.addf %1168, %1169 : vector<8x16xf32>
    %cst_228 = arith.constant 5.000000e-01 : f32
    %1171 = vector.broadcast %cst_228 : f32 to vector<8x16xf32>
    %1172 = arith.mulf %1171, %1170 : vector<8x16xf32>
    %1173 = vector.extract_strided_slice %1156 {offsets = [0, 32], sizes = [8, 16], strides = [1, 1]} : vector<8x64xf32> to vector<8x16xf32>
    %1174 = math.tanh %1173 : vector<8x16xf32>
    %1175 = vector.extract_strided_slice %1156 {offsets = [0, 48], sizes = [8, 16], strides = [1, 1]} : vector<8x64xf32> to vector<8x16xf32>
    %cst_229 = arith.constant 5.000000e-01 : f32
    %1176 = vector.broadcast %cst_229 : f32 to vector<8x16xf32>
    %1177 = arith.mulf %1176, %1175 : vector<8x16xf32>
    %1178 = math.tanh %1177 : vector<8x16xf32>
    %cst_230 = arith.constant 1.000000e+00 : f32
    %1179 = vector.broadcast %cst_230 : f32 to vector<8x16xf32>
    %1180 = arith.addf %1178, %1179 : vector<8x16xf32>
    %cst_231 = arith.constant 5.000000e-01 : f32
    %1181 = vector.broadcast %cst_231 : f32 to vector<8x16xf32>
    %1182 = arith.mulf %1181, %1180 : vector<8x16xf32>
    %1183 = arith.mulf %1172, %1101 : vector<8x16xf32>
    %1184 = arith.mulf %1164, %1174 : vector<8x16xf32>
    %1185 = arith.addf %1183, %1184 : vector<8x16xf32>
    %1186 = math.tanh %1185 : vector<8x16xf32>
    %1187 = arith.mulf %1182, %1186 : vector<8x16xf32>
    %cst_232 = arith.constant dense<0.000000e+00> : vector<8x176xf32>
    %1188 = tpu.matmul %1187, %1093, %cst_232 {dimension_numbers = #tpu.dot_dimension_numbers<[1], [0], [0], [1], [0, 0, 1, 1], [], []>} : vector<8x16xf32>, vector<16x176xf32>, vector<8x176xf32> -> vector<8x176xf32>
    %1189 = vector.extract_strided_slice %1188 {offsets = [0, 0], sizes = [8, 112], strides = [1, 1]} : vector<8x176xf32> to vector<8x112xf32>
    %1190 = arith.addf %1092, %1189 : vector<8x112xf32>
    %cst_233 = arith.constant dense<0.000000e+00> : vector<8x112xf32>
    %1191 = tpu.matmul %1185, %1094, %cst_233 {dimension_numbers = #tpu.dot_dimension_numbers<[1], [0], [0], [1], [0, 0, 1, 1], [], []>} : vector<8x16xf32>, vector<16x112xf32>, vector<8x112xf32> -> vector<8x112xf32>
    %1192 = arith.addf %1190, %1191 : vector<8x112xf32>
    %1193 = vector.extract_strided_slice %1188 {offsets = [0, 112], sizes = [8, 64], strides = [1, 1]} : vector<8x176xf32> to vector<8x64xf32>
    %1194 = vector.broadcast %1097 : vector<1x64xf32> to vector<8x64xf32>
    %1195 = arith.addf %1193, %1194 : vector<8x64xf32>
    %1196 = math.tanh %1192 : vector<8x112xf32>
    %cst_234 = arith.constant dense<0.000000e+00> : vector<8x7xf32>
    %1197 = tpu.matmul %1196, %1095, %cst_234 {dimension_numbers = #tpu.dot_dimension_numbers<[1], [0], [0], [1], [0, 0, 1, 1], [], []>} : vector<8x112xf32>, vector<112x7xf32>, vector<8x7xf32> -> vector<8x7xf32>
    %1198 = vector.broadcast %3 : vector<1x1xf32> to vector<8x7xf32>
    %1199 = arith.addf %1197, %1198 : vector<8x7xf32>
    %cst_235 = arith.constant dense<0xFF800000> : vector<8xf32>
    %1200 = vector.multi_reduction <maximumf>, %1199, %cst_235 [1] : vector<8x7xf32> to vector<8xf32>
    %1201 = vector.shape_cast %1200 : vector<8xf32> to vector<8x1xf32>
    %1202 = vector.broadcast %1201 : vector<8x1xf32> to vector<8x7xf32>
    %1203 = arith.subf %1199, %1202 : vector<8x7xf32>
    %1204 = math.exp %1203 : vector<8x7xf32>
    %cst_236 = arith.constant dense<0.000000e+00> : vector<8xf32>
    %1205 = vector.multi_reduction <add>, %1204, %cst_236 [1] : vector<8x7xf32> to vector<8xf32>
    %1206 = vector.shape_cast %1205 : vector<8xf32> to vector<8x1xf32>
    %1207 = vector.broadcast %1206 : vector<8x1xf32> to vector<8x7xf32>
    %1208 = arith.divf %1204, %1207 : vector<8x7xf32>
    %1209 = vector.extract_strided_slice %1208 {offsets = [0, 0], sizes = [8, 1], strides = [1, 1]} : vector<8x7xf32> to vector<8x1xf32>
    %1210 = vector.broadcast %1209 : vector<8x1xf32> to vector<8x16xf32>
    %1211 = arith.mulf %1210, %588 : vector<8x16xf32>
    %1212 = vector.extract_strided_slice %1208 {offsets = [0, 1], sizes = [8, 1], strides = [1, 1]} : vector<8x7xf32> to vector<8x1xf32>
    %1213 = vector.broadcast %1212 : vector<8x1xf32> to vector<8x16xf32>
    %1214 = arith.mulf %1213, %671 : vector<8x16xf32>
    %1215 = arith.addf %1211, %1214 : vector<8x16xf32>
    %1216 = vector.extract_strided_slice %1208 {offsets = [0, 2], sizes = [8, 1], strides = [1, 1]} : vector<8x7xf32> to vector<8x1xf32>
    %1217 = vector.broadcast %1216 : vector<8x1xf32> to vector<8x16xf32>
    %1218 = arith.mulf %1217, %754 : vector<8x16xf32>
    %1219 = arith.addf %1215, %1218 : vector<8x16xf32>
    %1220 = vector.extract_strided_slice %1208 {offsets = [0, 3], sizes = [8, 1], strides = [1, 1]} : vector<8x7xf32> to vector<8x1xf32>
    %1221 = vector.broadcast %1220 : vector<8x1xf32> to vector<8x16xf32>
    %1222 = arith.mulf %1221, %837 : vector<8x16xf32>
    %1223 = arith.addf %1219, %1222 : vector<8x16xf32>
    %1224 = vector.extract_strided_slice %1208 {offsets = [0, 4], sizes = [8, 1], strides = [1, 1]} : vector<8x7xf32> to vector<8x1xf32>
    %1225 = vector.broadcast %1224 : vector<8x1xf32> to vector<8x16xf32>
    %1226 = arith.mulf %1225, %920 : vector<8x16xf32>
    %1227 = arith.addf %1223, %1226 : vector<8x16xf32>
    %1228 = vector.extract_strided_slice %1208 {offsets = [0, 5], sizes = [8, 1], strides = [1, 1]} : vector<8x7xf32> to vector<8x1xf32>
    %1229 = vector.broadcast %1228 : vector<8x1xf32> to vector<8x16xf32>
    %1230 = arith.mulf %1229, %1003 : vector<8x16xf32>
    %1231 = arith.addf %1227, %1230 : vector<8x16xf32>
    %1232 = vector.extract_strided_slice %1208 {offsets = [0, 6], sizes = [8, 1], strides = [1, 1]} : vector<8x7xf32> to vector<8x1xf32>
    %1233 = vector.broadcast %1232 : vector<8x1xf32> to vector<8x16xf32>
    %1234 = arith.mulf %1233, %1086 : vector<8x16xf32>
    %1235 = arith.addf %1231, %1234 : vector<8x16xf32>
    %1236 = vector.extract_strided_slice %8 {offsets = [0, 1], sizes = [8, 1], strides = [1, 1]} : vector<8x7xf32> to vector<8x1xf32>
    %1237 = vector.broadcast %1098 : vector<1x16xf32> to vector<8x16xf32>
    %1238 = arith.mulf %1235, %1237 : vector<8x16xf32>
    %cst_237 = arith.constant dense<0.000000e+00> : vector<8xf32>
    %1239 = vector.multi_reduction <add>, %1238, %cst_237 [1] : vector<8x16xf32> to vector<8xf32>
    %1240 = vector.shape_cast %1239 : vector<8xf32> to vector<8x1xf32>
    %1241 = vector.broadcast %4 : vector<1x1xf32> to vector<8x1xf32>
    %1242 = arith.mulf %1236, %1241 : vector<8x1xf32>
    %1243 = arith.addf %1240, %1242 : vector<8x1xf32>
    %1244 = vector.broadcast %5 : vector<1x1xf32> to vector<8x1xf32>
    %1245 = arith.addf %1243, %1244 : vector<8x1xf32>
    %1246 = vector.broadcast %1245 : vector<8x1xf32> to vector<8x64xf32>
    %1247 = vector.broadcast %1096 : vector<1x64xf32> to vector<8x64xf32>
    %1248 = arith.mulf %1246, %1247 : vector<8x64xf32>
    %1249 = arith.addf %1195, %1248 : vector<8x64xf32>
    %1250 = vector.extract_strided_slice %1249 {offsets = [0, 0], sizes = [8, 16], strides = [1, 1]} : vector<8x64xf32> to vector<8x16xf32>
    %cst_238 = arith.constant 5.000000e-01 : f32
    %1251 = vector.broadcast %cst_238 : f32 to vector<8x16xf32>
    %1252 = arith.mulf %1251, %1250 : vector<8x16xf32>
    %1253 = math.tanh %1252 : vector<8x16xf32>
    %cst_239 = arith.constant 1.000000e+00 : f32
    %1254 = vector.broadcast %cst_239 : f32 to vector<8x16xf32>
    %1255 = arith.addf %1253, %1254 : vector<8x16xf32>
    %cst_240 = arith.constant 5.000000e-01 : f32
    %1256 = vector.broadcast %cst_240 : f32 to vector<8x16xf32>
    %1257 = arith.mulf %1256, %1255 : vector<8x16xf32>
    %1258 = vector.extract_strided_slice %1249 {offsets = [0, 16], sizes = [8, 16], strides = [1, 1]} : vector<8x64xf32> to vector<8x16xf32>
    %cst_241 = arith.constant 5.000000e-01 : f32
    %1259 = vector.broadcast %cst_241 : f32 to vector<8x16xf32>
    %1260 = arith.mulf %1259, %1258 : vector<8x16xf32>
    %1261 = math.tanh %1260 : vector<8x16xf32>
    %cst_242 = arith.constant 1.000000e+00 : f32
    %1262 = vector.broadcast %cst_242 : f32 to vector<8x16xf32>
    %1263 = arith.addf %1261, %1262 : vector<8x16xf32>
    %cst_243 = arith.constant 5.000000e-01 : f32
    %1264 = vector.broadcast %cst_243 : f32 to vector<8x16xf32>
    %1265 = arith.mulf %1264, %1263 : vector<8x16xf32>
    %1266 = vector.extract_strided_slice %1249 {offsets = [0, 32], sizes = [8, 16], strides = [1, 1]} : vector<8x64xf32> to vector<8x16xf32>
    %1267 = math.tanh %1266 : vector<8x16xf32>
    %1268 = vector.extract_strided_slice %1249 {offsets = [0, 48], sizes = [8, 16], strides = [1, 1]} : vector<8x64xf32> to vector<8x16xf32>
    %cst_244 = arith.constant 5.000000e-01 : f32
    %1269 = vector.broadcast %cst_244 : f32 to vector<8x16xf32>
    %1270 = arith.mulf %1269, %1268 : vector<8x16xf32>
    %1271 = math.tanh %1270 : vector<8x16xf32>
    %cst_245 = arith.constant 1.000000e+00 : f32
    %1272 = vector.broadcast %cst_245 : f32 to vector<8x16xf32>
    %1273 = arith.addf %1271, %1272 : vector<8x16xf32>
    %cst_246 = arith.constant 5.000000e-01 : f32
    %1274 = vector.broadcast %cst_246 : f32 to vector<8x16xf32>
    %1275 = arith.mulf %1274, %1273 : vector<8x16xf32>
    %1276 = arith.mulf %1265, %1185 : vector<8x16xf32>
    %1277 = arith.mulf %1257, %1267 : vector<8x16xf32>
    %1278 = arith.addf %1276, %1277 : vector<8x16xf32>
    %1279 = math.tanh %1278 : vector<8x16xf32>
    %1280 = arith.mulf %1275, %1279 : vector<8x16xf32>
    %cst_247 = arith.constant dense<0.000000e+00> : vector<8x176xf32>
    %1281 = tpu.matmul %1280, %1093, %cst_247 {dimension_numbers = #tpu.dot_dimension_numbers<[1], [0], [0], [1], [0, 0, 1, 1], [], []>} : vector<8x16xf32>, vector<16x176xf32>, vector<8x176xf32> -> vector<8x176xf32>
    %1282 = vector.extract_strided_slice %1281 {offsets = [0, 0], sizes = [8, 112], strides = [1, 1]} : vector<8x176xf32> to vector<8x112xf32>
    %1283 = arith.addf %1092, %1282 : vector<8x112xf32>
    %cst_248 = arith.constant dense<0.000000e+00> : vector<8x112xf32>
    %1284 = tpu.matmul %1278, %1094, %cst_248 {dimension_numbers = #tpu.dot_dimension_numbers<[1], [0], [0], [1], [0, 0, 1, 1], [], []>} : vector<8x16xf32>, vector<16x112xf32>, vector<8x112xf32> -> vector<8x112xf32>
    %1285 = arith.addf %1283, %1284 : vector<8x112xf32>
    %1286 = vector.extract_strided_slice %1281 {offsets = [0, 112], sizes = [8, 64], strides = [1, 1]} : vector<8x176xf32> to vector<8x64xf32>
    %1287 = vector.broadcast %1097 : vector<1x64xf32> to vector<8x64xf32>
    %1288 = arith.addf %1286, %1287 : vector<8x64xf32>
    %1289 = math.tanh %1285 : vector<8x112xf32>
    %cst_249 = arith.constant dense<0.000000e+00> : vector<8x7xf32>
    %1290 = tpu.matmul %1289, %1095, %cst_249 {dimension_numbers = #tpu.dot_dimension_numbers<[1], [0], [0], [1], [0, 0, 1, 1], [], []>} : vector<8x112xf32>, vector<112x7xf32>, vector<8x7xf32> -> vector<8x7xf32>
    %1291 = vector.broadcast %3 : vector<1x1xf32> to vector<8x7xf32>
    %1292 = arith.addf %1290, %1291 : vector<8x7xf32>
    %cst_250 = arith.constant dense<0xFF800000> : vector<8xf32>
    %1293 = vector.multi_reduction <maximumf>, %1292, %cst_250 [1] : vector<8x7xf32> to vector<8xf32>
    %1294 = vector.shape_cast %1293 : vector<8xf32> to vector<8x1xf32>
    %1295 = vector.broadcast %1294 : vector<8x1xf32> to vector<8x7xf32>
    %1296 = arith.subf %1292, %1295 : vector<8x7xf32>
    %1297 = math.exp %1296 : vector<8x7xf32>
    %cst_251 = arith.constant dense<0.000000e+00> : vector<8xf32>
    %1298 = vector.multi_reduction <add>, %1297, %cst_251 [1] : vector<8x7xf32> to vector<8xf32>
    %1299 = vector.shape_cast %1298 : vector<8xf32> to vector<8x1xf32>
    %1300 = vector.broadcast %1299 : vector<8x1xf32> to vector<8x7xf32>
    %1301 = arith.divf %1297, %1300 : vector<8x7xf32>
    %1302 = vector.extract_strided_slice %1301 {offsets = [0, 0], sizes = [8, 1], strides = [1, 1]} : vector<8x7xf32> to vector<8x1xf32>
    %1303 = vector.broadcast %1302 : vector<8x1xf32> to vector<8x16xf32>
    %1304 = arith.mulf %1303, %588 : vector<8x16xf32>
    %1305 = vector.extract_strided_slice %1301 {offsets = [0, 1], sizes = [8, 1], strides = [1, 1]} : vector<8x7xf32> to vector<8x1xf32>
    %1306 = vector.broadcast %1305 : vector<8x1xf32> to vector<8x16xf32>
    %1307 = arith.mulf %1306, %671 : vector<8x16xf32>
    %1308 = arith.addf %1304, %1307 : vector<8x16xf32>
    %1309 = vector.extract_strided_slice %1301 {offsets = [0, 2], sizes = [8, 1], strides = [1, 1]} : vector<8x7xf32> to vector<8x1xf32>
    %1310 = vector.broadcast %1309 : vector<8x1xf32> to vector<8x16xf32>
    %1311 = arith.mulf %1310, %754 : vector<8x16xf32>
    %1312 = arith.addf %1308, %1311 : vector<8x16xf32>
    %1313 = vector.extract_strided_slice %1301 {offsets = [0, 3], sizes = [8, 1], strides = [1, 1]} : vector<8x7xf32> to vector<8x1xf32>
    %1314 = vector.broadcast %1313 : vector<8x1xf32> to vector<8x16xf32>
    %1315 = arith.mulf %1314, %837 : vector<8x16xf32>
    %1316 = arith.addf %1312, %1315 : vector<8x16xf32>
    %1317 = vector.extract_strided_slice %1301 {offsets = [0, 4], sizes = [8, 1], strides = [1, 1]} : vector<8x7xf32> to vector<8x1xf32>
    %1318 = vector.broadcast %1317 : vector<8x1xf32> to vector<8x16xf32>
    %1319 = arith.mulf %1318, %920 : vector<8x16xf32>
    %1320 = arith.addf %1316, %1319 : vector<8x16xf32>
    %1321 = vector.extract_strided_slice %1301 {offsets = [0, 5], sizes = [8, 1], strides = [1, 1]} : vector<8x7xf32> to vector<8x1xf32>
    %1322 = vector.broadcast %1321 : vector<8x1xf32> to vector<8x16xf32>
    %1323 = arith.mulf %1322, %1003 : vector<8x16xf32>
    %1324 = arith.addf %1320, %1323 : vector<8x16xf32>
    %1325 = vector.extract_strided_slice %1301 {offsets = [0, 6], sizes = [8, 1], strides = [1, 1]} : vector<8x7xf32> to vector<8x1xf32>
    %1326 = vector.broadcast %1325 : vector<8x1xf32> to vector<8x16xf32>
    %1327 = arith.mulf %1326, %1086 : vector<8x16xf32>
    %1328 = arith.addf %1324, %1327 : vector<8x16xf32>
    %1329 = vector.extract_strided_slice %8 {offsets = [0, 2], sizes = [8, 1], strides = [1, 1]} : vector<8x7xf32> to vector<8x1xf32>
    %1330 = vector.broadcast %1098 : vector<1x16xf32> to vector<8x16xf32>
    %1331 = arith.mulf %1328, %1330 : vector<8x16xf32>
    %cst_252 = arith.constant dense<0.000000e+00> : vector<8xf32>
    %1332 = vector.multi_reduction <add>, %1331, %cst_252 [1] : vector<8x16xf32> to vector<8xf32>
    %1333 = vector.shape_cast %1332 : vector<8xf32> to vector<8x1xf32>
    %1334 = vector.broadcast %4 : vector<1x1xf32> to vector<8x1xf32>
    %1335 = arith.mulf %1329, %1334 : vector<8x1xf32>
    %1336 = arith.addf %1333, %1335 : vector<8x1xf32>
    %1337 = vector.broadcast %5 : vector<1x1xf32> to vector<8x1xf32>
    %1338 = arith.addf %1336, %1337 : vector<8x1xf32>
    %1339 = vector.broadcast %1338 : vector<8x1xf32> to vector<8x64xf32>
    %1340 = vector.broadcast %1096 : vector<1x64xf32> to vector<8x64xf32>
    %1341 = arith.mulf %1339, %1340 : vector<8x64xf32>
    %1342 = arith.addf %1288, %1341 : vector<8x64xf32>
    %1343 = vector.extract_strided_slice %1342 {offsets = [0, 0], sizes = [8, 16], strides = [1, 1]} : vector<8x64xf32> to vector<8x16xf32>
    %cst_253 = arith.constant 5.000000e-01 : f32
    %1344 = vector.broadcast %cst_253 : f32 to vector<8x16xf32>
    %1345 = arith.mulf %1344, %1343 : vector<8x16xf32>
    %1346 = math.tanh %1345 : vector<8x16xf32>
    %cst_254 = arith.constant 1.000000e+00 : f32
    %1347 = vector.broadcast %cst_254 : f32 to vector<8x16xf32>
    %1348 = arith.addf %1346, %1347 : vector<8x16xf32>
    %cst_255 = arith.constant 5.000000e-01 : f32
    %1349 = vector.broadcast %cst_255 : f32 to vector<8x16xf32>
    %1350 = arith.mulf %1349, %1348 : vector<8x16xf32>
    %1351 = vector.extract_strided_slice %1342 {offsets = [0, 16], sizes = [8, 16], strides = [1, 1]} : vector<8x64xf32> to vector<8x16xf32>
    %cst_256 = arith.constant 5.000000e-01 : f32
    %1352 = vector.broadcast %cst_256 : f32 to vector<8x16xf32>
    %1353 = arith.mulf %1352, %1351 : vector<8x16xf32>
    %1354 = math.tanh %1353 : vector<8x16xf32>
    %cst_257 = arith.constant 1.000000e+00 : f32
    %1355 = vector.broadcast %cst_257 : f32 to vector<8x16xf32>
    %1356 = arith.addf %1354, %1355 : vector<8x16xf32>
    %cst_258 = arith.constant 5.000000e-01 : f32
    %1357 = vector.broadcast %cst_258 : f32 to vector<8x16xf32>
    %1358 = arith.mulf %1357, %1356 : vector<8x16xf32>
    %1359 = vector.extract_strided_slice %1342 {offsets = [0, 32], sizes = [8, 16], strides = [1, 1]} : vector<8x64xf32> to vector<8x16xf32>
    %1360 = math.tanh %1359 : vector<8x16xf32>
    %1361 = vector.extract_strided_slice %1342 {offsets = [0, 48], sizes = [8, 16], strides = [1, 1]} : vector<8x64xf32> to vector<8x16xf32>
    %cst_259 = arith.constant 5.000000e-01 : f32
    %1362 = vector.broadcast %cst_259 : f32 to vector<8x16xf32>
    %1363 = arith.mulf %1362, %1361 : vector<8x16xf32>
    %1364 = math.tanh %1363 : vector<8x16xf32>
    %cst_260 = arith.constant 1.000000e+00 : f32
    %1365 = vector.broadcast %cst_260 : f32 to vector<8x16xf32>
    %1366 = arith.addf %1364, %1365 : vector<8x16xf32>
    %cst_261 = arith.constant 5.000000e-01 : f32
    %1367 = vector.broadcast %cst_261 : f32 to vector<8x16xf32>
    %1368 = arith.mulf %1367, %1366 : vector<8x16xf32>
    %1369 = arith.mulf %1358, %1278 : vector<8x16xf32>
    %1370 = arith.mulf %1350, %1360 : vector<8x16xf32>
    %1371 = arith.addf %1369, %1370 : vector<8x16xf32>
    %1372 = math.tanh %1371 : vector<8x16xf32>
    %1373 = arith.mulf %1368, %1372 : vector<8x16xf32>
    %cst_262 = arith.constant dense<0.000000e+00> : vector<8x176xf32>
    %1374 = tpu.matmul %1373, %1093, %cst_262 {dimension_numbers = #tpu.dot_dimension_numbers<[1], [0], [0], [1], [0, 0, 1, 1], [], []>} : vector<8x16xf32>, vector<16x176xf32>, vector<8x176xf32> -> vector<8x176xf32>
    %1375 = vector.extract_strided_slice %1374 {offsets = [0, 0], sizes = [8, 112], strides = [1, 1]} : vector<8x176xf32> to vector<8x112xf32>
    %1376 = arith.addf %1092, %1375 : vector<8x112xf32>
    %cst_263 = arith.constant dense<0.000000e+00> : vector<8x112xf32>
    %1377 = tpu.matmul %1371, %1094, %cst_263 {dimension_numbers = #tpu.dot_dimension_numbers<[1], [0], [0], [1], [0, 0, 1, 1], [], []>} : vector<8x16xf32>, vector<16x112xf32>, vector<8x112xf32> -> vector<8x112xf32>
    %1378 = arith.addf %1376, %1377 : vector<8x112xf32>
    %1379 = vector.extract_strided_slice %1374 {offsets = [0, 112], sizes = [8, 64], strides = [1, 1]} : vector<8x176xf32> to vector<8x64xf32>
    %1380 = vector.broadcast %1097 : vector<1x64xf32> to vector<8x64xf32>
    %1381 = arith.addf %1379, %1380 : vector<8x64xf32>
    %1382 = math.tanh %1378 : vector<8x112xf32>
    %cst_264 = arith.constant dense<0.000000e+00> : vector<8x7xf32>
    %1383 = tpu.matmul %1382, %1095, %cst_264 {dimension_numbers = #tpu.dot_dimension_numbers<[1], [0], [0], [1], [0, 0, 1, 1], [], []>} : vector<8x112xf32>, vector<112x7xf32>, vector<8x7xf32> -> vector<8x7xf32>
    %1384 = vector.broadcast %3 : vector<1x1xf32> to vector<8x7xf32>
    %1385 = arith.addf %1383, %1384 : vector<8x7xf32>
    %cst_265 = arith.constant dense<0xFF800000> : vector<8xf32>
    %1386 = vector.multi_reduction <maximumf>, %1385, %cst_265 [1] : vector<8x7xf32> to vector<8xf32>
    %1387 = vector.shape_cast %1386 : vector<8xf32> to vector<8x1xf32>
    %1388 = vector.broadcast %1387 : vector<8x1xf32> to vector<8x7xf32>
    %1389 = arith.subf %1385, %1388 : vector<8x7xf32>
    %1390 = math.exp %1389 : vector<8x7xf32>
    %cst_266 = arith.constant dense<0.000000e+00> : vector<8xf32>
    %1391 = vector.multi_reduction <add>, %1390, %cst_266 [1] : vector<8x7xf32> to vector<8xf32>
    %1392 = vector.shape_cast %1391 : vector<8xf32> to vector<8x1xf32>
    %1393 = vector.broadcast %1392 : vector<8x1xf32> to vector<8x7xf32>
    %1394 = arith.divf %1390, %1393 : vector<8x7xf32>
    %1395 = vector.extract_strided_slice %1394 {offsets = [0, 0], sizes = [8, 1], strides = [1, 1]} : vector<8x7xf32> to vector<8x1xf32>
    %1396 = vector.broadcast %1395 : vector<8x1xf32> to vector<8x16xf32>
    %1397 = arith.mulf %1396, %588 : vector<8x16xf32>
    %1398 = vector.extract_strided_slice %1394 {offsets = [0, 1], sizes = [8, 1], strides = [1, 1]} : vector<8x7xf32> to vector<8x1xf32>
    %1399 = vector.broadcast %1398 : vector<8x1xf32> to vector<8x16xf32>
    %1400 = arith.mulf %1399, %671 : vector<8x16xf32>
    %1401 = arith.addf %1397, %1400 : vector<8x16xf32>
    %1402 = vector.extract_strided_slice %1394 {offsets = [0, 2], sizes = [8, 1], strides = [1, 1]} : vector<8x7xf32> to vector<8x1xf32>
    %1403 = vector.broadcast %1402 : vector<8x1xf32> to vector<8x16xf32>
    %1404 = arith.mulf %1403, %754 : vector<8x16xf32>
    %1405 = arith.addf %1401, %1404 : vector<8x16xf32>
    %1406 = vector.extract_strided_slice %1394 {offsets = [0, 3], sizes = [8, 1], strides = [1, 1]} : vector<8x7xf32> to vector<8x1xf32>
    %1407 = vector.broadcast %1406 : vector<8x1xf32> to vector<8x16xf32>
    %1408 = arith.mulf %1407, %837 : vector<8x16xf32>
    %1409 = arith.addf %1405, %1408 : vector<8x16xf32>
    %1410 = vector.extract_strided_slice %1394 {offsets = [0, 4], sizes = [8, 1], strides = [1, 1]} : vector<8x7xf32> to vector<8x1xf32>
    %1411 = vector.broadcast %1410 : vector<8x1xf32> to vector<8x16xf32>
    %1412 = arith.mulf %1411, %920 : vector<8x16xf32>
    %1413 = arith.addf %1409, %1412 : vector<8x16xf32>
    %1414 = vector.extract_strided_slice %1394 {offsets = [0, 5], sizes = [8, 1], strides = [1, 1]} : vector<8x7xf32> to vector<8x1xf32>
    %1415 = vector.broadcast %1414 : vector<8x1xf32> to vector<8x16xf32>
    %1416 = arith.mulf %1415, %1003 : vector<8x16xf32>
    %1417 = arith.addf %1413, %1416 : vector<8x16xf32>
    %1418 = vector.extract_strided_slice %1394 {offsets = [0, 6], sizes = [8, 1], strides = [1, 1]} : vector<8x7xf32> to vector<8x1xf32>
    %1419 = vector.broadcast %1418 : vector<8x1xf32> to vector<8x16xf32>
    %1420 = arith.mulf %1419, %1086 : vector<8x16xf32>
    %1421 = arith.addf %1417, %1420 : vector<8x16xf32>
    %1422 = vector.extract_strided_slice %8 {offsets = [0, 3], sizes = [8, 1], strides = [1, 1]} : vector<8x7xf32> to vector<8x1xf32>
    %1423 = vector.broadcast %1098 : vector<1x16xf32> to vector<8x16xf32>
    %1424 = arith.mulf %1421, %1423 : vector<8x16xf32>
    %cst_267 = arith.constant dense<0.000000e+00> : vector<8xf32>
    %1425 = vector.multi_reduction <add>, %1424, %cst_267 [1] : vector<8x16xf32> to vector<8xf32>
    %1426 = vector.shape_cast %1425 : vector<8xf32> to vector<8x1xf32>
    %1427 = vector.broadcast %4 : vector<1x1xf32> to vector<8x1xf32>
    %1428 = arith.mulf %1422, %1427 : vector<8x1xf32>
    %1429 = arith.addf %1426, %1428 : vector<8x1xf32>
    %1430 = vector.broadcast %5 : vector<1x1xf32> to vector<8x1xf32>
    %1431 = arith.addf %1429, %1430 : vector<8x1xf32>
    %1432 = vector.broadcast %1431 : vector<8x1xf32> to vector<8x64xf32>
    %1433 = vector.broadcast %1096 : vector<1x64xf32> to vector<8x64xf32>
    %1434 = arith.mulf %1432, %1433 : vector<8x64xf32>
    %1435 = arith.addf %1381, %1434 : vector<8x64xf32>
    %1436 = vector.extract_strided_slice %1435 {offsets = [0, 0], sizes = [8, 16], strides = [1, 1]} : vector<8x64xf32> to vector<8x16xf32>
    %cst_268 = arith.constant 5.000000e-01 : f32
    %1437 = vector.broadcast %cst_268 : f32 to vector<8x16xf32>
    %1438 = arith.mulf %1437, %1436 : vector<8x16xf32>
    %1439 = math.tanh %1438 : vector<8x16xf32>
    %cst_269 = arith.constant 1.000000e+00 : f32
    %1440 = vector.broadcast %cst_269 : f32 to vector<8x16xf32>
    %1441 = arith.addf %1439, %1440 : vector<8x16xf32>
    %cst_270 = arith.constant 5.000000e-01 : f32
    %1442 = vector.broadcast %cst_270 : f32 to vector<8x16xf32>
    %1443 = arith.mulf %1442, %1441 : vector<8x16xf32>
    %1444 = vector.extract_strided_slice %1435 {offsets = [0, 16], sizes = [8, 16], strides = [1, 1]} : vector<8x64xf32> to vector<8x16xf32>
    %cst_271 = arith.constant 5.000000e-01 : f32
    %1445 = vector.broadcast %cst_271 : f32 to vector<8x16xf32>
    %1446 = arith.mulf %1445, %1444 : vector<8x16xf32>
    %1447 = math.tanh %1446 : vector<8x16xf32>
    %cst_272 = arith.constant 1.000000e+00 : f32
    %1448 = vector.broadcast %cst_272 : f32 to vector<8x16xf32>
    %1449 = arith.addf %1447, %1448 : vector<8x16xf32>
    %cst_273 = arith.constant 5.000000e-01 : f32
    %1450 = vector.broadcast %cst_273 : f32 to vector<8x16xf32>
    %1451 = arith.mulf %1450, %1449 : vector<8x16xf32>
    %1452 = vector.extract_strided_slice %1435 {offsets = [0, 32], sizes = [8, 16], strides = [1, 1]} : vector<8x64xf32> to vector<8x16xf32>
    %1453 = math.tanh %1452 : vector<8x16xf32>
    %1454 = vector.extract_strided_slice %1435 {offsets = [0, 48], sizes = [8, 16], strides = [1, 1]} : vector<8x64xf32> to vector<8x16xf32>
    %cst_274 = arith.constant 5.000000e-01 : f32
    %1455 = vector.broadcast %cst_274 : f32 to vector<8x16xf32>
    %1456 = arith.mulf %1455, %1454 : vector<8x16xf32>
    %1457 = math.tanh %1456 : vector<8x16xf32>
    %cst_275 = arith.constant 1.000000e+00 : f32
    %1458 = vector.broadcast %cst_275 : f32 to vector<8x16xf32>
    %1459 = arith.addf %1457, %1458 : vector<8x16xf32>
    %cst_276 = arith.constant 5.000000e-01 : f32
    %1460 = vector.broadcast %cst_276 : f32 to vector<8x16xf32>
    %1461 = arith.mulf %1460, %1459 : vector<8x16xf32>
    %1462 = arith.mulf %1451, %1371 : vector<8x16xf32>
    %1463 = arith.mulf %1443, %1453 : vector<8x16xf32>
    %1464 = arith.addf %1462, %1463 : vector<8x16xf32>
    %1465 = math.tanh %1464 : vector<8x16xf32>
    %1466 = arith.mulf %1461, %1465 : vector<8x16xf32>
    %cst_277 = arith.constant dense<0.000000e+00> : vector<8x176xf32>
    %1467 = tpu.matmul %1466, %1093, %cst_277 {dimension_numbers = #tpu.dot_dimension_numbers<[1], [0], [0], [1], [0, 0, 1, 1], [], []>} : vector<8x16xf32>, vector<16x176xf32>, vector<8x176xf32> -> vector<8x176xf32>
    %1468 = vector.extract_strided_slice %1467 {offsets = [0, 0], sizes = [8, 112], strides = [1, 1]} : vector<8x176xf32> to vector<8x112xf32>
    %1469 = arith.addf %1092, %1468 : vector<8x112xf32>
    %cst_278 = arith.constant dense<0.000000e+00> : vector<8x112xf32>
    %1470 = tpu.matmul %1464, %1094, %cst_278 {dimension_numbers = #tpu.dot_dimension_numbers<[1], [0], [0], [1], [0, 0, 1, 1], [], []>} : vector<8x16xf32>, vector<16x112xf32>, vector<8x112xf32> -> vector<8x112xf32>
    %1471 = arith.addf %1469, %1470 : vector<8x112xf32>
    %1472 = vector.extract_strided_slice %1467 {offsets = [0, 112], sizes = [8, 64], strides = [1, 1]} : vector<8x176xf32> to vector<8x64xf32>
    %1473 = vector.broadcast %1097 : vector<1x64xf32> to vector<8x64xf32>
    %1474 = arith.addf %1472, %1473 : vector<8x64xf32>
    %1475 = math.tanh %1471 : vector<8x112xf32>
    %cst_279 = arith.constant dense<0.000000e+00> : vector<8x7xf32>
    %1476 = tpu.matmul %1475, %1095, %cst_279 {dimension_numbers = #tpu.dot_dimension_numbers<[1], [0], [0], [1], [0, 0, 1, 1], [], []>} : vector<8x112xf32>, vector<112x7xf32>, vector<8x7xf32> -> vector<8x7xf32>
    %1477 = vector.broadcast %3 : vector<1x1xf32> to vector<8x7xf32>
    %1478 = arith.addf %1476, %1477 : vector<8x7xf32>
    %cst_280 = arith.constant dense<0xFF800000> : vector<8xf32>
    %1479 = vector.multi_reduction <maximumf>, %1478, %cst_280 [1] : vector<8x7xf32> to vector<8xf32>
    %1480 = vector.shape_cast %1479 : vector<8xf32> to vector<8x1xf32>
    %1481 = vector.broadcast %1480 : vector<8x1xf32> to vector<8x7xf32>
    %1482 = arith.subf %1478, %1481 : vector<8x7xf32>
    %1483 = math.exp %1482 : vector<8x7xf32>
    %cst_281 = arith.constant dense<0.000000e+00> : vector<8xf32>
    %1484 = vector.multi_reduction <add>, %1483, %cst_281 [1] : vector<8x7xf32> to vector<8xf32>
    %1485 = vector.shape_cast %1484 : vector<8xf32> to vector<8x1xf32>
    %1486 = vector.broadcast %1485 : vector<8x1xf32> to vector<8x7xf32>
    %1487 = arith.divf %1483, %1486 : vector<8x7xf32>
    %1488 = vector.extract_strided_slice %1487 {offsets = [0, 0], sizes = [8, 1], strides = [1, 1]} : vector<8x7xf32> to vector<8x1xf32>
    %1489 = vector.broadcast %1488 : vector<8x1xf32> to vector<8x16xf32>
    %1490 = arith.mulf %1489, %588 : vector<8x16xf32>
    %1491 = vector.extract_strided_slice %1487 {offsets = [0, 1], sizes = [8, 1], strides = [1, 1]} : vector<8x7xf32> to vector<8x1xf32>
    %1492 = vector.broadcast %1491 : vector<8x1xf32> to vector<8x16xf32>
    %1493 = arith.mulf %1492, %671 : vector<8x16xf32>
    %1494 = arith.addf %1490, %1493 : vector<8x16xf32>
    %1495 = vector.extract_strided_slice %1487 {offsets = [0, 2], sizes = [8, 1], strides = [1, 1]} : vector<8x7xf32> to vector<8x1xf32>
    %1496 = vector.broadcast %1495 : vector<8x1xf32> to vector<8x16xf32>
    %1497 = arith.mulf %1496, %754 : vector<8x16xf32>
    %1498 = arith.addf %1494, %1497 : vector<8x16xf32>
    %1499 = vector.extract_strided_slice %1487 {offsets = [0, 3], sizes = [8, 1], strides = [1, 1]} : vector<8x7xf32> to vector<8x1xf32>
    %1500 = vector.broadcast %1499 : vector<8x1xf32> to vector<8x16xf32>
    %1501 = arith.mulf %1500, %837 : vector<8x16xf32>
    %1502 = arith.addf %1498, %1501 : vector<8x16xf32>
    %1503 = vector.extract_strided_slice %1487 {offsets = [0, 4], sizes = [8, 1], strides = [1, 1]} : vector<8x7xf32> to vector<8x1xf32>
    %1504 = vector.broadcast %1503 : vector<8x1xf32> to vector<8x16xf32>
    %1505 = arith.mulf %1504, %920 : vector<8x16xf32>
    %1506 = arith.addf %1502, %1505 : vector<8x16xf32>
    %1507 = vector.extract_strided_slice %1487 {offsets = [0, 5], sizes = [8, 1], strides = [1, 1]} : vector<8x7xf32> to vector<8x1xf32>
    %1508 = vector.broadcast %1507 : vector<8x1xf32> to vector<8x16xf32>
    %1509 = arith.mulf %1508, %1003 : vector<8x16xf32>
    %1510 = arith.addf %1506, %1509 : vector<8x16xf32>
    %1511 = vector.extract_strided_slice %1487 {offsets = [0, 6], sizes = [8, 1], strides = [1, 1]} : vector<8x7xf32> to vector<8x1xf32>
    %1512 = vector.broadcast %1511 : vector<8x1xf32> to vector<8x16xf32>
    %1513 = arith.mulf %1512, %1086 : vector<8x16xf32>
    %1514 = arith.addf %1510, %1513 : vector<8x16xf32>
    %1515 = vector.extract_strided_slice %8 {offsets = [0, 4], sizes = [8, 1], strides = [1, 1]} : vector<8x7xf32> to vector<8x1xf32>
    %1516 = vector.broadcast %1098 : vector<1x16xf32> to vector<8x16xf32>
    %1517 = arith.mulf %1514, %1516 : vector<8x16xf32>
    %cst_282 = arith.constant dense<0.000000e+00> : vector<8xf32>
    %1518 = vector.multi_reduction <add>, %1517, %cst_282 [1] : vector<8x16xf32> to vector<8xf32>
    %1519 = vector.shape_cast %1518 : vector<8xf32> to vector<8x1xf32>
    %1520 = vector.broadcast %4 : vector<1x1xf32> to vector<8x1xf32>
    %1521 = arith.mulf %1515, %1520 : vector<8x1xf32>
    %1522 = arith.addf %1519, %1521 : vector<8x1xf32>
    %1523 = vector.broadcast %5 : vector<1x1xf32> to vector<8x1xf32>
    %1524 = arith.addf %1522, %1523 : vector<8x1xf32>
    %1525 = vector.broadcast %1524 : vector<8x1xf32> to vector<8x64xf32>
    %1526 = vector.broadcast %1096 : vector<1x64xf32> to vector<8x64xf32>
    %1527 = arith.mulf %1525, %1526 : vector<8x64xf32>
    %1528 = arith.addf %1474, %1527 : vector<8x64xf32>
    %1529 = vector.extract_strided_slice %1528 {offsets = [0, 0], sizes = [8, 16], strides = [1, 1]} : vector<8x64xf32> to vector<8x16xf32>
    %cst_283 = arith.constant 5.000000e-01 : f32
    %1530 = vector.broadcast %cst_283 : f32 to vector<8x16xf32>
    %1531 = arith.mulf %1530, %1529 : vector<8x16xf32>
    %1532 = math.tanh %1531 : vector<8x16xf32>
    %cst_284 = arith.constant 1.000000e+00 : f32
    %1533 = vector.broadcast %cst_284 : f32 to vector<8x16xf32>
    %1534 = arith.addf %1532, %1533 : vector<8x16xf32>
    %cst_285 = arith.constant 5.000000e-01 : f32
    %1535 = vector.broadcast %cst_285 : f32 to vector<8x16xf32>
    %1536 = arith.mulf %1535, %1534 : vector<8x16xf32>
    %1537 = vector.extract_strided_slice %1528 {offsets = [0, 16], sizes = [8, 16], strides = [1, 1]} : vector<8x64xf32> to vector<8x16xf32>
    %cst_286 = arith.constant 5.000000e-01 : f32
    %1538 = vector.broadcast %cst_286 : f32 to vector<8x16xf32>
    %1539 = arith.mulf %1538, %1537 : vector<8x16xf32>
    %1540 = math.tanh %1539 : vector<8x16xf32>
    %cst_287 = arith.constant 1.000000e+00 : f32
    %1541 = vector.broadcast %cst_287 : f32 to vector<8x16xf32>
    %1542 = arith.addf %1540, %1541 : vector<8x16xf32>
    %cst_288 = arith.constant 5.000000e-01 : f32
    %1543 = vector.broadcast %cst_288 : f32 to vector<8x16xf32>
    %1544 = arith.mulf %1543, %1542 : vector<8x16xf32>
    %1545 = vector.extract_strided_slice %1528 {offsets = [0, 32], sizes = [8, 16], strides = [1, 1]} : vector<8x64xf32> to vector<8x16xf32>
    %1546 = math.tanh %1545 : vector<8x16xf32>
    %1547 = vector.extract_strided_slice %1528 {offsets = [0, 48], sizes = [8, 16], strides = [1, 1]} : vector<8x64xf32> to vector<8x16xf32>
    %cst_289 = arith.constant 5.000000e-01 : f32
    %1548 = vector.broadcast %cst_289 : f32 to vector<8x16xf32>
    %1549 = arith.mulf %1548, %1547 : vector<8x16xf32>
    %1550 = math.tanh %1549 : vector<8x16xf32>
    %cst_290 = arith.constant 1.000000e+00 : f32
    %1551 = vector.broadcast %cst_290 : f32 to vector<8x16xf32>
    %1552 = arith.addf %1550, %1551 : vector<8x16xf32>
    %cst_291 = arith.constant 5.000000e-01 : f32
    %1553 = vector.broadcast %cst_291 : f32 to vector<8x16xf32>
    %1554 = arith.mulf %1553, %1552 : vector<8x16xf32>
    %1555 = arith.mulf %1544, %1464 : vector<8x16xf32>
    %1556 = arith.mulf %1536, %1546 : vector<8x16xf32>
    %1557 = arith.addf %1555, %1556 : vector<8x16xf32>
    %1558 = math.tanh %1557 : vector<8x16xf32>
    %1559 = arith.mulf %1554, %1558 : vector<8x16xf32>
    %cst_292 = arith.constant dense<0.000000e+00> : vector<8x176xf32>
    %1560 = tpu.matmul %1559, %1093, %cst_292 {dimension_numbers = #tpu.dot_dimension_numbers<[1], [0], [0], [1], [0, 0, 1, 1], [], []>} : vector<8x16xf32>, vector<16x176xf32>, vector<8x176xf32> -> vector<8x176xf32>
    %1561 = vector.extract_strided_slice %1560 {offsets = [0, 0], sizes = [8, 112], strides = [1, 1]} : vector<8x176xf32> to vector<8x112xf32>
    %1562 = arith.addf %1092, %1561 : vector<8x112xf32>
    %cst_293 = arith.constant dense<0.000000e+00> : vector<8x112xf32>
    %1563 = tpu.matmul %1557, %1094, %cst_293 {dimension_numbers = #tpu.dot_dimension_numbers<[1], [0], [0], [1], [0, 0, 1, 1], [], []>} : vector<8x16xf32>, vector<16x112xf32>, vector<8x112xf32> -> vector<8x112xf32>
    %1564 = arith.addf %1562, %1563 : vector<8x112xf32>
    %1565 = vector.extract_strided_slice %1560 {offsets = [0, 112], sizes = [8, 64], strides = [1, 1]} : vector<8x176xf32> to vector<8x64xf32>
    %1566 = vector.broadcast %1097 : vector<1x64xf32> to vector<8x64xf32>
    %1567 = arith.addf %1565, %1566 : vector<8x64xf32>
    %1568 = math.tanh %1564 : vector<8x112xf32>
    %cst_294 = arith.constant dense<0.000000e+00> : vector<8x7xf32>
    %1569 = tpu.matmul %1568, %1095, %cst_294 {dimension_numbers = #tpu.dot_dimension_numbers<[1], [0], [0], [1], [0, 0, 1, 1], [], []>} : vector<8x112xf32>, vector<112x7xf32>, vector<8x7xf32> -> vector<8x7xf32>
    %1570 = vector.broadcast %3 : vector<1x1xf32> to vector<8x7xf32>
    %1571 = arith.addf %1569, %1570 : vector<8x7xf32>
    %cst_295 = arith.constant dense<0xFF800000> : vector<8xf32>
    %1572 = vector.multi_reduction <maximumf>, %1571, %cst_295 [1] : vector<8x7xf32> to vector<8xf32>
    %1573 = vector.shape_cast %1572 : vector<8xf32> to vector<8x1xf32>
    %1574 = vector.broadcast %1573 : vector<8x1xf32> to vector<8x7xf32>
    %1575 = arith.subf %1571, %1574 : vector<8x7xf32>
    %1576 = math.exp %1575 : vector<8x7xf32>
    %cst_296 = arith.constant dense<0.000000e+00> : vector<8xf32>
    %1577 = vector.multi_reduction <add>, %1576, %cst_296 [1] : vector<8x7xf32> to vector<8xf32>
    %1578 = vector.shape_cast %1577 : vector<8xf32> to vector<8x1xf32>
    %1579 = vector.broadcast %1578 : vector<8x1xf32> to vector<8x7xf32>
    %1580 = arith.divf %1576, %1579 : vector<8x7xf32>
    %1581 = vector.extract_strided_slice %1580 {offsets = [0, 0], sizes = [8, 1], strides = [1, 1]} : vector<8x7xf32> to vector<8x1xf32>
    %1582 = vector.broadcast %1581 : vector<8x1xf32> to vector<8x16xf32>
    %1583 = arith.mulf %1582, %588 : vector<8x16xf32>
    %1584 = vector.extract_strided_slice %1580 {offsets = [0, 1], sizes = [8, 1], strides = [1, 1]} : vector<8x7xf32> to vector<8x1xf32>
    %1585 = vector.broadcast %1584 : vector<8x1xf32> to vector<8x16xf32>
    %1586 = arith.mulf %1585, %671 : vector<8x16xf32>
    %1587 = arith.addf %1583, %1586 : vector<8x16xf32>
    %1588 = vector.extract_strided_slice %1580 {offsets = [0, 2], sizes = [8, 1], strides = [1, 1]} : vector<8x7xf32> to vector<8x1xf32>
    %1589 = vector.broadcast %1588 : vector<8x1xf32> to vector<8x16xf32>
    %1590 = arith.mulf %1589, %754 : vector<8x16xf32>
    %1591 = arith.addf %1587, %1590 : vector<8x16xf32>
    %1592 = vector.extract_strided_slice %1580 {offsets = [0, 3], sizes = [8, 1], strides = [1, 1]} : vector<8x7xf32> to vector<8x1xf32>
    %1593 = vector.broadcast %1592 : vector<8x1xf32> to vector<8x16xf32>
    %1594 = arith.mulf %1593, %837 : vector<8x16xf32>
    %1595 = arith.addf %1591, %1594 : vector<8x16xf32>
    %1596 = vector.extract_strided_slice %1580 {offsets = [0, 4], sizes = [8, 1], strides = [1, 1]} : vector<8x7xf32> to vector<8x1xf32>
    %1597 = vector.broadcast %1596 : vector<8x1xf32> to vector<8x16xf32>
    %1598 = arith.mulf %1597, %920 : vector<8x16xf32>
    %1599 = arith.addf %1595, %1598 : vector<8x16xf32>
    %1600 = vector.extract_strided_slice %1580 {offsets = [0, 5], sizes = [8, 1], strides = [1, 1]} : vector<8x7xf32> to vector<8x1xf32>
    %1601 = vector.broadcast %1600 : vector<8x1xf32> to vector<8x16xf32>
    %1602 = arith.mulf %1601, %1003 : vector<8x16xf32>
    %1603 = arith.addf %1599, %1602 : vector<8x16xf32>
    %1604 = vector.extract_strided_slice %1580 {offsets = [0, 6], sizes = [8, 1], strides = [1, 1]} : vector<8x7xf32> to vector<8x1xf32>
    %1605 = vector.broadcast %1604 : vector<8x1xf32> to vector<8x16xf32>
    %1606 = arith.mulf %1605, %1086 : vector<8x16xf32>
    %1607 = arith.addf %1603, %1606 : vector<8x16xf32>
    %1608 = vector.extract_strided_slice %8 {offsets = [0, 5], sizes = [8, 1], strides = [1, 1]} : vector<8x7xf32> to vector<8x1xf32>
    %1609 = vector.broadcast %1098 : vector<1x16xf32> to vector<8x16xf32>
    %1610 = arith.mulf %1607, %1609 : vector<8x16xf32>
    %cst_297 = arith.constant dense<0.000000e+00> : vector<8xf32>
    %1611 = vector.multi_reduction <add>, %1610, %cst_297 [1] : vector<8x16xf32> to vector<8xf32>
    %1612 = vector.shape_cast %1611 : vector<8xf32> to vector<8x1xf32>
    %1613 = vector.broadcast %4 : vector<1x1xf32> to vector<8x1xf32>
    %1614 = arith.mulf %1608, %1613 : vector<8x1xf32>
    %1615 = arith.addf %1612, %1614 : vector<8x1xf32>
    %1616 = vector.broadcast %5 : vector<1x1xf32> to vector<8x1xf32>
    %1617 = arith.addf %1615, %1616 : vector<8x1xf32>
    %1618 = vector.broadcast %1617 : vector<8x1xf32> to vector<8x64xf32>
    %1619 = vector.broadcast %1096 : vector<1x64xf32> to vector<8x64xf32>
    %1620 = arith.mulf %1618, %1619 : vector<8x64xf32>
    %1621 = arith.addf %1567, %1620 : vector<8x64xf32>
    %1622 = vector.extract_strided_slice %1621 {offsets = [0, 0], sizes = [8, 16], strides = [1, 1]} : vector<8x64xf32> to vector<8x16xf32>
    %cst_298 = arith.constant 5.000000e-01 : f32
    %1623 = vector.broadcast %cst_298 : f32 to vector<8x16xf32>
    %1624 = arith.mulf %1623, %1622 : vector<8x16xf32>
    %1625 = math.tanh %1624 : vector<8x16xf32>
    %cst_299 = arith.constant 1.000000e+00 : f32
    %1626 = vector.broadcast %cst_299 : f32 to vector<8x16xf32>
    %1627 = arith.addf %1625, %1626 : vector<8x16xf32>
    %cst_300 = arith.constant 5.000000e-01 : f32
    %1628 = vector.broadcast %cst_300 : f32 to vector<8x16xf32>
    %1629 = arith.mulf %1628, %1627 : vector<8x16xf32>
    %1630 = vector.extract_strided_slice %1621 {offsets = [0, 16], sizes = [8, 16], strides = [1, 1]} : vector<8x64xf32> to vector<8x16xf32>
    %cst_301 = arith.constant 5.000000e-01 : f32
    %1631 = vector.broadcast %cst_301 : f32 to vector<8x16xf32>
    %1632 = arith.mulf %1631, %1630 : vector<8x16xf32>
    %1633 = math.tanh %1632 : vector<8x16xf32>
    %cst_302 = arith.constant 1.000000e+00 : f32
    %1634 = vector.broadcast %cst_302 : f32 to vector<8x16xf32>
    %1635 = arith.addf %1633, %1634 : vector<8x16xf32>
    %cst_303 = arith.constant 5.000000e-01 : f32
    %1636 = vector.broadcast %cst_303 : f32 to vector<8x16xf32>
    %1637 = arith.mulf %1636, %1635 : vector<8x16xf32>
    %1638 = vector.extract_strided_slice %1621 {offsets = [0, 32], sizes = [8, 16], strides = [1, 1]} : vector<8x64xf32> to vector<8x16xf32>
    %1639 = math.tanh %1638 : vector<8x16xf32>
    %1640 = vector.extract_strided_slice %1621 {offsets = [0, 48], sizes = [8, 16], strides = [1, 1]} : vector<8x64xf32> to vector<8x16xf32>
    %cst_304 = arith.constant 5.000000e-01 : f32
    %1641 = vector.broadcast %cst_304 : f32 to vector<8x16xf32>
    %1642 = arith.mulf %1641, %1640 : vector<8x16xf32>
    %1643 = math.tanh %1642 : vector<8x16xf32>
    %cst_305 = arith.constant 1.000000e+00 : f32
    %1644 = vector.broadcast %cst_305 : f32 to vector<8x16xf32>
    %1645 = arith.addf %1643, %1644 : vector<8x16xf32>
    %cst_306 = arith.constant 5.000000e-01 : f32
    %1646 = vector.broadcast %cst_306 : f32 to vector<8x16xf32>
    %1647 = arith.mulf %1646, %1645 : vector<8x16xf32>
    %1648 = arith.mulf %1637, %1557 : vector<8x16xf32>
    %1649 = arith.mulf %1629, %1639 : vector<8x16xf32>
    %1650 = arith.addf %1648, %1649 : vector<8x16xf32>
    %1651 = math.tanh %1650 : vector<8x16xf32>
    %1652 = arith.mulf %1647, %1651 : vector<8x16xf32>
    %cst_307 = arith.constant dense<0.000000e+00> : vector<8x176xf32>
    %1653 = tpu.matmul %1652, %1093, %cst_307 {dimension_numbers = #tpu.dot_dimension_numbers<[1], [0], [0], [1], [0, 0, 1, 1], [], []>} : vector<8x16xf32>, vector<16x176xf32>, vector<8x176xf32> -> vector<8x176xf32>
    %1654 = vector.extract_strided_slice %1653 {offsets = [0, 0], sizes = [8, 112], strides = [1, 1]} : vector<8x176xf32> to vector<8x112xf32>
    %1655 = arith.addf %1092, %1654 : vector<8x112xf32>
    %cst_308 = arith.constant dense<0.000000e+00> : vector<8x112xf32>
    %1656 = tpu.matmul %1650, %1094, %cst_308 {dimension_numbers = #tpu.dot_dimension_numbers<[1], [0], [0], [1], [0, 0, 1, 1], [], []>} : vector<8x16xf32>, vector<16x112xf32>, vector<8x112xf32> -> vector<8x112xf32>
    %1657 = arith.addf %1655, %1656 : vector<8x112xf32>
    %1658 = vector.extract_strided_slice %1653 {offsets = [0, 112], sizes = [8, 64], strides = [1, 1]} : vector<8x176xf32> to vector<8x64xf32>
    %1659 = vector.broadcast %1097 : vector<1x64xf32> to vector<8x64xf32>
    %1660 = arith.addf %1658, %1659 : vector<8x64xf32>
    %1661 = math.tanh %1657 : vector<8x112xf32>
    %cst_309 = arith.constant dense<0.000000e+00> : vector<8x7xf32>
    %1662 = tpu.matmul %1661, %1095, %cst_309 {dimension_numbers = #tpu.dot_dimension_numbers<[1], [0], [0], [1], [0, 0, 1, 1], [], []>} : vector<8x112xf32>, vector<112x7xf32>, vector<8x7xf32> -> vector<8x7xf32>
    %1663 = vector.broadcast %3 : vector<1x1xf32> to vector<8x7xf32>
    %1664 = arith.addf %1662, %1663 : vector<8x7xf32>
    %cst_310 = arith.constant dense<0xFF800000> : vector<8xf32>
    %1665 = vector.multi_reduction <maximumf>, %1664, %cst_310 [1] : vector<8x7xf32> to vector<8xf32>
    %1666 = vector.shape_cast %1665 : vector<8xf32> to vector<8x1xf32>
    %1667 = vector.broadcast %1666 : vector<8x1xf32> to vector<8x7xf32>
    %1668 = arith.subf %1664, %1667 : vector<8x7xf32>
    %1669 = math.exp %1668 : vector<8x7xf32>
    %cst_311 = arith.constant dense<0.000000e+00> : vector<8xf32>
    %1670 = vector.multi_reduction <add>, %1669, %cst_311 [1] : vector<8x7xf32> to vector<8xf32>
    %1671 = vector.shape_cast %1670 : vector<8xf32> to vector<8x1xf32>
    %1672 = vector.broadcast %1671 : vector<8x1xf32> to vector<8x7xf32>
    %1673 = arith.divf %1669, %1672 : vector<8x7xf32>
    %1674 = vector.extract_strided_slice %1673 {offsets = [0, 0], sizes = [8, 1], strides = [1, 1]} : vector<8x7xf32> to vector<8x1xf32>
    %1675 = vector.broadcast %1674 : vector<8x1xf32> to vector<8x16xf32>
    %1676 = arith.mulf %1675, %588 : vector<8x16xf32>
    %1677 = vector.extract_strided_slice %1673 {offsets = [0, 1], sizes = [8, 1], strides = [1, 1]} : vector<8x7xf32> to vector<8x1xf32>
    %1678 = vector.broadcast %1677 : vector<8x1xf32> to vector<8x16xf32>
    %1679 = arith.mulf %1678, %671 : vector<8x16xf32>
    %1680 = arith.addf %1676, %1679 : vector<8x16xf32>
    %1681 = vector.extract_strided_slice %1673 {offsets = [0, 2], sizes = [8, 1], strides = [1, 1]} : vector<8x7xf32> to vector<8x1xf32>
    %1682 = vector.broadcast %1681 : vector<8x1xf32> to vector<8x16xf32>
    %1683 = arith.mulf %1682, %754 : vector<8x16xf32>
    %1684 = arith.addf %1680, %1683 : vector<8x16xf32>
    %1685 = vector.extract_strided_slice %1673 {offsets = [0, 3], sizes = [8, 1], strides = [1, 1]} : vector<8x7xf32> to vector<8x1xf32>
    %1686 = vector.broadcast %1685 : vector<8x1xf32> to vector<8x16xf32>
    %1687 = arith.mulf %1686, %837 : vector<8x16xf32>
    %1688 = arith.addf %1684, %1687 : vector<8x16xf32>
    %1689 = vector.extract_strided_slice %1673 {offsets = [0, 4], sizes = [8, 1], strides = [1, 1]} : vector<8x7xf32> to vector<8x1xf32>
    %1690 = vector.broadcast %1689 : vector<8x1xf32> to vector<8x16xf32>
    %1691 = arith.mulf %1690, %920 : vector<8x16xf32>
    %1692 = arith.addf %1688, %1691 : vector<8x16xf32>
    %1693 = vector.extract_strided_slice %1673 {offsets = [0, 5], sizes = [8, 1], strides = [1, 1]} : vector<8x7xf32> to vector<8x1xf32>
    %1694 = vector.broadcast %1693 : vector<8x1xf32> to vector<8x16xf32>
    %1695 = arith.mulf %1694, %1003 : vector<8x16xf32>
    %1696 = arith.addf %1692, %1695 : vector<8x16xf32>
    %1697 = vector.extract_strided_slice %1673 {offsets = [0, 6], sizes = [8, 1], strides = [1, 1]} : vector<8x7xf32> to vector<8x1xf32>
    %1698 = vector.broadcast %1697 : vector<8x1xf32> to vector<8x16xf32>
    %1699 = arith.mulf %1698, %1086 : vector<8x16xf32>
    %1700 = arith.addf %1696, %1699 : vector<8x16xf32>
    %1701 = vector.extract_strided_slice %8 {offsets = [0, 6], sizes = [8, 1], strides = [1, 1]} : vector<8x7xf32> to vector<8x1xf32>
    %1702 = vector.broadcast %1098 : vector<1x16xf32> to vector<8x16xf32>
    %1703 = arith.mulf %1700, %1702 : vector<8x16xf32>
    %cst_312 = arith.constant dense<0.000000e+00> : vector<8xf32>
    %1704 = vector.multi_reduction <add>, %1703, %cst_312 [1] : vector<8x16xf32> to vector<8xf32>
    %1705 = vector.shape_cast %1704 : vector<8xf32> to vector<8x1xf32>
    %1706 = vector.broadcast %4 : vector<1x1xf32> to vector<8x1xf32>
    %1707 = arith.mulf %1701, %1706 : vector<8x1xf32>
    %1708 = arith.addf %1705, %1707 : vector<8x1xf32>
    %1709 = vector.broadcast %5 : vector<1x1xf32> to vector<8x1xf32>
    %1710 = arith.addf %1708, %1709 : vector<8x1xf32>
    %1711 = vector.broadcast %1710 : vector<8x1xf32> to vector<8x64xf32>
    %1712 = vector.broadcast %1096 : vector<1x64xf32> to vector<8x64xf32>
    %1713 = arith.mulf %1711, %1712 : vector<8x64xf32>
    %1714 = arith.addf %1660, %1713 : vector<8x64xf32>
    %1715 = vector.extract_strided_slice %1714 {offsets = [0, 0], sizes = [8, 16], strides = [1, 1]} : vector<8x64xf32> to vector<8x16xf32>
    %cst_313 = arith.constant 5.000000e-01 : f32
    %1716 = vector.broadcast %cst_313 : f32 to vector<8x16xf32>
    %1717 = arith.mulf %1716, %1715 : vector<8x16xf32>
    %1718 = math.tanh %1717 : vector<8x16xf32>
    %cst_314 = arith.constant 1.000000e+00 : f32
    %1719 = vector.broadcast %cst_314 : f32 to vector<8x16xf32>
    %1720 = arith.addf %1718, %1719 : vector<8x16xf32>
    %cst_315 = arith.constant 5.000000e-01 : f32
    %1721 = vector.broadcast %cst_315 : f32 to vector<8x16xf32>
    %1722 = arith.mulf %1721, %1720 : vector<8x16xf32>
    %1723 = vector.extract_strided_slice %1714 {offsets = [0, 16], sizes = [8, 16], strides = [1, 1]} : vector<8x64xf32> to vector<8x16xf32>
    %cst_316 = arith.constant 5.000000e-01 : f32
    %1724 = vector.broadcast %cst_316 : f32 to vector<8x16xf32>
    %1725 = arith.mulf %1724, %1723 : vector<8x16xf32>
    %1726 = math.tanh %1725 : vector<8x16xf32>
    %cst_317 = arith.constant 1.000000e+00 : f32
    %1727 = vector.broadcast %cst_317 : f32 to vector<8x16xf32>
    %1728 = arith.addf %1726, %1727 : vector<8x16xf32>
    %cst_318 = arith.constant 5.000000e-01 : f32
    %1729 = vector.broadcast %cst_318 : f32 to vector<8x16xf32>
    %1730 = arith.mulf %1729, %1728 : vector<8x16xf32>
    %1731 = vector.extract_strided_slice %1714 {offsets = [0, 32], sizes = [8, 16], strides = [1, 1]} : vector<8x64xf32> to vector<8x16xf32>
    %1732 = math.tanh %1731 : vector<8x16xf32>
    %1733 = vector.extract_strided_slice %1714 {offsets = [0, 48], sizes = [8, 16], strides = [1, 1]} : vector<8x64xf32> to vector<8x16xf32>
    %cst_319 = arith.constant 5.000000e-01 : f32
    %1734 = vector.broadcast %cst_319 : f32 to vector<8x16xf32>
    %1735 = arith.mulf %1734, %1733 : vector<8x16xf32>
    %1736 = math.tanh %1735 : vector<8x16xf32>
    %cst_320 = arith.constant 1.000000e+00 : f32
    %1737 = vector.broadcast %cst_320 : f32 to vector<8x16xf32>
    %1738 = arith.addf %1736, %1737 : vector<8x16xf32>
    %cst_321 = arith.constant 5.000000e-01 : f32
    %1739 = vector.broadcast %cst_321 : f32 to vector<8x16xf32>
    %1740 = arith.mulf %1739, %1738 : vector<8x16xf32>
    %1741 = arith.mulf %1730, %1650 : vector<8x16xf32>
    %1742 = arith.mulf %1722, %1732 : vector<8x16xf32>
    %1743 = arith.addf %1741, %1742 : vector<8x16xf32>
    %1744 = math.tanh %1743 : vector<8x16xf32>
    %1745 = arith.mulf %1740, %1744 : vector<8x16xf32>
    %1746 = vector.broadcast %1099 : vector<1x16xf32> to vector<8x16xf32>
    %1747 = arith.mulf %1745, %1746 : vector<8x16xf32>
    %cst_322 = arith.constant dense<0.000000e+00> : vector<8xf32>
    %1748 = vector.multi_reduction <add>, %1747, %cst_322 [1] : vector<8x16xf32> to vector<8xf32>
    %1749 = vector.shape_cast %1748 : vector<8xf32> to vector<8x1xf32>
    %1750 = vector.broadcast %1100 : vector<1x16xf32> to vector<8x16xf32>
    %1751 = arith.mulf %1700, %1750 : vector<8x16xf32>
    %cst_323 = arith.constant dense<0.000000e+00> : vector<8xf32>
    %1752 = vector.multi_reduction <add>, %1751, %cst_323 [1] : vector<8x16xf32> to vector<8xf32>
    %1753 = vector.shape_cast %1752 : vector<8xf32> to vector<8x1xf32>
    %1754 = arith.addf %1749, %1753 : vector<8x1xf32>
    %1755 = vector.broadcast %6 : vector<1x1xf32> to vector<8x1xf32>
    %1756 = arith.addf %1754, %1755 : vector<8x1xf32>
    %c0_324 = arith.constant 0 : index
    %c0_325 = arith.constant 0 : index
    %1757 = vector.load %arg5[%c0_324, %c0_325] : memref<8x1xf32, #tpu.memory_space<vmem>>, vector<8x1xf32>
    tpu.vector_store %arg5[%c0_324, %c0_325], %1756 {strides = array<i32>} : memref<8x1xf32, #tpu.memory_space<vmem>>, vector<8x1xf32>,
    return
  }
  func.func @transform_0(%arg0: i32) -> (i32, i32) {
    %c0_i32 = arith.constant 0 : i32
    %c0_i32_0 = arith.constant 0 : i32
    return %arg0, %c0_i32 : i32, i32
  }
  func.func @transform_1(%arg0: i32) -> (i32, i32) {
    %c0_i32 = arith.constant 0 : i32
    %c0_i32_0 = arith.constant 0 : i32
    return %arg0, %c0_i32 : i32, i32
  }
  func.func @transform_2(%arg0: i32) -> (i32, i32) {
    %c0_i32 = arith.constant 0 : i32
    %c0_i32_0 = arith.constant 0 : i32
    %c0_i32_1 = arith.constant 0 : i32
    return %c0_i32, %c0_i32_0 : i32, i32
  }
  func.func @transform_3(%arg0: i32) -> (i32, i32) {
    %c0_i32 = arith.constant 0 : i32
    %c0_i32_0 = arith.constant 0 : i32
    %c0_i32_1 = arith.constant 0 : i32
    return %c0_i32, %c0_i32_0 : i32, i32
  }
  func.func @transform_4(%arg0: i32) -> (i32, i32) {
    %c0_i32 = arith.constant 0 : i32
    %c0_i32_0 = arith.constant 0 : i32
    return %arg0, %c0_i32 : i32, i32
  }
}

</mosaic_0001>

<bundles_post_ra>
// kernel: tpu_custom_call.1
= control target key start
LH: loop header
LB: loop body
LE: loop exit
PB: predicated region body
PF: predicated region fallthrough
CT: control target
= control target key end

     0   :  { %9 = vsyncpa [#allocation3], 0  ;;  %s10157_s0 = inlined_call_operand.hbm [shape: f32[8,28], index: 0, kind: input, shape index: {}]   ;;  %s10158_s1 = inlined_call_operand.hbm [shape: f32[8,7], index: 1, kind: input, shape index: {}]   ;;  %s10159_s2 = inlined_call_operand.hbm [shape: f32[448,128], index: 2, kind: input, shape index: {}]   ;;  %s10160_s3 = inlined_call_operand.hbm [shape: f32[16,176], index: 3, kind: input, shape index: {}]   ;;  %s10161_s4 = inlined_call_operand.vmem [shape: f32[8,1], index: 4, kind: output, shape index: {}]  }
   0x1   :  { %10 = vsyncpa [#allocation5], 0 }
   0x2   :  { %11 = vsyncpa [#allocation8], 0  ;;  %s8650_s15 = smov [#allocation4]   ;;  %s8651_s17 = smov [#allocation2]  }
   0x3   :  { %s28_s16 = sshll.u32 %s8650_s15, 4  ;;  %s18_s18 = sshll.u32 %s8651_s17, 4  ;;  %s29_s16 = int_to_ptr.vmem [resolvable:$true] %s28_s16  ;;  %s19_s18 = int_to_ptr.vmem [resolvable:$true] %s18_s18 }
   0x4   :  { %s8556_s21 = scalar_lea.hbm %s10158_s1, 128 }
   0x5   :  { %p8557_p0 = scmp.ne.s32.totalorder %s10158_s1, %s8556_s21  ;;  %p8560_p1 = scmp.lt.u32.totalorder %s8556_s21, %s10158_s1 }
   0x7   :  { %p8562_p2 = pnand %p8560_p1, %p8557_p0 }
   0x9   :  { %8565 = shalt.err (!%p8562_p2)
}
   0xa   :  { %s8566_s26 = scalar_lea.vmem %s29_s16, 128  ;;  %p8571_p4 = scmp.lt.s32.totalorder %s29_s16, %s29_s16 }
   0xb   :  { %p8567_p3 = scmp.ne.s32.totalorder %s29_s16, %s8566_s26  ;;  %p8572_p5 = scmp.lt.s32.totalorder %s8566_s26, %s8566_s26 }
   0xd   :  { %p8573_p6 = por %p8572_p5, %p8571_p4 }
   0xf   :  { %p8574_p7 = pnand %p8573_p6, %p8567_p3 }
  0x11   :  { %8577 = shalt.err (!%p8574_p7)
}
  0x12   :  { %31 = dma.hbm_to_vmem [thread:$0]  %s10158_s1, 128, %s29_s16, [#allocation5]  }
  0x13   :  { %s8578_s5 = scalar_lea.hbm %s10157_s0, 128 }
  0x14   :  { %p8579_p8 = scmp.ne.s32.totalorder %s10157_s0, %s8578_s5  ;;  %p8582_p9 = scmp.lt.u32.totalorder %s8578_s5, %s10157_s0 }
  0x16   :  { %p8584_p10 = pnand %p8582_p9, %p8579_p8 }
  0x18   :  { %8587 = shalt.err (!%p8584_p10)
}
  0x19   :  { %s8588_s10 = scalar_lea.vmem %s19_s18, 128  ;;  %p8593_p12 = scmp.lt.s32.totalorder %s19_s18, %s19_s18 }
  0x1a   :  { %p8589_p11 = scmp.ne.s32.totalorder %s19_s18, %s8588_s10  ;;  %p8594_p13 = scmp.lt.s32.totalorder %s8588_s10, %s8588_s10 }
  0x1c   :  { %p8595_p0 = por %p8594_p13, %p8593_p12 }
  0x1e   :  { %p8596_p1 = pnand %p8595_p0, %p8589_p11 }
  0x20   :  { %8599 = shalt.err (!%p8596_p1)
}
  0x21   :  { %21 = dma.hbm_to_vmem [thread:$0]  %s10157_s0, 128, %s19_s18, [#allocation3]  }
  0x22   :  { %s8652_s12 = smov [#allocation6]   ;;  %s8600_s16 = scalar_lea.hbm %s10159_s2, 7168 }
  0x23   :  { %s37_s13 = sshll.u32 %s8652_s12, 4  ;;  %p8601_p2 = scmp.ne.s32.totalorder %s10159_s2, %s8600_s16  ;;  %s38_s13 = int_to_ptr.vmem [resolvable:$true] %s37_s13 }
  0x24   :  { %p8604_p3 = scmp.lt.u32.totalorder %s8600_s16, %s10159_s2 }
  0x26   :  { %p8606_p4 = pnand %p8604_p3, %p8601_p2 }
  0x28   :  { %8609 = shalt.err (!%p8606_p4)
}
  0x29   :  { %s8610_s22 = scalar_lea.vmem %s38_s13, 7168  ;;  %p8615_p6 = scmp.lt.s32.totalorder %s38_s13, %s38_s13 }
  0x2a   :  { %p8611_p5 = scmp.ne.s32.totalorder %s38_s13, %s8610_s22  ;;  %p8616_p7 = scmp.lt.s32.totalorder %s8610_s22, %s8610_s22 }
  0x2c   :  { %p8617_p8 = por %p8616_p7, %p8615_p6 }
  0x2e   :  { %p8618_p9 = pnand %p8617_p8, %p8611_p5 }
  0x30   :  { %8621 = shalt.err (!%p8618_p9)
}
  0x31   :  { %s8653_s0 = smov 128   ;;  %s8654_s18 = smov 8  }
  0x32   :  { %43 = dma.hbm_to_vmem [thread:$0]  %s10159_s2, 7168, %s38_s13, [#allocation5], %s8653_s0, %s8653_s0, %s8654_s18  }
  0x33   :  { %s8655_s25 = smov [#allocation7]   ;;  %s8622_s29 = scalar_lea.hbm %s10160_s3, 512 }
  0x34   :  { %s49_s26 = sshll.u32 %s8655_s25, 4  ;;  %p8623_p10 = scmp.ne.s32.totalorder %s10160_s3, %s8622_s29  ;;  %s50_s26 = int_to_ptr.vmem [resolvable:$true] %s49_s26 }
  0x35   :  { %p8626_p11 = scmp.lt.u32.totalorder %s8622_s29, %s10160_s3 }
  0x37   :  { %p8628_p12 = pnand %p8626_p11, %p8623_p10 }
  0x39   :  { %8631 = shalt.err (!%p8628_p12)
}
  0x3a   :  { %s8632_s8 = scalar_lea.vmem %s50_s26, 512  ;;  %p8637_p0 = scmp.lt.s32.totalorder %s50_s26, %s50_s26 }
  0x3b   :  { %p8633_p13 = scmp.ne.s32.totalorder %s50_s26, %s8632_s8  ;;  %p8638_p1 = scmp.lt.s32.totalorder %s8632_s8, %s8632_s8 }
  0x3d   :  { %p8639_p2 = por %p8638_p1, %p8637_p0 }
  0x3f   :  { %p8640_p3 = pnand %p8639_p2, %p8633_p13 }
  0x41   :  { %8643 = shalt.err (!%p8640_p3)
}
  0x42   :  { %s8656_s2 = smov 256   ;;  %s8657_s9 = smov 16  }
  0x43   :  { %55 = dma.hbm_to_vmem [thread:$0]  %s10160_s3, 512, %s50_s26, [#allocation8], %s8656_s2, %s8656_s2, %s8657_s9  }
  0x44   :  { %8644 = dma.done.wait [#allocation3], 128  }
  0x45   :  { %8645 = vsyncadd [#allocation3], 4294967168 }
  0x46   :  { %8646 = dma.done.wait [#allocation5], 7296  }
  0x47   :  { %8647 = vsyncadd [#allocation5], 4294960000 }
  0x48   :  { %8648 = dma.done.wait [#allocation8], 512  }
  0x49   :  { %8649 = vsyncadd [#allocation8], 4294966784  ;;  %v8658_v0 = vmov 0.0|0.0   ;;  %vm8659_vm0 = vmmov 0   ;;  %v8660_v1 = vmov 0.0   ;;  %v71_v2 = vld [vmem:[#allocation6 + $0x28] sm:$0xff]  ;;  %v265_v40 = vlaneseq }
  0x4a   :  { %7769 = vmatprep.subr.bf16.mxu0 %v8658_v0  ;;  %7794 = vmatprep.subr.bf16.mxu1 %v8658_v0  ;;  %v72_v3 = vld [vmem:[#allocation6 + $0x30] sm:$0xff]  ;;  %v73_v4 = vld [vmem:[#allocation6 + $0x38] sm:$0xff]  ;;  %v74_v6 = vld [vmem:[#allocation6 + $0x40] sm:$0xf]  ;;  %vm84_vm1 = vcmask 1043456   ;;  %vm8661_vm2 = vmmov 1  }
  0x4b   :  { %7167 = vmatprep.mubr.msk.f32.mxu0 %vm8659_vm0, %v8660_v1  ;;  %7210 = vmatprep.mubr.msk.f32.mxu1 %vm8659_vm0, %v8660_v1  ;;  %v7770_v5 = vpack.c.bf16 %v72_v3, %v71_v2  ;;  %v7773_v7 = vpack.c.bf16 %v74_v6, %v73_v4  ;;  %vm8773_vm3 = vmpackc.low %vm84_vm1, %vm8661_vm2  ;;  %v8779_v9 = vld [vmem:[#allocation2] sm:$0xff]  ;;  %vm80_vm4 = vcmask 228352   ;;  %v163_v10 = vld [vmem:[#allocation6 + $0x48] sm:$0xff]  ;;  %vm173_vm5 = vcmask 261120   ;;  %s8666_s11 = smov 96   ;;  %s8667_s12 = smov 32  }
  0x4c   :  { %v164_v11 = vld [vmem:[#allocation6 + $0x50] sm:$0xff]  ;;  %v165_v12 = vld [vmem:[#allocation6 + $0x58] sm:$0xff]  ;;  %v166_v14 = vld [vmem:[#allocation6 + $0x60] sm:$0xff]  ;;  %vm247_vm6 = vcmask 31744   ;;  %v8662_v32 = vmov 2   ;;  %v8663_v33 = vmov 0  }
  0x4d   :  { %7771 = vmatpush3.bf16.msra.mxu0 %v7770_v5  ;;  %v8786_v13 = vpack.c.bf16 %v164_v11, %v163_v10  ;;  %v8789_v15 = vpack.c.bf16 %v166_v14, %v165_v12  ;;  %v68_v16 = vld [vmem:[#allocation6 + $0x1b8] sm:$0x1]  ;;  %v6808_v17 = vld [vmem:[#allocation6 + $0x68] ss:$0 sm:$0xff]  ;;  %8183 = vset.pattern.permute.xlu0 %v8662_v32  ;;  %v8664_v38 = vmov 1   ;;  %v8665_v39 = vmov 3  }
  0x4e   :  { %7772 = vmatprep.subr.bf16.mxu0 %v8658_v0  ;;  %8134 = vpush %v68_v16  ;;  %8181 = vset.pattern.permute.xlu1 %v8663_v33  ;;  %v8818_v41 = vshrl.u32 %v265_v40, 7  ;;  %v162_v43 = vld [vmem:[#allocation6 + $0x20] sm:$0xf]  ;;  %v8833_v50 = vld [vmem:[#allocation6 + $0x70] ss:$0 sm:$0xff]  ;;  %s8668_s13 = smov 80  }
  0x4f   :  { %v158_v16 = vld [vmem:[#allocation6] sm:$0xff]  ;;  %s8669_s14 = smov 112   ;;  %vm330_vm7 = vcmask 130048   ;;  %s8670_s15 = smov 124   ;;  %vm2121_vm8 = vcmask 64512   ;;  %vm2123_vm9 = vcmask 97280  }
  0x50   :  { %v8821_v42 = vsub.s32 0, %v8818_v41  ;;  %v281_v45 = vsub.s32 1, %v8818_v41  ;;  %v291_v46 = vsub.s32 2, %v8818_v41  ;;  %v301_v51 = vsub.s32 3, %v8818_v41  ;;  %s8671_s16 = smov 48   ;;  %s8672_s17 = smov 120  }
  0x51   :  { %7775 = vmatpush3.bf16.msk.msra.mxu0 %vm8773_vm3, %v7773_v7  ;;  %s8673_s19 = smov 116   ;;  %s8674_s20 = smov 108   ;;  %vm2126_vm10 = vcmask 162816   ;;  %vm2128_vm11 = vcmask 195584   ;;  %vm4357_vm12 = vcmask 392192   ;;  %vm4359_vm13 = vcmask 523264  }
  0x52   :  { %7776 = vmatprep.subr.bf16.mxu0 %v8658_v0  ;;  %v8824_v44 = vrot.slane %v162_v43, %v8821_v42  ;;  %v8831_v49 = vrot.slane %v162_v43, %v281_v45  ;;  %v8838_v52 = vrot.slane %v162_v43, %v291_v46  ;;  %v8844_v57 = vrot.slane %v162_v43, %v301_v51  ;;  %s8675_s21 = smov 4   ;;  %s8676_s22 = smov 104  }
  0x53   :  { %s8677_s0 = smov 12   ;;  %s8679_s23 = smov 24   ;;  %vm4361_vm14 = vcmask 654336   ;;  %vm4363_vm15 = vcmask 785408   ;;  %vm4402_vm1 = vcmask 916480   ;;  %vm4476_vm2 = vcmask 56320  }
  0x54   :  { %7168 = vmatmul.mubr.msk.f32.vlgmr.msra.gmra.mrb[0].mxu0 %vm80_vm4, %v8779_v9  ;;  %s8680_s24 = smov 127   ;;  %s8684_s26 = smov 64  }
  0x55   :  { %7178 = vmatprep.mubr.msk.f32.mxu0 %vm8659_vm0, %v8660_v1  ;;  %7778 = vmatpush3.bf16.msra.mxu0 %v8786_v13  ;;  %s8685_s27 = smov 126   ;;  %s8686_s29 = smov 125  }
  0x56   :  { %7779 = vmatprep.subr.bf16.mxu0 %v8658_v0  ;;  %s8687_s30 = smov 1   ;;  %s8688_s5 = smov 2  }
  0x57   :  { %s8689_s6 = smov 3   ;;  %s8690_s7 = smov 123  }
  0x59   :  { %7781 = vmatpush3.bf16.msra.mxu0 %v8789_v15 }
  0x5a   :  { %7782 = vmatprep.subr.bf16.mxu0 %v8658_v0 }
  0x7f   :  { %s8135_s3 = spop %8134 }
  0x80   :  { %v8800_v22 = vstv %s8135_s3 }
 0x127   :  { %v154_v18 = vpop.f32.mrb[0].mxu0 }
 0x128   :  { %v8794_v19 = vadd.f32 %v6808_v17, %v154_v18  ;;  %v7169_v20 = vpop.f32.mrb[1].mxu0  ;;  %v159_v17 = vld [vmem:[#allocation6 + $0x8] sm:$0xff] }
 0x129   :  { %v8853_v18 = vpack.c.bf16 %v159_v17, %v158_v16 }
 0x12a   :  { %8290 = vtanh.f32 %v8794_v19 }
 0x12b   :  { %7796 = vmatpush3.bf16.msra.mxu1 %v8853_v18 }
 0x12c   :  { %7797 = vmatprep.subr.bf16.mxu1 %v8658_v0 }
 0x134   :  { %v8291_v21 = vpop.eup %8290 }
 0x135   :  { %7179 = vmatmul.mubr.msk.f32.vlgmr.msra.gmra.mrb[2].mxu0 %vm173_vm5, %v8291_v21 }
 0x136   :  { %7185 = vmatprep.mubr.msk.f32.mxu0 %vm8659_vm0, %v8660_v1  ;;  %7784 = vmatpush3.bf16.msra.mxu0 %v8853_v18 }
 0x137   :  { %7785 = vmatprep.subr.bf16.mxu0 %v8658_v0 }
 0x208   :  { %v243_v23 = vpop.f32.mrb[2].mxu0 }
 0x209   :  { %v244_v24 = vadd.f32 %v243_v23, %v8800_v22  ;;  %v7180_v25 = vpop.f32.mrb[3].mxu0 }
 0x20a   :  { %v161_v25 = vld [vmem:[#allocation6 + $0x18] sm:$0xff] }
 0x20b   :  { %v248_v26 = vsel %vm247_vm6, %v244_v24, -inf }
 0x20c   :  { %249 = vmax.xlane.f32.xlu0 %v248_v26 }
 0x299   :  { %v250_v27 = vpop.xlane.xlu0 %249 }
 0x29a   :  { %v251_v28 = vsub.f32 %v244_v24, %v250_v27  ;;  %v160_v24 = vld [vmem:[#allocation6 + $0x10] sm:$0xff] }
 0x29b   :  { %v8863_v26 = vpack.c.bf16 %v161_v25, %v160_v24 }
 0x29c   :  { %v252_v29 = vmul.f32 1.442695, %v251_v28 }
 0x29e   :  { %8292 = vpow2.f32 %v252_v29 }
 0x2a8   :  { %v8293_v30 = vpop.eup %8292 }
 0x2a9   :  { %v254_v31 = vsel %vm247_vm6, %v8293_v30, 0.0 }
 0x2aa   :  { %255 = vadd.xlane.f32.xlu0 %v254_v31 }
 0x337   :  { %v256_v34 = vpop.xlane.xlu0 %255 }
 0x338   :  { %8294 = vrcp.f32 %v256_v34 }
 0x342   :  { %v8295_v35 = vpop.eup %8294 }
 0x343   :  { %v258_v36 = vmul.f32 %v8295_v35, %v8293_v30 }
 0x345   :  { %v8808_v37 = vmul.f32 %v258_v36, %v8779_v9 }
 0x347   :  { %286 = vperm.xlu0 %8183, %v8808_v37   ;;  %262 = vperm.xlu1 %8181, %v8808_v37  }
 0x34b   :  { %8182 = vset.pattern.permute.xlu1 %v8664_v38  ;;  %8185 = vset.pattern.permute.xlu0 %v8663_v33 }
 0x34c   :  { %276 = vperm.xlu1 %8182, %v8808_v37  }
 0x350   :  { %8184 = vset.pattern.permute.xlu1 %v8665_v39 }
 0x351   :  { %296 = vperm.xlu1 %8184, %v8808_v37  }
 0x355   :  { %8186 = vset.pattern.permute.xlu1 %v8664_v38 }
 0x3c6   :  { %v263_v47 = vpop.permute.xlu1 %262  ;;  %v287_v53 = vpop.permute.xlu0 %286 }
 0x3c7   :  { %v269_v48 = vmul.f32 %v8824_v44, %v263_v47  ;;  %v293_v58 = vmul.f32 %v8838_v52, %v287_v53 }
 0x3c9   :  { %v274_v55 = vadd.f32 %v8833_v50, %v269_v48 }
 0x3cb   :  { %v277_v54 = vpop.permute.xlu1 %276 }
 0x3cc   :  { %v283_v56 = vmul.f32 %v8831_v49, %v277_v54 }
 0x3ce   :  { %v284_v59 = vadd.f32 %v283_v56, %v274_v55 }
 0x3d0   :  { %v294_v60 = vadd.f32 %v293_v58, %v284_v59  ;;  %v297_v61 = vpop.permute.xlu1 %296 }
 0x3d1   :  { %v303_v62 = vmul.f32 %v8844_v57, %v297_v61 }
 0x3d3   :  { %v304_v63 = vadd.f32 %v303_v62, %v294_v60 }
 0x3d5   :  { %8296 = vtanh.f32 %v304_v63  ;;  %v305_v3 = vmul.f32 0.5, %v304_v63 }
 0x3d7   :  { %8298 = vtanh.f32 %v305_v3 }
 0x3df   :  { %v8297_v2 = vpop.eup %8296 }
 0x3e0   :  { %312 = vrot.lane.b32.xlu1 %v8297_v2, %s8666_s11 }
 0x3e1   :  { %v8299_v4 = vpop.eup %8298 }
 0x3e2   :  { %v307_v5 = vadd.f32 1.0, %v8299_v4 }
 0x3e4   :  { %v308_v6 = vmul.f32 0.5, %v307_v5 }
 0x3e6   :  { %v310_v11 = vmul.f32 0.0, %v308_v6 }
 0x452   :  { %v313_v7 = vpop.permute.xlu1 %312 }
 0x453   :  { %v315_v10 = vmul.f32 %v313_v7, %v308_v6 }
 0x455   :  { %317 = vrot.lane.b32.xlu1 %v315_v10, %s8657_s9 }
 0x4c7   :  { %v318_v12 = vpop.permute.xlu1 %317 }
 0x4c8   :  { %v8850_v14 = vadd.f32 %v318_v12, %v310_v11 }
 0x4ca   :  { %8300 = vtanh.f32 %v8850_v14 }
 0x4d4   :  { %v8301_v20 = vpop.eup %8300 }
 0x4d5   :  { %323 = vrot.lane.b32.xlu1 %v8301_v20, %s8667_s12 }
 0x547   :  { %v324_v21 = vpop.permute.xlu1 %323 }
 0x548   :  { %v326_v23 = vmul.f32 %v324_v21, %v308_v6 }
 0x54a   :  { %328 = vrot.lane.b32.xlu1 %v326_v23, %s8668_s13 }
 0x54e   :  { %405 = vrot.lane.b32.xlu1 %v8850_v14, %s8669_s14 }
 0x5bc   :  { %v329_v27 = vpop.permute.xlu1 %328 }
 0x5bd   :  { %7186 = vmatmul.mubr.msk.f32.vlgmr.msra.gmra.mrb[4].mxu0 %vm330_vm7, %v329_v27 }
 0x5be   :  { %7787 = vmatpush3.bf16.msra.mxu0 %v8863_v26  ;;  %7192 = vmatprep.mubr.msk.f32.mxu0 %vm8659_vm0, %v8660_v1 }
 0x5bf   :  { %7788 = vmatprep.subr.bf16.mxu0 %v8658_v0 }
 0x5c0   :  { %v406_v28 = vpop.permute.xlu1 %405 }
 0x5c1   :  { %7193 = vmatmul.mubr.msk.f32.vlgmr.msra.gmra.mrb[6].mxu0 %vm330_vm7, %v406_v28 }
 0x5c2   :  { %7790 = vmatpush3.bf16.msra.mxu0 %v8786_v13  ;;  %7203 = vmatprep.mubr.msk.f32.mxu0 %vm8659_vm0, %v8660_v1 }
 0x5c3   :  { %7791 = vmatprep.subr.bf16.mxu0 %v8658_v0 }
 0x5c6   :  { %7793 = vmatpush3.bf16.msra.mxu0 %v8789_v15 }
 0x5c7   :  { %7800 = vmatprep.subr.bf16.mxu0 %v8658_v0 }
 0x690   :  { %v399_v29 = vpop.f32.mrb[4].mxu0 }
 0x691   :  { %v7187_v30 = vpop.f32.mrb[5].mxu0  ;;  %v403_v31 = vadd.f32 %v399_v29, %v8794_v19 }
 0x694   :  { %v475_v34 = vpop.f32.mrb[6].mxu0 }
 0x695   :  { %v479_v35 = vadd.f32 %v475_v34, %v403_v31  ;;  %v7194_v36 = vpop.f32.mrb[7].mxu0 }
 0x697   :  { %8302 = vtanh.f32 %v479_v35 }
 0x6a1   :  { %v8303_v40 = vpop.eup %8302 }
 0x6a2   :  { %7204 = vmatmul.mubr.msk.f32.vlgmr.msra.gmra.mrb[8].mxu0 %vm173_vm5, %v8303_v40 }
 0x6a3   :  { %7802 = vmatpush3.bf16.msra.mxu0 %v8786_v13  ;;  %7228 = vmatprep.mubr.msk.f32.mxu0 %vm8659_vm0, %v8660_v1 }
 0x6a4   :  { %7803 = vmatprep.subr.bf16.mxu0 %v8658_v0 }
 0x6a7   :  { %7805 = vmatpush3.bf16.msra.mxu0 %v8789_v15 }
 0x6a8   :  { %7812 = vmatprep.subr.bf16.mxu0 %v8658_v0 }
 0x775   :  { %v555_v43 = vpop.f32.mrb[8].mxu0 }
 0x776   :  { %v556_v47 = vadd.f32 %v555_v43, %v8800_v22  ;;  %v7205_v48 = vpop.f32.mrb[9].mxu0 }
 0x778   :  { %v559_v53 = vsel %vm247_vm6, %v556_v47, -inf }
 0x779   :  { %560 = vmax.xlane.f32.xlu1 %v559_v53 }
 0x78a   :  { %570 = vrot.lane.b32.xlu1 %v8779_v9, %s8670_s15 }
 0x806   :  { %v561_v54 = vpop.xlane.xlu1 %560 }
 0x807   :  { %v562_v55 = vsub.f32 %v556_v47, %v561_v54 }
 0x809   :  { %v563_v56 = vmul.f32 1.442695, %v562_v55 }
 0x80a   :  { %v571_v62 = vpop.permute.xlu1 %570 }
 0x80b   :  { %8304 = vpow2.f32 %v563_v56 }
 0x815   :  { %v8305_v58 = vpop.eup %8304 }
 0x816   :  { %v565_v59 = vsel %vm247_vm6, %v8305_v58, 0.0 }
 0x817   :  { %566 = vadd.xlane.f32.xlu0 %v565_v59 }
 0x8a4   :  { %v567_v60 = vpop.xlane.xlu0 %566 }
 0x8a5   :  { %8306 = vrcp.f32 %v567_v60 }
 0x8af   :  { %v8307_v61 = vpop.eup %8306 }
 0x8b0   :  { %v569_v63 = vmul.f32 %v8307_v61, %v8305_v58 }
 0x8b2   :  { %v8890_v2 = vmul.f32 %v571_v62, %v569_v63 }
 0x8b4   :  { %586 = vperm.xlu1 %8186, %v8890_v2   ;;  %576 = vperm.xlu0 %8185, %v8890_v2  }
 0x8b8   :  { %8187 = vset.pattern.permute.xlu1 %v8662_v32  ;;  %8191 = vset.pattern.permute.xlu0 %v8662_v32 }
 0x8b9   :  { %596 = vperm.xlu1 %8187, %v8890_v2  }
 0x8bd   :  { %8188 = vset.pattern.permute.xlu1 %v8665_v39 }
 0x8be   :  { %606 = vperm.xlu1 %8188, %v8890_v2  }
 0x8c2   :  { %481 = vrot.lane.b32.xlu1 %v8833_v50, %s8667_s12 }
 0x8c3   :  { %8189 = vset.pattern.permute.xlu1 %v8663_v33 }
 0x933   :  { %v587_v3 = vpop.permute.xlu1 %586  ;;  %v577_v4 = vpop.permute.xlu0 %576 }
 0x934   :  { %v579_v5 = vmul.f32 %v577_v4, %v8824_v44  ;;  %v589_v6 = vmul.f32 %v587_v3, %v8831_v49 }
 0x936   :  { %581 = vrot.lane.b32.xlu1 %v579_v5, %s8667_s12 }
 0x938   :  { %v597_v7 = vpop.permute.xlu1 %596 }
 0x939   :  { %v599_v10 = vmul.f32 %v597_v7, %v8838_v52 }
 0x93a   :  { %591 = vrot.lane.b32.xlu1 %v589_v6, %s8667_s12 }
 0x93d   :  { %v607_v11 = vpop.permute.xlu1 %606 }
 0x93e   :  { %601 = vrot.lane.b32.xlu1 %v599_v10, %s8667_s12  ;;  %v609_v50 = vmul.f32 %v607_v11, %v8844_v57 }
 0x941   :  { %v8910_v12 = vpop.permute.xlu1 %481 }
 0x942   :  { %611 = vrot.lane.b32.xlu1 %v609_v50, %s8667_s12  ;;  %v484_v20 = vadd.f32 %v8910_v12, %v399_v29 }
 0x9a8   :  { %v582_v16 = vpop.permute.xlu1 %581 }
 0x9a9   :  { %v584_v21 = vadd.f32 %v582_v16, %v484_v20 }
 0x9ac   :  { %v592_v17 = vpop.permute.xlu1 %591 }
 0x9ad   :  { %v594_v24 = vadd.f32 %v592_v17, %v584_v21 }
 0x9b0   :  { %v602_v23 = vpop.permute.xlu1 %601 }
 0x9b1   :  { %v604_v25 = vadd.f32 %v602_v23, %v594_v24 }
 0x9b4   :  { %v612_v27 = vpop.permute.xlu1 %611 }
 0x9b5   :  { %v614_v28 = vadd.f32 %v612_v27, %v604_v25 }
 0x9b7   :  { %8308 = vtanh.f32 %v614_v28  ;;  %v615_v31 = vmul.f32 0.5, %v614_v28 }
 0x9b9   :  { %8310 = vtanh.f32 %v615_v31 }
 0x9c1   :  { %v8309_v30 = vpop.eup %8308 }
 0x9c2   :  { %625 = vrot.lane.b32.xlu1 %v8309_v30, %s8666_s11 }
 0x9c3   :  { %v8311_v34 = vpop.eup %8310 }
 0x9c4   :  { %v617_v35 = vadd.f32 1.0, %v8311_v34 }
 0x9c6   :  { %620 = vrot.lane.b32.xlu1 %v8850_v14, %s8667_s12  ;;  %v618_v36 = vmul.f32 0.5, %v617_v35 }
 0xa34   :  { %v626_v40 = vpop.permute.xlu1 %625 }
 0xa35   :  { %v628_v29 = vmul.f32 %v626_v40, %v618_v36 }
 0xa37   :  { %630 = vrot.lane.b32.xlu1 %v628_v29, %s8657_s9 }
 0xa38   :  { %v621_v43 = vpop.permute.xlu1 %620 }
 0xa39   :  { %v623_v47 = vmul.f32 %v621_v43, %v618_v36 }
 0xaa9   :  { %v631_v48 = vpop.permute.xlu1 %630 }
 0xaaa   :  { %v8917_v53 = vadd.f32 %v631_v48, %v623_v47 }
 0xaac   :  { %8312 = vtanh.f32 %v8917_v53 }
 0xab6   :  { %v8313_v54 = vpop.eup %8312 }
 0xab7   :  { %636 = vrot.lane.b32.xlu0 %v8313_v54, %s8667_s12 }
 0xabb   :  { %717 = vrot.lane.b32.xlu0 %v8917_v53, %s8668_s13 }
 0xb29   :  { %v637_v14 = vpop.permute.xlu0 %636 }
 0xb2a   :  { %v639_v55 = vmul.f32 %v637_v14, %v618_v36 }
 0xb2c   :  { %641 = vrot.lane.b32.xlu1 %v639_v55, %s8671_s16 }
 0xb2d   :  { %v718_v58 = vpop.permute.xlu0 %717 }
 0xb9e   :  { %v642_v56 = vpop.permute.xlu1 %641 }
 0xb9f   :  { %7211 = vmatmul.mubr.msk.f32.vlgmr.msra.gmra.mrb[0].mxu1 %vm330_vm7, %v642_v56 }
 0xba0   :  { %7799 = vmatpush3.bf16.msra.mxu1 %v8863_v26  ;;  %7217 = vmatprep.mubr.msk.f32.mxu1 %vm8659_vm0, %v8660_v1 }
 0xba1   :  { %7806 = vmatprep.subr.bf16.mxu1 %v8658_v0 }
 0xba3   :  { %7218 = vmatmul.mubr.msk.f32.vlgmr.msra.gmra.mrb[2].mxu1 %vm330_vm7, %v718_v58 }
 0xba4   :  { %7808 = vmatpush3.bf16.msra.mxu1 %v8853_v18  ;;  %7235 = vmatprep.mubr.msk.f32.mxu1 %vm8659_vm0, %v8660_v1 }
 0xba5   :  { %7809 = vmatprep.subr.bf16.mxu1 %v8658_v0 }
 0xc72   :  { %v711_v59 = vpop.f32.mrb[0].mxu1 }
 0xc73   :  { %v7212_v60 = vpop.f32.mrb[1].mxu1  ;;  %v715_v61 = vadd.f32 %v711_v59, %v8794_v19  ;;  %v792_v47 = vadd.f32 %v711_v59, %v8910_v12 }
 0xc76   :  { %v787_v62 = vpop.f32.mrb[2].mxu1 }
 0xc77   :  { %v791_v63 = vadd.f32 %v787_v62, %v715_v61  ;;  %v7219_v3 = vpop.f32.mrb[3].mxu1 }
 0xc79   :  { %8314 = vtanh.f32 %v791_v63 }
 0xc83   :  { %v8315_v4 = vpop.eup %8314 }
 0xc84   :  { %7229 = vmatmul.mubr.msk.f32.vlgmr.msra.gmra.mrb[10].mxu0 %vm173_vm5, %v8315_v4 }
 0xc85   :  { %7814 = vmatpush3.bf16.msra.mxu0 %v8786_v13  ;;  %7253 = vmatprep.mubr.msk.f32.mxu0 %vm8659_vm0, %v8660_v1 }
 0xc86   :  { %7815 = vmatprep.subr.bf16.mxu0 %v8658_v0 }
 0xc89   :  { %7817 = vmatpush3.bf16.msra.mxu0 %v8789_v15 }
 0xc8a   :  { %7824 = vmatprep.subr.bf16.mxu0 %v8658_v0 }
 0xd57   :  { %v863_v5 = vpop.f32.mrb[10].mxu0 }
 0xd58   :  { %v864_v6 = vadd.f32 %v863_v5, %v8800_v22  ;;  %v7230_v7 = vpop.f32.mrb[11].mxu0 }
 0xd5a   :  { %v867_v10 = vsel %vm247_vm6, %v864_v6, -inf }
 0xd5b   :  { %868 = vmax.xlane.f32.xlu1 %v867_v10 }
 0xde8   :  { %v869_v11 = vpop.xlane.xlu1 %868 }
 0xde9   :  { %v870_v50 = vsub.f32 %v864_v6, %v869_v11 }
 0xdeb   :  { %v871_v16 = vmul.f32 1.442695, %v870_v50 }
 0xded   :  { %8316 = vpow2.f32 %v871_v16 }
 0xdf7   :  { %v8317_v17 = vpop.eup %8316 }
 0xdf8   :  { %v873_v20 = vsel %vm247_vm6, %v8317_v17, 0.0 }
 0xdf9   :  { %874 = vadd.xlane.f32.xlu0 %v873_v20 }
 0xe0f   :  { %878 = vrot.lane.b32.xlu0 %v8779_v9, %s8672_s17 }
 0xe86   :  { %v875_v21 = vpop.xlane.xlu0 %874 }
 0xe87   :  { %8318 = vrcp.f32 %v875_v21 }
 0xe8a   :  { %v879_v24 = vpop.permute.xlu0 %878 }
 0xe91   :  { %v8319_v23 = vpop.eup %8318 }
 0xe92   :  { %v877_v25 = vmul.f32 %v8319_v23, %v8317_v17 }
 0xe94   :  { %v8946_v27 = vmul.f32 %v879_v24, %v877_v25 }
 0xe96   :  { %904 = vperm.xlu0 %8191, %v8946_v27   ;;  %884 = vperm.xlu1 %8189, %v8946_v27  }
 0xe9a   :  { %8190 = vset.pattern.permute.xlu1 %v8664_v38  ;;  %8194 = vset.pattern.permute.xlu0 %v8664_v38 }
 0xe9b   :  { %894 = vperm.xlu1 %8190, %v8946_v27  }
 0xe9f   :  { %8192 = vset.pattern.permute.xlu1 %v8665_v39 }
 0xea0   :  { %914 = vperm.xlu1 %8192, %v8946_v27  }
 0xea4   :  { %8193 = vset.pattern.permute.xlu1 %v8663_v33 }
 0xf15   :  { %v885_v28 = vpop.permute.xlu1 %884  ;;  %v905_v31 = vpop.permute.xlu0 %904 }
 0xf16   :  { %v887_v30 = vmul.f32 %v885_v28, %v8824_v44  ;;  %v907_v34 = vmul.f32 %v905_v31, %v8838_v52 }
 0xf18   :  { %889 = vrot.lane.b32.xlu1 %v887_v30, %s8667_s12 }
 0xf1a   :  { %v895_v35 = vpop.permute.xlu1 %894 }
 0xf1b   :  { %v897_v36 = vmul.f32 %v895_v35, %v8831_v49 }
 0xf1c   :  { %909 = vrot.lane.b32.xlu1 %v907_v34, %s8667_s12 }
 0xf1d   :  { %899 = vrot.lane.b32.xlu0 %v897_v36, %s8667_s12 }
 0xf1f   :  { %v915_v40 = vpop.permute.xlu1 %914 }
 0xf20   :  { %v917_v29 = vmul.f32 %v915_v40, %v8844_v57 }
 0xf22   :  { %919 = vrot.lane.b32.xlu0 %v917_v29, %s8667_s12 }
 0xf8a   :  { %v890_v43 = vpop.permute.xlu1 %889 }
 0xf8b   :  { %v892_v48 = vadd.f32 %v890_v43, %v792_v47 }
 0xf8e   :  { %v910_v55 = vpop.permute.xlu1 %909 }
 0xf8f   :  { %v900_v54 = vpop.permute.xlu0 %899 }
 0xf90   :  { %v902_v14 = vadd.f32 %v900_v54, %v892_v48 }
 0xf92   :  { %v912_v56 = vadd.f32 %v910_v55, %v902_v14 }
 0xf94   :  { %v920_v58 = vpop.permute.xlu0 %919 }
 0xf95   :  { %v922_v60 = vadd.f32 %v920_v58, %v912_v56 }
 0xf97   :  { %8320 = vtanh.f32 %v922_v60  ;;  %v923_v62 = vmul.f32 0.5, %v922_v60 }
 0xf99   :  { %8322 = vtanh.f32 %v923_v62 }
 0xfa1   :  { %v8321_v61 = vpop.eup %8320 }
 0xfa2   :  { %930 = vrot.lane.b32.xlu1 %v8321_v61, %s8666_s11 }
 0xfa3   :  { %v8323_v63 = vpop.eup %8322 }
 0xfa4   :  { %v925_v3 = vadd.f32 1.0, %v8323_v63 }
 0xfa6   :  { %v926_v4 = vmul.f32 0.5, %v925_v3 }
 0xfa8   :  { %v928_v59 = vmul.f32 %v926_v4, %v8917_v53 }
0x1014   :  { %v931_v5 = vpop.permute.xlu1 %930 }
0x1015   :  { %v933_v6 = vmul.f32 %v931_v5, %v926_v4 }
0x1017   :  { %935 = vrot.lane.b32.xlu0 %v933_v6, %s8657_s9 }
0x1089   :  { %v936_v7 = vpop.permute.xlu0 %935 }
0x108a   :  { %v8968_v10 = vadd.f32 %v936_v7, %v928_v59 }
0x108c   :  { %8324 = vtanh.f32 %v8968_v10 }
0x1096   :  { %v8325_v11 = vpop.eup %8324 }
0x1097   :  { %941 = vrot.lane.b32.xlu1 %v8325_v11, %s8667_s12 }
0x109b   :  { %1022 = vrot.lane.b32.xlu1 %v8968_v10, %s8668_s13 }
0x1109   :  { %v942_v50 = vpop.permute.xlu1 %941 }
0x110a   :  { %v944_v16 = vmul.f32 %v942_v50, %v926_v4 }
0x110c   :  { %946 = vrot.lane.b32.xlu0 %v944_v16, %s8671_s16 }
0x110d   :  { %v1023_v53 = vpop.permute.xlu1 %1022 }
0x117e   :  { %v947_v17 = vpop.permute.xlu0 %946 }
0x117f   :  { %7236 = vmatmul.mubr.msk.f32.vlgmr.msra.gmra.mrb[4].mxu1 %vm330_vm7, %v947_v17 }
0x1180   :  { %7811 = vmatpush3.bf16.msra.mxu1 %v8863_v26  ;;  %7242 = vmatprep.mubr.msk.f32.mxu1 %vm8659_vm0, %v8660_v1 }
0x1181   :  { %7818 = vmatprep.subr.bf16.mxu1 %v8658_v0 }
0x1183   :  { %7243 = vmatmul.mubr.msk.f32.vlgmr.msra.gmra.mrb[6].mxu1 %vm330_vm7, %v1023_v53 }
0x1184   :  { %7820 = vmatpush3.bf16.msra.mxu1 %v8853_v18  ;;  %7260 = vmatprep.mubr.msk.f32.mxu1 %vm8659_vm0, %v8660_v1 }
0x1185   :  { %7821 = vmatprep.subr.bf16.mxu1 %v8658_v0 }
0x1252   :  { %v1016_v20 = vpop.f32.mrb[4].mxu1 }
0x1253   :  { %v7237_v21 = vpop.f32.mrb[5].mxu1  ;;  %v1020_v23 = vadd.f32 %v1016_v20, %v8794_v19  ;;  %v1097_v59 = vadd.f32 %v1016_v20, %v8910_v12 }
0x1256   :  { %v1092_v24 = vpop.f32.mrb[6].mxu1 }
0x1257   :  { %v1096_v25 = vadd.f32 %v1092_v24, %v1020_v23  ;;  %v7244_v28 = vpop.f32.mrb[7].mxu1 }
0x1259   :  { %8326 = vtanh.f32 %v1096_v25 }
0x1263   :  { %v8327_v30 = vpop.eup %8326 }
0x1264   :  { %7254 = vmatmul.mubr.msk.f32.vlgmr.msra.gmra.mrb[12].mxu0 %vm173_vm5, %v8327_v30 }
0x1265   :  { %7826 = vmatpush3.bf16.msra.mxu0 %v8786_v13  ;;  %7278 = vmatprep.mubr.msk.f32.mxu0 %vm8659_vm0, %v8660_v1 }
0x1266   :  { %7827 = vmatprep.subr.bf16.mxu0 %v8658_v0 }
0x1269   :  { %7829 = vmatpush3.bf16.msra.mxu0 %v8789_v15 }
0x126a   :  { %7836 = vmatprep.subr.bf16.mxu0 %v8658_v0 }
0x1337   :  { %v1168_v31 = vpop.f32.mrb[12].mxu0 }
0x1338   :  { %v1169_v34 = vadd.f32 %v1168_v31, %v8800_v22  ;;  %v7255_v35 = vpop.f32.mrb[13].mxu0 }
0x133a   :  { %v1172_v36 = vsel %vm247_vm6, %v1169_v34, -inf }
0x133b   :  { %1173 = vmax.xlane.f32.xlu0 %v1172_v36 }
0x1351   :  { %1183 = vrot.lane.b32.xlu0 %v8779_v9, %s8673_s19 }
0x13c8   :  { %v1174_v40 = vpop.xlane.xlu0 %1173 }
0x13c9   :  { %v1175_v29 = vsub.f32 %v1169_v34, %v1174_v40 }
0x13cb   :  { %v1176_v43 = vmul.f32 1.442695, %v1175_v29 }
0x13cc   :  { %v1184_v55 = vpop.permute.xlu0 %1183 }
0x13cd   :  { %8328 = vpow2.f32 %v1176_v43 }
0x13d7   :  { %v8329_v47 = vpop.eup %8328 }
0x13d8   :  { %v1178_v48 = vsel %vm247_vm6, %v8329_v47, 0.0 }
0x13d9   :  { %1179 = vadd.xlane.f32.xlu1 %v1178_v48 }
0x1466   :  { %v1180_v54 = vpop.xlane.xlu1 %1179 }
0x1467   :  { %8330 = vrcp.f32 %v1180_v54 }
0x1471   :  { %v8331_v14 = vpop.eup %8330 }
0x1472   :  { %v1182_v56 = vmul.f32 %v8331_v14, %v8329_v47 }
0x1474   :  { %v8997_v58 = vmul.f32 %v1184_v55, %v1182_v56 }
0x1476   :  { %1199 = vperm.xlu0 %8194, %v8997_v58   ;;  %1189 = vperm.xlu1 %8193, %v8997_v58  }
0x147a   :  { %8195 = vset.pattern.permute.xlu1 %v8662_v32  ;;  %8199 = vset.pattern.permute.xlu0 %v8662_v32 }
0x147b   :  { %1209 = vperm.xlu1 %8195, %v8997_v58  }
0x147f   :  { %8196 = vset.pattern.permute.xlu1 %v8665_v39 }
0x1480   :  { %1219 = vperm.xlu1 %8196, %v8997_v58  }
0x1484   :  { %8197 = vset.pattern.permute.xlu1 %v8663_v33 }
0x14f5   :  { %v1200_v60 = vpop.permute.xlu0 %1199  ;;  %v1190_v61 = vpop.permute.xlu1 %1189 }
0x14f6   :  { %v1202_v62 = vmul.f32 %v1200_v60, %v8831_v49  ;;  %v1192_v63 = vmul.f32 %v1190_v61, %v8824_v44 }
0x14f8   :  { %1204 = vrot.lane.b32.xlu1 %v1202_v62, %s8667_s12  ;;  %1194 = vrot.lane.b32.xlu0 %v1192_v63, %s8667_s12 }
0x14fa   :  { %v1210_v3 = vpop.permute.xlu1 %1209 }
0x14fb   :  { %v1212_v4 = vmul.f32 %v1210_v3, %v8838_v52 }
0x14fd   :  { %1214 = vrot.lane.b32.xlu0 %v1212_v4, %s8667_s12 }
0x14ff   :  { %v1220_v5 = vpop.permute.xlu1 %1219 }
0x1500   :  { %v1222_v6 = vmul.f32 %v1220_v5, %v8844_v57 }
0x1502   :  { %1224 = vrot.lane.b32.xlu1 %v1222_v6, %s8667_s12 }
0x156a   :  { %v1195_v7 = vpop.permute.xlu0 %1194  ;;  %v1205_v50 = vpop.permute.xlu1 %1204 }
0x156b   :  { %v1197_v11 = vadd.f32 %v1195_v7, %v1097_v59 }
0x156d   :  { %v1207_v16 = vadd.f32 %v1205_v50, %v1197_v11 }
0x156f   :  { %v1215_v17 = vpop.permute.xlu0 %1214 }
0x1570   :  { %v1217_v53 = vadd.f32 %v1215_v17, %v1207_v16 }
0x1574   :  { %v1225_v21 = vpop.permute.xlu1 %1224 }
0x1575   :  { %v1227_v23 = vadd.f32 %v1225_v21, %v1217_v53 }
0x1577   :  { %8332 = vtanh.f32 %v1227_v23  ;;  %v1228_v25 = vmul.f32 0.5, %v1227_v23 }
0x1579   :  { %8334 = vtanh.f32 %v1228_v25 }
0x1581   :  { %v8333_v24 = vpop.eup %8332 }
0x1582   :  { %1235 = vrot.lane.b32.xlu0 %v8333_v24, %s8666_s11 }
0x1583   :  { %v8335_v28 = vpop.eup %8334 }
0x1584   :  { %v1230_v30 = vadd.f32 1.0, %v8335_v28 }
0x1586   :  { %v1231_v31 = vmul.f32 0.5, %v1230_v30 }
0x1588   :  { %v1233_v20 = vmul.f32 %v1231_v31, %v8968_v10 }
0x15f4   :  { %v1236_v34 = vpop.permute.xlu0 %1235 }
0x15f5   :  { %v1238_v35 = vmul.f32 %v1236_v34, %v1231_v31 }
0x15f7   :  { %1240 = vrot.lane.b32.xlu1 %v1238_v35, %s8657_s9 }
0x1669   :  { %v1241_v36 = vpop.permute.xlu1 %1240 }
0x166a   :  { %v9019_v40 = vadd.f32 %v1241_v36, %v1233_v20 }
0x166c   :  { %8336 = vtanh.f32 %v9019_v40 }
0x1676   :  { %v8337_v29 = vpop.eup %8336 }
0x1677   :  { %1246 = vrot.lane.b32.xlu0 %v8337_v29, %s8667_s12 }
0x167b   :  { %1327 = vrot.lane.b32.xlu0 %v9019_v40, %s8668_s13 }
0x16e9   :  { %v1247_v43 = vpop.permute.xlu0 %1246 }
0x16ea   :  { %v1249_v47 = vmul.f32 %v1247_v43, %v1231_v31 }
0x16ec   :  { %1251 = vrot.lane.b32.xlu1 %v1249_v47, %s8671_s16 }
0x16ed   :  { %v1328_v10 = vpop.permute.xlu0 %1327 }
0x175e   :  { %v1252_v48 = vpop.permute.xlu1 %1251 }
0x175f   :  { %7261 = vmatmul.mubr.msk.f32.vlgmr.msra.gmra.mrb[8].mxu1 %vm330_vm7, %v1252_v48 }
0x1760   :  { %7823 = vmatpush3.bf16.msra.mxu1 %v8863_v26  ;;  %7267 = vmatprep.mubr.msk.f32.mxu1 %vm8659_vm0, %v8660_v1 }
0x1761   :  { %7830 = vmatprep.subr.bf16.mxu1 %v8658_v0 }
0x1763   :  { %7268 = vmatmul.mubr.msk.f32.vlgmr.msra.gmra.mrb[10].mxu1 %vm330_vm7, %v1328_v10 }
0x1764   :  { %7832 = vmatpush3.bf16.msra.mxu1 %v8853_v18  ;;  %7285 = vmatprep.mubr.msk.f32.mxu1 %vm8659_vm0, %v8660_v1 }
0x1765   :  { %7833 = vmatprep.subr.bf16.mxu1 %v8658_v0 }
0x1832   :  { %v1321_v54 = vpop.f32.mrb[8].mxu1 }
0x1833   :  { %v7262_v14 = vpop.f32.mrb[9].mxu1  ;;  %v1325_v55 = vadd.f32 %v1321_v54, %v8794_v19  ;;  %v1402_v36 = vadd.f32 %v1321_v54, %v8910_v12 }
0x1836   :  { %v1397_v56 = vpop.f32.mrb[10].mxu1 }
0x1837   :  { %v1401_v60 = vadd.f32 %v1397_v56, %v1325_v55  ;;  %v7269_v61 = vpop.f32.mrb[11].mxu1 }
0x1839   :  { %8338 = vtanh.f32 %v1401_v60 }
0x1843   :  { %v8339_v62 = vpop.eup %8338 }
0x1844   :  { %7279 = vmatmul.mubr.msk.f32.vlgmr.msra.gmra.mrb[14].mxu0 %vm173_vm5, %v8339_v62 }
0x1845   :  { %7838 = vmatpush3.bf16.msra.mxu0 %v8786_v13  ;;  %7303 = vmatprep.mubr.msk.f32.mxu0 %vm8659_vm0, %v8660_v1 }
0x1846   :  { %7839 = vmatprep.subr.bf16.mxu0 %v8658_v0 }
0x1849   :  { %7841 = vmatpush3.bf16.msra.mxu0 %v8789_v15 }
0x184a   :  { %7848 = vmatprep.subr.bf16.mxu0 %v8658_v0 }
0x1917   :  { %v1473_v63 = vpop.f32.mrb[14].mxu0 }
0x1918   :  { %v1474_v3 = vadd.f32 %v1473_v63, %v8800_v22  ;;  %v7280_v4 = vpop.f32.mrb[15].mxu0 }
0x191a   :  { %v1477_v5 = vsel %vm247_vm6, %v1474_v3, -inf }
0x191b   :  { %1478 = vmax.xlane.f32.xlu1 %v1477_v5 }
0x19a8   :  { %v1479_v6 = vpop.xlane.xlu1 %1478 }
0x19a9   :  { %v1480_v59 = vsub.f32 %v1474_v3, %v1479_v6 }
0x19ab   :  { %v1481_v7 = vmul.f32 1.442695, %v1480_v59 }
0x19ad   :  { %8340 = vpow2.f32 %v1481_v7 }
0x19b7   :  { %v8341_v11 = vpop.eup %8340 }
0x19b8   :  { %v1483_v50 = vsel %vm247_vm6, %v8341_v11, 0.0 }
0x19b9   :  { %1484 = vadd.xlane.f32.xlu0 %v1483_v50 }
0x19cf   :  { %1488 = vrot.lane.b32.xlu0 %v8779_v9, %s8669_s14 }
0x1a46   :  { %v1485_v16 = vpop.xlane.xlu0 %1484 }
0x1a47   :  { %8342 = vrcp.f32 %v1485_v16 }
0x1a4a   :  { %v1489_v53 = vpop.permute.xlu0 %1488 }
0x1a51   :  { %v8343_v17 = vpop.eup %8342 }
0x1a52   :  { %v1487_v21 = vmul.f32 %v8343_v17, %v8341_v11 }
0x1a54   :  { %v9049_v23 = vmul.f32 %v1489_v53, %v1487_v21 }
0x1a56   :  { %1514 = vperm.xlu0 %8199, %v9049_v23   ;;  %1494 = vperm.xlu1 %8197, %v9049_v23  }
0x1a5a   :  { %8198 = vset.pattern.permute.xlu1 %v8664_v38  ;;  %8202 = vset.pattern.permute.xlu0 %v8664_v38 }
0x1a5b   :  { %1504 = vperm.xlu1 %8198, %v9049_v23  }
0x1a5f   :  { %8200 = vset.pattern.permute.xlu1 %v8665_v39 }
0x1a60   :  { %1524 = vperm.xlu1 %8200, %v9049_v23  }
0x1a64   :  { %8201 = vset.pattern.permute.xlu1 %v8663_v33 }
0x1ad5   :  { %v1495_v9 = vpop.permute.xlu1 %1494  ;;  %v1515_v25 = vpop.permute.xlu0 %1514 }
0x1ad6   :  { %v1497_v24 = vmul.f32 %v1495_v9, %v8824_v44  ;;  %v1517_v28 = vmul.f32 %v1515_v25, %v8838_v52 }
0x1ad8   :  { %1499 = vrot.lane.b32.xlu1 %v1497_v24, %s8667_s12 }
0x1ada   :  { %v1505_v30 = vpop.permute.xlu1 %1504 }
0x1adb   :  { %v1507_v31 = vmul.f32 %v1505_v30, %v8831_v49 }
0x1adc   :  { %1519 = vrot.lane.b32.xlu1 %v1517_v28, %s8667_s12 }
0x1add   :  { %1509 = vrot.lane.b32.xlu0 %v1507_v31, %s8667_s12 }
0x1adf   :  { %v1525_v34 = vpop.permute.xlu1 %1524 }
0x1ae0   :  { %v1527_v35 = vmul.f32 %v1525_v34, %v8844_v57  ;;  %v9098_v34 = vld [vmem:[#allocation2] sm:$0xff] }
0x1ae2   :  { %1529 = vrot.lane.b32.xlu0 %v1527_v35, %s8667_s12 }
0x1b4a   :  { %v1500_v20 = vpop.permute.xlu1 %1499 }
0x1b4b   :  { %v1502_v29 = vadd.f32 %v1500_v20, %v1402_v36 }
0x1b4e   :  { %v1520_v48 = vpop.permute.xlu1 %1519 }
0x1b4f   :  { %v1510_v43 = vpop.permute.xlu0 %1509 }
0x1b50   :  { %v1512_v47 = vadd.f32 %v1510_v43, %v1502_v29 }
0x1b52   :  { %v1522_v10 = vadd.f32 %v1520_v48, %v1512_v47 }
0x1b54   :  { %v1530_v14 = vpop.permute.xlu0 %1529 }
0x1b55   :  { %v1532_v55 = vadd.f32 %v1530_v14, %v1522_v10 }
0x1b57   :  { %8344 = vtanh.f32 %v1532_v55  ;;  %v1533_v60 = vmul.f32 0.5, %v1532_v55 }
0x1b59   :  { %8346 = vtanh.f32 %v1533_v60 }
0x1b61   :  { %v8345_v56 = vpop.eup %8344 }
0x1b62   :  { %1540 = vrot.lane.b32.xlu1 %v8345_v56, %s8666_s11 }
0x1b63   :  { %v8347_v61 = vpop.eup %8346 }
0x1b64   :  { %v1535_v62 = vadd.f32 1.0, %v8347_v61 }
0x1b66   :  { %v1536_v63 = vmul.f32 0.5, %v1535_v62 }
0x1b68   :  { %v1538_v54 = vmul.f32 %v1536_v63, %v9019_v40 }
0x1bd4   :  { %v1541_v3 = vpop.permute.xlu1 %1540 }
0x1bd5   :  { %v1543_v4 = vmul.f32 %v1541_v3, %v1536_v63 }
0x1bd7   :  { %1545 = vrot.lane.b32.xlu0 %v1543_v4, %s8657_s9 }
0x1c49   :  { %v1546_v5 = vpop.permute.xlu0 %1545 }
0x1c4a   :  { %v9071_v6 = vadd.f32 %v1546_v5, %v1538_v54 }
0x1c4c   :  { %8348 = vtanh.f32 %v9071_v6 }
0x1c56   :  { %v8349_v59 = vpop.eup %8348 }
0x1c57   :  { %1551 = vrot.lane.b32.xlu1 %v8349_v59, %s8667_s12 }
0x1c5b   :  { %1632 = vrot.lane.b32.xlu1 %v9071_v6, %s8668_s13 }
0x1cc9   :  { %v1552_v7 = vpop.permute.xlu1 %1551 }
0x1cca   :  { %v1554_v11 = vmul.f32 %v1552_v7, %v1536_v63 }
0x1ccc   :  { %1556 = vrot.lane.b32.xlu0 %v1554_v11, %s8671_s16 }
0x1ccd   :  { %v1633_v40 = vpop.permute.xlu1 %1632 }
0x1d3e   :  { %v1557_v50 = vpop.permute.xlu0 %1556 }
0x1d3f   :  { %7286 = vmatmul.mubr.msk.f32.vlgmr.msra.gmra.mrb[12].mxu1 %vm330_vm7, %v1557_v50 }
0x1d40   :  { %7835 = vmatpush3.bf16.msra.mxu1 %v8863_v26  ;;  %7292 = vmatprep.mubr.msk.f32.mxu1 %vm8659_vm0, %v8660_v1 }
0x1d41   :  { %7842 = vmatprep.subr.bf16.mxu1 %v8658_v0 }
0x1d43   :  { %7293 = vmatmul.mubr.msk.f32.vlgmr.msra.gmra.mrb[14].mxu1 %vm330_vm7, %v1633_v40 }
0x1d44   :  { %7844 = vmatpush3.bf16.msra.mxu1 %v8853_v18  ;;  %7310 = vmatprep.mubr.msk.f32.mxu1 %vm8659_vm0, %v8660_v1 }
0x1d45   :  { %7845 = vmatprep.subr.bf16.mxu1 %v8658_v0 }
0x1e12   :  { %v1626_v16 = vpop.f32.mrb[12].mxu1 }
0x1e13   :  { %v7287_v17 = vpop.f32.mrb[13].mxu1  ;;  %v1630_v53 = vadd.f32 %v1626_v16, %v8794_v19  ;;  %v1707_v4 = vadd.f32 %v1626_v16, %v8910_v12 }
0x1e16   :  { %v1702_v21 = vpop.f32.mrb[14].mxu1 }
0x1e17   :  { %v1706_v9 = vadd.f32 %v1702_v21, %v1630_v53  ;;  %v7294_v24 = vpop.f32.mrb[15].mxu1 }
0x1e19   :  { %8350 = vtanh.f32 %v1706_v9 }
0x1e23   :  { %v8351_v25 = vpop.eup %8350 }
0x1e24   :  { %7304 = vmatmul.mubr.msk.f32.vlgmr.msra.gmra.mrb[16].mxu0 %vm173_vm5, %v8351_v25 }
0x1e25   :  { %7850 = vmatpush3.bf16.msra.mxu0 %v8786_v13  ;;  %7328 = vmatprep.mubr.msk.f32.mxu0 %vm8659_vm0, %v8660_v1 }
0x1e26   :  { %7851 = vmatprep.subr.bf16.mxu0 %v8658_v0 }
0x1e29   :  { %7853 = vmatpush3.bf16.msra.mxu0 %v8789_v15 }
0x1e2a   :  { %7861 = vmatprep.subr.bf16.mxu0 %v8658_v0 }
0x1ef7   :  { %v1778_v18 = vpop.f32.mrb[16].mxu0 }
0x1ef8   :  { %v1779_v28 = vadd.f32 %v1778_v18, %v8800_v22  ;;  %v7305_v30 = vpop.f32.mrb[17].mxu0 }
0x1efa   :  { %v1782_v31 = vsel %vm247_vm6, %v1779_v28, -inf }
0x1efb   :  { %1783 = vmax.xlane.f32.xlu0 %v1782_v31 }
0x1f11   :  { %1793 = vrot.lane.b32.xlu0 %v9098_v34, %s8674_s20 }
0x1f88   :  { %v1784_v13 = vpop.xlane.xlu0 %1783 }
0x1f89   :  { %v1785_v35 = vsub.f32 %v1779_v28, %v1784_v13 }
0x1f8b   :  { %v1786_v20 = vmul.f32 1.442695, %v1785_v35 }
0x1f8c   :  { %v1794_v47 = vpop.permute.xlu0 %1793 }
0x1f8d   :  { %8352 = vpow2.f32 %v1786_v20 }
0x1f97   :  { %v8353_v36 = vpop.eup %8352 }
0x1f98   :  { %v1788_v15 = vsel %vm247_vm6, %v8353_v36, 0.0 }
0x1f99   :  { %1789 = vadd.xlane.f32.xlu1 %v1788_v15 }
0x2026   :  { %v1790_v29 = vpop.xlane.xlu1 %1789 }
0x2027   :  { %8354 = vrcp.f32 %v1790_v29 }
0x2031   :  { %v8355_v43 = vpop.eup %8354 }
0x2032   :  { %v1792_v48 = vmul.f32 %v8355_v43, %v8353_v36 }
0x2034   :  { %v9102_v10 = vmul.f32 %v1794_v47, %v1792_v48 }
0x2036   :  { %1809 = vperm.xlu0 %8202, %v9102_v10   ;;  %1799 = vperm.xlu1 %8201, %v9102_v10  }
0x203a   :  { %8203 = vset.pattern.permute.xlu1 %v8662_v32  ;;  %8205 = vset.pattern.permute.xlu0 %v8663_v33 }
0x203b   :  { %1819 = vperm.xlu1 %8203, %v9102_v10  }
0x203f   :  { %8204 = vset.pattern.permute.xlu1 %v8665_v39 }
0x2040   :  { %1829 = vperm.xlu1 %8204, %v9102_v10  }
0x2044   :  { %8206 = vset.pattern.permute.xlu1 %v8664_v38 }
0x20b5   :  { %v1810_v14 = vpop.permute.xlu0 %1809  ;;  %v1800_v55 = vpop.permute.xlu1 %1799 }
0x20b6   :  { %v1812_v56 = vmul.f32 %v1810_v14, %v8831_v49  ;;  %v1802_v60 = vmul.f32 %v1800_v55, %v8824_v44  ;;  %v2130_v14 = vld [vmem:[#allocation6 + $0xa0] sm:$0xff]  ;;  %v2131_v55 = vld [vmem:[#allocation6 + $0xa8] sm:$0xff] }
0x20b8   :  { %1814 = vrot.lane.b32.xlu1 %v1812_v56, %s8667_s12  ;;  %1804 = vrot.lane.b32.xlu0 %v1802_v60, %s8667_s12  ;;  %v2132_v56 = vld [vmem:[#allocation6 + $0xb0] sm:$0xff]  ;;  %v7855_v60 = vpack.c.bf16 %v2131_v55, %v2130_v14 }
0x20ba   :  { %v1820_v61 = vpop.permute.xlu1 %1819 }
0x20bb   :  { %v1822_v62 = vmul.f32 %v1820_v61, %v8838_v52  ;;  %v2133_v61 = vld [vmem:[#allocation6 + $0xb8] sm:$0xf] }
0x20bd   :  { %1824 = vrot.lane.b32.xlu0 %v1822_v62, %s8667_s12  ;;  %v7858_v62 = vpack.c.bf16 %v2133_v61, %v2132_v56 }
0x20bf   :  { %v1830_v63 = vpop.permute.xlu1 %1829 }
0x20c0   :  { %v1832_v3 = vmul.f32 %v1830_v63, %v8844_v57  ;;  %v9154_v63 = vld [vmem:[#allocation4] sm:$0xff] }
0x20c2   :  { %1834 = vrot.lane.b32.xlu1 %v1832_v3, %s8667_s12 }
0x212a   :  { %v1805_v54 = vpop.permute.xlu0 %1804  ;;  %v1815_v5 = vpop.permute.xlu1 %1814 }
0x212b   :  { %v1807_v49 = vadd.f32 %v1805_v54, %v1707_v4 }
0x212d   :  { %v1817_v44 = vadd.f32 %v1815_v5, %v1807_v49 }
0x212f   :  { %v1825_v59 = vpop.permute.xlu0 %1824 }
0x2130   :  { %v1827_v7 = vadd.f32 %v1825_v59, %v1817_v44 }
0x2134   :  { %v1835_v11 = vpop.permute.xlu1 %1834 }
0x2135   :  { %v1837_v50 = vadd.f32 %v1835_v11, %v1827_v7 }
0x2137   :  { %8356 = vtanh.f32 %v1837_v50  ;;  %v1838_v52 = vmul.f32 0.5, %v1837_v50 }
0x2139   :  { %8358 = vtanh.f32 %v1838_v52 }
0x2141   :  { %v8357_v40 = vpop.eup %8356 }
0x2142   :  { %1845 = vrot.lane.b32.xlu0 %v8357_v40, %s8666_s11 }
0x2143   :  { %v8359_v17 = vpop.eup %8358 }
0x2144   :  { %v1840_v57 = vadd.f32 1.0, %v8359_v17 }
0x2146   :  { %v1841_v53 = vmul.f32 0.5, %v1840_v57 }
0x2148   :  { %v1843_v12 = vmul.f32 %v1841_v53, %v9071_v6 }
0x21b4   :  { %v1846_v21 = vpop.permute.xlu0 %1845 }
0x21b5   :  { %v1848_v9 = vmul.f32 %v1846_v21, %v1841_v53  ;;  %v2221_v21 = vld [vmem:[#allocation6 + $0xc0] sm:$0xff] }
0x21b7   :  { %1850 = vrot.lane.b32.xlu1 %v1848_v9, %s8657_s9  ;;  %v2222_v9 = vld [vmem:[#allocation6 + $0xc8] sm:$0xff] }
0x2229   :  { %v1851_v16 = vpop.permute.xlu1 %1850 }
0x222a   :  { %v1853_v24 = vadd.f32 %v1851_v16, %v1843_v12  ;;  %v2223_v12 = vld [vmem:[#allocation6 + $0xd0] sm:$0xff]  ;;  %v9166_v16 = vpack.c.bf16 %v2222_v9, %v2221_v21 }
0x222c   :  { %8360 = vtanh.f32 %v1853_v24 }
0x2236   :  { %v8361_v25 = vpop.eup %8360 }
0x2237   :  { %1856 = vrot.lane.b32.xlu0 %v8361_v25, %s8667_s12 }
0x223b   :  { %1937 = vrot.lane.b32.xlu0 %v1853_v24, %s8668_s13  ;;  %v2224_v24 = vld [vmem:[#allocation6 + $0xd8] sm:$0xff] }
0x223c   :  { %v9169_v25 = vpack.c.bf16 %v2224_v24, %v2223_v12 }
0x22a9   :  { %v1857_v18 = vpop.permute.xlu0 %1856 }
0x22aa   :  { %v1859_v28 = vmul.f32 %v1857_v18, %v1841_v53  ;;  %v8549_v18 = vld [vmem:[#allocation6 + $0x1b8] sm:$0x1] }
0x22ac   :  { %1861 = vrot.lane.b32.xlu1 %v1859_v28, %s8671_s16  ;;  %v9175_v28 = vld [vmem:[#allocation6 + $0xe8] ss:$0 sm:$0xff] }
0x22ad   :  { %v1938_v6 = vpop.permute.xlu0 %1937 }
0x231e   :  { %v1862_v30 = vpop.permute.xlu1 %1861 }
0x231f   :  { %7311 = vmatmul.mubr.msk.f32.vlgmr.msra.gmra.mrb[16].mxu1 %vm330_vm7, %v1862_v30 }
0x2320   :  { %7847 = vmatpush3.bf16.msra.mxu1 %v8863_v26  ;;  %7317 = vmatprep.mubr.msk.f32.mxu1 %vm8659_vm0, %v8660_v1 }
0x2321   :  { %7854 = vmatprep.subr.bf16.mxu1 %v8658_v0 }
0x2327   :  { %7318 = vmatmul.mubr.msk.f32.vlgmr.msra.gmra.mrb[16].mxu1 %vm330_vm7, %v1938_v6  ;;  %v6831_v6 = vld [vmem:[#allocation6 + $0xe0] ss:$0 sm:$0xff] }
0x2328   :  { %7339 = vmatprep.mubr.msk.f32.mxu1 %vm8659_vm0, %v8660_v1  ;;  %7856 = vmatpush3.bf16.msra.mxu1 %v7855_v60 }
0x2329   :  { %7857 = vmatprep.subr.bf16.mxu1 %v8658_v0 }
0x232c   :  { %7860 = vmatpush3.bf16.msk.msra.mxu1 %vm8773_vm3, %v7858_v62 }
0x232d   :  { %7867 = vmatprep.subr.bf16.mxu1 %v8658_v0 }
0x23fa   :  { %v2007_v31 = vpop.f32.mrb[16].mxu1 }
0x23fb   :  { %v8131_v13 = vadd.f32 %v2007_v31, %v8794_v19  ;;  %v7319_v35 = vpop.f32.mrb[17].mxu1 }
0x23fd   :  { %8362 = vtanh.f32 %v8131_v13 }
0x2407   :  { %v8363_v20 = vpop.eup %8362 }
0x2408   :  { %7329 = vmatmul.mubr.msk.f32.vlgmr.msra.gmra.mrb[18].mxu0 %vm173_vm5, %v8363_v20 }
0x2409   :  { %7350 = vmatprep.mubr.msk.f32.mxu0 %vm8659_vm0, %v8660_v1  ;;  %7863 = vmatpush3.bf16.msra.mxu0 %v9166_v16 }
0x240a   :  { %7864 = vmatprep.subr.bf16.mxu0 %v8658_v0 }
0x240d   :  { %7866 = vmatpush3.bf16.msra.mxu0 %v9169_v25 }
0x240e   :  { %7873 = vmatprep.subr.bf16.mxu0 %v8658_v0 }
0x24db   :  { %v2082_v26 = vpop.f32.mrb[18].mxu0 }
0x24dc   :  { %v2083_v36 = vadd.f32 %v2082_v26, %v8800_v22  ;;  %v7330_v15 = vpop.f32.mrb[19].mxu0 }
0x24de   :  { %v2086_v29 = vsel %vm247_vm6, %v2083_v36, -inf }
0x24df   :  { %2087 = vmax.xlane.f32.xlu1 %v2086_v29 }
0x24f0   :  { %2101 = vrot.lane.b32.xlu1 %v8890_v2, %s8675_s21 }
0x24f4   :  { %2104 = vrot.lane.b32.xlu1 %v8946_v27, %s8654_s18  ;;  %s8678_s18 = smov 20  }
0x24f8   :  { %2110 = vrot.lane.b32.xlu1 %v9049_v23, %s8657_s9 }
0x256c   :  { %v2088_v19 = vpop.xlane.xlu1 %2087 }
0x256d   :  { %v2089_v43 = vsub.f32 %v2083_v36, %v2088_v19 }
0x256f   :  { %v2090_v47 = vmul.f32 1.442695, %v2089_v43 }
0x2570   :  { %v2102_v5 = vpop.permute.xlu1 %2101 }
0x2571   :  { %8364 = vpow2.f32 %v2090_v47  ;;  %v2120_v59 = vsel %vm247_vm6, %v8808_v37, %v2102_v5 }
0x2574   :  { %v2105_v44 = vpop.permute.xlu1 %2104 }
0x2575   :  { %v2122_v7 = vsel %vm2121_vm8, %v2120_v59, %v2105_v44  ;;  %v9205_v44 = vld [vmem:[#allocation6 + $0xf0] ss:$0 sm:$0xff] }
0x2578   :  { %v2111_v11 = vpop.permute.xlu1 %2110 }
0x257b   :  { %v8365_v48 = vpop.eup %8364 }
0x257c   :  { %v2092_v22 = vsel %vm247_vm6, %v8365_v48, 0.0 }
0x257d   :  { %2093 = vadd.xlane.f32.xlu0 %v2092_v22 }
0x2593   :  { %2097 = vrot.lane.b32.xlu0 %v9098_v34, %s8676_s22 }
0x2597   :  { %2107 = vrot.lane.b32.xlu0 %v8997_v58, %s8677_s0 }
0x259b   :  { %2113 = vrot.lane.b32.xlu0 %v9102_v10, %s8678_s18 }
0x259f   :  { %2228 = vperm.xlu0 %8205, %v9154_v63  }
0x260a   :  { %v2094_v34 = vpop.xlane.xlu0 %2093 }
0x260b   :  { %8366 = vrcp.f32 %v2094_v34 }
0x260e   :  { %v2098_v54 = vpop.permute.xlu0 %2097 }
0x2612   :  { %v2108_v8 = vpop.permute.xlu0 %2107 }
0x2613   :  { %v2124_v50 = vsel %vm2123_vm9, %v2122_v7, %v2108_v8 }
0x2614   :  { %v2125_v52 = vsel %vm330_vm7, %v2124_v50, %v2111_v11 }
0x2615   :  { %v8367_v3 = vpop.eup %8366 }
0x2616   :  { %v2096_v4 = vmul.f32 %v8367_v3, %v8365_v48  ;;  %v2114_v40 = vpop.permute.xlu0 %2113 }
0x2617   :  { %v2127_v17 = vsel %vm2126_vm10, %v2125_v52, %v2114_v40 }
0x2618   :  { %v9157_v49 = vmul.f32 %v2098_v54, %v2096_v4  ;;  %v2220_v4 = vld [vmem:[#allocation6 + $0x98] sm:$0xf] }
0x2619   :  { %v9199_v54 = vrot.slane %v2220_v4, %v8821_v42  ;;  %v9203_v5 = vrot.slane %v2220_v4, %v281_v45  ;;  %v9210_v7 = vrot.slane %v2220_v4, %v291_v46  ;;  %v9216_v40 = vrot.slane %v2220_v4, %v301_v51 }
0x261a   :  { %2117 = vrot.lane.b32.xlu1 %v9157_v49, %s8679_s23 }
0x261e   :  { %2238 = vrot.lane.b32.xlu1 %v8549_v18, %s8680_s24  ;;  %v2229_v30 = vpop.permute.xlu0 %2228 }
0x261f   :  { %v2235_v31 = vmul.f32 %v9175_v28, %v2229_v30 }
0x268c   :  { %v2118_v57 = vpop.permute.xlu1 %2117 }
0x268d   :  { %v2129_v53 = vsel %vm2128_vm11, %v2127_v17, %v2118_v57 }
0x268e   :  { %7340 = vmatmul.mubr.msk.f32.vlgmr.msra.gmra.mrb[18].mxu1 %vm80_vm4, %v2129_v53 }
0x268f   :  { %7357 = vmatprep.mubr.msk.f32.mxu1 %vm8659_vm0, %v8660_v1 }
0x2690   :  { %v2239_v36 = vpop.permute.xlu1 %2238 }
0x2691   :  { %8136 = vpush %v2239_v36 }
0x26c2   :  { %s8137_s25 = spop %8136 }
0x26c3   :  { %v9188_v29 = vstv %s8137_s25 }
0x2761   :  { %v2211_v13 = vpop.f32.mrb[18].mxu1 }
0x2762   :  { %v9178_v35 = vadd.f32 %v6831_v6, %v2211_v13  ;;  %v7341_v20 = vpop.f32.mrb[19].mxu1 }
0x2763   :  { %v2216_v20 = vld [vmem:[#allocation6 + $0x78] sm:$0xff] }
0x2764   :  { %v2236_v26 = vadd.f32 %v2235_v31, %v9178_v35 }
0x2766   :  { %8368 = vtanh.f32 %v2236_v26  ;;  %v2217_v26 = vld [vmem:[#allocation6 + $0x80] sm:$0xff] }
0x2767   :  { %v9225_v36 = vpack.c.bf16 %v2217_v26, %v2216_v20 }
0x2769   :  { %7869 = vmatpush3.bf16.msra.mxu1 %v9225_v36 }
0x276a   :  { %7870 = vmatprep.subr.bf16.mxu1 %v8658_v0 }
0x2770   :  { %v8369_v15 = vpop.eup %8368 }
0x2771   :  { %7351 = vmatmul.mubr.msk.f32.vlgmr.msra.gmra.mrb[20].mxu0 %vm173_vm5, %v8369_v15 }
0x2772   :  { %7875 = vmatpush3.bf16.msra.mxu0 %v9166_v16  ;;  %7375 = vmatprep.mubr.msk.f32.mxu0 %vm8659_vm0, %v8660_v1 }
0x2773   :  { %7876 = vmatprep.subr.bf16.mxu0 %v8658_v0 }
0x2776   :  { %7878 = vmatpush3.bf16.msra.mxu0 %v9169_v25 }
0x2777   :  { %7885 = vmatprep.subr.bf16.mxu0 %v8658_v0 }
0x2844   :  { %v2312_v19 = vpop.f32.mrb[20].mxu0 }
0x2845   :  { %v2313_v43 = vadd.f32 %v2312_v19, %v9188_v29  ;;  %v7352_v47 = vpop.f32.mrb[21].mxu0 }
0x2846   :  { %v2218_v47 = vld [vmem:[#allocation6 + $0x88] sm:$0xff] }
0x2847   :  { %v2316_v48 = vsel %vm247_vm6, %v2313_v43, -inf }
0x2848   :  { %2317 = vmax.xlane.f32.xlu1 %v2316_v48  ;;  %v2219_v48 = vld [vmem:[#allocation6 + $0x90] sm:$0xff] }
0x28d5   :  { %v2318_v22 = vpop.xlane.xlu1 %2317 }
0x28d6   :  { %v2319_v14 = vsub.f32 %v2313_v43, %v2318_v22  ;;  %v9237_v22 = vpack.c.bf16 %v2219_v48, %v2218_v47 }
0x28d8   :  { %v2320_v55 = vmul.f32 1.442695, %v2319_v14 }
0x28da   :  { %8370 = vpow2.f32 %v2320_v55 }
0x28e4   :  { %v8371_v56 = vpop.eup %8370 }
0x28e5   :  { %v2322_v60 = vsel %vm247_vm6, %v8371_v56, 0.0 }
0x28e6   :  { %2323 = vadd.xlane.f32.xlu0 %v2322_v60 }
0x2973   :  { %v2324_v61 = vpop.xlane.xlu0 %2323 }
0x2974   :  { %8372 = vrcp.f32 %v2324_v61 }
0x297e   :  { %v8373_v62 = vpop.eup %8372 }
0x297f   :  { %v2326_v34 = vmul.f32 %v8373_v62, %v8371_v56 }
0x2981   :  { %v2327_v3 = vmul.f32 %v2326_v34, %v8808_v37 }
0x2983   :  { %2344 = vperm.xlu1 %8206, %v2327_v3   ;;  %2330 = vperm.xlu0 %8205, %v2327_v3  }
0x2987   :  { %8207 = vset.pattern.permute.xlu1 %v8662_v32  ;;  %8208 = vset.pattern.permute.xlu0 %v8665_v39 }
0x2988   :  { %2354 = vperm.xlu1 %8207, %v2327_v3   ;;  %2364 = vperm.xlu0 %8208, %v2327_v3  }
0x298c   :  { %8209 = vset.pattern.permute.xlu1 %v8664_v38  ;;  %8210 = vset.pattern.permute.xlu0 %v8663_v33 }
0x2a02   :  { %v2345_v37 = vpop.permute.xlu1 %2344  ;;  %v2331_v8 = vpop.permute.xlu0 %2330 }
0x2a03   :  { %v2337_v59 = vmul.f32 %v9199_v54, %v2331_v8  ;;  %v2351_v11 = vmul.f32 %v9203_v5, %v2345_v37 }
0x2a05   :  { %v2342_v50 = vadd.f32 %v9205_v44, %v2337_v59 }
0x2a07   :  { %v2355_v45 = vpop.permute.xlu1 %2354  ;;  %v2352_v52 = vadd.f32 %v2351_v11, %v2342_v50  ;;  %v2365_v17 = vpop.permute.xlu0 %2364 }
0x2a08   :  { %v2361_v57 = vmul.f32 %v9210_v7, %v2355_v45  ;;  %v2371_v21 = vmul.f32 %v9216_v40, %v2365_v17 }
0x2a0a   :  { %v2362_v53 = vadd.f32 %v2361_v57, %v2352_v52 }
0x2a0c   :  { %v2372_v9 = vadd.f32 %v2371_v21, %v2362_v53 }
0x2a0e   :  { %8374 = vtanh.f32 %v2372_v9  ;;  %v2373_v12 = vmul.f32 0.5, %v2372_v9 }
0x2a10   :  { %8376 = vtanh.f32 %v2373_v12 }
0x2a18   :  { %v8375_v46 = vpop.eup %8374 }
0x2a19   :  { %2380 = vrot.lane.b32.xlu1 %v8375_v46, %s8666_s11 }
0x2a1a   :  { %v8377_v24 = vpop.eup %8376 }
0x2a1b   :  { %v2375_v18 = vadd.f32 1.0, %v8377_v24 }
0x2a1d   :  { %v2376_v41 = vmul.f32 0.5, %v2375_v18 }
0x2a1f   :  { %v2378_v6 = vmul.f32 0.0, %v2376_v41 }
0x2a8b   :  { %v2381_v51 = vpop.permute.xlu1 %2380 }
0x2a8c   :  { %v2383_v30 = vmul.f32 %v2381_v51, %v2376_v41 }
0x2a8e   :  { %2385 = vrot.lane.b32.xlu1 %v2383_v30, %s8657_s9 }
0x2b00   :  { %v2386_v31 = vpop.permute.xlu1 %2385 }
0x2b01   :  { %v9222_v13 = vadd.f32 %v2386_v31, %v2378_v6 }
0x2b03   :  { %8378 = vtanh.f32 %v9222_v13 }
0x2b0d   :  { %v8379_v15 = vpop.eup %8378 }
0x2b0e   :  { %2391 = vrot.lane.b32.xlu0 %v8379_v15, %s8667_s12 }
0x2b12   :  { %2478 = vrot.lane.b32.xlu0 %v9222_v13, %s8669_s14 }
0x2b80   :  { %v2392_v19 = vpop.permute.xlu0 %2391 }
0x2b81   :  { %v9232_v43 = vmul.f32 %v2392_v19, %v2376_v41 }
0x2b83   :  { %2396 = vrot.lane.b32.xlu1 %v9232_v43, %s8668_s13 }
0x2b84   :  { %v2479_v55 = vpop.permute.xlu0 %2478 }
0x2b87   :  { %2471 = vperm.xlu1 %8209, %v9154_v63  }
0x2bf5   :  { %v2397_v14 = vpop.permute.xlu1 %2396 }
0x2bf6   :  { %7358 = vmatmul.mubr.msk.f32.vlgmr.msra.gmra.mrb[20].mxu1 %vm330_vm7, %v2397_v14 }
0x2bf7   :  { %7872 = vmatpush3.bf16.msra.mxu1 %v9237_v22  ;;  %7364 = vmatprep.mubr.msk.f32.mxu1 %vm8659_vm0, %v8660_v1 }
0x2bf8   :  { %7879 = vmatprep.subr.bf16.mxu1 %v8658_v0 }
0x2bfa   :  { %7365 = vmatmul.mubr.msk.f32.vlgmr.msra.gmra.mrb[22].mxu1 %vm330_vm7, %v2479_v55 }
0x2bfb   :  { %7881 = vmatpush3.bf16.msra.mxu1 %v9225_v36  ;;  %7382 = vmatprep.mubr.msk.f32.mxu1 %vm8659_vm0, %v8660_v1 }
0x2bfc   :  { %7882 = vmatprep.subr.bf16.mxu1 %v8658_v0 }
0x2c06   :  { %v2472_v56 = vpop.permute.xlu1 %2471 }
0x2c07   :  { %v2474_v60 = vmul.f32 %v9175_v28, %v2472_v56 }
0x2c09   :  { %v2475_v62 = vadd.f32 %v2474_v60, %v9178_v35 }
0x2cc9   :  { %v9250_v61 = vpop.f32.mrb[20].mxu1 }
0x2cca   :  { %v7359_v34 = vpop.f32.mrb[21].mxu1  ;;  %v2476_v3 = vadd.f32 %v2475_v62, %v9250_v61 }
0x2ccd   :  { %v2548_v4 = vpop.f32.mrb[22].mxu1 }
0x2cce   :  { %v2552_v37 = vadd.f32 %v2548_v4, %v2476_v3  ;;  %v7366_v8 = vpop.f32.mrb[23].mxu1 }
0x2cd0   :  { %8380 = vtanh.f32 %v2552_v37 }
0x2cda   :  { %v8381_v59 = vpop.eup %8380 }
0x2cdb   :  { %7376 = vmatmul.mubr.msk.f32.vlgmr.msra.gmra.mrb[22].mxu0 %vm173_vm5, %v8381_v59 }
0x2cdc   :  { %7887 = vmatpush3.bf16.msra.mxu0 %v9166_v16  ;;  %7400 = vmatprep.mubr.msk.f32.mxu0 %vm8659_vm0, %v8660_v1 }
0x2cdd   :  { %7888 = vmatprep.subr.bf16.mxu0 %v8658_v0 }
0x2ce0   :  { %7890 = vmatpush3.bf16.msra.mxu0 %v9169_v25 }
0x2ce1   :  { %7897 = vmatprep.subr.bf16.mxu0 %v8658_v0 }
0x2dae   :  { %v2628_v11 = vpop.f32.mrb[22].mxu0 }
0x2daf   :  { %v2629_v50 = vadd.f32 %v2628_v11, %v9188_v29  ;;  %v7377_v45 = vpop.f32.mrb[23].mxu0 }
0x2db1   :  { %v2632_v52 = vsel %vm247_vm6, %v2629_v50, -inf }
0x2db2   :  { %2633 = vmax.xlane.f32.xlu0 %v2632_v52 }
0x2e3f   :  { %v2634_v17 = vpop.xlane.xlu0 %2633 }
0x2e40   :  { %v2635_v57 = vsub.f32 %v2629_v50, %v2634_v17 }
0x2e42   :  { %v2636_v53 = vmul.f32 1.442695, %v2635_v57 }
0x2e44   :  { %8382 = vpow2.f32 %v2636_v53 }
0x2e4e   :  { %v8383_v21 = vpop.eup %8382 }
0x2e4f   :  { %v2638_v9 = vsel %vm247_vm6, %v8383_v21, 0.0 }
0x2e50   :  { %2639 = vadd.xlane.f32.xlu1 %v2638_v9 }
0x2edd   :  { %v2640_v46 = vpop.xlane.xlu1 %2639 }
0x2ede   :  { %8384 = vrcp.f32 %v2640_v46 }
0x2ee8   :  { %v8385_v12 = vpop.eup %8384 }
0x2ee9   :  { %v2642_v24 = vmul.f32 %v8385_v12, %v8383_v21 }
0x2eeb   :  { %v2643_v18 = vmul.f32 %v2642_v24, %v8890_v2 }
0x2eed   :  { %2656 = vperm.xlu1 %8209, %v2643_v18   ;;  %2646 = vperm.xlu0 %8210, %v2643_v18  }
0x2ef1   :  { %8211 = vset.pattern.permute.xlu1 %v8662_v32  ;;  %8213 = vset.pattern.permute.xlu0 %v8662_v32 }
0x2ef2   :  { %2666 = vperm.xlu1 %8211, %v2643_v18  }
0x2ef6   :  { %8212 = vset.pattern.permute.xlu1 %v8665_v39 }
0x2ef7   :  { %2676 = vperm.xlu1 %8212, %v2643_v18  }
0x2efb   :  { %2554 = vrot.lane.b32.xlu1 %v9205_v44, %s8667_s12 }
0x2efc   :  { %8214 = vset.pattern.permute.xlu1 %v8663_v33 }
0x2f6c   :  { %v2657_v41 = vpop.permute.xlu1 %2656  ;;  %v2647_v51 = vpop.permute.xlu0 %2646 }
0x2f6d   :  { %v2649_v30 = vmul.f32 %v2647_v51, %v9199_v54  ;;  %v2659_v2 = vmul.f32 %v2657_v41, %v9203_v5 }
0x2f6f   :  { %2651 = vrot.lane.b32.xlu1 %v2649_v30, %s8667_s12 }
0x2f71   :  { %v2667_v6 = vpop.permute.xlu1 %2666 }
0x2f72   :  { %v2669_v31 = vmul.f32 %v2667_v6, %v9210_v7 }
0x2f73   :  { %2661 = vrot.lane.b32.xlu1 %v2659_v2, %s8667_s12 }
0x2f74   :  { %2671 = vrot.lane.b32.xlu0 %v2669_v31, %s8667_s12 }
0x2f76   :  { %v2677_v20 = vpop.permute.xlu1 %2676 }
0x2f77   :  { %v2679_v44 = vmul.f32 %v2677_v20, %v9216_v40 }
0x2f79   :  { %2681 = vrot.lane.b32.xlu1 %v2679_v44, %s8667_s12 }
0x2f7a   :  { %v9281_v26 = vpop.permute.xlu1 %2554 }
0x2f7b   :  { %v2557_v19 = vadd.f32 %v9281_v26, %v9250_v61 }
0x2f7d   :  { %2690 = vrot.lane.b32.xlu1 %v9222_v13, %s8667_s12 }
0x2fe1   :  { %v2652_v15 = vpop.permute.xlu1 %2651 }
0x2fe2   :  { %v2654_v47 = vadd.f32 %v2652_v15, %v2557_v19 }
0x2fe5   :  { %v2662_v48 = vpop.permute.xlu1 %2661 }
0x2fe6   :  { %v2664_v14 = vadd.f32 %v2662_v48, %v2654_v47  ;;  %v2672_v55 = vpop.permute.xlu0 %2671 }
0x2fe8   :  { %v2674_v56 = vadd.f32 %v2672_v55, %v2664_v14 }
0x2feb   :  { %v2682_v60 = vpop.permute.xlu1 %2681 }
0x2fec   :  { %v2684_v62 = vadd.f32 %v2682_v60, %v2674_v56 }
0x2fee   :  { %8386 = vtanh.f32 %v2684_v62  ;;  %v2685_v3 = vmul.f32 0.5, %v2684_v62 }
0x2fef   :  { %v2691_v11 = vpop.permute.xlu1 %2690 }
0x2ff0   :  { %8388 = vtanh.f32 %v2685_v3 }
0x2ff8   :  { %v8387_v34 = vpop.eup %8386 }
0x2ff9   :  { %2695 = vrot.lane.b32.xlu0 %v8387_v34, %s8666_s11 }
0x2ffa   :  { %v8389_v13 = vpop.eup %8388 }
0x2ffb   :  { %v2687_v4 = vadd.f32 1.0, %v8389_v13 }
0x2ffd   :  { %v2688_v37 = vmul.f32 0.5, %v2687_v4 }
0x2fff   :  { %v2693_v50 = vmul.f32 %v2691_v11, %v2688_v37 }
0x306b   :  { %v2696_v8 = vpop.permute.xlu0 %2695 }
0x306c   :  { %v2698_v59 = vmul.f32 %v2696_v8, %v2688_v37 }
0x306e   :  { %2700 = vrot.lane.b32.xlu0 %v2698_v59, %s8657_s9 }
0x30e0   :  { %v2701_v45 = vpop.permute.xlu0 %2700 }
0x30e1   :  { %v9287_v52 = vadd.f32 %v2701_v45, %v2693_v50 }
0x30e3   :  { %8390 = vtanh.f32 %v9287_v52 }
0x30ed   :  { %v8391_v17 = vpop.eup %8390 }
0x30ee   :  { %2706 = vrot.lane.b32.xlu1 %v8391_v17, %s8667_s12 }
0x30f2   :  { %2793 = vrot.lane.b32.xlu1 %v9287_v52, %s8668_s13 }
0x3160   :  { %v2707_v57 = vpop.permute.xlu1 %2706 }
0x3161   :  { %v9293_v53 = vmul.f32 %v2707_v57, %v2688_v37 }
0x3163   :  { %2711 = vrot.lane.b32.xlu0 %v9293_v53, %s8671_s16 }
0x3164   :  { %v2794_v9 = vpop.permute.xlu1 %2793 }
0x3167   :  { %2786 = vperm.xlu0 %8213, %v9154_v63  }
0x316b   :  { %8215 = vset.pattern.permute.xlu0 %v8664_v38 }
0x31d5   :  { %v2712_v21 = vpop.permute.xlu0 %2711 }
0x31d6   :  { %7383 = vmatmul.mubr.msk.f32.vlgmr.msra.gmra.mrb[24].mxu1 %vm330_vm7, %v2712_v21 }
0x31d7   :  { %7884 = vmatpush3.bf16.msra.mxu1 %v9237_v22  ;;  %7389 = vmatprep.mubr.msk.f32.mxu1 %vm8659_vm0, %v8660_v1 }
0x31d8   :  { %7891 = vmatprep.subr.bf16.mxu1 %v8658_v0 }
0x31da   :  { %7390 = vmatmul.mubr.msk.f32.vlgmr.msra.gmra.mrb[26].mxu1 %vm330_vm7, %v2794_v9 }
0x31db   :  { %7893 = vmatpush3.bf16.msra.mxu1 %v9225_v36  ;;  %7407 = vmatprep.mubr.msk.f32.mxu1 %vm8659_vm0, %v8660_v1 }
0x31dc   :  { %7894 = vmatprep.subr.bf16.mxu1 %v8658_v0 }
0x31e6   :  { %v2787_v46 = vpop.permute.xlu0 %2786 }
0x31e7   :  { %v2789_v12 = vmul.f32 %v9175_v28, %v2787_v46 }
0x31e9   :  { %v2790_v18 = vadd.f32 %v2789_v12, %v9178_v35 }
0x32a9   :  { %v9310_v24 = vpop.f32.mrb[24].mxu1 }
0x32aa   :  { %v7384_v41 = vpop.f32.mrb[25].mxu1  ;;  %v2791_v51 = vadd.f32 %v2790_v18, %v9310_v24  ;;  %v2868_v57 = vadd.f32 %v9310_v24, %v9281_v26 }
0x32ad   :  { %v2863_v30 = vpop.f32.mrb[26].mxu1 }
0x32ae   :  { %v2867_v2 = vadd.f32 %v2863_v30, %v2791_v51  ;;  %v7391_v6 = vpop.f32.mrb[27].mxu1 }
0x32b0   :  { %8392 = vtanh.f32 %v2867_v2 }
0x32ba   :  { %v8393_v31 = vpop.eup %8392 }
0x32bb   :  { %7401 = vmatmul.mubr.msk.f32.vlgmr.msra.gmra.mrb[24].mxu0 %vm173_vm5, %v8393_v31 }
0x32bc   :  { %7899 = vmatpush3.bf16.msra.mxu0 %v9166_v16  ;;  %7425 = vmatprep.mubr.msk.f32.mxu0 %vm8659_vm0, %v8660_v1 }
0x32bd   :  { %7900 = vmatprep.subr.bf16.mxu0 %v8658_v0 }
0x32c0   :  { %7902 = vmatpush3.bf16.msra.mxu0 %v9169_v25 }
0x32c1   :  { %7909 = vmatprep.subr.bf16.mxu0 %v8658_v0 }
0x338e   :  { %v2939_v20 = vpop.f32.mrb[24].mxu0 }
0x338f   :  { %v2940_v44 = vadd.f32 %v2939_v20, %v9188_v29  ;;  %v7402_v15 = vpop.f32.mrb[25].mxu0 }
0x3391   :  { %v2943_v19 = vsel %vm247_vm6, %v2940_v44, -inf }
0x3392   :  { %2944 = vmax.xlane.f32.xlu1 %v2943_v19 }
0x341f   :  { %v2945_v47 = vpop.xlane.xlu1 %2944 }
0x3420   :  { %v2946_v48 = vsub.f32 %v2940_v44, %v2945_v47 }
0x3422   :  { %v2947_v14 = vmul.f32 1.442695, %v2946_v48 }
0x3424   :  { %8394 = vpow2.f32 %v2947_v14 }
0x342e   :  { %v8395_v55 = vpop.eup %8394 }
0x342f   :  { %v2949_v56 = vsel %vm247_vm6, %v8395_v55, 0.0 }
0x3430   :  { %2950 = vadd.xlane.f32.xlu0 %v2949_v56 }
0x34bd   :  { %v2951_v60 = vpop.xlane.xlu0 %2950 }
0x34be   :  { %8396 = vrcp.f32 %v2951_v60 }
0x34c8   :  { %v8397_v62 = vpop.eup %8396 }
0x34c9   :  { %v2953_v34 = vmul.f32 %v8397_v62, %v8395_v55 }
0x34cb   :  { %v2954_v3 = vmul.f32 %v2953_v34, %v8946_v27 }
0x34cd   :  { %2967 = vperm.xlu0 %8215, %v2954_v3   ;;  %2957 = vperm.xlu1 %8214, %v2954_v3  }
0x34d1   :  { %8216 = vset.pattern.permute.xlu1 %v8662_v32  ;;  %8218 = vset.pattern.permute.xlu0 %v8663_v33 }
0x34d2   :  { %2977 = vperm.xlu1 %8216, %v2954_v3  }
0x34d6   :  { %8217 = vset.pattern.permute.xlu1 %v8665_v39 }
0x34d7   :  { %2987 = vperm.xlu1 %8217, %v2954_v3  }
0x354c   :  { %v2958_v13 = vpop.permute.xlu1 %2957  ;;  %v2968_v37 = vpop.permute.xlu0 %2967 }
0x354d   :  { %v2960_v4 = vmul.f32 %v2958_v13, %v9199_v54  ;;  %v2970_v8 = vmul.f32 %v2968_v37, %v9203_v5 }
0x354f   :  { %2962 = vrot.lane.b32.xlu1 %v2960_v4, %s8667_s12 }
0x3551   :  { %v2978_v59 = vpop.permute.xlu1 %2977 }
0x3552   :  { %v2980_v27 = vmul.f32 %v2978_v59, %v9210_v7 }
0x3553   :  { %2972 = vrot.lane.b32.xlu1 %v2970_v8, %s8667_s12 }
0x3556   :  { %v2988_v11 = vpop.permute.xlu1 %2987 }
0x3557   :  { %2982 = vrot.lane.b32.xlu1 %v2980_v27, %s8667_s12  ;;  %v2990_v50 = vmul.f32 %v2988_v11, %v9216_v40 }
0x355b   :  { %2992 = vrot.lane.b32.xlu1 %v2990_v50, %s8667_s12 }
0x35c1   :  { %v2963_v45 = vpop.permute.xlu1 %2962 }
0x35c2   :  { %v2965_v21 = vadd.f32 %v2963_v45, %v2868_v57 }
0x35c5   :  { %v2973_v17 = vpop.permute.xlu1 %2972 }
0x35c6   :  { %v2975_v46 = vadd.f32 %v2973_v17, %v2965_v21 }
0x35c9   :  { %v2983_v9 = vpop.permute.xlu1 %2982 }
0x35ca   :  { %v2985_v12 = vadd.f32 %v2983_v9, %v2975_v46 }
0x35cd   :  { %v2993_v18 = vpop.permute.xlu1 %2992 }
0x35ce   :  { %v2995_v41 = vadd.f32 %v2993_v18, %v2985_v12 }
0x35d0   :  { %8398 = vtanh.f32 %v2995_v41  ;;  %v2996_v30 = vmul.f32 0.5, %v2995_v41 }
0x35d2   :  { %8400 = vtanh.f32 %v2996_v30 }
0x35da   :  { %v8399_v51 = vpop.eup %8398 }
0x35db   :  { %3003 = vrot.lane.b32.xlu1 %v8399_v51, %s8666_s11 }
0x35dc   :  { %v8401_v2 = vpop.eup %8400 }
0x35dd   :  { %v2998_v6 = vadd.f32 1.0, %v8401_v2 }
0x35df   :  { %v2999_v31 = vmul.f32 0.5, %v2998_v6 }
0x35e1   :  { %v3001_v15 = vmul.f32 %v2999_v31, %v9287_v52 }
0x364d   :  { %v3004_v20 = vpop.permute.xlu1 %3003 }
0x364e   :  { %v3006_v44 = vmul.f32 %v3004_v20, %v2999_v31 }
0x3650   :  { %3008 = vrot.lane.b32.xlu1 %v3006_v44, %s8657_s9 }
0x36c2   :  { %v3009_v19 = vpop.permute.xlu1 %3008 }
0x36c3   :  { %v9341_v47 = vadd.f32 %v3009_v19, %v3001_v15 }
0x36c5   :  { %8402 = vtanh.f32 %v9341_v47 }
0x36cf   :  { %v8403_v48 = vpop.eup %8402 }
0x36d0   :  { %3014 = vrot.lane.b32.xlu0 %v8403_v48, %s8667_s12 }
0x36d4   :  { %3101 = vrot.lane.b32.xlu0 %v9341_v47, %s8668_s13 }
0x3742   :  { %v3015_v14 = vpop.permute.xlu0 %3014 }
0x3743   :  { %v9347_v55 = vmul.f32 %v3015_v14, %v2999_v31 }
0x3745   :  { %3019 = vrot.lane.b32.xlu1 %v9347_v55, %s8671_s16 }
0x3746   :  { %v3102_v56 = vpop.permute.xlu0 %3101 }
0x3749   :  { %3094 = vperm.xlu1 %8217, %v9154_v63  }
0x374d   :  { %8219 = vset.pattern.permute.xlu1 %v8664_v38 }
0x37b7   :  { %v3020_v52 = vpop.permute.xlu1 %3019 }
0x37b8   :  { %7408 = vmatmul.mubr.msk.f32.vlgmr.msra.gmra.mrb[28].mxu1 %vm330_vm7, %v3020_v52 }
0x37b9   :  { %7896 = vmatpush3.bf16.msra.mxu1 %v9237_v22  ;;  %7414 = vmatprep.mubr.msk.f32.mxu1 %vm8659_vm0, %v8660_v1 }
0x37ba   :  { %7903 = vmatprep.subr.bf16.mxu1 %v8658_v0 }
0x37bc   :  { %7415 = vmatmul.mubr.msk.f32.vlgmr.msra.gmra.mrb[30].mxu1 %vm330_vm7, %v3102_v56 }
0x37bd   :  { %7905 = vmatpush3.bf16.msra.mxu1 %v9225_v36  ;;  %7432 = vmatprep.mubr.msk.f32.mxu1 %vm8659_vm0, %v8660_v1 }
0x37be   :  { %7906 = vmatprep.subr.bf16.mxu1 %v8658_v0 }
0x37c8   :  { %v3095_v60 = vpop.permute.xlu1 %3094 }
0x37c9   :  { %v3097_v62 = vmul.f32 %v9175_v28, %v3095_v60 }
0x37cb   :  { %v3098_v3 = vadd.f32 %v3097_v62, %v9178_v35 }
0x388b   :  { %v9364_v34 = vpop.f32.mrb[28].mxu1 }
0x388c   :  { %v7409_v13 = vpop.f32.mrb[29].mxu1  ;;  %v3099_v4 = vadd.f32 %v3098_v3, %v9364_v34  ;;  %v3176_v14 = vadd.f32 %v9364_v34, %v9281_v26 }
0x388f   :  { %v3171_v37 = vpop.f32.mrb[30].mxu1 }
0x3890   :  { %v3175_v8 = vadd.f32 %v3171_v37, %v3099_v4  ;;  %v7416_v59 = vpop.f32.mrb[31].mxu1 }
0x3892   :  { %8404 = vtanh.f32 %v3175_v8 }
0x389c   :  { %v8405_v27 = vpop.eup %8404 }
0x389d   :  { %7426 = vmatmul.mubr.msk.f32.vlgmr.msra.gmra.mrb[26].mxu0 %vm173_vm5, %v8405_v27 }
0x389e   :  { %7911 = vmatpush3.bf16.msra.mxu0 %v9166_v16  ;;  %7450 = vmatprep.mubr.msk.f32.mxu0 %vm8659_vm0, %v8660_v1 }
0x389f   :  { %7912 = vmatprep.subr.bf16.mxu0 %v8658_v0 }
0x38a2   :  { %7914 = vmatpush3.bf16.msra.mxu0 %v9169_v25 }
0x38a3   :  { %7921 = vmatprep.subr.bf16.mxu0 %v8658_v0 }
0x3970   :  { %v3247_v11 = vpop.f32.mrb[26].mxu0 }
0x3971   :  { %v3248_v50 = vadd.f32 %v3247_v11, %v9188_v29  ;;  %v7427_v45 = vpop.f32.mrb[27].mxu0 }
0x3973   :  { %v3251_v17 = vsel %vm247_vm6, %v3248_v50, -inf }
0x3974   :  { %3252 = vmax.xlane.f32.xlu0 %v3251_v17 }
0x3a01   :  { %v3253_v57 = vpop.xlane.xlu0 %3252 }
0x3a02   :  { %v3254_v21 = vsub.f32 %v3248_v50, %v3253_v57 }
0x3a04   :  { %v3255_v9 = vmul.f32 1.442695, %v3254_v21 }
0x3a06   :  { %8406 = vpow2.f32 %v3255_v9  ;;  %v8681_v9 = vmov 4  }
0x3a10   :  { %v8407_v46 = vpop.eup %8406 }
0x3a11   :  { %v3257_v12 = vsel %vm247_vm6, %v8407_v46, 0.0 }
0x3a12   :  { %3258 = vadd.xlane.f32.xlu1 %v3257_v12 }
0x3a9f   :  { %v3259_v18 = vpop.xlane.xlu1 %3258 }
0x3aa0   :  { %8408 = vrcp.f32 %v3259_v18 }
0x3aaa   :  { %v8409_v41 = vpop.eup %8408 }
0x3aab   :  { %v3261_v51 = vmul.f32 %v8409_v41, %v8407_v46 }
0x3aad   :  { %v3262_v30 = vmul.f32 %v3261_v51, %v8997_v58 }
0x3aaf   :  { %3275 = vperm.xlu1 %8219, %v3262_v30   ;;  %3265 = vperm.xlu0 %8218, %v3262_v30  }
0x3ab3   :  { %8220 = vset.pattern.permute.xlu1 %v8662_v32  ;;  %8222 = vset.pattern.permute.xlu0 %v8681_v9 }
0x3ab4   :  { %3285 = vperm.xlu1 %8220, %v3262_v30  }
0x3ab8   :  { %8221 = vset.pattern.permute.xlu1 %v8665_v39 }
0x3ab9   :  { %3295 = vperm.xlu1 %8221, %v3262_v30  }
0x3abd   :  { %8223 = vset.pattern.permute.xlu1 %v8663_v33 }
0x3b2e   :  { %v3276_v2 = vpop.permute.xlu1 %3275  ;;  %v3266_v6 = vpop.permute.xlu0 %3265 }
0x3b2f   :  { %v3268_v31 = vmul.f32 %v3266_v6, %v9199_v54  ;;  %v3278_v20 = vmul.f32 %v3276_v2, %v9203_v5 }
0x3b31   :  { %3270 = vrot.lane.b32.xlu1 %v3268_v31, %s8667_s12 }
0x3b33   :  { %v3286_v44 = vpop.permute.xlu1 %3285 }
0x3b34   :  { %v3288_v58 = vmul.f32 %v3286_v44, %v9210_v7 }
0x3b35   :  { %3280 = vrot.lane.b32.xlu1 %v3278_v20, %s8667_s12 }
0x3b38   :  { %v3296_v15 = vpop.permute.xlu1 %3295 }
0x3b39   :  { %v3298_v19 = vmul.f32 %v3296_v15, %v9216_v40  ;;  %3290 = vrot.lane.b32.xlu1 %v3288_v58, %s8667_s12 }
0x3b3b   :  { %3300 = vrot.lane.b32.xlu0 %v3298_v19, %s8667_s12 }
0x3ba3   :  { %v3271_v48 = vpop.permute.xlu1 %3270 }
0x3ba4   :  { %v3273_v56 = vadd.f32 %v3271_v48, %v3176_v14 }
0x3ba7   :  { %v3281_v52 = vpop.permute.xlu1 %3280 }
0x3ba8   :  { %v3283_v60 = vadd.f32 %v3281_v52, %v3273_v56 }
0x3bab   :  { %v3291_v62 = vpop.permute.xlu1 %3290 }
0x3bac   :  { %v3293_v3 = vadd.f32 %v3291_v62, %v3283_v60 }
0x3bad   :  { %v3301_v13 = vpop.permute.xlu0 %3300 }
0x3bae   :  { %v3303_v4 = vadd.f32 %v3301_v13, %v3293_v3 }
0x3bb0   :  { %8410 = vtanh.f32 %v3303_v4  ;;  %v3304_v8 = vmul.f32 0.5, %v3303_v4 }
0x3bb2   :  { %8412 = vtanh.f32 %v3304_v8 }
0x3bba   :  { %v8411_v37 = vpop.eup %8410 }
0x3bbb   :  { %3311 = vrot.lane.b32.xlu1 %v8411_v37, %s8666_s11 }
0x3bbc   :  { %v8413_v59 = vpop.eup %8412 }
0x3bbd   :  { %v3306_v27 = vadd.f32 1.0, %v8413_v59 }
0x3bbf   :  { %v3307_v11 = vmul.f32 0.5, %v3306_v27 }
0x3bc1   :  { %v3309_v17 = vmul.f32 %v3307_v11, %v9341_v47 }
0x3c2d   :  { %v3312_v50 = vpop.permute.xlu1 %3311 }
0x3c2e   :  { %v3314_v45 = vmul.f32 %v3312_v50, %v3307_v11 }
0x3c30   :  { %3316 = vrot.lane.b32.xlu0 %v3314_v45, %s8657_s9 }
0x3ca2   :  { %v3317_v57 = vpop.permute.xlu0 %3316 }
0x3ca3   :  { %v9395_v21 = vadd.f32 %v3317_v57, %v3309_v17 }
0x3ca5   :  { %8414 = vtanh.f32 %v9395_v21 }
0x3caf   :  { %v8415_v46 = vpop.eup %8414 }
0x3cb0   :  { %3322 = vrot.lane.b32.xlu1 %v8415_v46, %s8667_s12 }
0x3cb4   :  { %3409 = vrot.lane.b32.xlu1 %v9395_v21, %s8668_s13 }
0x3d22   :  { %v3323_v12 = vpop.permute.xlu1 %3322 }
0x3d23   :  { %v9402_v18 = vmul.f32 %v3323_v12, %v3307_v11 }
0x3d25   :  { %3327 = vrot.lane.b32.xlu0 %v9402_v18, %s8671_s16 }
0x3d26   :  { %v3410_v41 = vpop.permute.xlu1 %3409 }
0x3d29   :  { %3402 = vperm.xlu0 %8222, %v9154_v63  }
0x3d2d   :  { %8224 = vset.pattern.permute.xlu0 %v8664_v38 }
0x3d97   :  { %v3328_v47 = vpop.permute.xlu0 %3327 }
0x3d98   :  { %7433 = vmatmul.mubr.msk.f32.vlgmr.msra.gmra.mrb[32].mxu1 %vm330_vm7, %v3328_v47 }
0x3d99   :  { %7908 = vmatpush3.bf16.msra.mxu1 %v9237_v22  ;;  %7439 = vmatprep.mubr.msk.f32.mxu1 %vm8659_vm0, %v8660_v1 }
0x3d9a   :  { %7915 = vmatprep.subr.bf16.mxu1 %v8658_v0 }
0x3d9c   :  { %7440 = vmatmul.mubr.msk.f32.vlgmr.msra.gmra.mrb[34].mxu1 %vm330_vm7, %v3410_v41 }
0x3d9d   :  { %7917 = vmatpush3.bf16.msra.mxu1 %v9225_v36  ;;  %7457 = vmatprep.mubr.msk.f32.mxu1 %vm8659_vm0, %v8660_v1 }
0x3d9e   :  { %7918 = vmatprep.subr.bf16.mxu1 %v8658_v0 }
0x3da8   :  { %v3403_v63 = vpop.permute.xlu0 %3402 }
0x3da9   :  { %v3405_v51 = vmul.f32 %v9175_v28, %v3403_v63 }
0x3dab   :  { %v3406_v2 = vadd.f32 %v3405_v51, %v9178_v35 }
0x3e6b   :  { %v9419_v30 = vpop.f32.mrb[32].mxu1 }
0x3e6c   :  { %v7434_v6 = vpop.f32.mrb[33].mxu1  ;;  %v3407_v31 = vadd.f32 %v3406_v2, %v9419_v30  ;;  %v3484_v41 = vadd.f32 %v9419_v30, %v9281_v26 }
0x3e6f   :  { %v3479_v20 = vpop.f32.mrb[34].mxu1 }
0x3e70   :  { %v3483_v44 = vadd.f32 %v3479_v20, %v3407_v31  ;;  %v7441_v58 = vpop.f32.mrb[35].mxu1 }
0x3e72   :  { %8416 = vtanh.f32 %v3483_v44 }
0x3e7c   :  { %v8417_v15 = vpop.eup %8416 }
0x3e7d   :  { %7451 = vmatmul.mubr.msk.f32.vlgmr.msra.gmra.mrb[28].mxu0 %vm173_vm5, %v8417_v15 }
0x3e7e   :  { %7923 = vmatpush3.bf16.msra.mxu0 %v9166_v16  ;;  %7475 = vmatprep.mubr.msk.f32.mxu0 %vm8659_vm0, %v8660_v1 }
0x3e7f   :  { %7924 = vmatprep.subr.bf16.mxu0 %v8658_v0 }
0x3e82   :  { %7926 = vmatpush3.bf16.msra.mxu0 %v9169_v25 }
0x3e83   :  { %7933 = vmatprep.subr.bf16.mxu0 %v8658_v0 }
0x3f50   :  { %v3555_v19 = vpop.f32.mrb[28].mxu0 }
0x3f51   :  { %v3556_v48 = vadd.f32 %v3555_v19, %v9188_v29  ;;  %v7452_v14 = vpop.f32.mrb[29].mxu0 }
0x3f53   :  { %v3559_v52 = vsel %vm247_vm6, %v3556_v48, -inf }
0x3f54   :  { %3560 = vmax.xlane.f32.xlu1 %v3559_v52 }
0x3fe1   :  { %v3561_v56 = vpop.xlane.xlu1 %3560 }
0x3fe2   :  { %v3562_v60 = vsub.f32 %v3556_v48, %v3561_v56 }
0x3fe4   :  { %v3563_v62 = vmul.f32 1.442695, %v3562_v60 }
0x3fe6   :  { %8418 = vpow2.f32 %v3563_v62 }
0x3ff0   :  { %v8419_v3 = vpop.eup %8418 }
0x3ff1   :  { %v3565_v13 = vsel %vm247_vm6, %v8419_v3, 0.0 }
0x3ff2   :  { %3566 = vadd.xlane.f32.xlu0 %v3565_v13 }
0x407f   :  { %v3567_v4 = vpop.xlane.xlu0 %3566 }
0x4080   :  { %8420 = vrcp.f32 %v3567_v4 }
0x408a   :  { %v8421_v37 = vpop.eup %8420 }
0x408b   :  { %v3569_v8 = vmul.f32 %v8421_v37, %v8419_v3  ;;  %v8682_v3 = vmov 5  }
0x408d   :  { %v3570_v59 = vmul.f32 %v3569_v8, %v9049_v23 }
0x408f   :  { %3583 = vperm.xlu0 %8224, %v3570_v59   ;;  %3573 = vperm.xlu1 %8223, %v3570_v59  }
0x4093   :  { %8225 = vset.pattern.permute.xlu1 %v8662_v32  ;;  %8228 = vset.pattern.permute.xlu0 %v8663_v33 }
0x4094   :  { %3593 = vperm.xlu1 %8225, %v3570_v59  }
0x4098   :  { %8226 = vset.pattern.permute.xlu1 %v8665_v39 }
0x4099   :  { %3603 = vperm.xlu1 %8226, %v3570_v59  }
0x409d   :  { %8227 = vset.pattern.permute.xlu1 %v8682_v3 }
0x410e   :  { %v3574_v27 = vpop.permute.xlu1 %3573  ;;  %v3584_v50 = vpop.permute.xlu0 %3583 }
0x410f   :  { %v3576_v11 = vmul.f32 %v3574_v27, %v9199_v54  ;;  %v3586_v45 = vmul.f32 %v3584_v50, %v9203_v5 }
0x4111   :  { %3578 = vrot.lane.b32.xlu1 %v3576_v11, %s8667_s12 }
0x4113   :  { %v3594_v17 = vpop.permute.xlu1 %3593 }
0x4114   :  { %v3596_v23 = vmul.f32 %v3594_v17, %v9210_v7 }
0x4115   :  { %3588 = vrot.lane.b32.xlu1 %v3586_v45, %s8667_s12 }
0x4118   :  { %v3604_v57 = vpop.permute.xlu1 %3603 }
0x4119   :  { %3598 = vrot.lane.b32.xlu1 %v3596_v23, %s8667_s12  ;;  %v3606_v46 = vmul.f32 %v3604_v57, %v9216_v40 }
0x411d   :  { %3608 = vrot.lane.b32.xlu1 %v3606_v46, %s8667_s12 }
0x4183   :  { %v3579_v12 = vpop.permute.xlu1 %3578 }
0x4184   :  { %v3581_v63 = vadd.f32 %v3579_v12, %v3484_v41 }
0x4187   :  { %v3589_v47 = vpop.permute.xlu1 %3588 }
0x4188   :  { %v3591_v2 = vadd.f32 %v3589_v47, %v3581_v63 }
0x418b   :  { %v3599_v51 = vpop.permute.xlu1 %3598 }
0x418c   :  { %v3601_v6 = vadd.f32 %v3599_v51, %v3591_v2 }
0x418f   :  { %v3609_v31 = vpop.permute.xlu1 %3608 }
0x4190   :  { %v3611_v20 = vadd.f32 %v3609_v31, %v3601_v6 }
0x4192   :  { %8422 = vtanh.f32 %v3611_v20  ;;  %v3612_v58 = vmul.f32 0.5, %v3611_v20 }
0x4194   :  { %8424 = vtanh.f32 %v3612_v58 }
0x419c   :  { %v8423_v44 = vpop.eup %8422 }
0x419d   :  { %3619 = vrot.lane.b32.xlu1 %v8423_v44, %s8666_s11 }
0x419e   :  { %v8425_v15 = vpop.eup %8424 }
0x419f   :  { %v3614_v19 = vadd.f32 1.0, %v8425_v15 }
0x41a1   :  { %v3615_v48 = vmul.f32 0.5, %v3614_v19 }
0x41a3   :  { %v3617_v56 = vmul.f32 %v3615_v48, %v9395_v21  ;;  %v9461_v21 = vld [vmem:[#allocation4] sm:$0xff] }
0x420f   :  { %v3620_v14 = vpop.permute.xlu1 %3619 }
0x4210   :  { %v3622_v52 = vmul.f32 %v3620_v14, %v3615_v48 }
0x4212   :  { %3624 = vrot.lane.b32.xlu1 %v3622_v52, %s8657_s9 }
0x4284   :  { %v3625_v60 = vpop.permute.xlu1 %3624 }
0x4285   :  { %v9450_v62 = vadd.f32 %v3625_v60, %v3617_v56 }
0x4287   :  { %8426 = vtanh.f32 %v9450_v62 }
0x4291   :  { %v8427_v13 = vpop.eup %8426 }
0x4292   :  { %3630 = vrot.lane.b32.xlu0 %v8427_v13, %s8667_s12 }
0x4296   :  { %3717 = vrot.lane.b32.xlu0 %v9450_v62, %s8668_s13 }
0x4304   :  { %v3631_v4 = vpop.permute.xlu0 %3630 }
0x4305   :  { %v9457_v37 = vmul.f32 %v3631_v4, %v3615_v48 }
0x4307   :  { %3635 = vrot.lane.b32.xlu1 %v9457_v37, %s8671_s16 }
0x4308   :  { %v3718_v59 = vpop.permute.xlu0 %3717 }
0x430b   :  { %3710 = vperm.xlu1 %8227, %v9461_v21  }
0x430f   :  { %8229 = vset.pattern.permute.xlu1 %v8664_v38 }
0x4379   :  { %v3636_v8 = vpop.permute.xlu1 %3635 }
0x437a   :  { %7458 = vmatmul.mubr.msk.f32.vlgmr.msra.gmra.mrb[36].mxu1 %vm330_vm7, %v3636_v8 }
0x437b   :  { %7920 = vmatpush3.bf16.msra.mxu1 %v9237_v22  ;;  %7464 = vmatprep.mubr.msk.f32.mxu1 %vm8659_vm0, %v8660_v1 }
0x437c   :  { %7927 = vmatprep.subr.bf16.mxu1 %v8658_v0 }
0x437e   :  { %7465 = vmatmul.mubr.msk.f32.vlgmr.msra.gmra.mrb[38].mxu1 %vm330_vm7, %v3718_v59 }
0x437f   :  { %7929 = vmatpush3.bf16.msra.mxu1 %v9225_v36  ;;  %7482 = vmatprep.mubr.msk.f32.mxu1 %vm8659_vm0, %v8660_v1 }
0x4380   :  { %7930 = vmatprep.subr.bf16.mxu1 %v8658_v0 }
0x438a   :  { %v3711_v27 = vpop.permute.xlu1 %3710 }
0x438b   :  { %v3713_v11 = vmul.f32 %v9175_v28, %v3711_v27 }
0x438d   :  { %v3714_v45 = vadd.f32 %v3713_v11, %v9178_v35 }
0x444d   :  { %v9476_v50 = vpop.f32.mrb[36].mxu1 }
0x444e   :  { %v7459_v17 = vpop.f32.mrb[37].mxu1  ;;  %v3715_v23 = vadd.f32 %v3714_v45, %v9476_v50  ;;  %v3792_v4 = vadd.f32 %v9476_v50, %v9281_v26 }
0x4451   :  { %v3787_v57 = vpop.f32.mrb[38].mxu1 }
0x4452   :  { %v3791_v46 = vadd.f32 %v3787_v57, %v3715_v23  ;;  %v7466_v12 = vpop.f32.mrb[39].mxu1 }
0x4454   :  { %8428 = vtanh.f32 %v3791_v46 }
0x445e   :  { %v8429_v36 = vpop.eup %8428 }
0x445f   :  { %7476 = vmatmul.mubr.msk.f32.vlgmr.msra.gmra.mrb[30].mxu0 %vm173_vm5, %v8429_v36 }
0x4460   :  { %7935 = vmatpush3.bf16.msra.mxu0 %v9166_v16  ;;  %7500 = vmatprep.mubr.msk.f32.mxu0 %vm8659_vm0, %v8660_v1 }
0x4461   :  { %7936 = vmatprep.subr.bf16.mxu0 %v8658_v0 }
0x4464   :  { %7938 = vmatpush3.bf16.msra.mxu0 %v9169_v25 }
0x4532   :  { %v3863_v28 = vpop.f32.mrb[30].mxu0 }
0x4533   :  { %v3864_v47 = vadd.f32 %v3863_v28, %v9188_v29  ;;  %v7477_v41 = vpop.f32.mrb[31].mxu0 }
0x4535   :  { %v3867_v63 = vsel %vm247_vm6, %v3864_v47, -inf }
0x4536   :  { %3868 = vmax.xlane.f32.xlu0 %v3867_v63 }
0x45c3   :  { %v3869_v51 = vpop.xlane.xlu0 %3868 }
0x45c4   :  { %v3870_v2 = vsub.f32 %v3864_v47, %v3869_v51 }
0x45c6   :  { %v3871_v6 = vmul.f32 1.442695, %v3870_v2 }
0x45c8   :  { %8430 = vpow2.f32 %v3871_v6  ;;  %v8683_v6 = vmov 6  }
0x45d2   :  { %v8431_v31 = vpop.eup %8430 }
0x45d3   :  { %v3873_v16 = vsel %vm247_vm6, %v8431_v31, 0.0 }
0x45d4   :  { %3874 = vadd.xlane.f32.xlu1 %v3873_v16 }
0x4661   :  { %v3875_v20 = vpop.xlane.xlu1 %3874 }
0x4662   :  { %8432 = vrcp.f32 %v3875_v20 }
0x466c   :  { %v8433_v44 = vpop.eup %8432 }
0x466d   :  { %v3877_v58 = vmul.f32 %v8433_v44, %v8431_v31 }
0x466f   :  { %v3878_v25 = vmul.f32 %v3877_v58, %v9102_v10 }
0x4671   :  { %3891 = vperm.xlu1 %8229, %v3878_v25   ;;  %3881 = vperm.xlu0 %8228, %v3878_v25  }
0x4675   :  { %8230 = vset.pattern.permute.xlu1 %v8662_v32  ;;  %8232 = vset.pattern.permute.xlu0 %v8683_v6 }
0x4676   :  { %3901 = vperm.xlu1 %8230, %v3878_v25  }
0x467a   :  { %8231 = vset.pattern.permute.xlu1 %v8665_v39 }
0x467b   :  { %3911 = vperm.xlu1 %8231, %v3878_v25   ;;  %v8551_v25 = vld [vmem:[#allocation6 + $0xe8] ss:$0 sm:$0xff] }
0x467f   :  { %8233 = vset.pattern.permute.xlu1 %v8663_v33 }
0x46f0   :  { %v3892_v15 = vpop.permute.xlu1 %3891  ;;  %v3882_v19 = vpop.permute.xlu0 %3881 }
0x46f1   :  { %v3884_v48 = vmul.f32 %v3882_v19, %v9199_v54  ;;  %v3894_v14 = vmul.f32 %v3892_v15, %v9203_v5 }
0x46f3   :  { %3886 = vrot.lane.b32.xlu1 %v3884_v48, %s8667_s12 }
0x46f5   :  { %v3902_v52 = vpop.permute.xlu1 %3901 }
0x46f6   :  { %v3904_v10 = vmul.f32 %v3902_v52, %v9210_v7 }
0x46f7   :  { %3896 = vrot.lane.b32.xlu1 %v3894_v14, %s8667_s12 }
0x46fa   :  { %v3912_v56 = vpop.permute.xlu1 %3911 }
0x46fb   :  { %v3914_v60 = vmul.f32 %v3912_v56, %v9216_v40  ;;  %3906 = vrot.lane.b32.xlu1 %v3904_v10, %s8667_s12 }
0x46fd   :  { %3916 = vrot.lane.b32.xlu0 %v3914_v60, %s8667_s12 }
0x4765   :  { %v3887_v13 = vpop.permute.xlu1 %3886 }
0x4766   :  { %v3889_v59 = vadd.f32 %v3887_v13, %v3792_v4 }
0x4769   :  { %v3897_v8 = vpop.permute.xlu1 %3896 }
0x476a   :  { %v3899_v27 = vadd.f32 %v3897_v8, %v3889_v59 }
0x476d   :  { %v3907_v11 = vpop.permute.xlu1 %3906 }
0x476e   :  { %v3909_v45 = vadd.f32 %v3907_v11, %v3899_v27 }
0x476f   :  { %v3917_v17 = vpop.permute.xlu0 %3916 }
0x4770   :  { %v3919_v23 = vadd.f32 %v3917_v17, %v3909_v45 }
0x4772   :  { %8434 = vtanh.f32 %v3919_v23  ;;  %v3920_v46 = vmul.f32 0.5, %v3919_v23 }
0x4774   :  { %8436 = vtanh.f32 %v3920_v46 }
0x477c   :  { %v8435_v57 = vpop.eup %8434 }
0x477d   :  { %3927 = vrot.lane.b32.xlu1 %v8435_v57, %s8666_s11 }
0x477e   :  { %v8437_v12 = vpop.eup %8436 }
0x477f   :  { %v3922_v36 = vadd.f32 1.0, %v8437_v12 }
0x4781   :  { %v3923_v28 = vmul.f32 0.5, %v3922_v36 }
0x4783   :  { %v3925_v63 = vmul.f32 %v3923_v28, %v9450_v62 }
0x47ef   :  { %v3928_v47 = vpop.permute.xlu1 %3927 }
0x47f0   :  { %v3930_v41 = vmul.f32 %v3928_v47, %v3923_v28 }
0x47f2   :  { %3932 = vrot.lane.b32.xlu0 %v3930_v41, %s8657_s9 }
0x4864   :  { %v3933_v51 = vpop.permute.xlu0 %3932 }
0x4865   :  { %v9506_v2 = vadd.f32 %v3933_v51, %v3925_v63 }
0x4867   :  { %8438 = vtanh.f32 %v9506_v2 }
0x4871   :  { %v8439_v31 = vpop.eup %8438 }
0x4872   :  { %3938 = vrot.lane.b32.xlu1 %v8439_v31, %s8667_s12 }
0x4876   :  { %4025 = vrot.lane.b32.xlu1 %v9506_v2, %s8668_s13 }
0x48e4   :  { %v3939_v16 = vpop.permute.xlu1 %3938 }
0x48e5   :  { %v9513_v20 = vmul.f32 %v3939_v16, %v3923_v28 }
0x48e7   :  { %3943 = vrot.lane.b32.xlu0 %v9513_v20, %s8671_s16 }
0x48e8   :  { %v4026_v44 = vpop.permute.xlu1 %4025 }
0x48eb   :  { %4018 = vperm.xlu0 %8232, %v9461_v21  }
0x48ef   :  { %8234 = vset.pattern.permute.xlu0 %v8664_v38 }
0x4959   :  { %v3944_v62 = vpop.permute.xlu0 %3943 }
0x495a   :  { %7483 = vmatmul.mubr.msk.f32.vlgmr.msra.gmra.mrb[40].mxu1 %vm330_vm7, %v3944_v62 }
0x495b   :  { %7932 = vmatpush3.bf16.msra.mxu1 %v9237_v22  ;;  %7489 = vmatprep.mubr.msk.f32.mxu1 %vm8659_vm0, %v8660_v1 }
0x495c   :  { %7939 = vmatprep.subr.bf16.mxu1 %v8658_v0 }
0x495e   :  { %7490 = vmatmul.mubr.msk.f32.vlgmr.msra.gmra.mrb[42].mxu1 %vm330_vm7, %v4026_v44 }
0x495f   :  { %7507 = vmatprep.mubr.msk.f32.mxu1 %vm8659_vm0, %v8660_v1 }
0x496a   :  { %v4019_v58 = vpop.permute.xlu0 %4018 }
0x496b   :  { %v4021_v15 = vmul.f32 %v8551_v25, %v4019_v58 }
0x496d   :  { %v4022_v48 = vadd.f32 %v4021_v15, %v9178_v35 }
0x4a2d   :  { %v9527_v19 = vpop.f32.mrb[40].mxu1 }
0x4a2e   :  { %v7484_v14 = vpop.f32.mrb[41].mxu1  ;;  %v4023_v22 = vadd.f32 %v4022_v48, %v9527_v19 }
0x4a31   :  { %v4095_v52 = vpop.f32.mrb[42].mxu1 }
0x4a32   :  { %v4099_v10 = vadd.f32 %v4095_v52, %v4023_v22  ;;  %v7491_v56 = vpop.f32.mrb[43].mxu1 }
0x4a34   :  { %8440 = vtanh.f32 %v4099_v10 }
0x4a3e   :  { %v8441_v60 = vpop.eup %8440 }
0x4a3f   :  { %7501 = vmatmul.mubr.msk.f32.vlgmr.msra.gmra.mrb[32].mxu0 %vm173_vm5, %v8441_v60 }
0x4a40   :  { %4690 = vmatprep.mubr.f32.mxu0 %v8660_v1 }
0x4b12   :  { %v4171_v13 = vpop.f32.mrb[32].mxu0 }
0x4b13   :  { %v4172_v4 = vadd.f32 %v4171_v13, %v9188_v29  ;;  %v7502_v8 = vpop.f32.mrb[33].mxu0 }
0x4b14   :  { %v4251_v8 = vld [vmem:[#allocation6 + $0x188] sm:$0xff] }
0x4b15   :  { %v4175_v59 = vsel %vm247_vm6, %v4172_v4, -inf }
0x4b16   :  { %4176 = vmax.xlane.f32.xlu1 %v4175_v59 }
0x4ba3   :  { %v4177_v35 = vpop.xlane.xlu1 %4176 }
0x4ba4   :  { %v4178_v27 = vsub.f32 %v4172_v4, %v4177_v35  ;;  %v4250_v4 = vld [vmem:[#allocation6 + $0x180] sm:$0xff] }
0x4ba5   :  { %v7940_v59 = vpack.c.bf16 %v4251_v8, %v4250_v4 }
0x4ba6   :  { %v4179_v11 = vmul.f32 1.442695, %v4178_v27  ;;  %v4379_v27 = vld [vmem:[#allocation6 + $0x118] sm:$0xff] }
0x4ba7   :  { %7941 = vmatpush3.bf16.msra.mxu1 %v7940_v59 }
0x4ba8   :  { %8442 = vpow2.f32 %v4179_v11  ;;  %7942 = vmatprep.subr.bf16.mxu1 %v8658_v0 }
0x4bb2   :  { %v8443_v45 = vpop.eup %8442 }
0x4bb3   :  { %v4181_v17 = vsel %vm247_vm6, %v8443_v45, 0.0 }
0x4bb4   :  { %4182 = vadd.xlane.f32.xlu0 %v4181_v17 }
0x4c41   :  { %v4183_v23 = vpop.xlane.xlu0 %4182 }
0x4c42   :  { %8444 = vrcp.f32 %v4183_v23  ;;  %v4383_v23 = vld [vmem:[#allocation6 + $0x138] sm:$0xff] }
0x4c4c   :  { %v8445_v57 = vpop.eup %8444 }
0x4c4d   :  { %v4185_v46 = vmul.f32 %v8445_v57, %v8443_v45  ;;  %v4380_v45 = vld [vmem:[#allocation6 + $0x120] sm:$0xff] }
0x4c4e   :  { %v4384_v57 = vld [vmem:[#allocation6 + $0x140] sm:$0xff] }
0x4c4f   :  { %v4186_v12 = vmul.f32 %v4185_v46, %v9157_v49  ;;  %v9584_v46 = vpack.c.bf16 %v4384_v57, %v4383_v23 }
0x4c51   :  { %4199 = vperm.xlu0 %8234, %v4186_v12   ;;  %4189 = vperm.xlu1 %8233, %v4186_v12  }
0x4c55   :  { %8235 = vset.pattern.permute.xlu1 %v8662_v32 }
0x4c56   :  { %4209 = vperm.xlu1 %8235, %v4186_v12  }
0x4c5a   :  { %8236 = vset.pattern.permute.xlu1 %v8665_v39 }
0x4c5b   :  { %4219 = vperm.xlu1 %8236, %v4186_v12   ;;  %v4385_v12 = vld [vmem:[#allocation6 + $0x148] sm:$0xff] }
0x4c5f   :  { %8237 = vset.pattern.permute.xlu1 %v8662_v32 }
0x4cd0   :  { %v4190_v29 = vpop.permute.xlu1 %4189  ;;  %v4200_v28 = vpop.permute.xlu0 %4199 }
0x4cd1   :  { %v4192_v36 = vmul.f32 %v4190_v29, %v9199_v54  ;;  %v4202_v47 = vmul.f32 %v4200_v28, %v9203_v5  ;;  %v4100_v54 = vadd.f32 %v9527_v19, %v9281_v26  ;;  %v4386_v29 = vld [vmem:[#allocation6 + $0x150] sm:$0xff]  ;;  %v4387_v28 = vld [vmem:[#allocation6 + $0x158] sm:$0xff] }
0x4cd3   :  { %4194 = vrot.lane.b32.xlu1 %v4192_v36, %s8667_s12  ;;  %v9589_v36 = vpack.c.bf16 %v4386_v29, %v4385_v12 }
0x4cd5   :  { %v4210_v41 = vpop.permute.xlu1 %4209 }
0x4cd6   :  { %v4212_v49 = vmul.f32 %v4210_v41, %v9210_v7 }
0x4cd7   :  { %4204 = vrot.lane.b32.xlu1 %v4202_v47, %s8667_s12  ;;  %v4388_v47 = vld [vmem:[#allocation6 + $0x160] sm:$0xff] }
0x4cd8   :  { %v9593_v41 = vpack.c.bf16 %v4388_v47, %v4387_v28 }
0x4cda   :  { %v4220_v63 = vpop.permute.xlu1 %4219 }
0x4cdb   :  { %4214 = vrot.lane.b32.xlu1 %v4212_v49, %s8667_s12  ;;  %v4222_v51 = vmul.f32 %v4220_v63, %v9216_v40  ;;  %v4389_v49 = vld [vmem:[#allocation6 + $0x168] sm:$0xff]  ;;  %v4390_v63 = vld [vmem:[#allocation6 + $0x170] sm:$0xff] }
0x4cdf   :  { %4224 = vrot.lane.b32.xlu1 %v4222_v51, %s8667_s12  ;;  %v9596_v51 = vpack.c.bf16 %v4390_v63, %v4389_v49 }
0x4d45   :  { %v4195_v31 = vpop.permute.xlu1 %4194 }
0x4d46   :  { %v4197_v62 = vadd.f32 %v4195_v31, %v4100_v54  ;;  %v9601_v54 = vld [vmem:[#allocation6 + $0x1b8] sm:$0x1] }
0x4d49   :  { %v4205_v16 = vpop.permute.xlu1 %4204 }
0x4d4a   :  { %v4207_v5 = vadd.f32 %v4205_v16, %v4197_v62 }
0x4d4d   :  { %v4215_v44 = vpop.permute.xlu1 %4214 }
0x4d4e   :  { %v4217_v58 = vadd.f32 %v4215_v44, %v4207_v5 }
0x4d51   :  { %v4225_v25 = vpop.permute.xlu1 %4224 }
0x4d52   :  { %v4227_v15 = vadd.f32 %v4225_v25, %v4217_v58 }
0x4d54   :  { %8446 = vtanh.f32 %v4227_v15  ;;  %v4228_v48 = vmul.f32 0.5, %v4227_v15 }
0x4d56   :  { %8448 = vtanh.f32 %v4228_v48 }
0x4d5e   :  { %v8447_v7 = vpop.eup %8446 }
0x4d5f   :  { %4235 = vrot.lane.b32.xlu1 %v8447_v7, %s8666_s11 }
0x4d60   :  { %v8449_v40 = vpop.eup %8448 }
0x4d61   :  { %v4230_v14 = vadd.f32 1.0, %v8449_v40 }
0x4d63   :  { %v4231_v22 = vmul.f32 0.5, %v4230_v14 }
0x4d65   :  { %v4233_v26 = vmul.f32 %v4231_v22, %v9506_v2 }
0x4dd1   :  { %v4236_v52 = vpop.permute.xlu1 %4235 }
0x4dd2   :  { %v4238_v10 = vmul.f32 %v4236_v52, %v4231_v22 }
0x4dd4   :  { %4240 = vrot.lane.b32.xlu1 %v4238_v10, %s8657_s9 }
0x4e46   :  { %v4241_v56 = vpop.permute.xlu1 %4240 }
0x4e47   :  { %v4243_v60 = vadd.f32 %v4241_v56, %v4233_v26 }
0x4e49   :  { %8450 = vtanh.f32 %v4243_v60 }
0x4e53   :  { %v8451_v13 = vpop.eup %8450 }
0x4e54   :  { %4246 = vrot.lane.b32.xlu0 %v8451_v13, %s8667_s12 }
0x4e58   :  { %4328 = vrot.lane.b32.xlu0 %v9250_v61, %s8667_s12 }
0x4e5c   :  { %4336 = vrot.lane.b32.xlu0 %v9364_v34, %s8684_s26  ;;  %v4377_v34 = vld [vmem:[#allocation6 + $0x108] sm:$0xff] }
0x4e60   :  { %4344 = vrot.lane.b32.xlu0 %v9476_v50, %s8666_s11  ;;  %v4378_v50 = vld [vmem:[#allocation6 + $0x110] sm:$0xff] }
0x4e61   :  { %v9573_v11 = vpack.c.bf16 %v4378_v50, %v4377_v34 }
0x4ec6   :  { %v4247_v2 = vpop.permute.xlu0 %4246 }
0x4ec7   :  { %v9560_v35 = vmul.f32 %v4247_v2, %v4231_v22  ;;  %v6856_v22 = vld [vmem:[#allocation6 + $0x178] ss:$0 sm:$0xff] }
0x4ec9   :  { %4253 = vrot.lane.b32.xlu1 %v9560_v35, %s8671_s16 }
0x4eca   :  { %v4329_v62 = vpop.permute.xlu0 %4328 }
0x4ecd   :  { %4332 = vrot.lane.b32.xlu1 %v9310_v24, %s8671_s16  ;;  %v9576_v24 = vpack.c.bf16 %v4380_v45, %v4379_v27 }
0x4ece   :  { %v4337_v5 = vpop.permute.xlu0 %4336 }
0x4ed1   :  { %4340 = vrot.lane.b32.xlu1 %v9419_v30, %s8668_s13  ;;  %v4381_v30 = vld [vmem:[#allocation6 + $0x128] sm:$0xff] }
0x4ed2   :  { %v4345_v7 = vpop.permute.xlu0 %4344 }
0x4ed5   :  { %4348 = vrot.lane.b32.xlu1 %v9527_v19, %s8669_s14  ;;  %v4382_v19 = vld [vmem:[#allocation6 + $0x130] sm:$0xff] }
0x4ed6   :  { %v9580_v17 = vpack.c.bf16 %v4382_v19, %v4381_v30 }
0x4ed9   :  { %4397 = vrot.lane.b32.xlu1 %v9601_v54, %s8685_s27 }
0x4f3b   :  { %v4254_v61 = vpop.permute.xlu1 %4253 }
0x4f3c   :  { %7508 = vmatmul.mubr.msk.f32.vlgmr.msra.gmra.mrb[44].mxu1 %vm330_vm7, %v4254_v61 }
0x4f3d   :  { %7538 = vmatprep.mubr.msk.f32.mxu1 %vm8659_vm0, %v8660_v1  ;;  %7944 = vmatpush3.bf16.msra.mxu1 %v9573_v11 }
0x4f3e   :  { %7945 = vmatprep.subr.bf16.mxu1 %v8658_v0 }
0x4f3f   :  { %v4333_v44 = vpop.permute.xlu1 %4332 }
0x4f40   :  { %v4355_v25 = vsel %vm330_vm7, %v4329_v62, %v4333_v44 }
0x4f41   :  { %7947 = vmatpush3.bf16.msra.mxu1 %v9576_v24  ;;  %v4356_v15 = vsel %vm173_vm5, %v4355_v25, %v4337_v5  ;;  %v6858_v25 = vld [vmem:[#allocation6 + $0x1a0] ss:$0 sm:$0xff] }
0x4f42   :  { %7948 = vmatprep.subr.bf16.mxu1 %v8658_v0 }
0x4f43   :  { %v4341_v58 = vpop.permute.xlu1 %4340 }
0x4f44   :  { %v4358_v48 = vsel %vm4357_vm12, %v4356_v15, %v4341_v58 }
0x4f45   :  { %7950 = vmatpush3.bf16.msra.mxu1 %v9580_v17  ;;  %v4360_v14 = vsel %vm4359_vm13, %v4358_v48, %v4345_v7 }
0x4f46   :  { %7951 = vmatprep.subr.bf16.mxu1 %v8658_v0 }
0x4f47   :  { %v4349_v40 = vpop.permute.xlu1 %4348 }
0x4f48   :  { %v4362_v52 = vsel %vm4361_vm14, %v4360_v14, %v4349_v40 }
0x4f49   :  { %7953 = vmatpush3.bf16.msra.mxu1 %v9584_v46 }
0x4f4a   :  { %7954 = vmatprep.subr.bf16.mxu1 %v8658_v0 }
0x4f4b   :  { %v4398_v60 = vpop.permute.xlu1 %4397 }
0x4f4c   :  { %8138 = vpush %v4398_v60 }
0x4f4d   :  { %7956 = vmatpush3.bf16.msra.mxu1 %v9589_v36 }
0x4f4e   :  { %7957 = vmatprep.subr.bf16.mxu1 %v8658_v0 }
0x4f51   :  { %7959 = vmatpush3.bf16.msra.mxu1 %v9593_v41 }
0x4f52   :  { %7960 = vmatprep.subr.bf16.mxu1 %v8658_v0 }
0x4f55   :  { %7962 = vmatpush3.bf16.msra.mxu1 %v9596_v51 }
0x4f7d   :  { %s8139_s28 = spop %8138 }
0x4f7e   :  { %v9612_v4 = vstv %s8139_s28 }
0x500f   :  { %v4323_v31 = vpop.f32.mrb[44].mxu1 }
0x5010   :  { %4352 = vrot.lane.b32.xlu0 %v4323_v31, %s8666_s11  ;;  %v7509_v16 = vpop.f32.mrb[45].mxu1 }
0x5082   :  { %v4353_v10 = vpop.permute.xlu0 %4352 }
0x5083   :  { %v4364_v26 = vsel %vm4363_vm15, %v4362_v52, %v4353_v10 }
0x5084   :  { %v9607_v56 = vadd.f32 %v6856_v22, %v4364_v26 }
0x5086   :  { %8452 = vtanh.f32 %v9607_v56 }
0x5090   :  { %v8453_v13 = vpop.eup %8452 }
0x5091   :  { %7539 = vmatmul.mubr.msk.f32.vlgmr.msra.gmra.mrb[46].mxu1 %vm4402_vm1, %v8453_v13 }
0x5092   :  { %5053 = vmatprep.mubr.f32.mxu1 %v8660_v1 }
0x5164   :  { %v4472_v8 = vpop.f32.mrb[46].mxu1 }
0x5165   :  { %v4473_v59 = vadd.f32 %v4472_v8, %v9612_v4  ;;  %v7540_v2 = vpop.f32.mrb[47].mxu1 }
0x5167   :  { %v4477_v61 = vsel %vm4476_vm2, %v4473_v59, -inf }
0x5168   :  { %4478 = vmax.xlane.f32.xlu0 %v4477_v61 }
0x51f5   :  { %v4479_v34 = vpop.xlane.xlu0 %4478 }
0x51f6   :  { %v4480_v50 = vsub.f32 %v4473_v59, %v4479_v34 }
0x51f8   :  { %v4481_v27 = vmul.f32 1.442695, %v4480_v50  ;;  %v9643_v50 = vrot.slane %v9601_v54, %v8821_v42 }
0x51fa   :  { %8454 = vpow2.f32 %v4481_v27 }
0x5204   :  { %v8455_v45 = vpop.eup %8454 }
0x5205   :  { %v4483_v30 = vsel %vm4476_vm2, %v8455_v45, 0.0 }
0x5206   :  { %4484 = vadd.xlane.f32.xlu1 %v4483_v30 }
0x5293   :  { %v4485_v19 = vpop.xlane.xlu1 %4484 }
0x5294   :  { %8456 = vrcp.f32 %v4485_v19 }
0x529e   :  { %v8457_v23 = vpop.eup %8456 }
0x529f   :  { %v4487_v57 = vmul.f32 %v8457_v23, %v8455_v45 }
0x52a1   :  { %4505 = vperm.xlu1 %8237, %v4487_v57   ;;  %4495 = vperm.xlu0 %8234, %v4487_v57  }
0x52a5   :  { %8239 = vset.pattern.permute.xlu1 %v8681_v9  ;;  %8238 = vset.pattern.permute.xlu0 %v8665_v39 }
0x52a6   :  { %4525 = vperm.xlu1 %8239, %v4487_v57   ;;  %4515 = vperm.xlu0 %8238, %v4487_v57  }
0x52aa   :  { %8240 = vset.pattern.permute.xlu1 %v8682_v3  ;;  %8241 = vset.pattern.permute.xlu0 %v8683_v6 }
0x52ab   :  { %4535 = vperm.xlu1 %8240, %v4487_v57   ;;  %4545 = vperm.xlu0 %8241, %v4487_v57  }
0x52af   :  { %8242 = vset.pattern.permute.xlu1 %v8663_v33  ;;  %8243 = vset.pattern.permute.xlu0 %v8663_v33 }
0x52b0   :  { %4490 = vperm.xlu1 %8242, %v4487_v57  }
0x52b4   :  { %8244 = vset.pattern.permute.xlu1 %v8664_v38 }
0x5320   :  { %v4506_v12 = vpop.permute.xlu1 %4505  ;;  %v4496_v29 = vpop.permute.xlu0 %4495 }
0x5321   :  { %v4508_v28 = vmul.f32 %v4506_v12, %v9347_v55  ;;  %v4498_v47 = vmul.f32 %v4496_v29, %v9293_v53  ;;  %v9655_v12 = vld [vmem:[#allocation6 + $0x190] ss:$0 sm:$0xff]  ;;  %v9657_v29 = vld [vmem:[#allocation6 + $0x198] ss:$0 sm:$0xff] }
0x5323   :  { %4510 = vrot.lane.b32.xlu0 %v4508_v28, %s8666_s11  ;;  %4500 = vrot.lane.b32.xlu1 %v4498_v47, %s8666_s11 }
0x5325   :  { %v4526_v49 = vpop.permute.xlu1 %4525  ;;  %v4516_v63 = vpop.permute.xlu0 %4515 }
0x5326   :  { %v4528_v31 = vmul.f32 %v4526_v49, %v9457_v37  ;;  %v4518_v16 = vmul.f32 %v4516_v63, %v9402_v18 }
0x5328   :  { %4530 = vrot.lane.b32.xlu0 %v4528_v31, %s8666_s11  ;;  %4520 = vrot.lane.b32.xlu1 %v4518_v16, %s8666_s11 }
0x532a   :  { %v4536_v62 = vpop.permute.xlu1 %4535  ;;  %v4546_v44 = vpop.permute.xlu0 %4545 }
0x532b   :  { %v4538_v5 = vmul.f32 %v4536_v62, %v9513_v20  ;;  %v4548_v58 = vmul.f32 %v4546_v44, %v9560_v35 }
0x532d   :  { %4540 = vrot.lane.b32.xlu1 %v4538_v5, %s8666_s11  ;;  %4550 = vrot.lane.b32.xlu0 %v4548_v58, %s8666_s11 }
0x532f   :  { %v4491_v15 = vpop.permute.xlu1 %4490 }
0x5330   :  { %v4493_v7 = vmul.f32 %v4491_v15, %v9232_v43 }
0x5331   :  { %4559 = vrot.lane.b32.xlu1 %v6858_v25, %s8671_s16 }
0x5395   :  { %v4501_v48 = vpop.permute.xlu1 %4500  ;;  %v4511_v40 = vpop.permute.xlu0 %4510 }
0x5396   :  { %v4503_v14 = vadd.f32 %v4501_v48, %v4493_v7  ;;  %v4372_v48 = vld [vmem:[#allocation7 + $0x8] sm:$0xff] }
0x5398   :  { %v4513_v22 = vadd.f32 %v4511_v40, %v4503_v14  ;;  %v4374_v40 = vld [vmem:[#allocation7 + $0x18] sm:$0xff]  ;;  %v4371_v14 = vld [vmem:[#allocation7] sm:$0xff] }
0x539a   :  { %v4521_v52 = vpop.permute.xlu1 %4520  ;;  %v4531_v26 = vpop.permute.xlu0 %4530 }
0x539b   :  { %v4523_v10 = vadd.f32 %v4521_v52, %v4513_v22  ;;  %v9663_v22 = vpack.c.bf16 %v4374_v40, %v4372_v48  ;;  %v4373_v52 = vld [vmem:[#allocation7 + $0x10] sm:$0xff] }
0x539d   :  { %v4533_v60 = vadd.f32 %v4531_v26, %v4523_v10  ;;  %v9665_v10 = vpack.c.bf16 %v4373_v52, %v4371_v14  ;;  %7964 = vmatprep.subr.bf16.mxu0 %v9663_v22  ;;  %7992 = vmatprep.subr.bf16.mxu1 %v9663_v22 }
0x539f   :  { %v4541_v13 = vpop.permute.xlu1 %4540  ;;  %v4551_v59 = vpop.permute.xlu0 %4550  ;;  %7966 = vmatpush1.bf16.msra.mxu0 %v9665_v10  ;;  %7994 = vmatpush1.bf16.msra.mxu1 %v9665_v10 }
0x53a0   :  { %v4543_v8 = vadd.f32 %v4541_v13, %v4533_v60  ;;  %7967 = vmatprep.subr.bf16.mxu0 %v8658_v0  ;;  %7995 = vmatprep.subr.bf16.mxu1 %v8658_v0 }
0x53a2   :  { %v4553_v2 = vadd.f32 %v4551_v59, %v4543_v8  ;;  %v4375_v8 = vld [vmem:[#allocation6 + $0xf8] sm:$0xff]  ;;  %v4376_v59 = vld [vmem:[#allocation6 + $0x100] sm:$0xff] }
0x53a3   :  { %v9638_v61 = vpop.permute.xlu1 %4559 }
0x53a4   :  { %v4562_v34 = vmul.f32 %v9638_v61, %v4553_v2  ;;  %v9676_v2 = vpack.c.bf16 %v4376_v59, %v4375_v8 }
0x53a6   :  { %4564 = vrot.lane.b32.xlu0 %v4562_v34, %s8668_s13 }
0x53aa   :  { %4575 = vrot.lane.b32.xlu0 %v9643_v50, %s8686_s29 }
0x53ae   :  { %4580 = vrot.lane.b32.xlu0 %v9643_v50, %s8670_s15 }
0x5418   :  { %v4565_v27 = vpop.permute.xlu0 %4564 }
0x5419   :  { %v4567_v45 = vsel %vm330_vm7, %v4565_v27, 0.0 }
0x541a   :  { %4568 = vadd.xlane.f32.xlu1 %v4567_v45 }
0x541c   :  { %v9650_v30 = vpop.permute.xlu0 %4575 }
0x541d   :  { %v4578_v19 = vmul.f32 %v9461_v21, %v9650_v30 }
0x5420   :  { %v4581_v42 = vpop.permute.xlu0 %4580 }
0x54a7   :  { %v4569_v23 = vpop.xlane.xlu1 %4568 }
0x54a8   :  { %v4579_v54 = vadd.f32 %v4578_v19, %v4569_v23 }
0x54aa   :  { %v4583_v57 = vadd.f32 %v4581_v42, %v4579_v54 }
0x54ac   :  { %4586 = vperm.xlu0 %8243, %v4583_v57  }
0x54b0   :  { %8248 = vset.pattern.permute.xlu0 %v8682_v3 }
0x552b   :  { %v4587_v28 = vpop.permute.xlu0 %4586 }
0x552c   :  { %v4593_v47 = vmul.f32 %v9655_v12, %v4587_v28 }
0x552e   :  { %v4598_v49 = vadd.f32 %v9657_v29, %v4593_v47 }
0x5530   :  { %8458 = vtanh.f32 %v4598_v49  ;;  %v4599_v31 = vmul.f32 0.5, %v4598_v49 }
0x5532   :  { %8460 = vtanh.f32 %v4599_v31 }
0x553a   :  { %v8459_v63 = vpop.eup %8458 }
0x553b   :  { %4606 = vrot.lane.b32.xlu0 %v8459_v63, %s8666_s11 }
0x553c   :  { %v8461_v16 = vpop.eup %8460 }
0x553d   :  { %v4601_v62 = vadd.f32 1.0, %v8461_v16 }
0x553f   :  { %v4602_v44 = vmul.f32 0.5, %v4601_v62 }
0x5541   :  { %v4604_v25 = vmul.f32 0.0, %v4602_v44 }
0x55ad   :  { %v4607_v5 = vpop.permute.xlu0 %4606 }
0x55ae   :  { %v4609_v58 = vmul.f32 %v4607_v5, %v4602_v44 }
0x55b0   :  { %4611 = vrot.lane.b32.xlu0 %v4609_v58, %s8657_s9 }
0x5622   :  { %v4612_v15 = vpop.permute.xlu0 %4611 }
0x5623   :  { %v4614_v7 = vadd.f32 %v4612_v15, %v4604_v25 }
0x5625   :  { %8462 = vtanh.f32 %v4614_v7 }
0x562f   :  { %v8463_v26 = vpop.eup %8462 }
0x5630   :  { %4617 = vrot.lane.b32.xlu0 %v8463_v26, %s8667_s12 }
0x56a2   :  { %v4618_v60 = vpop.permute.xlu0 %4617 }
0x56a3   :  { %v4620_v13 = vmul.f32 %v4618_v60, %v4602_v44 }
0x56a5   :  { %4622 = vrot.lane.b32.xlu0 %v4620_v13, %s8668_s13 }
0x56a9   :  { %4699 = vrot.lane.b32.xlu0 %v4614_v7, %s8669_s14 }
0x5717   :  { %v4623_v34 = vpop.permute.xlu0 %4622 }
0x5718   :  { %6861 = vmatmul.mubr.msk.f32.vlgmr.msra.gmra.mrb[34].mxu0 %vm330_vm7, %v4623_v34 }
0x5719   :  { %7969 = vmatpush3.bf16.msra.mxu0 %v9676_v2  ;;  %7545 = vmatprep.mubr.msk.f32.mxu0 %vm8659_vm0, %v8660_v1 }
0x571a   :  { %7970 = vmatprep.subr.bf16.mxu0 %v8658_v0 }
0x571b   :  { %v9683_v27 = vpop.permute.xlu0 %4699 }
0x571c   :  { %7546 = vmatmul.mubr.msk.f32.vlgmr.msra.gmra.mrb[36].mxu0 %vm330_vm7, %v9683_v27 }
0x571d   :  { %7972 = vmatpush3.bf16.msra.mxu0 %v9573_v11  ;;  %7576 = vmatprep.mubr.msk.f32.mxu0 %vm8659_vm0, %v8660_v1 }
0x571e   :  { %7973 = vmatprep.subr.bf16.mxu0 %v8658_v0 }
0x5721   :  { %7975 = vmatpush3.bf16.msra.mxu0 %v9576_v24 }
0x5722   :  { %7976 = vmatprep.subr.bf16.mxu0 %v8658_v0 }
0x5725   :  { %7978 = vmatpush3.bf16.msra.mxu0 %v9580_v17 }
0x5726   :  { %7979 = vmatprep.subr.bf16.mxu0 %v8658_v0 }
0x5729   :  { %7981 = vmatpush3.bf16.msra.mxu0 %v9584_v46 }
0x572a   :  { %7982 = vmatprep.subr.bf16.mxu0 %v8658_v0 }
0x572d   :  { %7984 = vmatpush3.bf16.msra.mxu0 %v9589_v36 }
0x572e   :  { %7985 = vmatprep.subr.bf16.mxu0 %v8658_v0 }
0x5731   :  { %7987 = vmatpush3.bf16.msra.mxu0 %v9593_v41 }
0x5732   :  { %7988 = vmatprep.subr.bf16.mxu0 %v8658_v0 }
0x5735   :  { %7990 = vmatpush3.bf16.msra.mxu0 %v9596_v51 }
0x5736   :  { %8020 = vmatprep.subr.bf16.mxu0 %v9663_v22 }
0x57eb   :  { %v9703_v45 = vpop.f32.mrb[34].mxu0 }
0x57ec   :  { %v9705_v19 = vpop.f32.mrb[35].mxu0  ;;  %v4697_v23 = vadd.f32 %v9703_v45, %v9607_v56 }
0x57ef   :  { %v4769_v42 = vpop.f32.mrb[36].mxu0 }
0x57f0   :  { %v4773_v54 = vadd.f32 %v4769_v42, %v4697_v23  ;;  %v7547_v57 = vpop.f32.mrb[37].mxu0 }
0x57f2   :  { %8464 = vtanh.f32 %v4773_v54 }
0x57fc   :  { %v8465_v28 = vpop.eup %8464 }
0x57fd   :  { %7577 = vmatmul.mubr.msk.f32.vlgmr.msra.gmra.mrb[38].mxu0 %vm4402_vm1, %v8465_v28 }
0x57fe   :  { %8022 = vmatpush1.bf16.msra.mxu0 %v9665_v10  ;;  %5409 = vmatprep.mubr.f32.mxu0 %v8660_v1 }
0x57ff   :  { %8023 = vmatprep.subr.bf16.mxu0 %v8658_v0 }
0x58d0   :  { %v4850_v47 = vpop.f32.mrb[38].mxu0 }
0x58d1   :  { %v4851_v49 = vadd.f32 %v4850_v47, %v9612_v4  ;;  %v7578_v63 = vpop.f32.mrb[39].mxu0 }
0x58d3   :  { %v4854_v31 = vsel %vm4476_vm2, %v4851_v49, -inf }
0x58d4   :  { %4855 = vmax.xlane.f32.xlu1 %v4854_v31 }
0x5961   :  { %v4856_v16 = vpop.xlane.xlu1 %4855 }
0x5962   :  { %v4857_v62 = vsub.f32 %v4851_v49, %v4856_v16 }
0x5964   :  { %v4858_v44 = vmul.f32 1.442695, %v4857_v62 }
0x5966   :  { %8466 = vpow2.f32 %v4858_v44 }
0x5970   :  { %v8467_v5 = vpop.eup %8466 }
0x5971   :  { %v4860_v58 = vsel %vm4476_vm2, %v8467_v5, 0.0 }
0x5972   :  { %4861 = vadd.xlane.f32.xlu0 %v4860_v58 }
0x59ff   :  { %v4862_v25 = vpop.xlane.xlu0 %4861 }
0x5a00   :  { %8468 = vrcp.f32 %v4862_v25 }
0x5a0a   :  { %v8469_v15 = vpop.eup %8468 }
0x5a0b   :  { %v4864_v7 = vmul.f32 %v8469_v15, %v8467_v5 }
0x5a0d   :  { %4912 = vperm.xlu0 %8248, %v4864_v7   ;;  %4872 = vperm.xlu1 %8244, %v4864_v7  }
0x5a11   :  { %8245 = vset.pattern.permute.xlu1 %v8662_v32  ;;  %4939 = vrot.lane.b32.xlu0 %v9643_v50, %s8685_s27 }
0x5a12   :  { %4882 = vperm.xlu1 %8245, %v4864_v7   ;;  %8251 = vset.pattern.permute.xlu0 %v8664_v38 }
0x5a16   :  { %8246 = vset.pattern.permute.xlu1 %v8665_v39 }
0x5a17   :  { %4892 = vperm.xlu1 %8246, %v4864_v7  }
0x5a1b   :  { %8247 = vset.pattern.permute.xlu1 %v8681_v9 }
0x5a1c   :  { %4902 = vperm.xlu1 %8247, %v4864_v7  }
0x5a20   :  { %8249 = vset.pattern.permute.xlu1 %v8683_v6 }
0x5a21   :  { %4922 = vperm.xlu1 %8249, %v4864_v7  }
0x5a25   :  { %8250 = vset.pattern.permute.xlu1 %v8663_v33 }
0x5a26   :  { %4867 = vperm.xlu1 %8250, %v4864_v7  }
0x5a2a   :  { %8252 = vset.pattern.permute.xlu1 %v8662_v32 }
0x5a8c   :  { %v4873_v48 = vpop.permute.xlu1 %4872  ;;  %v4913_v59 = vpop.permute.xlu0 %4912 }
0x5a8d   :  { %v4875_v40 = vmul.f32 %v4873_v48, %v9293_v53  ;;  %v4915_v34 = vmul.f32 %v4913_v59, %v9513_v20 }
0x5a8f   :  { %4877 = vrot.lane.b32.xlu1 %v4875_v40, %s8666_s11 }
0x5a91   :  { %v4883_v14 = vpop.permute.xlu1 %4882 }
0x5a92   :  { %v4885_v52 = vmul.f32 %v4883_v14, %v9347_v55  ;;  %v9741_v14 = vpop.permute.xlu0 %4939 }
0x5a94   :  { %4887 = vrot.lane.b32.xlu1 %v4885_v52, %s8666_s11  ;;  %v4942_v52 = vmul.f32 %v9461_v21, %v9741_v14 }
0x5a96   :  { %v4893_v26 = vpop.permute.xlu1 %4892 }
0x5a97   :  { %v4895_v60 = vmul.f32 %v4893_v26, %v9402_v18 }
0x5a99   :  { %4897 = vrot.lane.b32.xlu1 %v4895_v60, %s8666_s11 }
0x5a9b   :  { %v4903_v13 = vpop.permute.xlu1 %4902 }
0x5a9c   :  { %v4905_v8 = vmul.f32 %v4903_v13, %v9457_v37 }
0x5a9e   :  { %4907 = vrot.lane.b32.xlu1 %v4905_v8, %s8666_s11 }
0x5aa0   :  { %v4923_v23 = vpop.permute.xlu1 %4922 }
0x5aa1   :  { %v4925_v42 = vmul.f32 %v4923_v23, %v9560_v35 }
0x5aa2   :  { %4917 = vrot.lane.b32.xlu1 %v4915_v34, %s8666_s11 }
0x5aa5   :  { %v4868_v54 = vpop.permute.xlu1 %4867 }
0x5aa6   :  { %4927 = vrot.lane.b32.xlu1 %v4925_v42, %s8666_s11  ;;  %v4870_v49 = vmul.f32 %v4868_v54, %v9232_v43 }
0x5b01   :  { %v4878_v57 = vpop.permute.xlu1 %4877 }
0x5b02   :  { %v4880_v63 = vadd.f32 %v4878_v57, %v4870_v49 }
0x5b06   :  { %v4888_v28 = vpop.permute.xlu1 %4887 }
0x5b07   :  { %v4890_v16 = vadd.f32 %v4888_v28, %v4880_v63 }
0x5b0b   :  { %v4898_v47 = vpop.permute.xlu1 %4897 }
0x5b0c   :  { %v4900_v62 = vadd.f32 %v4898_v47, %v4890_v16 }
0x5b10   :  { %v4908_v31 = vpop.permute.xlu1 %4907 }
0x5b11   :  { %v4910_v5 = vadd.f32 %v4908_v31, %v4900_v62 }
0x5b14   :  { %v4918_v44 = vpop.permute.xlu1 %4917 }
0x5b15   :  { %v4920_v58 = vadd.f32 %v4918_v44, %v4910_v5 }
0x5b18   :  { %v4928_v25 = vpop.permute.xlu1 %4927 }
0x5b19   :  { %v4930_v15 = vadd.f32 %v4928_v25, %v4920_v58 }
0x5b1b   :  { %v4931_v7 = vmul.f32 %v4930_v15, %v9638_v61 }
0x5b1d   :  { %4933 = vrot.lane.b32.xlu1 %v4931_v7, %s8668_s13 }
0x5b8f   :  { %v4934_v48 = vpop.permute.xlu1 %4933 }
0x5b90   :  { %v4936_v40 = vsel %vm330_vm7, %v4934_v48, 0.0 }
0x5b91   :  { %4937 = vadd.xlane.f32.xlu1 %v4936_v40 }
0x5c1e   :  { %v4938_v26 = vpop.xlane.xlu1 %4937 }
0x5c1f   :  { %v4943_v60 = vadd.f32 %v4942_v52, %v4938_v26 }
0x5c21   :  { %v4944_v13 = vadd.f32 %v4943_v60, %v9650_v30 }
0x5c23   :  { %4947 = vperm.xlu0 %8251, %v4944_v13  }
0x5c27   :  { %4775 = vrot.lane.b32.xlu0 %v9657_v29, %s8669_s14 }
0x5ca2   :  { %v4948_v8 = vpop.permute.xlu0 %4947 }
0x5ca3   :  { %v4950_v59 = vmul.f32 %v9655_v12, %v4948_v8 }
0x5ca5   :  { %4952 = vrot.lane.b32.xlu0 %v4950_v59, %s8669_s14 }
0x5ca6   :  { %v9750_v34 = vpop.permute.xlu0 %4775 }
0x5ca7   :  { %v4779_v23 = vadd.f32 %v9750_v34, %v9705_v19  ;;  %v4778_v30 = vadd.f32 %v9750_v34, %v9703_v45 }
0x5d17   :  { %v4953_v42 = vpop.permute.xlu0 %4952 }
0x5d18   :  { %v4956_v21 = vadd.f32 %v4953_v42, %v4779_v23  ;;  %v4955_v29 = vadd.f32 %v4953_v42, %v4778_v30 }
0x5d1a   :  { %8470 = vtanh.f32 %v4956_v21  ;;  %v4957_v57 = vmul.f32 0.5, %v4955_v29  ;;  %v4961_v19 = vmul.f32 0.5, %v4956_v21 }
0x5d1c   :  { %8472 = vtanh.f32 %v4957_v57 }
0x5d1d   :  { %8474 = vtanh.f32 %v4961_v19 }
0x5d24   :  { %v8471_v54 = vpop.eup %8470 }
0x5d25   :  { %4969 = vrot.lane.b32.xlu0 %v8471_v54, %s8666_s11 }
0x5d26   :  { %v8473_v28 = vpop.eup %8472 }
0x5d27   :  { %v4959_v47 = vadd.f32 1.0, %v8473_v28  ;;  %v8475_v16 = vpop.eup %8474 }
0x5d28   :  { %v4963_v62 = vadd.f32 1.0, %v8475_v16 }
0x5d29   :  { %v4960_v49 = vmul.f32 0.5, %v4959_v47 }
0x5d2a   :  { %v4964_v44 = vmul.f32 0.5, %v4963_v62 }
0x5d2c   :  { %v4967_v5 = vmul.f32 %v4964_v44, %v9683_v27 }
0x5d97   :  { %v4970_v63 = vpop.permute.xlu0 %4969 }
0x5d98   :  { %v4972_v31 = vmul.f32 %v4970_v63, %v4960_v49 }
0x5d9a   :  { %4974 = vrot.lane.b32.xlu0 %v4972_v31, %s8657_s9 }
0x5e0c   :  { %v4975_v58 = vpop.permute.xlu0 %4974 }
0x5e0d   :  { %v9759_v25 = vadd.f32 %v4975_v58, %v4967_v5 }
0x5e0f   :  { %8476 = vtanh.f32 %v9759_v25 }
0x5e19   :  { %v8477_v45 = vpop.eup %8476 }
0x5e1a   :  { %4980 = vrot.lane.b32.xlu0 %v8477_v45, %s8667_s12 }
0x5e8c   :  { %v4981_v15 = vpop.permute.xlu0 %4980 }
0x5e8d   :  { %v4983_v7 = vmul.f32 %v4981_v15, %v4964_v44 }
0x5e8f   :  { %4985 = vrot.lane.b32.xlu1 %v4983_v7, %s8666_s11 }
0x5f01   :  { %v4986_v48 = vpop.permute.xlu1 %4985 }
0x5f02   :  { %6864 = vmatmul.mubr.msk.f32.vlgmr.msra.gmra.mrb[48].mxu1 %vm330_vm7, %v4986_v48 }
0x5f03   :  { %7997 = vmatpush3.bf16.msra.mxu1 %v9676_v2  ;;  %7583 = vmatprep.mubr.msk.f32.mxu1 %vm8659_vm0, %v8660_v1 }
0x5f04   :  { %7998 = vmatprep.subr.bf16.mxu1 %v8658_v0 }
0x5f06   :  { %7584 = vmatmul.mubr.msk.f32.vlgmr.msra.gmra.mrb[50].mxu1 %vm330_vm7, %v9759_v25 }
0x5f07   :  { %8000 = vmatpush3.bf16.msra.mxu1 %v9573_v11  ;;  %7614 = vmatprep.mubr.msk.f32.mxu1 %vm8659_vm0, %v8660_v1 }
0x5f08   :  { %8001 = vmatprep.subr.bf16.mxu1 %v8658_v0 }
0x5f0b   :  { %8003 = vmatpush3.bf16.msra.mxu1 %v9576_v24 }
0x5f0c   :  { %8004 = vmatprep.subr.bf16.mxu1 %v8658_v0 }
0x5f0f   :  { %8006 = vmatpush3.bf16.msra.mxu1 %v9580_v17 }
0x5f10   :  { %8007 = vmatprep.subr.bf16.mxu1 %v8658_v0 }
0x5f13   :  { %8009 = vmatpush3.bf16.msra.mxu1 %v9584_v46 }
0x5f14   :  { %8010 = vmatprep.subr.bf16.mxu1 %v8658_v0 }
0x5f17   :  { %8012 = vmatpush3.bf16.msra.mxu1 %v9589_v36 }
0x5f18   :  { %8013 = vmatprep.subr.bf16.mxu1 %v8658_v0 }
0x5f1b   :  { %8015 = vmatpush3.bf16.msra.mxu1 %v9593_v41 }
0x5f1c   :  { %8016 = vmatprep.subr.bf16.mxu1 %v8658_v0 }
0x5f1f   :  { %8018 = vmatpush3.bf16.msra.mxu1 %v9596_v51 }
0x5f20   :  { %8048 = vmatprep.subr.bf16.mxu1 %v9663_v22 }
0x5fd5   :  { %v9787_v27 = vpop.f32.mrb[48].mxu1 }
0x5fd6   :  { %v9789_v40 = vpop.f32.mrb[49].mxu1  ;;  %v5060_v52 = vadd.f32 %v9787_v27, %v9607_v56 }
0x5fd9   :  { %v5130_v26 = vpop.f32.mrb[50].mxu1 }
0x5fda   :  { %v5134_v60 = vadd.f32 %v5130_v26, %v5060_v52  ;;  %v7585_v13 = vpop.f32.mrb[51].mxu1 }
0x5fdc   :  { %8478 = vtanh.f32 %v5134_v60 }
0x5fe6   :  { %v8479_v8 = vpop.eup %8478 }
0x5fe7   :  { %7615 = vmatmul.mubr.msk.f32.vlgmr.msra.gmra.mrb[52].mxu1 %vm4402_vm1, %v8479_v8 }
0x5fe8   :  { %8050 = vmatpush1.bf16.msra.mxu1 %v9665_v10  ;;  %5762 = vmatprep.mubr.f32.mxu1 %v8660_v1 }
0x5fe9   :  { %8051 = vmatprep.subr.bf16.mxu1 %v8658_v0 }
0x60ba   :  { %v5207_v59 = vpop.f32.mrb[52].mxu1 }
0x60bb   :  { %v5208_v23 = vadd.f32 %v5207_v59, %v9612_v4  ;;  %v7616_v42 = vpop.f32.mrb[53].mxu1 }
0x60bd   :  { %v5211_v21 = vsel %vm4476_vm2, %v5208_v23, -inf }
0x60be   :  { %5212 = vmax.xlane.f32.xlu0 %v5211_v21 }
0x614b   :  { %v5213_v54 = vpop.xlane.xlu0 %5212 }
0x614c   :  { %v5214_v30 = vsub.f32 %v5208_v23, %v5213_v54 }
0x614e   :  { %v5215_v29 = vmul.f32 1.442695, %v5214_v30 }
0x6150   :  { %8480 = vpow2.f32 %v5215_v29 }
0x615a   :  { %v8481_v57 = vpop.eup %8480 }
0x615b   :  { %v5217_v28 = vsel %vm4476_vm2, %v8481_v57, 0.0 }
0x615c   :  { %5218 = vadd.xlane.f32.xlu1 %v5217_v28 }
0x61e9   :  { %v5219_v47 = vpop.xlane.xlu1 %5218 }
0x61ea   :  { %8482 = vrcp.f32 %v5219_v47 }
0x61f4   :  { %v8483_v49 = vpop.eup %8482 }
0x61f5   :  { %v5221_v63 = vmul.f32 %v8483_v49, %v8481_v57 }
0x61f7   :  { %5239 = vperm.xlu1 %8252, %v5221_v63   ;;  %5229 = vperm.xlu0 %8251, %v5221_v63  }
0x61fb   :  { %8255 = vset.pattern.permute.xlu1 %v8682_v3  ;;  %8253 = vset.pattern.permute.xlu0 %v8665_v39 }
0x61fc   :  { %5269 = vperm.xlu1 %8255, %v5221_v63   ;;  %5249 = vperm.xlu0 %8253, %v5221_v63  }
0x6200   :  { %8257 = vset.pattern.permute.xlu1 %v8663_v33  ;;  %8254 = vset.pattern.permute.xlu0 %v8681_v9 }
0x6201   :  { %5224 = vperm.xlu1 %8257, %v5221_v63   ;;  %5259 = vperm.xlu0 %8254, %v5221_v63  }
0x6205   :  { %8256 = vset.pattern.permute.xlu0 %v8683_v6  ;;  %8258 = vset.pattern.permute.xlu1 %v8662_v32 }
0x6206   :  { %5279 = vperm.xlu0 %8256, %v5221_v63  }
0x620a   :  { %8259 = vset.pattern.permute.xlu0 %v8664_v38 }
0x6276   :  { %v5240_v31 = vpop.permute.xlu1 %5239  ;;  %v5230_v19 = vpop.permute.xlu0 %5229 }
0x6277   :  { %v5242_v16 = vmul.f32 %v5240_v31, %v9347_v55  ;;  %v5232_v62 = vmul.f32 %v5230_v19, %v9293_v53 }
0x6279   :  { %5244 = vrot.lane.b32.xlu0 %v5242_v16, %s8666_s11  ;;  %5234 = vrot.lane.b32.xlu1 %v5232_v62, %s8666_s11  ;;  %v9827_v16 = vld [vmem:[#allocation4] sm:$0xff] }
0x627b   :  { %v5250_v44 = vpop.permute.xlu0 %5249  ;;  %v5270_v58 = vpop.permute.xlu1 %5269 }
0x627c   :  { %v5252_v5 = vmul.f32 %v5250_v44, %v9402_v18  ;;  %v5272_v45 = vmul.f32 %v5270_v58, %v9513_v20 }
0x627e   :  { %5254 = vrot.lane.b32.xlu1 %v5252_v5, %s8666_s11 }
0x6280   :  { %v5260_v15 = vpop.permute.xlu0 %5259  ;;  %v5225_v26 = vpop.permute.xlu1 %5224 }
0x6281   :  { %v5262_v7 = vmul.f32 %v5260_v15, %v9457_v37  ;;  %v5227_v60 = vmul.f32 %v5225_v26, %v9232_v43 }
0x6282   :  { %5274 = vrot.lane.b32.xlu1 %v5272_v45, %s8666_s11 }
0x6283   :  { %5264 = vrot.lane.b32.xlu0 %v5262_v7, %s8666_s11  ;;  %v5136_v7 = vadd.f32 %v9789_v40, %v9750_v34 }
0x6285   :  { %v5280_v48 = vpop.permute.xlu0 %5279 }
0x6286   :  { %v5282_v52 = vmul.f32 %v5280_v48, %v9560_v35 }
0x6288   :  { %5284 = vrot.lane.b32.xlu0 %v5282_v52, %s8666_s11 }
0x62eb   :  { %v5235_v13 = vpop.permute.xlu1 %5234  ;;  %v5245_v59 = vpop.permute.xlu0 %5244 }
0x62ec   :  { %v5237_v8 = vadd.f32 %v5235_v13, %v5227_v60  ;;  %v5135_v60 = vadd.f32 %v9787_v27, %v9750_v34 }
0x62ee   :  { %v5247_v23 = vadd.f32 %v5245_v59, %v5237_v8 }
0x62f0   :  { %v5255_v42 = vpop.permute.xlu1 %5254 }
0x62f1   :  { %v5257_v21 = vadd.f32 %v5255_v42, %v5247_v23 }
0x62f4   :  { %v5275_v29 = vpop.permute.xlu1 %5274 }
0x62f5   :  { %v5265_v54 = vpop.permute.xlu0 %5264 }
0x62f6   :  { %v5267_v30 = vadd.f32 %v5265_v54, %v5257_v21 }
0x62f8   :  { %v5277_v57 = vadd.f32 %v5275_v29, %v5267_v30 }
0x62fa   :  { %v5285_v28 = vpop.permute.xlu0 %5284 }
0x62fb   :  { %v5287_v47 = vadd.f32 %v5285_v28, %v5277_v57 }
0x62fd   :  { %v5288_v49 = vmul.f32 %v5287_v47, %v9638_v61 }
0x62ff   :  { %5290 = vrot.lane.b32.xlu1 %v5288_v49, %s8668_s13 }
0x6303   :  { %5296 = vrot.lane.b32.xlu1 %v9643_v50, %s8680_s24 }
0x6371   :  { %v5291_v63 = vpop.permute.xlu1 %5290 }
0x6372   :  { %v5293_v31 = vsel %vm330_vm7, %v5291_v63, 0.0 }
0x6373   :  { %5294 = vadd.xlane.f32.xlu0 %v5293_v31 }
0x6375   :  { %v9825_v19 = vpop.permute.xlu1 %5296 }
0x6376   :  { %v5299_v62 = vmul.f32 %v9827_v16, %v9825_v19 }
0x6400   :  { %v5295_v44 = vpop.xlane.xlu0 %5294 }
0x6401   :  { %v5300_v5 = vadd.f32 %v5299_v62, %v5295_v44 }
0x6403   :  { %v5301_v58 = vadd.f32 %v5300_v5, %v9741_v14 }
0x6405   :  { %5304 = vperm.xlu1 %8258, %v5301_v58  }
0x6484   :  { %v5305_v45 = vpop.permute.xlu1 %5304 }
0x6485   :  { %v5307_v15 = vmul.f32 %v9655_v12, %v5305_v45 }
0x6487   :  { %5309 = vrot.lane.b32.xlu1 %v5307_v15, %s8669_s14 }
0x64f9   :  { %v5310_v48 = vpop.permute.xlu1 %5309 }
0x64fa   :  { %v5313_v52 = vadd.f32 %v5310_v48, %v5136_v7  ;;  %v5312_v13 = vadd.f32 %v5310_v48, %v5135_v60 }
0x64fc   :  { %8484 = vtanh.f32 %v5313_v52  ;;  %v5314_v14 = vmul.f32 0.5, %v5312_v13  ;;  %v5318_v40 = vmul.f32 0.5, %v5313_v52 }
0x64fe   :  { %8486 = vtanh.f32 %v5314_v14 }
0x64ff   :  { %8488 = vtanh.f32 %v5318_v40 }
0x6506   :  { %v8485_v26 = vpop.eup %8484 }
0x6507   :  { %5325 = vrot.lane.b32.xlu1 %v8485_v26, %s8666_s11 }
0x6508   :  { %v8487_v8 = vpop.eup %8486 }
0x6509   :  { %v5316_v59 = vadd.f32 1.0, %v8487_v8  ;;  %v8489_v54 = vpop.eup %8488 }
0x650a   :  { %v5320_v30 = vadd.f32 1.0, %v8489_v54 }
0x650b   :  { %v5317_v23 = vmul.f32 0.5, %v5316_v59 }
0x650c   :  { %v5321_v29 = vmul.f32 0.5, %v5320_v30 }
0x650e   :  { %v5323_v57 = vmul.f32 %v5321_v29, %v9759_v25 }
0x6579   :  { %v5326_v42 = vpop.permute.xlu1 %5325 }
0x657a   :  { %v5328_v21 = vmul.f32 %v5326_v42, %v5317_v23 }
0x657c   :  { %5330 = vrot.lane.b32.xlu1 %v5328_v21, %s8657_s9 }
0x65ee   :  { %v5331_v28 = vpop.permute.xlu1 %5330 }
0x65ef   :  { %v9841_v47 = vadd.f32 %v5331_v28, %v5323_v57 }
0x65f1   :  { %8490 = vtanh.f32 %v9841_v47 }
0x65fb   :  { %v8491_v27 = vpop.eup %8490 }
0x65fc   :  { %5336 = vrot.lane.b32.xlu1 %v8491_v27, %s8667_s12 }
0x666e   :  { %v5337_v49 = vpop.permute.xlu1 %5336 }
0x666f   :  { %v5339_v63 = vmul.f32 %v5337_v49, %v5321_v29 }
0x6671   :  { %5341 = vrot.lane.b32.xlu1 %v5339_v63, %s8666_s11 }
0x66e3   :  { %v5342_v31 = vpop.permute.xlu1 %5341 }
0x66e4   :  { %6867 = vmatmul.mubr.msk.f32.vlgmr.msra.gmra.mrb[40].mxu0 %vm330_vm7, %v5342_v31 }
0x66e5   :  { %8025 = vmatpush3.bf16.msra.mxu0 %v9676_v2  ;;  %7621 = vmatprep.mubr.msk.f32.mxu0 %vm8659_vm0, %v8660_v1 }
0x66e6   :  { %8026 = vmatprep.subr.bf16.mxu0 %v8658_v0 }
0x66e8   :  { %7622 = vmatmul.mubr.msk.f32.vlgmr.msra.gmra.mrb[42].mxu0 %vm330_vm7, %v9841_v47 }
0x66e9   :  { %8028 = vmatpush3.bf16.msra.mxu0 %v9573_v11  ;;  %7652 = vmatprep.mubr.msk.f32.mxu0 %vm8659_vm0, %v8660_v1 }
0x66ea   :  { %8029 = vmatprep.subr.bf16.mxu0 %v8658_v0 }
0x66ed   :  { %8031 = vmatpush3.bf16.msra.mxu0 %v9576_v24 }
0x66ee   :  { %8032 = vmatprep.subr.bf16.mxu0 %v8658_v0 }
0x66f1   :  { %8034 = vmatpush3.bf16.msra.mxu0 %v9580_v17 }
0x66f2   :  { %8035 = vmatprep.subr.bf16.mxu0 %v8658_v0 }
0x66f5   :  { %8037 = vmatpush3.bf16.msra.mxu0 %v9584_v46 }
0x66f6   :  { %8038 = vmatprep.subr.bf16.mxu0 %v8658_v0 }
0x66f9   :  { %8040 = vmatpush3.bf16.msra.mxu0 %v9589_v36 }
0x66fa   :  { %8041 = vmatprep.subr.bf16.mxu0 %v8658_v0 }
0x66fd   :  { %8043 = vmatpush3.bf16.msra.mxu0 %v9593_v41 }
0x66fe   :  { %8044 = vmatprep.subr.bf16.mxu0 %v8658_v0 }
0x6701   :  { %8046 = vmatpush3.bf16.msra.mxu0 %v9596_v51 }
0x6702   :  { %8076 = vmatprep.subr.bf16.mxu0 %v9663_v22 }
0x67b7   :  { %v9869_v25 = vpop.f32.mrb[40].mxu0 }
0x67b8   :  { %v9871_v62 = vpop.f32.mrb[41].mxu0  ;;  %v5416_v44 = vadd.f32 %v9869_v25, %v9607_v56 }
0x67bb   :  { %v5486_v5 = vpop.f32.mrb[42].mxu0 }
0x67bc   :  { %v5490_v58 = vadd.f32 %v5486_v5, %v5416_v44  ;;  %v7623_v45 = vpop.f32.mrb[43].mxu0 }
0x67be   :  { %8492 = vtanh.f32 %v5490_v58 }
0x67c8   :  { %v8493_v15 = vpop.eup %8492 }
0x67c9   :  { %7653 = vmatmul.mubr.msk.f32.vlgmr.msra.gmra.mrb[44].mxu0 %vm4402_vm1, %v8493_v15 }
0x67ca   :  { %8078 = vmatpush1.bf16.msra.mxu0 %v9665_v10  ;;  %6118 = vmatprep.mubr.f32.mxu0 %v8660_v1 }
0x67cb   :  { %8079 = vmatprep.subr.bf16.mxu0 %v8658_v0 }
0x689c   :  { %v5563_v7 = vpop.f32.mrb[44].mxu0 }
0x689d   :  { %v5564_v48 = vadd.f32 %v5563_v7, %v9612_v4  ;;  %v7654_v52 = vpop.f32.mrb[45].mxu0 }
0x689f   :  { %v5567_v26 = vsel %vm4476_vm2, %v5564_v48, -inf }
0x68a0   :  { %5568 = vmax.xlane.f32.xlu1 %v5567_v26 }
0x692d   :  { %v5569_v60 = vpop.xlane.xlu1 %5568 }
0x692e   :  { %v5570_v13 = vsub.f32 %v5564_v48, %v5569_v60 }
0x6930   :  { %v5571_v14 = vmul.f32 1.442695, %v5570_v13 }
0x6932   :  { %8494 = vpow2.f32 %v5571_v14 }
0x693c   :  { %v8495_v8 = vpop.eup %8494 }
0x693d   :  { %v5573_v59 = vsel %vm4476_vm2, %v8495_v8, 0.0 }
0x693e   :  { %5574 = vadd.xlane.f32.xlu0 %v5573_v59 }
0x69cb   :  { %v5575_v23 = vpop.xlane.xlu0 %5574 }
0x69cc   :  { %8496 = vrcp.f32 %v5575_v23 }
0x69d6   :  { %v8497_v42 = vpop.eup %8496 }
0x69d7   :  { %v5577_v21 = vmul.f32 %v8497_v42, %v8495_v8 }
0x69d9   :  { %5595 = vperm.xlu1 %8258, %v5577_v21   ;;  %5585 = vperm.xlu0 %8259, %v5577_v21  }
0x69dd   :  { %8261 = vset.pattern.permute.xlu1 %v8681_v9  ;;  %8260 = vset.pattern.permute.xlu0 %v8665_v39 }
0x69de   :  { %5615 = vperm.xlu1 %8261, %v5577_v21   ;;  %5605 = vperm.xlu0 %8260, %v5577_v21  }
0x69e2   :  { %8262 = vset.pattern.permute.xlu1 %v8682_v3  ;;  %8263 = vset.pattern.permute.xlu0 %v8683_v6 }
0x69e3   :  { %5625 = vperm.xlu1 %8262, %v5577_v21   ;;  %5635 = vperm.xlu0 %8263, %v5577_v21  }
0x69e7   :  { %8264 = vset.pattern.permute.xlu1 %v8663_v33  ;;  %8266 = vset.pattern.permute.xlu0 %v8664_v38 }
0x69e8   :  { %5580 = vperm.xlu1 %8264, %v5577_v21  }
0x69ec   :  { %8265 = vset.pattern.permute.xlu1 %v8665_v39 }
0x6a58   :  { %v5596_v40 = vpop.permute.xlu1 %5595  ;;  %v5586_v54 = vpop.permute.xlu0 %5585 }
0x6a59   :  { %v5598_v30 = vmul.f32 %v5596_v40, %v9347_v55  ;;  %v5588_v29 = vmul.f32 %v5586_v54, %v9293_v53 }
0x6a5b   :  { %5600 = vrot.lane.b32.xlu0 %v5598_v30, %s8666_s11  ;;  %5590 = vrot.lane.b32.xlu1 %v5588_v29, %s8666_s11  ;;  %v5652_v30 = vmul.f32 %v9827_v16, %v9643_v50 }
0x6a5d   :  { %v5616_v57 = vpop.permute.xlu1 %5615  ;;  %v5606_v28 = vpop.permute.xlu0 %5605 }
0x6a5e   :  { %v5618_v27 = vmul.f32 %v5616_v57, %v9457_v37  ;;  %v5608_v49 = vmul.f32 %v5606_v28, %v9402_v18 }
0x6a60   :  { %5620 = vrot.lane.b32.xlu0 %v5618_v27, %s8666_s11  ;;  %5610 = vrot.lane.b32.xlu1 %v5608_v49, %s8666_s11 }
0x6a62   :  { %v5626_v63 = vpop.permute.xlu1 %5625  ;;  %v5636_v31 = vpop.permute.xlu0 %5635 }
0x6a63   :  { %v5628_v44 = vmul.f32 %v5626_v63, %v9513_v20  ;;  %v5638_v5 = vmul.f32 %v5636_v31, %v9560_v35  ;;  %v5492_v63 = vadd.f32 %v9871_v62, %v9750_v34 }
0x6a65   :  { %5630 = vrot.lane.b32.xlu1 %v5628_v44, %s8666_s11  ;;  %5640 = vrot.lane.b32.xlu0 %v5638_v5, %s8666_s11 }
0x6a67   :  { %v5581_v58 = vpop.permute.xlu1 %5580 }
0x6a68   :  { %v5583_v45 = vmul.f32 %v5581_v58, %v9232_v43 }
0x6acd   :  { %v5591_v15 = vpop.permute.xlu1 %5590  ;;  %v5601_v7 = vpop.permute.xlu0 %5600 }
0x6ace   :  { %v5593_v48 = vadd.f32 %v5591_v15, %v5583_v45 }
0x6ad0   :  { %v5603_v52 = vadd.f32 %v5601_v7, %v5593_v48 }
0x6ad2   :  { %v5611_v26 = vpop.permute.xlu1 %5610  ;;  %v5621_v13 = vpop.permute.xlu0 %5620 }
0x6ad3   :  { %v5613_v60 = vadd.f32 %v5611_v26, %v5603_v52 }
0x6ad5   :  { %v5623_v14 = vadd.f32 %v5621_v13, %v5613_v60 }
0x6ad7   :  { %v5631_v8 = vpop.permute.xlu1 %5630  ;;  %v5641_v23 = vpop.permute.xlu0 %5640 }
0x6ad8   :  { %v5633_v59 = vadd.f32 %v5631_v8, %v5623_v14 }
0x6ada   :  { %v5643_v42 = vadd.f32 %v5641_v23, %v5633_v59 }
0x6adc   :  { %v5644_v21 = vmul.f32 %v5643_v42, %v9638_v61 }
0x6ade   :  { %5646 = vrot.lane.b32.xlu1 %v5644_v21, %s8668_s13 }
0x6b50   :  { %v5647_v40 = vpop.permute.xlu1 %5646 }
0x6b51   :  { %v5649_v54 = vsel %vm330_vm7, %v5647_v40, 0.0 }
0x6b52   :  { %5650 = vadd.xlane.f32.xlu0 %v5649_v54 }
0x6bdf   :  { %v5651_v29 = vpop.xlane.xlu0 %5650 }
0x6be0   :  { %v5653_v57 = vadd.f32 %v5652_v30, %v5651_v29 }
0x6be2   :  { %v5654_v28 = vadd.f32 %v5653_v57, %v9825_v19  ;;  %v5491_v19 = vadd.f32 %v9869_v25, %v9750_v34 }
0x6be4   :  { %5657 = vperm.xlu1 %8265, %v5654_v28  }
0x6be8   :  { %8267 = vset.pattern.permute.xlu1 %v8662_v32 }
0x6c63   :  { %v5658_v27 = vpop.permute.xlu1 %5657 }
0x6c64   :  { %v5660_v49 = vmul.f32 %v9655_v12, %v5658_v27 }
0x6c66   :  { %5662 = vrot.lane.b32.xlu1 %v5660_v49, %s8669_s14 }
0x6cd8   :  { %v5663_v31 = vpop.permute.xlu1 %5662 }
0x6cd9   :  { %v5666_v44 = vadd.f32 %v5663_v31, %v5492_v63  ;;  %v5665_v58 = vadd.f32 %v5663_v31, %v5491_v19 }
0x6cdb   :  { %8498 = vtanh.f32 %v5666_v44  ;;  %v5667_v45 = vmul.f32 0.5, %v5665_v58  ;;  %v5671_v62 = vmul.f32 0.5, %v5666_v44 }
0x6cdd   :  { %8500 = vtanh.f32 %v5667_v45 }
0x6cde   :  { %8502 = vtanh.f32 %v5671_v62 }
0x6ce5   :  { %v8499_v5 = vpop.eup %8498 }
0x6ce6   :  { %5678 = vrot.lane.b32.xlu1 %v8499_v5, %s8666_s11 }
0x6ce7   :  { %v8501_v15 = vpop.eup %8500 }
0x6ce8   :  { %v5669_v7 = vadd.f32 1.0, %v8501_v15  ;;  %v8503_v26 = vpop.eup %8502 }
0x6ce9   :  { %v5673_v60 = vadd.f32 1.0, %v8503_v26 }
0x6cea   :  { %v5670_v12 = vmul.f32 0.5, %v5669_v7 }
0x6ceb   :  { %v5674_v13 = vmul.f32 0.5, %v5673_v60 }
0x6ced   :  { %v5676_v14 = vmul.f32 %v5674_v13, %v9841_v47 }
0x6d58   :  { %v5679_v48 = vpop.permute.xlu1 %5678 }
0x6d59   :  { %v5681_v52 = vmul.f32 %v5679_v48, %v5670_v12 }
0x6d5b   :  { %5683 = vrot.lane.b32.xlu1 %v5681_v52, %s8657_s9 }
0x6dcd   :  { %v5684_v8 = vpop.permute.xlu1 %5683 }
0x6dce   :  { %v9918_v59 = vadd.f32 %v5684_v8, %v5676_v14 }
0x6dd0   :  { %8504 = vtanh.f32 %v9918_v59 }
0x6dda   :  { %v8505_v25 = vpop.eup %8504 }
0x6ddb   :  { %5689 = vrot.lane.b32.xlu1 %v8505_v25, %s8667_s12 }
0x6e4d   :  { %v5690_v23 = vpop.permute.xlu1 %5689 }
0x6e4e   :  { %v5692_v42 = vmul.f32 %v5690_v23, %v5674_v13 }
0x6e50   :  { %5694 = vrot.lane.b32.xlu1 %v5692_v42, %s8666_s11 }
0x6ec2   :  { %v5695_v21 = vpop.permute.xlu1 %5694 }
0x6ec3   :  { %6870 = vmatmul.mubr.msk.f32.vlgmr.msra.gmra.mrb[54].mxu1 %vm330_vm7, %v5695_v21 }
0x6ec4   :  { %8053 = vmatpush3.bf16.msra.mxu1 %v9676_v2  ;;  %7659 = vmatprep.mubr.msk.f32.mxu1 %vm8659_vm0, %v8660_v1 }
0x6ec5   :  { %8054 = vmatprep.subr.bf16.mxu1 %v8658_v0 }
0x6ec7   :  { %7660 = vmatmul.mubr.msk.f32.vlgmr.msra.gmra.mrb[56].mxu1 %vm330_vm7, %v9918_v59 }
0x6ec8   :  { %8056 = vmatpush3.bf16.msra.mxu1 %v9573_v11  ;;  %7690 = vmatprep.mubr.msk.f32.mxu1 %vm8659_vm0, %v8660_v1 }
0x6ec9   :  { %8057 = vmatprep.subr.bf16.mxu1 %v8658_v0 }
0x6ecc   :  { %8059 = vmatpush3.bf16.msra.mxu1 %v9576_v24 }
0x6ecd   :  { %8060 = vmatprep.subr.bf16.mxu1 %v8658_v0 }
0x6ed0   :  { %8062 = vmatpush3.bf16.msra.mxu1 %v9580_v17 }
0x6ed1   :  { %8063 = vmatprep.subr.bf16.mxu1 %v8658_v0 }
0x6ed4   :  { %8065 = vmatpush3.bf16.msra.mxu1 %v9584_v46 }
0x6ed5   :  { %8066 = vmatprep.subr.bf16.mxu1 %v8658_v0 }
0x6ed8   :  { %8068 = vmatpush3.bf16.msra.mxu1 %v9589_v36 }
0x6ed9   :  { %8069 = vmatprep.subr.bf16.mxu1 %v8658_v0 }
0x6edc   :  { %8071 = vmatpush3.bf16.msra.mxu1 %v9593_v41 }
0x6edd   :  { %8072 = vmatprep.subr.bf16.mxu1 %v8658_v0 }
0x6ee0   :  { %8074 = vmatpush3.bf16.msra.mxu1 %v9596_v51 }
0x6ee1   :  { %8104 = vmatprep.subr.bf16.mxu1 %v9663_v22 }
0x6f96   :  { %v9946_v47 = vpop.f32.mrb[54].mxu1 }
0x6f97   :  { %v9948_v40 = vpop.f32.mrb[55].mxu1  ;;  %v5769_v54 = vadd.f32 %v9946_v47, %v9607_v56 }
0x6f9a   :  { %v5839_v30 = vpop.f32.mrb[56].mxu1 }
0x6f9b   :  { %v5843_v29 = vadd.f32 %v5839_v30, %v5769_v54  ;;  %v7661_v57 = vpop.f32.mrb[57].mxu1 }
0x6f9d   :  { %8506 = vtanh.f32 %v5843_v29 }
0x6fa7   :  { %v8507_v28 = vpop.eup %8506 }
0x6fa8   :  { %7691 = vmatmul.mubr.msk.f32.vlgmr.msra.gmra.mrb[58].mxu1 %vm4402_vm1, %v8507_v28 }
0x6fa9   :  { %8106 = vmatpush1.bf16.msra.mxu1 %v9665_v10  ;;  %6474 = vmatprep.mubr.f32.mxu1 %v8660_v1 }
0x6faa   :  { %8107 = vmatprep.subr.bf16.mxu1 %v8658_v0 }
0x707b   :  { %v5916_v22 = vpop.f32.mrb[58].mxu1 }
0x707c   :  { %v5917_v27 = vadd.f32 %v5916_v22, %v9612_v4  ;;  %v7692_v49 = vpop.f32.mrb[59].mxu1 }
0x707e   :  { %v5920_v63 = vsel %vm4476_vm2, %v5917_v27, -inf }
0x707f   :  { %5921 = vmax.xlane.f32.xlu1 %v5920_v63 }
0x710c   :  { %v5922_v31 = vpop.xlane.xlu1 %5921 }
0x710d   :  { %v5923_v44 = vsub.f32 %v5917_v27, %v5922_v31 }
0x710f   :  { %v5924_v5 = vmul.f32 1.442695, %v5923_v44 }
0x7111   :  { %8508 = vpow2.f32 %v5924_v5 }
0x711b   :  { %v8509_v19 = vpop.eup %8508 }
0x711c   :  { %v5926_v58 = vsel %vm4476_vm2, %v8509_v19, 0.0 }
0x711d   :  { %5927 = vadd.xlane.f32.xlu0 %v5926_v58 }
0x71aa   :  { %v5928_v10 = vpop.xlane.xlu0 %5927 }
0x71ab   :  { %8510 = vrcp.f32 %v5928_v10 }
0x71b5   :  { %v8511_v45 = vpop.eup %8510 }
0x71b6   :  { %v5930_v15 = vmul.f32 %v8511_v45, %v8509_v19 }
0x71b8   :  { %5948 = vperm.xlu1 %8267, %v5930_v15   ;;  %5938 = vperm.xlu0 %8266, %v5930_v15  }
0x71bc   :  { %8269 = vset.pattern.permute.xlu1 %v8681_v9  ;;  %8268 = vset.pattern.permute.xlu0 %v8665_v39 }
0x71bd   :  { %5968 = vperm.xlu1 %8269, %v5930_v15   ;;  %5958 = vperm.xlu0 %8268, %v5930_v15  }
0x71c1   :  { %8270 = vset.pattern.permute.xlu1 %v8682_v3  ;;  %8271 = vset.pattern.permute.xlu0 %v8683_v6 }
0x71c2   :  { %5978 = vperm.xlu1 %8270, %v5930_v15   ;;  %5988 = vperm.xlu0 %8271, %v5930_v15  }
0x71c6   :  { %8272 = vset.pattern.permute.xlu1 %v8663_v33  ;;  %8274 = vset.pattern.permute.xlu0 %v8664_v38 }
0x71c7   :  { %5933 = vperm.xlu1 %8272, %v5930_v15  }
0x71cb   :  { %8273 = vset.pattern.permute.xlu1 %v8681_v9 }
0x7237   :  { %v5949_v7 = vpop.permute.xlu1 %5948  ;;  %v5939_v12 = vpop.permute.xlu0 %5938 }
0x7238   :  { %v5951_v48 = vmul.f32 %v5949_v7, %v9347_v55  ;;  %v5941_v52 = vmul.f32 %v5939_v12, %v9293_v53 }
0x723a   :  { %5953 = vrot.lane.b32.xlu0 %v5951_v48, %s8666_s11  ;;  %5943 = vrot.lane.b32.xlu1 %v5941_v52, %s8666_s11 }
0x723c   :  { %v5969_v62 = vpop.permute.xlu1 %5968  ;;  %v5959_v26 = vpop.permute.xlu0 %5958 }
0x723d   :  { %v5971_v60 = vmul.f32 %v5969_v62, %v9457_v37  ;;  %v5961_v13 = vmul.f32 %v5959_v26, %v9402_v18  ;;  %v9989_v62 = vld [vmem:[#allocation6 + $0x190] ss:$0 sm:$0xff] }
0x723f   :  { %5973 = vrot.lane.b32.xlu0 %v5971_v60, %s8666_s11  ;;  %5963 = vrot.lane.b32.xlu1 %v5961_v13, %s8666_s11  ;;  %v5845_v60 = vadd.f32 %v9948_v40, %v9750_v34 }
0x7241   :  { %v5979_v14 = vpop.permute.xlu1 %5978  ;;  %v5989_v8 = vpop.permute.xlu0 %5988 }
0x7242   :  { %v5981_v25 = vmul.f32 %v5979_v14, %v9513_v20  ;;  %v5991_v23 = vmul.f32 %v5989_v8, %v9560_v35 }
0x7244   :  { %5983 = vrot.lane.b32.xlu1 %v5981_v25, %s8666_s11  ;;  %5993 = vrot.lane.b32.xlu0 %v5991_v23, %s8666_s11  ;;  %v5844_v25 = vadd.f32 %v9946_v47, %v9750_v34 }
0x7246   :  { %v5934_v42 = vpop.permute.xlu1 %5933 }
0x7247   :  { %v5936_v21 = vmul.f32 %v5934_v42, %v9232_v43 }
0x72ac   :  { %v5944_v54 = vpop.permute.xlu1 %5943  ;;  %v5954_v30 = vpop.permute.xlu0 %5953 }
0x72ad   :  { %v5946_v29 = vadd.f32 %v5944_v54, %v5936_v21 }
0x72af   :  { %v5956_v57 = vadd.f32 %v5954_v30, %v5946_v29 }
0x72b1   :  { %v5964_v28 = vpop.permute.xlu1 %5963  ;;  %v5974_v27 = vpop.permute.xlu0 %5973 }
0x72b2   :  { %v5966_v22 = vadd.f32 %v5964_v28, %v5956_v57 }
0x72b4   :  { %v5976_v49 = vadd.f32 %v5974_v27, %v5966_v22 }
0x72b6   :  { %v5984_v63 = vpop.permute.xlu1 %5983  ;;  %v5994_v44 = vpop.permute.xlu0 %5993 }
0x72b7   :  { %v5986_v31 = vadd.f32 %v5984_v63, %v5976_v49 }
0x72b9   :  { %v5996_v5 = vadd.f32 %v5994_v44, %v5986_v31 }
0x72bb   :  { %v5997_v19 = vmul.f32 %v5996_v5, %v9638_v61 }
0x72bd   :  { %5999 = vrot.lane.b32.xlu1 %v5997_v19, %s8668_s13 }
0x72c1   :  { %6005 = vrot.lane.b32.xlu1 %v9643_v50, %s8687_s30 }
0x732f   :  { %v6000_v58 = vpop.permute.xlu1 %5999 }
0x7330   :  { %v6002_v10 = vsel %vm330_vm7, %v6000_v58, 0.0 }
0x7331   :  { %6003 = vadd.xlane.f32.xlu0 %v6002_v10 }
0x7333   :  { %v9983_v45 = vpop.permute.xlu1 %6005 }
0x7334   :  { %v6008_v15 = vmul.f32 %v9827_v16, %v9983_v45 }
0x73be   :  { %v6004_v7 = vpop.xlane.xlu0 %6003 }
0x73bf   :  { %v6009_v12 = vadd.f32 %v6008_v15, %v6004_v7 }
0x73c1   :  { %v6010_v48 = vadd.f32 %v6009_v12, %v9643_v50 }
0x73c3   :  { %6013 = vperm.xlu1 %8273, %v6010_v48  }
0x73c7   :  { %8275 = vset.pattern.permute.xlu1 %v8662_v32 }
0x7442   :  { %v6014_v52 = vpop.permute.xlu1 %6013 }
0x7443   :  { %v6016_v26 = vmul.f32 %v9989_v62, %v6014_v52 }
0x7445   :  { %6018 = vrot.lane.b32.xlu1 %v6016_v26, %s8669_s14 }
0x74b7   :  { %v6019_v13 = vpop.permute.xlu1 %6018 }
0x74b8   :  { %v6022_v14 = vadd.f32 %v6019_v13, %v5845_v60  ;;  %v6021_v23 = vadd.f32 %v6019_v13, %v5844_v25 }
0x74ba   :  { %8512 = vtanh.f32 %v6022_v14  ;;  %v6023_v42 = vmul.f32 0.5, %v6021_v23  ;;  %v6027_v40 = vmul.f32 0.5, %v6022_v14 }
0x74bc   :  { %8514 = vtanh.f32 %v6023_v42 }
0x74bd   :  { %8516 = vtanh.f32 %v6027_v40 }
0x74c4   :  { %v8513_v8 = vpop.eup %8512 }
0x74c5   :  { %6034 = vrot.lane.b32.xlu1 %v8513_v8, %s8666_s11 }
0x74c6   :  { %v8515_v21 = vpop.eup %8514 }
0x74c7   :  { %v6025_v54 = vadd.f32 1.0, %v8515_v21  ;;  %v8517_v28 = vpop.eup %8516 }
0x74c8   :  { %v6029_v22 = vadd.f32 1.0, %v8517_v28 }
0x74c9   :  { %v6026_v30 = vmul.f32 0.5, %v6025_v54 }
0x74ca   :  { %v6030_v27 = vmul.f32 0.5, %v6029_v22 }
0x74cc   :  { %v6032_v49 = vmul.f32 %v6030_v27, %v9918_v59 }
0x7537   :  { %v6035_v29 = vpop.permute.xlu1 %6034 }
0x7538   :  { %v6037_v57 = vmul.f32 %v6035_v29, %v6026_v30 }
0x753a   :  { %6039 = vrot.lane.b32.xlu1 %v6037_v57, %s8657_s9 }
0x75ac   :  { %v6040_v63 = vpop.permute.xlu1 %6039 }
0x75ad   :  { %v10000_v31 = vadd.f32 %v6040_v63, %v6032_v49 }
0x75af   :  { %8518 = vtanh.f32 %v10000_v31 }
0x75b9   :  { %v8519_v47 = vpop.eup %8518 }
0x75ba   :  { %6045 = vrot.lane.b32.xlu1 %v8519_v47, %s8667_s12 }
0x762c   :  { %v6046_v44 = vpop.permute.xlu1 %6045 }
0x762d   :  { %v6048_v5 = vmul.f32 %v6046_v44, %v6030_v27 }
0x762f   :  { %6050 = vrot.lane.b32.xlu1 %v6048_v5, %s8666_s11 }
0x76a1   :  { %v6051_v19 = vpop.permute.xlu1 %6050 }
0x76a2   :  { %6873 = vmatmul.mubr.msk.f32.vlgmr.msra.gmra.mrb[46].mxu0 %vm330_vm7, %v6051_v19 }
0x76a3   :  { %8081 = vmatpush3.bf16.msra.mxu0 %v9676_v2  ;;  %7697 = vmatprep.mubr.msk.f32.mxu0 %vm8659_vm0, %v8660_v1 }
0x76a4   :  { %8082 = vmatprep.subr.bf16.mxu0 %v8658_v0 }
0x76a6   :  { %7698 = vmatmul.mubr.msk.f32.vlgmr.msra.gmra.mrb[48].mxu0 %vm330_vm7, %v10000_v31 }
0x76a7   :  { %8084 = vmatpush3.bf16.msra.mxu0 %v9573_v11  ;;  %7728 = vmatprep.mubr.msk.f32.mxu0 %vm8659_vm0, %v8660_v1 }
0x76a8   :  { %8085 = vmatprep.subr.bf16.mxu0 %v8658_v0 }
0x76ab   :  { %8087 = vmatpush3.bf16.msra.mxu0 %v9576_v24 }
0x76ac   :  { %8088 = vmatprep.subr.bf16.mxu0 %v8658_v0 }
0x76af   :  { %8090 = vmatpush3.bf16.msra.mxu0 %v9580_v17 }
0x76b0   :  { %8091 = vmatprep.subr.bf16.mxu0 %v8658_v0 }
0x76b3   :  { %8093 = vmatpush3.bf16.msra.mxu0 %v9584_v46 }
0x76b4   :  { %8094 = vmatprep.subr.bf16.mxu0 %v8658_v0 }
0x76b7   :  { %8096 = vmatpush3.bf16.msra.mxu0 %v9589_v36 }
0x76b8   :  { %8097 = vmatprep.subr.bf16.mxu0 %v8658_v0 }
0x76bb   :  { %8099 = vmatpush3.bf16.msra.mxu0 %v9593_v41 }
0x76bc   :  { %8100 = vmatprep.subr.bf16.mxu0 %v8658_v0 }
0x76bf   :  { %8102 = vmatpush3.bf16.msra.mxu0 %v9596_v51 }
0x7775   :  { %v10027_v59 = vpop.f32.mrb[46].mxu0 }
0x7776   :  { %v10029_v58 = vpop.f32.mrb[47].mxu0  ;;  %v6125_v10 = vadd.f32 %v10027_v59, %v9607_v56 }
0x7779   :  { %v6195_v15 = vpop.f32.mrb[48].mxu0 }
0x777a   :  { %v6199_v7 = vadd.f32 %v6195_v15, %v6125_v10  ;;  %v7699_v12 = vpop.f32.mrb[49].mxu0 }
0x777c   :  { %8520 = vtanh.f32 %v6199_v7 }
0x7786   :  { %v8521_v48 = vpop.eup %8520 }
0x7787   :  { %7729 = vmatmul.mubr.msk.f32.vlgmr.msra.gmra.mrb[50].mxu0 %vm4402_vm1, %v8521_v48 }
0x785a   :  { %v6272_v52 = vpop.f32.mrb[50].mxu0 }
0x785b   :  { %v6273_v26 = vadd.f32 %v6272_v52, %v9612_v4  ;;  %v7730_v60 = vpop.f32.mrb[51].mxu0 }
0x785d   :  { %v6276_v13 = vsel %vm4476_vm2, %v6273_v26, -inf }
0x785e   :  { %6277 = vmax.xlane.f32.xlu1 %v6276_v13 }
0x78eb   :  { %v6278_v14 = vpop.xlane.xlu1 %6277 }
0x78ec   :  { %v6279_v8 = vsub.f32 %v6273_v26, %v6278_v14 }
0x78ee   :  { %v6280_v25 = vmul.f32 1.442695, %v6279_v8 }
0x78f0   :  { %8522 = vpow2.f32 %v6280_v25 }
0x78fa   :  { %v8523_v23 = vpop.eup %8522 }
0x78fb   :  { %v6282_v42 = vsel %vm4476_vm2, %v8523_v23, 0.0 }
0x78fc   :  { %6283 = vadd.xlane.f32.xlu0 %v6282_v42 }
0x7989   :  { %v6284_v21 = vpop.xlane.xlu0 %6283 }
0x798a   :  { %8524 = vrcp.f32 %v6284_v21 }
0x7994   :  { %v8525_v54 = vpop.eup %8524 }
0x7995   :  { %v6286_v30 = vmul.f32 %v8525_v54, %v8523_v23 }
0x7997   :  { %6304 = vperm.xlu1 %8275, %v6286_v30   ;;  %6294 = vperm.xlu0 %8274, %v6286_v30  }
0x799b   :  { %8277 = vset.pattern.permute.xlu1 %v8681_v9  ;;  %8276 = vset.pattern.permute.xlu0 %v8665_v39 }
0x799c   :  { %6324 = vperm.xlu1 %8277, %v6286_v30   ;;  %6314 = vperm.xlu0 %8276, %v6286_v30  }
0x79a0   :  { %8278 = vset.pattern.permute.xlu1 %v8682_v3  ;;  %8279 = vset.pattern.permute.xlu0 %v8683_v6 }
0x79a1   :  { %6334 = vperm.xlu1 %8278, %v6286_v30   ;;  %6344 = vperm.xlu0 %8279, %v6286_v30  }
0x79a5   :  { %8280 = vset.pattern.permute.xlu1 %v8663_v33  ;;  %8282 = vset.pattern.permute.xlu0 %v8664_v38 }
0x79a6   :  { %6289 = vperm.xlu1 %8280, %v6286_v30  }
0x79aa   :  { %8281 = vset.pattern.permute.xlu1 %v8682_v3 }
0x7a16   :  { %v6305_v29 = vpop.permute.xlu1 %6304  ;;  %v6295_v57 = vpop.permute.xlu0 %6294 }
0x7a17   :  { %v6307_v40 = vmul.f32 %v6305_v29, %v9347_v55  ;;  %v6297_v28 = vmul.f32 %v6295_v57, %v9293_v53 }
0x7a19   :  { %6309 = vrot.lane.b32.xlu0 %v6307_v40, %s8666_s11  ;;  %6299 = vrot.lane.b32.xlu1 %v6297_v28, %s8666_s11 }
0x7a1b   :  { %v6325_v22 = vpop.permute.xlu1 %6324  ;;  %v6315_v27 = vpop.permute.xlu0 %6314 }
0x7a1c   :  { %v6327_v49 = vmul.f32 %v6325_v22, %v9457_v37  ;;  %v6317_v63 = vmul.f32 %v6315_v27, %v9402_v18 }
0x7a1e   :  { %6329 = vrot.lane.b32.xlu0 %v6327_v49, %s8666_s11  ;;  %6319 = vrot.lane.b32.xlu1 %v6317_v63, %s8666_s11  ;;  %v6201_v49 = vadd.f32 %v10029_v58, %v9750_v34 }
0x7a20   :  { %v6335_v38 = vpop.permute.xlu1 %6334  ;;  %v6345_v47 = vpop.permute.xlu0 %6344 }
0x7a21   :  { %v6337_v44 = vmul.f32 %v6335_v38, %v9513_v20  ;;  %v6347_v5 = vmul.f32 %v6345_v47, %v9560_v35 }
0x7a23   :  { %6339 = vrot.lane.b32.xlu1 %v6337_v44, %s8666_s11  ;;  %6349 = vrot.lane.b32.xlu0 %v6347_v5, %s8666_s11 }
0x7a25   :  { %v6290_v19 = vpop.permute.xlu1 %6289 }
0x7a26   :  { %v6292_v10 = vmul.f32 %v6290_v19, %v9232_v43 }
0x7a8b   :  { %v6300_v15 = vpop.permute.xlu1 %6299  ;;  %v6310_v7 = vpop.permute.xlu0 %6309 }
0x7a8c   :  { %v6302_v12 = vadd.f32 %v6300_v15, %v6292_v10 }
0x7a8e   :  { %v6312_v48 = vadd.f32 %v6310_v7, %v6302_v12 }
0x7a90   :  { %v6320_v52 = vpop.permute.xlu1 %6319  ;;  %v6330_v60 = vpop.permute.xlu0 %6329 }
0x7a91   :  { %v6322_v26 = vadd.f32 %v6320_v52, %v6312_v48 }
0x7a93   :  { %v6332_v13 = vadd.f32 %v6330_v60, %v6322_v26 }
0x7a95   :  { %v6340_v14 = vpop.permute.xlu1 %6339  ;;  %v6350_v25 = vpop.permute.xlu0 %6349 }
0x7a96   :  { %v6342_v8 = vadd.f32 %v6340_v14, %v6332_v13 }
0x7a98   :  { %v6352_v23 = vadd.f32 %v6350_v25, %v6342_v8 }
0x7a9a   :  { %v6353_v42 = vmul.f32 %v6352_v23, %v9638_v61 }
0x7a9c   :  { %6355 = vrot.lane.b32.xlu1 %v6353_v42, %s8668_s13 }
0x7aa0   :  { %6361 = vrot.lane.b32.xlu1 %v9643_v50, %s8688_s5 }
0x7b0e   :  { %v6356_v21 = vpop.permute.xlu1 %6355 }
0x7b0f   :  { %v6358_v54 = vsel %vm330_vm7, %v6356_v21, 0.0 }
0x7b10   :  { %6359 = vadd.xlane.f32.xlu0 %v6358_v54 }
0x7b12   :  { %v10061_v30 = vpop.permute.xlu1 %6361 }
0x7b13   :  { %v6364_v29 = vmul.f32 %v9827_v16, %v10061_v30  ;;  %v6200_v16 = vadd.f32 %v10027_v59, %v9750_v34 }
0x7b9d   :  { %v6360_v57 = vpop.xlane.xlu0 %6359 }
0x7b9e   :  { %v6365_v40 = vadd.f32 %v6364_v29, %v6360_v57 }
0x7ba0   :  { %v6366_v28 = vadd.f32 %v6365_v40, %v9983_v45 }
0x7ba2   :  { %6369 = vperm.xlu1 %8281, %v6366_v28  }
0x7ba6   :  { %8283 = vset.pattern.permute.xlu1 %v8662_v32 }
0x7c21   :  { %v6370_v22 = vpop.permute.xlu1 %6369 }
0x7c22   :  { %v6372_v27 = vmul.f32 %v9989_v62, %v6370_v22 }
0x7c24   :  { %6374 = vrot.lane.b32.xlu1 %v6372_v27, %s8669_s14 }
0x7c96   :  { %v6375_v63 = vpop.permute.xlu1 %6374 }
0x7c97   :  { %v6378_v38 = vadd.f32 %v6375_v63, %v6201_v49  ;;  %v6377_v45 = vadd.f32 %v6375_v63, %v6200_v16 }
0x7c99   :  { %8526 = vtanh.f32 %v6378_v38  ;;  %v6379_v44 = vmul.f32 0.5, %v6377_v45  ;;  %v6383_v58 = vmul.f32 0.5, %v6378_v38 }
0x7c9b   :  { %8528 = vtanh.f32 %v6379_v44 }
0x7c9c   :  { %8530 = vtanh.f32 %v6383_v58 }
0x7ca3   :  { %v8527_v47 = vpop.eup %8526 }
0x7ca4   :  { %6390 = vrot.lane.b32.xlu1 %v8527_v47, %s8666_s11 }
0x7ca5   :  { %v8529_v32 = vpop.eup %8528 }
0x7ca6   :  { %v6381_v5 = vadd.f32 1.0, %v8529_v32  ;;  %v8531_v7 = vpop.eup %8530 }
0x7ca7   :  { %v6385_v12 = vadd.f32 1.0, %v8531_v7  ;;  %v8555_v7 = vld [vmem:[#allocation4] sm:$0xff] }
0x7ca8   :  { %v6382_v19 = vmul.f32 0.5, %v6381_v5 }
0x7ca9   :  { %v6386_v48 = vmul.f32 0.5, %v6385_v12 }
0x7cab   :  { %v6388_v52 = vmul.f32 %v6386_v48, %v10000_v31 }
0x7d16   :  { %v6391_v10 = vpop.permute.xlu1 %6390 }
0x7d17   :  { %v6393_v15 = vmul.f32 %v6391_v10, %v6382_v19 }
0x7d19   :  { %6395 = vrot.lane.b32.xlu1 %v6393_v15, %s8657_s9 }
0x7d8b   :  { %v6396_v26 = vpop.permute.xlu1 %6395 }
0x7d8c   :  { %v10076_v60 = vadd.f32 %v6396_v26, %v6388_v52 }
0x7d8e   :  { %8532 = vtanh.f32 %v10076_v60 }
0x7d98   :  { %v8533_v59 = vpop.eup %8532 }
0x7d99   :  { %6401 = vrot.lane.b32.xlu1 %v8533_v59, %s8667_s12 }
0x7e0b   :  { %v6402_v13 = vpop.permute.xlu1 %6401 }
0x7e0c   :  { %v6404_v14 = vmul.f32 %v6402_v13, %v6386_v48 }
0x7e0e   :  { %6406 = vrot.lane.b32.xlu1 %v6404_v14, %s8666_s11 }
0x7e80   :  { %v6407_v8 = vpop.permute.xlu1 %6406 }
0x7e81   :  { %6876 = vmatmul.mubr.msk.f32.vlgmr.msra.gmra.mrb[60].mxu1 %vm330_vm7, %v6407_v8 }
0x7e82   :  { %8109 = vmatpush3.bf16.msra.mxu1 %v9676_v2  ;;  %7735 = vmatprep.mubr.msk.f32.mxu1 %vm8659_vm0, %v8660_v1 }
0x7e83   :  { %8110 = vmatprep.subr.bf16.mxu1 %v8658_v0 }
0x7e85   :  { %7736 = vmatmul.mubr.msk.f32.vlgmr.msra.gmra.mrb[62].mxu1 %vm330_vm7, %v10076_v60 }
0x7e86   :  { %8112 = vmatpush3.bf16.msra.mxu1 %v9573_v11  ;;  %7766 = vmatprep.mubr.msk.f32.mxu1 %vm8659_vm0, %v8660_v1  ;;  %vm6799_vm0 = vcmask 7168  }
0x7e87   :  { %8113 = vmatprep.subr.bf16.mxu1 %v8658_v0 }
0x7e8a   :  { %8115 = vmatpush3.bf16.msra.mxu1 %v9576_v24 }
0x7e8b   :  { %8116 = vmatprep.subr.bf16.mxu1 %v8658_v0 }
0x7e8e   :  { %8118 = vmatpush3.bf16.msra.mxu1 %v9580_v17 }
0x7e8f   :  { %8119 = vmatprep.subr.bf16.mxu1 %v8658_v0 }
0x7e92   :  { %8121 = vmatpush3.bf16.msra.mxu1 %v9584_v46 }
0x7e93   :  { %8122 = vmatprep.subr.bf16.mxu1 %v8658_v0 }
0x7e96   :  { %8124 = vmatpush3.bf16.msra.mxu1 %v9589_v36 }
0x7e97   :  { %8125 = vmatprep.subr.bf16.mxu1 %v8658_v0 }
0x7e9a   :  { %8127 = vmatpush3.bf16.msra.mxu1 %v9593_v41 }
0x7e9b   :  { %8128 = vmatprep.subr.bf16.mxu1 %v8658_v0 }
0x7e9e   :  { %8130 = vmatpush3.bf16.msra.mxu1 %v9596_v51 }
0x7f54   :  { %v10103_v1 = vpop.f32.mrb[60].mxu1 }
0x7f55   :  { %v10105_v11 = vpop.f32.mrb[61].mxu1  ;;  %v6481_v24 = vadd.f32 %v10103_v1, %v9607_v56 }
0x7f56   :  { %v6557_v13 = vadd.f32 %v10105_v11, %v9750_v34  ;;  %v6879_v11 = vld [vmem:[#allocation6 + $0x1a8] ss:$0 sm:$0xff] }
0x7f58   :  { %v6551_v17 = vpop.f32.mrb[62].mxu1 }
0x7f59   :  { %v6555_v46 = vadd.f32 %v6551_v17, %v6481_v24  ;;  %v7737_v2 = vpop.f32.mrb[63].mxu1  ;;  %v6556_v17 = vadd.f32 %v10103_v1, %v9750_v34 }
0x7f5b   :  { %8534 = vtanh.f32 %v6555_v46 }
0x7f65   :  { %v8535_v36 = vpop.eup %8534 }
0x7f66   :  { %7767 = vmatmul.mubr.msk.f32.vlgmr.msra.gmra.mrb[64].mxu1 %vm4402_vm1, %v8535_v36 }
0x8039   :  { %v6628_v31 = vpop.f32.mrb[64].mxu1 }
0x803a   :  { %v6629_v41 = vadd.f32 %v6628_v31, %v9612_v4  ;;  %v7768_v0 = vpop.f32.mrb[65].mxu1 }
0x803c   :  { %v6632_v51 = vsel %vm4476_vm2, %v6629_v41, -inf }
0x803d   :  { %6633 = vmax.xlane.f32.xlu0 %v6632_v51 }
0x80ca   :  { %v6634_v25 = vpop.xlane.xlu0 %6633 }
0x80cb   :  { %v6635_v23 = vsub.f32 %v6629_v41, %v6634_v25 }
0x80cd   :  { %v6636_v42 = vmul.f32 1.442695, %v6635_v23 }
0x80cf   :  { %8536 = vpow2.f32 %v6636_v42 }
0x80d9   :  { %v8537_v21 = vpop.eup %8536 }
0x80da   :  { %v6638_v56 = vsel %vm4476_vm2, %v8537_v21, 0.0 }
0x80db   :  { %6639 = vadd.xlane.f32.xlu1 %v6638_v56  ;;  %v6880_v56 = vld [vmem:[#allocation6 + $0x1b0] ss:$0 sm:$0xff] }
0x8168   :  { %v6640_v54 = vpop.xlane.xlu1 %6639 }
0x8169   :  { %8538 = vrcp.f32 %v6640_v54 }
0x8173   :  { %v8539_v29 = vpop.eup %8538 }
0x8174   :  { %v6642_v57 = vmul.f32 %v8539_v29, %v8537_v21 }
0x8176   :  { %6660 = vperm.xlu1 %8283, %v6642_v57   ;;  %6650 = vperm.xlu0 %8282, %v6642_v57  }
0x817a   :  { %8285 = vset.pattern.permute.xlu1 %v8681_v9  ;;  %8284 = vset.pattern.permute.xlu0 %v8665_v39 }
0x817b   :  { %6680 = vperm.xlu1 %8285, %v6642_v57   ;;  %6670 = vperm.xlu0 %8284, %v6642_v57  }
0x817f   :  { %8287 = vset.pattern.permute.xlu1 %v8683_v6  ;;  %8286 = vset.pattern.permute.xlu0 %v8682_v3 }
0x8180   :  { %6700 = vperm.xlu1 %8287, %v6642_v57   ;;  %6690 = vperm.xlu0 %8286, %v6642_v57  }
0x8184   :  { %8288 = vset.pattern.permute.xlu1 %v8663_v33  ;;  %8289 = vset.pattern.permute.xlu0 %v8683_v6 }
0x8185   :  { %6645 = vperm.xlu1 %8288, %v6642_v57  }
0x81f5   :  { %v6661_v4 = vpop.permute.xlu1 %6660  ;;  %v6651_v40 = vpop.permute.xlu0 %6650 }
0x81f6   :  { %v6663_v28 = vmul.f32 %v6661_v4, %v9347_v55  ;;  %v6653_v9 = vmul.f32 %v6651_v40, %v9293_v53 }
0x81f8   :  { %6665 = vrot.lane.b32.xlu1 %v6663_v28, %s8666_s11  ;;  %6655 = vrot.lane.b32.xlu0 %v6653_v9, %s8666_s11 }
0x81fa   :  { %v6681_v39 = vpop.permute.xlu1 %6680  ;;  %v6671_v22 = vpop.permute.xlu0 %6670 }
0x81fb   :  { %v6683_v3 = vmul.f32 %v6681_v39, %v9457_v37  ;;  %v6673_v27 = vmul.f32 %v6671_v22, %v9402_v18 }
0x81fd   :  { %6685 = vrot.lane.b32.xlu1 %v6683_v3, %s8666_s11  ;;  %6675 = vrot.lane.b32.xlu0 %v6673_v27, %s8666_s11 }
0x81ff   :  { %v6701_v33 = vpop.permute.xlu1 %6700  ;;  %v6691_v6 = vpop.permute.xlu0 %6690 }
0x8200   :  { %v6703_v55 = vmul.f32 %v6701_v33, %v9560_v35  ;;  %v6693_v53 = vmul.f32 %v6691_v6, %v9513_v20 }
0x8202   :  { %6705 = vrot.lane.b32.xlu1 %v6703_v55, %s8666_s11  ;;  %6695 = vrot.lane.b32.xlu0 %v6693_v53, %s8666_s11 }
0x8204   :  { %v6646_v49 = vpop.permute.xlu1 %6645 }
0x8205   :  { %v6648_v63 = vmul.f32 %v6646_v49, %v9232_v43 }
0x826a   :  { %v6666_v37 = vpop.permute.xlu1 %6665  ;;  %v6656_v38 = vpop.permute.xlu0 %6655 }
0x826b   :  { %v6658_v18 = vadd.f32 %v6656_v38, %v6648_v63 }
0x826d   :  { %v6668_v47 = vadd.f32 %v6666_v37, %v6658_v18 }
0x826f   :  { %v6676_v16 = vpop.permute.xlu0 %6675  ;;  %v6686_v45 = vpop.permute.xlu1 %6685 }
0x8270   :  { %v6678_v44 = vadd.f32 %v6676_v16, %v6668_v47 }
0x8272   :  { %v6688_v32 = vadd.f32 %v6686_v45, %v6678_v44 }
0x8274   :  { %v6696_v5 = vpop.permute.xlu0 %6695  ;;  %v6706_v35 = vpop.permute.xlu1 %6705 }
0x8275   :  { %v6698_v19 = vadd.f32 %v6696_v5, %v6688_v32 }
0x8277   :  { %v6708_v10 = vadd.f32 %v6706_v35, %v6698_v19 }
0x8279   :  { %v6709_v20 = vmul.f32 %v6708_v10, %v9638_v61 }
0x827b   :  { %6711 = vrot.lane.b32.xlu0 %v6709_v20, %s8668_s13 }
0x827f   :  { %6717 = vrot.lane.b32.xlu0 %v9643_v50, %s8689_s6 }
0x82ed   :  { %v6712_v43 = vpop.permute.xlu0 %6711 }
0x82ee   :  { %v6714_v15 = vsel %vm330_vm7, %v6712_v43, 0.0 }
0x82ef   :  { %6715 = vadd.xlane.f32.xlu1 %v6714_v15 }
0x82f1   :  { %v6718_v58 = vpop.permute.xlu0 %6717 }
0x82f2   :  { %v6720_v12 = vmul.f32 %v8555_v7, %v6718_v58 }
0x837c   :  { %v6716_v48 = vpop.xlane.xlu1 %6715 }
0x837d   :  { %v6721_v52 = vadd.f32 %v6720_v12, %v6716_v48 }
0x837f   :  { %v6722_v26 = vadd.f32 %v6721_v52, %v10061_v30 }
0x8381   :  { %6725 = vperm.xlu0 %8289, %v6722_v26  }
0x8400   :  { %v6726_v59 = vpop.permute.xlu0 %6725 }
0x8401   :  { %v6728_v61 = vmul.f32 %v9989_v62, %v6726_v59 }
0x8403   :  { %6730 = vrot.lane.b32.xlu0 %v6728_v61, %s8669_s14 }
0x8475   :  { %v6731_v14 = vpop.permute.xlu0 %6730 }
0x8476   :  { %v6734_v8 = vadd.f32 %v6731_v14, %v6557_v13  ;;  %v6733_v46 = vadd.f32 %v6731_v14, %v6556_v17 }
0x8478   :  { %8540 = vtanh.f32 %v6734_v8  ;;  %v6735_v30 = vmul.f32 0.5, %v6733_v46  ;;  %v6739_v0 = vmul.f32 0.5, %v6734_v8 }
0x847a   :  { %8542 = vtanh.f32 %v6735_v30 }
0x847b   :  { %8544 = vtanh.f32 %v6739_v0 }
0x8482   :  { %v8541_v24 = vpop.eup %8540 }
0x8483   :  { %6746 = vrot.lane.b32.xlu0 %v8541_v24, %s8666_s11 }
0x8484   :  { %v8543_v2 = vpop.eup %8542 }
0x8485   :  { %v6737_v36 = vadd.f32 1.0, %v8543_v2  ;;  %v8545_v51 = vpop.eup %8544 }
0x8486   :  { %v6741_v25 = vadd.f32 1.0, %v8545_v51 }
0x8487   :  { %v6738_v62 = vmul.f32 0.5, %v6737_v36 }
0x8488   :  { %v6742_v23 = vmul.f32 0.5, %v6741_v25 }
0x848a   :  { %v6744_v34 = vmul.f32 %v6742_v23, %v10076_v60 }
0x84f5   :  { %v6747_v31 = vpop.permute.xlu0 %6746 }
0x84f6   :  { %v6749_v41 = vmul.f32 %v6747_v31, %v6738_v62 }
0x84f8   :  { %6751 = vrot.lane.b32.xlu0 %v6749_v41, %s8657_s9 }
0x84fc   :  { %6766 = vrot.lane.b32.xlu0 %v6879_v11, %s8667_s12 }
0x856a   :  { %v6752_v1 = vpop.permute.xlu0 %6751 }
0x856b   :  { %v6754_v42 = vadd.f32 %v6752_v1, %v6744_v34 }
0x856d   :  { %8546 = vtanh.f32 %v6754_v42 }
0x856e   :  { %v6767_v54 = vpop.permute.xlu0 %6766 }
0x8577   :  { %v8547_v21 = vpop.eup %8546 }
0x8578   :  { %6757 = vrot.lane.b32.xlu0 %v8547_v21, %s8667_s12 }
0x857c   :  { %6782 = vrot.lane.b32.xlu0 %v6880_v56, %s8671_s16 }
0x85ea   :  { %v6758_v29 = vpop.permute.xlu0 %6757 }
0x85eb   :  { %v6760_v57 = vmul.f32 %v6758_v29, %v6742_v23 }
0x85ed   :  { %v6769_v4 = vmul.f32 %v6767_v54, %v6760_v57 }
0x85ee   :  { %v6783_v40 = vpop.permute.xlu0 %6782 }
0x85ef   :  { %v6785_v28 = vmul.f32 %v6783_v40, %v6708_v10  ;;  %6771 = vrot.lane.b32.xlu1 %v6769_v4, %s8666_s11 }
0x85f1   :  { %6787 = vrot.lane.b32.xlu0 %v6785_v28, %s8668_s13 }
0x8661   :  { %v6772_v60 = vpop.permute.xlu1 %6771 }
0x8662   :  { %v6774_v9 = vsel %vm330_vm7, %v6772_v60, 0.0 }
0x8663   :  { %6775 = vadd.xlane.f32.xlu0 %v6774_v9  ;;  %v6788_v39 = vpop.permute.xlu0 %6787 }
0x8664   :  { %v6790_v22 = vsel %vm330_vm7, %v6788_v39, 0.0 }
0x8665   :  { %6791 = vadd.xlane.f32.xlu1 %v6790_v22 }
0x86f0   :  { %v6776_v3 = vpop.xlane.xlu0 %6775 }
0x86f2   :  { %v6792_v27 = vpop.xlane.xlu1 %6791 }
0x86f3   :  { %v6793_v33 = vadd.f32 %v6792_v27, %v6776_v3 }
0x86f5   :  { %v6794_v6 = vadd.f32 %v6793_v33, %v9643_v50 }
0x86f7   :  { %6796 = vrot.lane.b32.xlu0 %v6794_v6, %s8690_s7 }
0x8769   :  { %v6797_v55 = vpop.permute.xlu0 %6796 }
0x876a   :  { %6800 = vst.msk [vmem:[%s10161_s4] sm:$0xff] %vm6799_vm0, %v6797_v55 }
0x876b   :  { %6805 = vsyncpa [#allocation3], 1 }
0x876c   :  { %6806 = vsyncpa [#allocation5], 1 }
0x876d   :  { %6807 = vsyncpa [#allocation8], 1 }

</bundles_post_ra>
